<compile_context>
chip_gen: v5e
topology: v5e:2x2
jax: 0.10.0
libtpu: 0.0.40
codegen_flags: <defaults>
</compile_context>

<pallas_src>
import math
from functools import partial

import jax
import jax.numpy as jnp
from jax.experimental import pallas as pl
from jax.experimental.pallas import tpu as pltpu


# ------------------------- in-kernel conv helpers -------------------------- #

def _col_masks(H, W):
    """Lane masks (1, H*W): does the left / right horizontal neighbour exist?"""
    HW = H * W
    col = jax.lax.broadcasted_iota(jnp.int32, (1, HW), 1) % W
    return col != 0, col != (W - 1)


def _masked_tap(pad_ref, dy, dx, H, W, m_left, m_right):
    """Shifted (Cin, HW) view of the row-padded activation for 3x3 tap (dy, dx).

    The activation sits at lane offset W+1 inside pad_ref, so tap (dy, dx) of
    output pixel q reads pad_ref[:, dy*W + dx + q].  Out-of-image rows land in
    the zeroed borders; out-of-image columns are masked to zero.
    """
    HW = H * W
    off = dy * W + dx
    tap = pad_ref[:, off:off + HW]
    if dx == 0:
        tap = jnp.where(m_left, tap, 0.0)
    elif dx == 2:
        tap = jnp.where(m_right, tap, 0.0)
    return tap


def _fill_patches(src, pad_ref, patch_ref, H, W):
    """Build the (9*Cin, HW) im2col patch matrix in VMEM scratch (never in HBM)."""
    Cin, HW = src.shape
    pad_ref[:, W + 1:W + 1 + HW] = src
    m_left, m_right = _col_masks(H, W)
    for dy in range(3):
        for dx in range(3):
            t = dy * 3 + dx
            patch_ref[t * Cin:(t + 1) * Cin, :] = _masked_tap(
                pad_ref, dy, dx, H, W, m_left, m_right)


def _avgpool3x3_s1(src, pad_ref, H, W):
    """AvgPool2d(k=3, pad=1, count_include_pad=True) at stride 1, VPU only."""
    Cin, HW = src.shape
    pad_ref[:, W + 1:W + 1 + HW] = src
    m_left, m_right = _col_masks(H, W)
    acc = jnp.zeros_like(src)
    for dy in range(3):
        for dx in range(3):
            acc = acc + _masked_tap(pad_ref, dy, dx, H, W, m_left, m_right)
    return acc * (1.0 / 9.0)


# ------------------------------ Pallas kernels ------------------------------ #

def _conv_kernel(*refs, H, W, relu, has_residual):
    # inputs: x (1, Cin, HW), w (Cout, 9*Cin), scale/bias (Cout, 1)[, res (1, Cout, HW)]
    # output: (1, Cout, HW); scratch: pad (Cin, HW+2W+2), patch (9*Cin, HW)
    if has_residual:
        x_ref, w_ref, s_ref, b_ref, r_ref, o_ref, pad_ref, patch_ref = refs
    else:
        x_ref, w_ref, s_ref, b_ref, o_ref, pad_ref, patch_ref = refs
        r_ref = None
    pad_ref[...] = jnp.zeros(pad_ref.shape, jnp.float32)
    _fill_patches(x_ref[0], pad_ref, patch_ref, H, W)
    y = jnp.dot(w_ref[...], patch_ref[...], preferred_element_type=jnp.float32)
    y = y * s_ref[...] + b_ref[...]
    if has_residual:
        y = y + r_ref[0]
    if relu:
        y = jnp.maximum(y, 0.0)
    o_ref[0] = y


def _resblock_kernel(x_ref, w1_ref, s1_ref, b1_ref, w2_ref, s2_ref, b2_ref,
                     o_ref, pad_ref, patch_ref, *, H, W, pool):
    # Fused ResidualBlock: relu(bn2(conv2(relu(bn1(conv1(x))))) + x)
    # optionally followed by AvgPool2d(3, stride=2, pad=1) computed at stride 1
    # (the wrapper decimates).  The intermediate activation never leaves VMEM.
    pad_ref[...] = jnp.zeros(pad_ref.shape, jnp.float32)
    x = x_ref[0]
    # conv1 + bn1 + relu
    _fill_patches(x, pad_ref, patch_ref, H, W)
    h = jnp.dot(w1_ref[...], patch_ref[...], preferred_element_type=jnp.float32)
    h = jnp.maximum(h * s1_ref[...] + b1_ref[...], 0.0)
    # conv2 + bn2 + residual + relu
    _fill_patches(h, pad_ref, patch_ref, H, W)
    y = jnp.dot(w2_ref[...], patch_ref[...], preferred_element_type=jnp.float32)
    y = jnp.maximum(y * s2_ref[...] + b2_ref[...] + x, 0.0)
    if pool:
        y = _avgpool3x3_s1(y, pad_ref, H, W)
    o_ref[0] = y


# ------------------------------ Pallas wrappers ----------------------------- #

def _round_up(x, m):
    return (x + m - 1) // m * m


def _fold_w(w):
    # PyTorch (Cout, Cin, 3, 3) -> (Cout, 9*Cin) with columns ordered (dy, dx, cin)
    # to match _fill_patches' tap-major / cin-fastest patch rows.
    cout, cin = w.shape[0], w.shape[1]
    return jnp.transpose(w, (0, 2, 3, 1)).reshape(cout, 9 * cin).astype(jnp.float32)


def pallas_conv(x, w, scale, bias, *, stride=1, relu=True, residual=None):
    """Fused Conv3x3(pad=1) + BN(eval) affine + optional residual + optional ReLU."""
    N, Cin, H, W = x.shape
    Cout = w.shape[0]
    assert not (stride == 2 and residual is not None)
    # Keep patch rows sublane-aligned: pad input channels up to a multiple of 8
    # (only the very first conv with Cin = #observation channels needs this).
    Cp = _round_up(Cin, 8)
    if Cp != Cin:
        x = jnp.pad(x, ((0, 0), (0, Cp - Cin), (0, 0), (0, 0)))
        w = jnp.pad(w, ((0, 0), (0, Cp - Cin), (0, 0), (0, 0)))
    HW = H * W
    args = [x.reshape(N, Cp, HW).astype(jnp.float32),
            _fold_w(w),
            scale.reshape(Cout, 1).astype(jnp.float32),
            bias.reshape(Cout, 1).astype(jnp.float32)]
    in_specs = [
        pl.BlockSpec((1, Cp, HW), lambda n: (n, 0, 0)),
        pl.BlockSpec((Cout, 9 * Cp), lambda n: (0, 0)),
        pl.BlockSpec((Cout, 1), lambda n: (0, 0)),
        pl.BlockSpec((Cout, 1), lambda n: (0, 0)),
    ]
    has_res = residual is not None
    if has_res:
        args.append(residual.reshape(N, Cout, HW).astype(jnp.float32))
        in_specs.append(pl.BlockSpec((1, Cout, HW), lambda n: (n, 0, 0)))
    out = pl.pallas_call(
        partial(_conv_kernel, H=H, W=W, relu=relu, has_residual=has_res),
        out_shape=jax.ShapeDtypeStruct((N, Cout, HW), jnp.float32),
        grid=(N,),
        in_specs=in_specs,
        out_specs=pl.BlockSpec((1, Cout, HW), lambda n: (n, 0, 0)),
        scratch_shapes=[pltpu.VMEM((Cp, HW + 2 * W + 2), jnp.float32),
                        pltpu.VMEM((9 * Cp, HW), jnp.float32)],
        compiler_params=pltpu.CompilerParams(dimension_semantics=("parallel",)),
    )(*args)
    out = out.reshape(N, Cout, H, W)
    if stride == 2:
        out = out[:, :, ::2, ::2]        # stride-2 = decimated stride-1 conv
    return out


def pallas_resblock(x, p, *, pool=False):
    """One fused pallas_call for a full ResidualBlock (+ optional AvgPool2d(3,2,1))."""
    N, C, H, W = x.shape
    assert C % 8 == 0, "hidden channels must be a multiple of 8"
    HW = H * W
    s1, b1 = p["bn1"]
    s2, b2 = p["bn2"]
    out = pl.pallas_call(
        partial(_resblock_kernel, H=H, W=W, pool=pool),
        out_shape=jax.ShapeDtypeStruct((N, C, HW), jnp.float32),
        grid=(N,),
        in_specs=[
            pl.BlockSpec((1, C, HW), lambda n: (n, 0, 0)),
            pl.BlockSpec((C, 9 * C), lambda n: (0, 0)),
            pl.BlockSpec((C, 1), lambda n: (0, 0)),
            pl.BlockSpec((C, 1), lambda n: (0, 0)),
            pl.BlockSpec((C, 9 * C), lambda n: (0, 0)),
            pl.BlockSpec((C, 1), lambda n: (0, 0)),
            pl.BlockSpec((C, 1), lambda n: (0, 0)),
        ],
        out_specs=pl.BlockSpec((1, C, HW), lambda n: (n, 0, 0)),
        scratch_shapes=[pltpu.VMEM((C, HW + 2 * W + 2), jnp.float32),
                        pltpu.VMEM((9 * C, HW), jnp.float32)],
        compiler_params=pltpu.CompilerParams(dimension_semantics=("parallel",)),
    )(x.reshape(N, C, HW).astype(jnp.float32),
      _fold_w(p["w1"]), s1.reshape(C, 1).astype(jnp.float32), b1.reshape(C, 1).astype(jnp.float32),
      _fold_w(p["w2"]), s2.reshape(C, 1).astype(jnp.float32), b2.reshape(C, 1).astype(jnp.float32))
    out = out.reshape(N, C, H, W)
    if pool:
        out = out[:, :, ::2, ::2]        # stride-2 pool = decimated stride-1 pool
    return out


# ------------------------------ pure-JAX reference -------------------------- #

def ref_conv(x, w, scale, bias, *, stride=1, relu=True, residual=None):
    y = jax.lax.conv_general_dilated(
        x, w, (stride, stride), ((1, 1), (1, 1)),
        dimension_numbers=("NCHW", "OIHW", "NCHW"))
    y = y * scale[None, :, None, None] + bias[None, :, None, None]
    if residual is not None:
        y = y + residual
    if relu:
        y = jnp.maximum(y, 0.0)
    return y


def ref_avgpool(x):
    s = jax.lax.reduce_window(x, 0.0, jax.lax.add, (1, 1, 3, 3), (1, 1, 2, 2),
                              ((0, 0), (0, 0), (1, 1), (1, 1)))
    return s / 9.0


def ref_resblock(x, p, *, pool=False):
    s1, b1 = p["bn1"]
    s2, b2 = p["bn2"]
    h = ref_conv(x, p["w1"], s1, b1, stride=1, relu=True)
    y = ref_conv(h, p["w2"], s2, b2, stride=1, relu=True, residual=x)
    if pool:
        y = ref_avgpool(y)
    return y


# --------------------------------- parameters ------------------------------- #

def _make_conv_w(key, cin, cout):
    # PyTorch Conv2d layout (Cout, Cin, 3, 3), bias=False.
    return jax.random.normal(key, (cout, cin, 3, 3), jnp.float32) / math.sqrt(9 * cin)


def _make_bn(key, c, eps=1e-5):
    # BatchNorm2d in eval mode folded into a per-channel affine (scale, bias).
    k1, k2, k3, k4 = jax.random.split(key, 4)
    gamma = 1.0 + 0.1 * jax.random.normal(k1, (c,), jnp.float32)
    beta = 0.1 * jax.random.normal(k2, (c,), jnp.float32)
    running_mean = 0.1 * jax.random.normal(k3, (c,), jnp.float32)
    running_var = 1.0 + 0.5 * jax.random.uniform(k4, (c,), jnp.float32)
    scale = gamma / jnp.sqrt(running_var + eps)
    bias = beta - running_mean * scale
    return scale, bias


def _make_resblock(key, c):
    k = jax.random.split(key, 4)
    return {"w1": _make_conv_w(k[0], c, c), "bn1": _make_bn(k[1], c),
            "w2": _make_conv_w(k[2], c, c), "bn2": _make_bn(k[3], c)}


def _make_ds_block(key, cin, cout):
    # ResidualBlock(cin, cout, downsample=DownSample.conv2, stride=2):
    # conv1 is stride 2; the identity path is a stride-2 conv with NO BatchNorm.
    k = jax.random.split(key, 5)
    return {"w1": _make_conv_w(k[0], cin, cout), "bn1": _make_bn(k[1], cout),
            "w2": _make_conv_w(k[2], cout, cout), "bn2": _make_bn(k[3], cout),
            "wd": _make_conv_w(k[4], cin, cout)}


def make_representation_params(key, observation_shape, num_blocks, num_channels, downsample):
    cin = observation_shape[0]
    keys = jax.random.split(key, num_blocks + 2)
    params = {
        "downsample": None,
        "resblocks": [_make_resblock(keys[2 + i], num_channels) for i in range(num_blocks)],
    }
    if downsample:
        dk = jax.random.split(keys[0], 6)
        params["downsample"] = {
            "w1": _make_conv_w(dk[0], cin, num_channels // 2),        # DownSample.conv1 (s=2)
            "bn1": _make_bn(dk[1], num_channels // 2),
            "res1": _make_resblock(dk[2], num_channels // 2),
            "ds_block": _make_ds_block(dk[3], num_channels // 2, num_channels),
            "res2": _make_resblock(dk[4], num_channels),
            "res3": _make_resblock(dk[5], num_channels),
        }
    else:
        params["w"] = _make_conv_w(keys[0], cin, num_channels)
        params["bn"] = _make_bn(keys[1], num_channels)
    return params


# ----------------------------------- forward -------------------------------- #

def _run_ds_block(x, p, conv):
    # out = relu(bn1(conv1_s2(x))); out = bn2(conv2(out))
    # identity = conv_s2_noBN(x);   return relu(out + identity)
    s1, b1 = p["bn1"]
    h = conv(x, p["w1"], s1, b1, stride=2, relu=True)
    cout = p["wd"].shape[0]
    ident = conv(x, p["wd"], jnp.ones((cout,), jnp.float32),
                 jnp.zeros((cout,), jnp.float32), stride=2, relu=False)
    s2, b2 = p["bn2"]
    return conv(h, p["w2"], s2, b2, stride=1, relu=True, residual=ident)


def representation_forward(x, params, conv, resblock):
    # NCHW in, NCHW out (PyTorch convention).
    x = x.astype(jnp.float32)
    d = params["downsample"]
    if d is not None:
        s1, b1 = d["bn1"]
        x = conv(x, d["w1"], s1, b1, stride=2, relu=True)   # conv1 + bn1 + relu
        x = resblock(x, d["res1"])                          # resblocks1
        x = _run_ds_block(x, d["ds_block"], conv)           # downsample_block
        x = resblock(x, d["res2"], pool=True)               # resblocks2 + pooling1
        x = resblock(x, d["res3"], pool=True)               # resblocks3 + pooling2
    else:
        s, b = params["bn"]
        x = conv(x, params["w"], s, b, stride=1, relu=True)  # conv + bn + relu
    for rb in params["resblocks"]:
        x = resblock(x, rb)
    return x


# ------------------------------------ main ----------------------------------- #

if __name__ == "__main__":
    key = jax.random.PRNGKey(0)
    kx, kp = jax.random.split(key)

    # (observation_shape (C,H,W), num_blocks, num_channels, downsample, batch)
    configs = [
        ((4, 32, 32), 1, 16, True, 2),   # downsample path (DownSample net)
        ((4, 16, 16), 2, 32, False, 2),  # plain conv+bn+relu path
    ]

    pallas_fwd = jax.jit(partial(representation_forward,
                                 conv=pallas_conv, resblock=pallas_resblock))
    ref_fwd = jax.jit(partial(representation_forward,
                              conv=ref_conv, resblock=ref_resblock))

    for i, (obs_shape, num_blocks, num_channels, downsample, batch) in enumerate(configs):
        params = make_representation_params(jax.random.fold_in(kp, i), obs_shape,
                                            num_blocks, num_channels, downsample)
        x = jax.random.normal(jax.random.fold_in(kx, i),
                              (batch,) + obs_shape, jnp.float32)   # NCHW, like PyTorch

        out = jax.block_until_ready(pallas_fwd(x, params))
        ref = jax.block_until_ready(ref_fwd(x, params))

        assert out.shape == ref.shape, (out.shape, ref.shape)
        err = float(jnp.max(jnp.abs(out - ref)))
        if err > 1e-3:
            raise AssertionError(f"config {i}: pallas/ref mismatch, max abs err = {err}")

    print("KERNEL_OK")
</pallas_src>

<mosaic_0001>
module attributes {stable_mosaic.version = 11 : i64} {
  func.func @_conv_kernel(%arg0: i32, %arg1: memref<1x8x1024xf32, #tpu.memory_space<vmem>>, %arg2: memref<8x72xf32, #tpu.memory_space<vmem>>, %arg3: memref<8x1xf32, #tpu.memory_space<vmem>>, %arg4: memref<8x1xf32, #tpu.memory_space<vmem>>, %arg5: memref<1x8x1024xf32, #tpu.memory_space<vmem>>, %arg6: memref<8x1090xf32, #tpu.memory_space<vmem>>, %arg7: memref<72x1024xf32, #tpu.memory_space<vmem>>) attributes {dimension_semantics = [#tpu.dimension_semantics<parallel>], iteration_bounds = array<i64: 2>, scalar_prefetch = 0 : i64, scratch_operands = 2 : i64, tpu.core_type = #tpu.core_type<tc>, window_params = [{transform_indices = @transform_0, window_bounds = array<i64: 1, 8, 1024>}, {pipeline_mode = #tpu.pipeline_mode<synchronous>, transform_indices = @transform_1, window_bounds = array<i64: 8, 72>}, {pipeline_mode = #tpu.pipeline_mode<synchronous>, transform_indices = @transform_2, window_bounds = array<i64: 8, 1>}, {pipeline_mode = #tpu.pipeline_mode<synchronous>, transform_indices = @transform_3, window_bounds = array<i64: 8, 1>}, {transform_indices = @transform_4, window_bounds = array<i64: 1, 8, 1024>}]} {
    %cst = arith.constant 0.000000e+00 : f32
    %0 = vector.broadcast %cst : f32 to vector<8x1090xf32>
    %c0 = arith.constant 0 : index
    %c0_0 = arith.constant 0 : index
    %1 = vector.load %arg6[%c0, %c0_0] : memref<8x1090xf32, #tpu.memory_space<vmem>>, vector<8x1090xf32>
    tpu.vector_store %arg6[%c0, %c0_0], %0 {strides = array<i32>} : memref<8x1090xf32, #tpu.memory_space<vmem>>, vector<8x1090xf32>,
    %c0_1 = arith.constant 0 : index
    %c0_2 = arith.constant 0 : index
    %c0_3 = arith.constant 0 : index
    %2 = vector.load %arg1[%c0_1, %c0_2, %c0_3] : memref<1x8x1024xf32, #tpu.memory_space<vmem>>, vector<1x8x1024xf32>
    %3 = vector.shape_cast %2 : vector<1x8x1024xf32> to vector<8x1024xf32>
    %c0_4 = arith.constant 0 : index
    %c33 = arith.constant 33 : index
    %4 = vector.load %arg6[%c0_4, %c33] : memref<8x1090xf32, #tpu.memory_space<vmem>>, vector<8x1024xf32>
    tpu.vector_store %arg6[%c0_4, %c33], %3 {strides = array<i32>} : memref<8x1090xf32, #tpu.memory_space<vmem>>, vector<8x1024xf32>,
    %5 = tpu.iota {dimensions = array<i32: 1>} : vector<1x1024xi32>
    %c32_i32 = arith.constant 32 : i32
    %c0_i32 = arith.constant 0 : i32
    %6 = arith.cmpi eq, %c32_i32, %c0_i32 : i32
    %c1_i32 = arith.constant 1 : i32
    %7 = arith.select %6, %c1_i32, %c32_i32 : i32
    %8 = vector.broadcast %7 : i32 to vector<1x1024xi32>
    %9 = arith.remsi %5, %8 : vector<1x1024xi32>
    %c0_i32_5 = arith.constant 0 : i32
    %10 = vector.broadcast %c0_i32_5 : i32 to vector<1x1024xi32>
    %11 = arith.cmpi ne, %9, %10 : vector<1x1024xi32>
    %c0_i32_6 = arith.constant 0 : i32
    %12 = vector.broadcast %c0_i32_6 : i32 to vector<1x1024xi32>
    %13 = arith.cmpi slt, %9, %12 : vector<1x1024xi32>
    %c0_i32_7 = arith.constant 0 : i32
    %14 = arith.cmpi slt, %7, %c0_i32_7 : i32
    %15 = vector.broadcast %14 : i1 to vector<1x1024xi1>
    %16 = vector.broadcast %15 : vector<1x1024xi1> to vector<1x1024xi1>
    %17 = arith.xori %13, %16 : vector<1x1024xi1>
    %18 = arith.andi %17, %11 : vector<1x1024xi1>
    %19 = vector.broadcast %7 : i32 to vector<1x1024xi32>
    %20 = arith.addi %9, %19 : vector<1x1024xi32>
    %21 = arith.select %18, %20, %9 : vector<1x1024xi1>, vector<1x1024xi32>
    %c0_i32_8 = arith.constant 0 : i32
    %22 = vector.broadcast %c0_i32_8 : i32 to vector<1x1024xi32>
    %23 = arith.cmpi ne, %21, %22 : vector<1x1024xi32>
    %c31_i32 = arith.constant 31 : i32
    %24 = vector.broadcast %c31_i32 : i32 to vector<1x1024xi32>
    %25 = arith.cmpi ne, %21, %24 : vector<1x1024xi32>
    %c0_9 = arith.constant 0 : index
    %c0_10 = arith.constant 0 : index
    %26 = vector.load %arg6[%c0_9, %c0_10] : memref<8x1090xf32, #tpu.memory_space<vmem>>, vector<8x1024xf32>
    %cst_11 = arith.constant 0.000000e+00 : f32
    %27 = vector.shape_cast %23 : vector<1x1024xi1> to vector<1x1024xi1>
    %28 = vector.broadcast %27 : vector<1x1024xi1> to vector<8x1024xi1>
    %29 = vector.broadcast %cst_11 : f32 to vector<8x1024xf32>
    %30 = arith.select %28, %26, %29 : vector<8x1024xi1>, vector<8x1024xf32>
    %c0_12 = arith.constant 0 : index
    %c0_13 = arith.constant 0 : index
    %31 = vector.load %arg7[%c0_12, %c0_13] : memref<72x1024xf32, #tpu.memory_space<vmem>>, vector<8x1024xf32>
    tpu.vector_store %arg7[%c0_12, %c0_13], %30 {strides = array<i32>} : memref<72x1024xf32, #tpu.memory_space<vmem>>, vector<8x1024xf32>,
    %c0_14 = arith.constant 0 : index
    %c1 = arith.constant 1 : index
    %32 = vector.load %arg6[%c0_14, %c1] : memref<8x1090xf32, #tpu.memory_space<vmem>>, vector<8x1024xf32>
    %c8 = arith.constant 8 : index
    %c0_15 = arith.constant 0 : index
    %33 = vector.load %arg7[%c8, %c0_15] : memref<72x1024xf32, #tpu.memory_space<vmem>>, vector<8x1024xf32>
    tpu.vector_store %arg7[%c8, %c0_15], %32 {strides = array<i32>} : memref<72x1024xf32, #tpu.memory_space<vmem>>, vector<8x1024xf32>,
    %c0_16 = arith.constant 0 : index
    %c2 = arith.constant 2 : index
    %34 = vector.load %arg6[%c0_16, %c2] : memref<8x1090xf32, #tpu.memory_space<vmem>>, vector<8x1024xf32>
    %cst_17 = arith.constant 0.000000e+00 : f32
    %35 = vector.shape_cast %25 : vector<1x1024xi1> to vector<1x1024xi1>
    %36 = vector.broadcast %35 : vector<1x1024xi1> to vector<8x1024xi1>
    %37 = vector.broadcast %cst_17 : f32 to vector<8x1024xf32>
    %38 = arith.select %36, %34, %37 : vector<8x1024xi1>, vector<8x1024xf32>
    %c16 = arith.constant 16 : index
    %c0_18 = arith.constant 0 : index
    %39 = vector.load %arg7[%c16, %c0_18] : memref<72x1024xf32, #tpu.memory_space<vmem>>, vector<8x1024xf32>
    tpu.vector_store %arg7[%c16, %c0_18], %38 {strides = array<i32>} : memref<72x1024xf32, #tpu.memory_space<vmem>>, vector<8x1024xf32>,
    %c0_19 = arith.constant 0 : index
    %c32 = arith.constant 32 : index
    %40 = vector.load %arg6[%c0_19, %c32] : memref<8x1090xf32, #tpu.memory_space<vmem>>, vector<8x1024xf32>
    %cst_20 = arith.constant 0.000000e+00 : f32
    %41 = vector.shape_cast %23 : vector<1x1024xi1> to vector<1x1024xi1>
    %42 = vector.broadcast %41 : vector<1x1024xi1> to vector<8x1024xi1>
    %43 = vector.broadcast %cst_20 : f32 to vector<8x1024xf32>
    %44 = arith.select %42, %40, %43 : vector<8x1024xi1>, vector<8x1024xf32>
    %c24 = arith.constant 24 : index
    %c0_21 = arith.constant 0 : index
    %45 = vector.load %arg7[%c24, %c0_21] : memref<72x1024xf32, #tpu.memory_space<vmem>>, vector<8x1024xf32>
    tpu.vector_store %arg7[%c24, %c0_21], %44 {strides = array<i32>} : memref<72x1024xf32, #tpu.memory_space<vmem>>, vector<8x1024xf32>,
    %c0_22 = arith.constant 0 : index
    %c33_23 = arith.constant 33 : index
    %46 = vector.load %arg6[%c0_22, %c33_23] : memref<8x1090xf32, #tpu.memory_space<vmem>>, vector<8x1024xf32>
    %c32_24 = arith.constant 32 : index
    %c0_25 = arith.constant 0 : index
    %47 = vector.load %arg7[%c32_24, %c0_25] : memref<72x1024xf32, #tpu.memory_space<vmem>>, vector<8x1024xf32>
    tpu.vector_store %arg7[%c32_24, %c0_25], %46 {strides = array<i32>} : memref<72x1024xf32, #tpu.memory_space<vmem>>, vector<8x1024xf32>,
    %c0_26 = arith.constant 0 : index
    %c34 = arith.constant 34 : index
    %48 = vector.load %arg6[%c0_26, %c34] : memref<8x1090xf32, #tpu.memory_space<vmem>>, vector<8x1024xf32>
    %cst_27 = arith.constant 0.000000e+00 : f32
    %49 = vector.shape_cast %25 : vector<1x1024xi1> to vector<1x1024xi1>
    %50 = vector.broadcast %49 : vector<1x1024xi1> to vector<8x1024xi1>
    %51 = vector.broadcast %cst_27 : f32 to vector<8x1024xf32>
    %52 = arith.select %50, %48, %51 : vector<8x1024xi1>, vector<8x1024xf32>
    %c40 = arith.constant 40 : index
    %c0_28 = arith.constant 0 : index
    %53 = vector.load %arg7[%c40, %c0_28] : memref<72x1024xf32, #tpu.memory_space<vmem>>, vector<8x1024xf32>
    tpu.vector_store %arg7[%c40, %c0_28], %52 {strides = array<i32>} : memref<72x1024xf32, #tpu.memory_space<vmem>>, vector<8x1024xf32>,
    %c0_29 = arith.constant 0 : index
    %c64 = arith.constant 64 : index
    %54 = vector.load %arg6[%c0_29, %c64] : memref<8x1090xf32, #tpu.memory_space<vmem>>, vector<8x1024xf32>
    %cst_30 = arith.constant 0.000000e+00 : f32
    %55 = vector.shape_cast %23 : vector<1x1024xi1> to vector<1x1024xi1>
    %56 = vector.broadcast %55 : vector<1x1024xi1> to vector<8x1024xi1>
    %57 = vector.broadcast %cst_30 : f32 to vector<8x1024xf32>
    %58 = arith.select %56, %54, %57 : vector<8x1024xi1>, vector<8x1024xf32>
    %c48 = arith.constant 48 : index
    %c0_31 = arith.constant 0 : index
    %59 = vector.load %arg7[%c48, %c0_31] : memref<72x1024xf32, #tpu.memory_space<vmem>>, vector<8x1024xf32>
    tpu.vector_store %arg7[%c48, %c0_31], %58 {strides = array<i32>} : memref<72x1024xf32, #tpu.memory_space<vmem>>, vector<8x1024xf32>,
    %c0_32 = arith.constant 0 : index
    %c65 = arith.constant 65 : index
    %60 = vector.load %arg6[%c0_32, %c65] : memref<8x1090xf32, #tpu.memory_space<vmem>>, vector<8x1024xf32>
    %c56 = arith.constant 56 : index
    %c0_33 = arith.constant 0 : index
    %61 = vector.load %arg7[%c56, %c0_33] : memref<72x1024xf32, #tpu.memory_space<vmem>>, vector<8x1024xf32>
    tpu.vector_store %arg7[%c56, %c0_33], %60 {strides = array<i32>} : memref<72x1024xf32, #tpu.memory_space<vmem>>, vector<8x1024xf32>,
    %c0_34 = arith.constant 0 : index
    %c66 = arith.constant 66 : index
    %62 = vector.load %arg6[%c0_34, %c66] : memref<8x1090xf32, #tpu.memory_space<vmem>>, vector<8x1024xf32>
    %cst_35 = arith.constant 0.000000e+00 : f32
    %63 = vector.shape_cast %25 : vector<1x1024xi1> to vector<1x1024xi1>
    %64 = vector.broadcast %63 : vector<1x1024xi1> to vector<8x1024xi1>
    %65 = vector.broadcast %cst_35 : f32 to vector<8x1024xf32>
    %66 = arith.select %64, %62, %65 : vector<8x1024xi1>, vector<8x1024xf32>
    %c64_36 = arith.constant 64 : index
    %c0_37 = arith.constant 0 : index
    %67 = vector.load %arg7[%c64_36, %c0_37] : memref<72x1024xf32, #tpu.memory_space<vmem>>, vector<8x1024xf32>
    tpu.vector_store %arg7[%c64_36, %c0_37], %66 {strides = array<i32>} : memref<72x1024xf32, #tpu.memory_space<vmem>>, vector<8x1024xf32>,
    %c0_38 = arith.constant 0 : index
    %c0_39 = arith.constant 0 : index
    %68 = vector.load %arg2[%c0_38, %c0_39] : memref<8x72xf32, #tpu.memory_space<vmem>>, vector<8x72xf32>
    %c0_40 = arith.constant 0 : index
    %c0_41 = arith.constant 0 : index
    %69 = vector.load %arg7[%c0_40, %c0_41] : memref<72x1024xf32, #tpu.memory_space<vmem>>, vector<72x1024xf32>
    %cst_42 = arith.constant dense<0.000000e+00> : vector<8x1024xf32>
    %70 = tpu.matmul %68, %69, %cst_42 {dimension_numbers = #tpu.dot_dimension_numbers<[1], [0], [0], [1], [0, 0, 1, 1], [], []>} : vector<8x72xf32>, vector<72x1024xf32>, vector<8x1024xf32> -> vector<8x1024xf32>
    %c0_43 = arith.constant 0 : index
    %c0_44 = arith.constant 0 : index
    %71 = vector.load %arg3[%c0_43, %c0_44] : memref<8x1xf32, #tpu.memory_space<vmem>>, vector<8x1xf32>
    %72 = vector.broadcast %71 : vector<8x1xf32> to vector<8x1024xf32>
    %73 = arith.mulf %70, %72 : vector<8x1024xf32>
    %c0_45 = arith.constant 0 : index
    %c0_46 = arith.constant 0 : index
    %74 = vector.load %arg4[%c0_45, %c0_46] : memref<8x1xf32, #tpu.memory_space<vmem>>, vector<8x1xf32>
    %75 = vector.broadcast %74 : vector<8x1xf32> to vector<8x1024xf32>
    %76 = arith.addf %73, %75 : vector<8x1024xf32>
    %cst_47 = arith.constant 0.000000e+00 : f32
    %77 = vector.broadcast %cst_47 : f32 to vector<8x1024xf32>
    %78 = arith.maximumf %76, %77 : vector<8x1024xf32>
    %c0_48 = arith.constant 0 : index
    %c0_49 = arith.constant 0 : index
    %c0_50 = arith.constant 0 : index
    %79 = vector.load %arg5[%c0_48, %c0_49, %c0_50] : memref<1x8x1024xf32, #tpu.memory_space<vmem>>, vector<1x8x1024xf32>
    %80 = vector.shape_cast %79 : vector<1x8x1024xf32> to vector<8x1024xf32>
    %81 = vector.shape_cast %78 : vector<8x1024xf32> to vector<1x8x1024xf32>
    tpu.vector_store %arg5[%c0_48, %c0_49, %c0_50], %81 {strides = array<i32>} : memref<1x8x1024xf32, #tpu.memory_space<vmem>>, vector<1x8x1024xf32>,
    return
  }
  func.func @transform_0(%arg0: i32) -> (i32, i32, i32) {
    %c0_i32 = arith.constant 0 : i32
    %c0_i32_0 = arith.constant 0 : i32
    %c0_i32_1 = arith.constant 0 : i32
    return %arg0, %c0_i32, %c0_i32_0 : i32, i32, i32
  }
  func.func @transform_1(%arg0: i32) -> (i32, i32) {
    %c0_i32 = arith.constant 0 : i32
    %c0_i32_0 = arith.constant 0 : i32
    %c0_i32_1 = arith.constant 0 : i32
    return %c0_i32, %c0_i32_0 : i32, i32
  }
  func.func @transform_2(%arg0: i32) -> (i32, i32) {
    %c0_i32 = arith.constant 0 : i32
    %c0_i32_0 = arith.constant 0 : i32
    %c0_i32_1 = arith.constant 0 : i32
    return %c0_i32, %c0_i32_0 : i32, i32
  }
  func.func @transform_3(%arg0: i32) -> (i32, i32) {
    %c0_i32 = arith.constant 0 : i32
    %c0_i32_0 = arith.constant 0 : i32
    %c0_i32_1 = arith.constant 0 : i32
    return %c0_i32, %c0_i32_0 : i32, i32
  }
  func.func @transform_4(%arg0: i32) -> (i32, i32, i32) {
    %c0_i32 = arith.constant 0 : i32
    %c0_i32_0 = arith.constant 0 : i32
    %c0_i32_1 = arith.constant 0 : i32
    return %arg0, %c0_i32, %c0_i32_0 : i32, i32, i32
  }
}

module attributes {stable_mosaic.version = 11 : i64} {
  func.func @_resblock_kernel(%arg0: i32, %arg1: memref<1x8x256xf32, #tpu.memory_space<vmem>>, %arg2: memref<8x72xf32, #tpu.memory_space<vmem>>, %arg3: memref<8x1xf32, #tpu.memory_space<vmem>>, %arg4: memref<8x1xf32, #tpu.memory_space<vmem>>, %arg5: memref<8x72xf32, #tpu.memory_space<vmem>>, %arg6: memref<8x1xf32, #tpu.memory_space<vmem>>, %arg7: memref<8x1xf32, #tpu.memory_space<vmem>>, %arg8: memref<1x8x256xf32, #tpu.memory_space<vmem>>, %arg9: memref<8x290xf32, #tpu.memory_space<vmem>>, %arg10: memref<72x256xf32, #tpu.memory_space<vmem>>) attributes {dimension_semantics = [#tpu.dimension_semantics<parallel>], iteration_bounds = array<i64: 2>, scalar_prefetch = 0 : i64, scratch_operands = 2 : i64, tpu.core_type = #tpu.core_type<tc>, window_params = [{transform_indices = @transform_0, window_bounds = array<i64: 1, 8, 256>}, {pipeline_mode = #tpu.pipeline_mode<synchronous>, transform_indices = @transform_1, window_bounds = array<i64: 8, 72>}, {pipeline_mode = #tpu.pipeline_mode<synchronous>, transform_indices = @transform_2, window_bounds = array<i64: 8, 1>}, {pipeline_mode = #tpu.pipeline_mode<synchronous>, transform_indices = @transform_3, window_bounds = array<i64: 8, 1>}, {pipeline_mode = #tpu.pipeline_mode<synchronous>, transform_indices = @transform_4, window_bounds = array<i64: 8, 72>}, {pipeline_mode = #tpu.pipeline_mode<synchronous>, transform_indices = @transform_5, window_bounds = array<i64: 8, 1>}, {pipeline_mode = #tpu.pipeline_mode<synchronous>, transform_indices = @transform_6, window_bounds = array<i64: 8, 1>}, {transform_indices = @transform_7, window_bounds = array<i64: 1, 8, 256>}]} {
    %cst = arith.constant 0.000000e+00 : f32
    %0 = vector.broadcast %cst : f32 to vector<8x290xf32>
    %c0 = arith.constant 0 : index
    %c0_0 = arith.constant 0 : index
    %1 = vector.load %arg9[%c0, %c0_0] : memref<8x290xf32, #tpu.memory_space<vmem>>, vector<8x290xf32>
    tpu.vector_store %arg9[%c0, %c0_0], %0 {strides = array<i32>} : memref<8x290xf32, #tpu.memory_space<vmem>>, vector<8x290xf32>,
    %c0_1 = arith.constant 0 : index
    %c0_2 = arith.constant 0 : index
    %c0_3 = arith.constant 0 : index
    %2 = vector.load %arg1[%c0_1, %c0_2, %c0_3] : memref<1x8x256xf32, #tpu.memory_space<vmem>>, vector<1x8x256xf32>
    %3 = vector.shape_cast %2 : vector<1x8x256xf32> to vector<8x256xf32>
    %c0_4 = arith.constant 0 : index
    %c17 = arith.constant 17 : index
    %4 = vector.load %arg9[%c0_4, %c17] : memref<8x290xf32, #tpu.memory_space<vmem>>, vector<8x256xf32>
    tpu.vector_store %arg9[%c0_4, %c17], %3 {strides = array<i32>} : memref<8x290xf32, #tpu.memory_space<vmem>>, vector<8x256xf32>,
    %5 = tpu.iota {dimensions = array<i32: 1>} : vector<1x256xi32>
    %c16_i32 = arith.constant 16 : i32
    %c0_i32 = arith.constant 0 : i32
    %6 = arith.cmpi eq, %c16_i32, %c0_i32 : i32
    %c1_i32 = arith.constant 1 : i32
    %7 = arith.select %6, %c1_i32, %c16_i32 : i32
    %8 = vector.broadcast %7 : i32 to vector<1x256xi32>
    %9 = arith.remsi %5, %8 : vector<1x256xi32>
    %c0_i32_5 = arith.constant 0 : i32
    %10 = vector.broadcast %c0_i32_5 : i32 to vector<1x256xi32>
    %11 = arith.cmpi ne, %9, %10 : vector<1x256xi32>
    %c0_i32_6 = arith.constant 0 : i32
    %12 = vector.broadcast %c0_i32_6 : i32 to vector<1x256xi32>
    %13 = arith.cmpi slt, %9, %12 : vector<1x256xi32>
    %c0_i32_7 = arith.constant 0 : i32
    %14 = arith.cmpi slt, %7, %c0_i32_7 : i32
    %15 = vector.broadcast %14 : i1 to vector<1x256xi1>
    %16 = vector.broadcast %15 : vector<1x256xi1> to vector<1x256xi1>
    %17 = arith.xori %13, %16 : vector<1x256xi1>
    %18 = arith.andi %17, %11 : vector<1x256xi1>
    %19 = vector.broadcast %7 : i32 to vector<1x256xi32>
    %20 = arith.addi %9, %19 : vector<1x256xi32>
    %21 = arith.select %18, %20, %9 : vector<1x256xi1>, vector<1x256xi32>
    %c0_i32_8 = arith.constant 0 : i32
    %22 = vector.broadcast %c0_i32_8 : i32 to vector<1x256xi32>
    %23 = arith.cmpi ne, %21, %22 : vector<1x256xi32>
    %c15_i32 = arith.constant 15 : i32
    %24 = vector.broadcast %c15_i32 : i32 to vector<1x256xi32>
    %25 = arith.cmpi ne, %21, %24 : vector<1x256xi32>
    %c0_9 = arith.constant 0 : index
    %c0_10 = arith.constant 0 : index
    %26 = vector.load %arg9[%c0_9, %c0_10] : memref<8x290xf32, #tpu.memory_space<vmem>>, vector<8x256xf32>
    %cst_11 = arith.constant 0.000000e+00 : f32
    %27 = vector.shape_cast %23 : vector<1x256xi1> to vector<1x256xi1>
    %28 = vector.broadcast %27 : vector<1x256xi1> to vector<8x256xi1>
    %29 = vector.broadcast %cst_11 : f32 to vector<8x256xf32>
    %30 = arith.select %28, %26, %29 : vector<8x256xi1>, vector<8x256xf32>
    %c0_12 = arith.constant 0 : index
    %c0_13 = arith.constant 0 : index
    %31 = vector.load %arg10[%c0_12, %c0_13] : memref<72x256xf32, #tpu.memory_space<vmem>>, vector<8x256xf32>
    tpu.vector_store %arg10[%c0_12, %c0_13], %30 {strides = array<i32>} : memref<72x256xf32, #tpu.memory_space<vmem>>, vector<8x256xf32>,
    %c0_14 = arith.constant 0 : index
    %c1 = arith.constant 1 : index
    %32 = vector.load %arg9[%c0_14, %c1] : memref<8x290xf32, #tpu.memory_space<vmem>>, vector<8x256xf32>
    %c8 = arith.constant 8 : index
    %c0_15 = arith.constant 0 : index
    %33 = vector.load %arg10[%c8, %c0_15] : memref<72x256xf32, #tpu.memory_space<vmem>>, vector<8x256xf32>
    tpu.vector_store %arg10[%c8, %c0_15], %32 {strides = array<i32>} : memref<72x256xf32, #tpu.memory_space<vmem>>, vector<8x256xf32>,
    %c0_16 = arith.constant 0 : index
    %c2 = arith.constant 2 : index
    %34 = vector.load %arg9[%c0_16, %c2] : memref<8x290xf32, #tpu.memory_space<vmem>>, vector<8x256xf32>
    %cst_17 = arith.constant 0.000000e+00 : f32
    %35 = vector.shape_cast %25 : vector<1x256xi1> to vector<1x256xi1>
    %36 = vector.broadcast %35 : vector<1x256xi1> to vector<8x256xi1>
    %37 = vector.broadcast %cst_17 : f32 to vector<8x256xf32>
    %38 = arith.select %36, %34, %37 : vector<8x256xi1>, vector<8x256xf32>
    %c16 = arith.constant 16 : index
    %c0_18 = arith.constant 0 : index
    %39 = vector.load %arg10[%c16, %c0_18] : memref<72x256xf32, #tpu.memory_space<vmem>>, vector<8x256xf32>
    tpu.vector_store %arg10[%c16, %c0_18], %38 {strides = array<i32>} : memref<72x256xf32, #tpu.memory_space<vmem>>, vector<8x256xf32>,
    %c0_19 = arith.constant 0 : index
    %c16_20 = arith.constant 16 : index
    %40 = vector.load %arg9[%c0_19, %c16_20] : memref<8x290xf32, #tpu.memory_space<vmem>>, vector<8x256xf32>
    %cst_21 = arith.constant 0.000000e+00 : f32
    %41 = vector.shape_cast %23 : vector<1x256xi1> to vector<1x256xi1>
    %42 = vector.broadcast %41 : vector<1x256xi1> to vector<8x256xi1>
    %43 = vector.broadcast %cst_21 : f32 to vector<8x256xf32>
    %44 = arith.select %42, %40, %43 : vector<8x256xi1>, vector<8x256xf32>
    %c24 = arith.constant 24 : index
    %c0_22 = arith.constant 0 : index
    %45 = vector.load %arg10[%c24, %c0_22] : memref<72x256xf32, #tpu.memory_space<vmem>>, vector<8x256xf32>
    tpu.vector_store %arg10[%c24, %c0_22], %44 {strides = array<i32>} : memref<72x256xf32, #tpu.memory_space<vmem>>, vector<8x256xf32>,
    %c0_23 = arith.constant 0 : index
    %c17_24 = arith.constant 17 : index
    %46 = vector.load %arg9[%c0_23, %c17_24] : memref<8x290xf32, #tpu.memory_space<vmem>>, vector<8x256xf32>
    %c32 = arith.constant 32 : index
    %c0_25 = arith.constant 0 : index
    %47 = vector.load %arg10[%c32, %c0_25] : memref<72x256xf32, #tpu.memory_space<vmem>>, vector<8x256xf32>
    tpu.vector_store %arg10[%c32, %c0_25], %46 {strides = array<i32>} : memref<72x256xf32, #tpu.memory_space<vmem>>, vector<8x256xf32>,
    %c0_26 = arith.constant 0 : index
    %c18 = arith.constant 18 : index
    %48 = vector.load %arg9[%c0_26, %c18] : memref<8x290xf32, #tpu.memory_space<vmem>>, vector<8x256xf32>
    %cst_27 = arith.constant 0.000000e+00 : f32
    %49 = vector.shape_cast %25 : vector<1x256xi1> to vector<1x256xi1>
    %50 = vector.broadcast %49 : vector<1x256xi1> to vector<8x256xi1>
    %51 = vector.broadcast %cst_27 : f32 to vector<8x256xf32>
    %52 = arith.select %50, %48, %51 : vector<8x256xi1>, vector<8x256xf32>
    %c40 = arith.constant 40 : index
    %c0_28 = arith.constant 0 : index
    %53 = vector.load %arg10[%c40, %c0_28] : memref<72x256xf32, #tpu.memory_space<vmem>>, vector<8x256xf32>
    tpu.vector_store %arg10[%c40, %c0_28], %52 {strides = array<i32>} : memref<72x256xf32, #tpu.memory_space<vmem>>, vector<8x256xf32>,
    %c0_29 = arith.constant 0 : index
    %c32_30 = arith.constant 32 : index
    %54 = vector.load %arg9[%c0_29, %c32_30] : memref<8x290xf32, #tpu.memory_space<vmem>>, vector<8x256xf32>
    %cst_31 = arith.constant 0.000000e+00 : f32
    %55 = vector.shape_cast %23 : vector<1x256xi1> to vector<1x256xi1>
    %56 = vector.broadcast %55 : vector<1x256xi1> to vector<8x256xi1>
    %57 = vector.broadcast %cst_31 : f32 to vector<8x256xf32>
    %58 = arith.select %56, %54, %57 : vector<8x256xi1>, vector<8x256xf32>
    %c48 = arith.constant 48 : index
    %c0_32 = arith.constant 0 : index
    %59 = vector.load %arg10[%c48, %c0_32] : memref<72x256xf32, #tpu.memory_space<vmem>>, vector<8x256xf32>
    tpu.vector_store %arg10[%c48, %c0_32], %58 {strides = array<i32>} : memref<72x256xf32, #tpu.memory_space<vmem>>, vector<8x256xf32>,
    %c0_33 = arith.constant 0 : index
    %c33 = arith.constant 33 : index
    %60 = vector.load %arg9[%c0_33, %c33] : memref<8x290xf32, #tpu.memory_space<vmem>>, vector<8x256xf32>
    %c56 = arith.constant 56 : index
    %c0_34 = arith.constant 0 : index
    %61 = vector.load %arg10[%c56, %c0_34] : memref<72x256xf32, #tpu.memory_space<vmem>>, vector<8x256xf32>
    tpu.vector_store %arg10[%c56, %c0_34], %60 {strides = array<i32>} : memref<72x256xf32, #tpu.memory_space<vmem>>, vector<8x256xf32>,
    %c0_35 = arith.constant 0 : index
    %c34 = arith.constant 34 : index
    %62 = vector.load %arg9[%c0_35, %c34] : memref<8x290xf32, #tpu.memory_space<vmem>>, vector<8x256xf32>
    %cst_36 = arith.constant 0.000000e+00 : f32
    %63 = vector.shape_cast %25 : vector<1x256xi1> to vector<1x256xi1>
    %64 = vector.broadcast %63 : vector<1x256xi1> to vector<8x256xi1>
    %65 = vector.broadcast %cst_36 : f32 to vector<8x256xf32>
    %66 = arith.select %64, %62, %65 : vector<8x256xi1>, vector<8x256xf32>
    %c64 = arith.constant 64 : index
    %c0_37 = arith.constant 0 : index
    %67 = vector.load %arg10[%c64, %c0_37] : memref<72x256xf32, #tpu.memory_space<vmem>>, vector<8x256xf32>
    tpu.vector_store %arg10[%c64, %c0_37], %66 {strides = array<i32>} : memref<72x256xf32, #tpu.memory_space<vmem>>, vector<8x256xf32>,
    %c0_38 = arith.constant 0 : index
    %c0_39 = arith.constant 0 : index
    %68 = vector.load %arg2[%c0_38, %c0_39] : memref<8x72xf32, #tpu.memory_space<vmem>>, vector<8x72xf32>
    %c0_40 = arith.constant 0 : index
    %c0_41 = arith.constant 0 : index
    %69 = vector.load %arg10[%c0_40, %c0_41] : memref<72x256xf32, #tpu.memory_space<vmem>>, vector<72x256xf32>
    %cst_42 = arith.constant dense<0.000000e+00> : vector<8x256xf32>
    %70 = tpu.matmul %68, %69, %cst_42 {dimension_numbers = #tpu.dot_dimension_numbers<[1], [0], [0], [1], [0, 0, 1, 1], [], []>} : vector<8x72xf32>, vector<72x256xf32>, vector<8x256xf32> -> vector<8x256xf32>
    %c0_43 = arith.constant 0 : index
    %c0_44 = arith.constant 0 : index
    %71 = vector.load %arg3[%c0_43, %c0_44] : memref<8x1xf32, #tpu.memory_space<vmem>>, vector<8x1xf32>
    %72 = vector.broadcast %71 : vector<8x1xf32> to vector<8x256xf32>
    %73 = arith.mulf %70, %72 : vector<8x256xf32>
    %c0_45 = arith.constant 0 : index
    %c0_46 = arith.constant 0 : index
    %74 = vector.load %arg4[%c0_45, %c0_46] : memref<8x1xf32, #tpu.memory_space<vmem>>, vector<8x1xf32>
    %75 = vector.broadcast %74 : vector<8x1xf32> to vector<8x256xf32>
    %76 = arith.addf %73, %75 : vector<8x256xf32>
    %cst_47 = arith.constant 0.000000e+00 : f32
    %77 = vector.broadcast %cst_47 : f32 to vector<8x256xf32>
    %78 = arith.maximumf %76, %77 : vector<8x256xf32>
    %c0_48 = arith.constant 0 : index
    %c17_49 = arith.constant 17 : index
    %79 = vector.load %arg9[%c0_48, %c17_49] : memref<8x290xf32, #tpu.memory_space<vmem>>, vector<8x256xf32>
    tpu.vector_store %arg9[%c0_48, %c17_49], %78 {strides = array<i32>} : memref<8x290xf32, #tpu.memory_space<vmem>>, vector<8x256xf32>,
    %80 = tpu.iota {dimensions = array<i32: 1>} : vector<1x256xi32>
    %c16_i32_50 = arith.constant 16 : i32
    %c0_i32_51 = arith.constant 0 : i32
    %81 = arith.cmpi eq, %c16_i32_50, %c0_i32_51 : i32
    %c1_i32_52 = arith.constant 1 : i32
    %82 = arith.select %81, %c1_i32_52, %c16_i32_50 : i32
    %83 = vector.broadcast %82 : i32 to vector<1x256xi32>
    %84 = arith.remsi %80, %83 : vector<1x256xi32>
    %c0_i32_53 = arith.constant 0 : i32
    %85 = vector.broadcast %c0_i32_53 : i32 to vector<1x256xi32>
    %86 = arith.cmpi ne, %84, %85 : vector<1x256xi32>
    %c0_i32_54 = arith.constant 0 : i32
    %87 = vector.broadcast %c0_i32_54 : i32 to vector<1x256xi32>
    %88 = arith.cmpi slt, %84, %87 : vector<1x256xi32>
    %c0_i32_55 = arith.constant 0 : i32
    %89 = arith.cmpi slt, %82, %c0_i32_55 : i32
    %90 = vector.broadcast %89 : i1 to vector<1x256xi1>
    %91 = vector.broadcast %90 : vector<1x256xi1> to vector<1x256xi1>
    %92 = arith.xori %88, %91 : vector<1x256xi1>
    %93 = arith.andi %92, %86 : vector<1x256xi1>
    %94 = vector.broadcast %82 : i32 to vector<1x256xi32>
    %95 = arith.addi %84, %94 : vector<1x256xi32>
    %96 = arith.select %93, %95, %84 : vector<1x256xi1>, vector<1x256xi32>
    %c0_i32_56 = arith.constant 0 : i32
    %97 = vector.broadcast %c0_i32_56 : i32 to vector<1x256xi32>
    %98 = arith.cmpi ne, %96, %97 : vector<1x256xi32>
    %c15_i32_57 = arith.constant 15 : i32
    %99 = vector.broadcast %c15_i32_57 : i32 to vector<1x256xi32>
    %100 = arith.cmpi ne, %96, %99 : vector<1x256xi32>
    %c0_58 = arith.constant 0 : index
    %c0_59 = arith.constant 0 : index
    %101 = vector.load %arg9[%c0_58, %c0_59] : memref<8x290xf32, #tpu.memory_space<vmem>>, vector<8x256xf32>
    %cst_60 = arith.constant 0.000000e+00 : f32
    %102 = vector.shape_cast %98 : vector<1x256xi1> to vector<1x256xi1>
    %103 = vector.broadcast %102 : vector<1x256xi1> to vector<8x256xi1>
    %104 = vector.broadcast %cst_60 : f32 to vector<8x256xf32>
    %105 = arith.select %103, %101, %104 : vector<8x256xi1>, vector<8x256xf32>
    %c0_61 = arith.constant 0 : index
    %c0_62 = arith.constant 0 : index
    %106 = vector.load %arg10[%c0_61, %c0_62] : memref<72x256xf32, #tpu.memory_space<vmem>>, vector<8x256xf32>
    tpu.vector_store %arg10[%c0_61, %c0_62], %105 {strides = array<i32>} : memref<72x256xf32, #tpu.memory_space<vmem>>, vector<8x256xf32>,
    %c0_63 = arith.constant 0 : index
    %c1_64 = arith.constant 1 : index
    %107 = vector.load %arg9[%c0_63, %c1_64] : memref<8x290xf32, #tpu.memory_space<vmem>>, vector<8x256xf32>
    %c8_65 = arith.constant 8 : index
    %c0_66 = arith.constant 0 : index
    %108 = vector.load %arg10[%c8_65, %c0_66] : memref<72x256xf32, #tpu.memory_space<vmem>>, vector<8x256xf32>
    tpu.vector_store %arg10[%c8_65, %c0_66], %107 {strides = array<i32>} : memref<72x256xf32, #tpu.memory_space<vmem>>, vector<8x256xf32>,
    %c0_67 = arith.constant 0 : index
    %c2_68 = arith.constant 2 : index
    %109 = vector.load %arg9[%c0_67, %c2_68] : memref<8x290xf32, #tpu.memory_space<vmem>>, vector<8x256xf32>
    %cst_69 = arith.constant 0.000000e+00 : f32
    %110 = vector.shape_cast %100 : vector<1x256xi1> to vector<1x256xi1>
    %111 = vector.broadcast %110 : vector<1x256xi1> to vector<8x256xi1>
    %112 = vector.broadcast %cst_69 : f32 to vector<8x256xf32>
    %113 = arith.select %111, %109, %112 : vector<8x256xi1>, vector<8x256xf32>
    %c16_70 = arith.constant 16 : index
    %c0_71 = arith.constant 0 : index
    %114 = vector.load %arg10[%c16_70, %c0_71] : memref<72x256xf32, #tpu.memory_space<vmem>>, vector<8x256xf32>
    tpu.vector_store %arg10[%c16_70, %c0_71], %113 {strides = array<i32>} : memref<72x256xf32, #tpu.memory_space<vmem>>, vector<8x256xf32>,
    %c0_72 = arith.constant 0 : index
    %c16_73 = arith.constant 16 : index
    %115 = vector.load %arg9[%c0_72, %c16_73] : memref<8x290xf32, #tpu.memory_space<vmem>>, vector<8x256xf32>
    %cst_74 = arith.constant 0.000000e+00 : f32
    %116 = vector.shape_cast %98 : vector<1x256xi1> to vector<1x256xi1>
    %117 = vector.broadcast %116 : vector<1x256xi1> to vector<8x256xi1>
    %118 = vector.broadcast %cst_74 : f32 to vector<8x256xf32>
    %119 = arith.select %117, %115, %118 : vector<8x256xi1>, vector<8x256xf32>
    %c24_75 = arith.constant 24 : index
    %c0_76 = arith.constant 0 : index
    %120 = vector.load %arg10[%c24_75, %c0_76] : memref<72x256xf32, #tpu.memory_space<vmem>>, vector<8x256xf32>
    tpu.vector_store %arg10[%c24_75, %c0_76], %119 {strides = array<i32>} : memref<72x256xf32, #tpu.memory_space<vmem>>, vector<8x256xf32>,
    %c0_77 = arith.constant 0 : index
    %c17_78 = arith.constant 17 : index
    %121 = vector.load %arg9[%c0_77, %c17_78] : memref<8x290xf32, #tpu.memory_space<vmem>>, vector<8x256xf32>
    %c32_79 = arith.constant 32 : index
    %c0_80 = arith.constant 0 : index
    %122 = vector.load %arg10[%c32_79, %c0_80] : memref<72x256xf32, #tpu.memory_space<vmem>>, vector<8x256xf32>
    tpu.vector_store %arg10[%c32_79, %c0_80], %121 {strides = array<i32>} : memref<72x256xf32, #tpu.memory_space<vmem>>, vector<8x256xf32>,
    %c0_81 = arith.constant 0 : index
    %c18_82 = arith.constant 18 : index
    %123 = vector.load %arg9[%c0_81, %c18_82] : memref<8x290xf32, #tpu.memory_space<vmem>>, vector<8x256xf32>
    %cst_83 = arith.constant 0.000000e+00 : f32
    %124 = vector.shape_cast %100 : vector<1x256xi1> to vector<1x256xi1>
    %125 = vector.broadcast %124 : vector<1x256xi1> to vector<8x256xi1>
    %126 = vector.broadcast %cst_83 : f32 to vector<8x256xf32>
    %127 = arith.select %125, %123, %126 : vector<8x256xi1>, vector<8x256xf32>
    %c40_84 = arith.constant 40 : index
    %c0_85 = arith.constant 0 : index
    %128 = vector.load %arg10[%c40_84, %c0_85] : memref<72x256xf32, #tpu.memory_space<vmem>>, vector<8x256xf32>
    tpu.vector_store %arg10[%c40_84, %c0_85], %127 {strides = array<i32>} : memref<72x256xf32, #tpu.memory_space<vmem>>, vector<8x256xf32>,
    %c0_86 = arith.constant 0 : index
    %c32_87 = arith.constant 32 : index
    %129 = vector.load %arg9[%c0_86, %c32_87] : memref<8x290xf32, #tpu.memory_space<vmem>>, vector<8x256xf32>
    %cst_88 = arith.constant 0.000000e+00 : f32
    %130 = vector.shape_cast %98 : vector<1x256xi1> to vector<1x256xi1>
    %131 = vector.broadcast %130 : vector<1x256xi1> to vector<8x256xi1>
    %132 = vector.broadcast %cst_88 : f32 to vector<8x256xf32>
    %133 = arith.select %131, %129, %132 : vector<8x256xi1>, vector<8x256xf32>
    %c48_89 = arith.constant 48 : index
    %c0_90 = arith.constant 0 : index
    %134 = vector.load %arg10[%c48_89, %c0_90] : memref<72x256xf32, #tpu.memory_space<vmem>>, vector<8x256xf32>
    tpu.vector_store %arg10[%c48_89, %c0_90], %133 {strides = array<i32>} : memref<72x256xf32, #tpu.memory_space<vmem>>, vector<8x256xf32>,
    %c0_91 = arith.constant 0 : index
    %c33_92 = arith.constant 33 : index
    %135 = vector.load %arg9[%c0_91, %c33_92] : memref<8x290xf32, #tpu.memory_space<vmem>>, vector<8x256xf32>
    %c56_93 = arith.constant 56 : index
    %c0_94 = arith.constant 0 : index
    %136 = vector.load %arg10[%c56_93, %c0_94] : memref<72x256xf32, #tpu.memory_space<vmem>>, vector<8x256xf32>
    tpu.vector_store %arg10[%c56_93, %c0_94], %135 {strides = array<i32>} : memref<72x256xf32, #tpu.memory_space<vmem>>, vector<8x256xf32>,
    %c0_95 = arith.constant 0 : index
    %c34_96 = arith.constant 34 : index
    %137 = vector.load %arg9[%c0_95, %c34_96] : memref<8x290xf32, #tpu.memory_space<vmem>>, vector<8x256xf32>
    %cst_97 = arith.constant 0.000000e+00 : f32
    %138 = vector.shape_cast %100 : vector<1x256xi1> to vector<1x256xi1>
    %139 = vector.broadcast %138 : vector<1x256xi1> to vector<8x256xi1>
    %140 = vector.broadcast %cst_97 : f32 to vector<8x256xf32>
    %141 = arith.select %139, %137, %140 : vector<8x256xi1>, vector<8x256xf32>
    %c64_98 = arith.constant 64 : index
    %c0_99 = arith.constant 0 : index
    %142 = vector.load %arg10[%c64_98, %c0_99] : memref<72x256xf32, #tpu.memory_space<vmem>>, vector<8x256xf32>
    tpu.vector_store %arg10[%c64_98, %c0_99], %141 {strides = array<i32>} : memref<72x256xf32, #tpu.memory_space<vmem>>, vector<8x256xf32>,
    %c0_100 = arith.constant 0 : index
    %c0_101 = arith.constant 0 : index
    %143 = vector.load %arg5[%c0_100, %c0_101] : memref<8x72xf32, #tpu.memory_space<vmem>>, vector<8x72xf32>
    %c0_102 = arith.constant 0 : index
    %c0_103 = arith.constant 0 : index
    %144 = vector.load %arg10[%c0_102, %c0_103] : memref<72x256xf32, #tpu.memory_space<vmem>>, vector<72x256xf32>
    %cst_104 = arith.constant dense<0.000000e+00> : vector<8x256xf32>
    %145 = tpu.matmul %143, %144, %cst_104 {dimension_numbers = #tpu.dot_dimension_numbers<[1], [0], [0], [1], [0, 0, 1, 1], [], []>} : vector<8x72xf32>, vector<72x256xf32>, vector<8x256xf32> -> vector<8x256xf32>
    %c0_105 = arith.constant 0 : index
    %c0_106 = arith.constant 0 : index
    %146 = vector.load %arg6[%c0_105, %c0_106] : memref<8x1xf32, #tpu.memory_space<vmem>>, vector<8x1xf32>
    %147 = vector.broadcast %146 : vector<8x1xf32> to vector<8x256xf32>
    %148 = arith.mulf %145, %147 : vector<8x256xf32>
    %c0_107 = arith.constant 0 : index
    %c0_108 = arith.constant 0 : index
    %149 = vector.load %arg7[%c0_107, %c0_108] : memref<8x1xf32, #tpu.memory_space<vmem>>, vector<8x1xf32>
    %150 = vector.broadcast %149 : vector<8x1xf32> to vector<8x256xf32>
    %151 = arith.addf %148, %150 : vector<8x256xf32>
    %152 = arith.addf %151, %3 : vector<8x256xf32>
    %cst_109 = arith.constant 0.000000e+00 : f32
    %153 = vector.broadcast %cst_109 : f32 to vector<8x256xf32>
    %154 = arith.maximumf %152, %153 : vector<8x256xf32>
    %c0_110 = arith.constant 0 : index
    %c0_111 = arith.constant 0 : index
    %c0_112 = arith.constant 0 : index
    %155 = vector.load %arg8[%c0_110, %c0_111, %c0_112] : memref<1x8x256xf32, #tpu.memory_space<vmem>>, vector<1x8x256xf32>
    %156 = vector.shape_cast %155 : vector<1x8x256xf32> to vector<8x256xf32>
    %157 = vector.shape_cast %154 : vector<8x256xf32> to vector<1x8x256xf32>
    tpu.vector_store %arg8[%c0_110, %c0_111, %c0_112], %157 {strides = array<i32>} : memref<1x8x256xf32, #tpu.memory_space<vmem>>, vector<1x8x256xf32>,
    return
  }
  func.func @transform_0(%arg0: i32) -> (i32, i32, i32) {
    %c0_i32 = arith.constant 0 : i32
    %c0_i32_0 = arith.constant 0 : i32
    %c0_i32_1 = arith.constant 0 : i32
    return %arg0, %c0_i32, %c0_i32_0 : i32, i32, i32
  }
  func.func @transform_1(%arg0: i32) -> (i32, i32) {
    %c0_i32 = arith.constant 0 : i32
    %c0_i32_0 = arith.constant 0 : i32
    %c0_i32_1 = arith.constant 0 : i32
    return %c0_i32, %c0_i32_0 : i32, i32
  }
  func.func @transform_2(%arg0: i32) -> (i32, i32) {
    %c0_i32 = arith.constant 0 : i32
    %c0_i32_0 = arith.constant 0 : i32
    %c0_i32_1 = arith.constant 0 : i32
    return %c0_i32, %c0_i32_0 : i32, i32
  }
  func.func @transform_3(%arg0: i32) -> (i32, i32) {
    %c0_i32 = arith.constant 0 : i32
    %c0_i32_0 = arith.constant 0 : i32
    %c0_i32_1 = arith.constant 0 : i32
    return %c0_i32, %c0_i32_0 : i32, i32
  }
  func.func @transform_4(%arg0: i32) -> (i32, i32) {
    %c0_i32 = arith.constant 0 : i32
    %c0_i32_0 = arith.constant 0 : i32
    %c0_i32_1 = arith.constant 0 : i32
    return %c0_i32, %c0_i32_0 : i32, i32
  }
  func.func @transform_5(%arg0: i32) -> (i32, i32) {
    %c0_i32 = arith.constant 0 : i32
    %c0_i32_0 = arith.constant 0 : i32
    %c0_i32_1 = arith.constant 0 : i32
    return %c0_i32, %c0_i32_0 : i32, i32
  }
  func.func @transform_6(%arg0: i32) -> (i32, i32) {
    %c0_i32 = arith.constant 0 : i32
    %c0_i32_0 = arith.constant 0 : i32
    %c0_i32_1 = arith.constant 0 : i32
    return %c0_i32, %c0_i32_0 : i32, i32
  }
  func.func @transform_7(%arg0: i32) -> (i32, i32, i32) {
    %c0_i32 = arith.constant 0 : i32
    %c0_i32_0 = arith.constant 0 : i32
    %c0_i32_1 = arith.constant 0 : i32
    return %arg0, %c0_i32, %c0_i32_0 : i32, i32, i32
  }
}

module attributes {stable_mosaic.version = 11 : i64} {
  func.func @_conv_kernel(%arg0: i32, %arg1: memref<1x8x256xf32, #tpu.memory_space<vmem>>, %arg2: memref<16x72xf32, #tpu.memory_space<vmem>>, %arg3: memref<16x1xf32, #tpu.memory_space<vmem>>, %arg4: memref<16x1xf32, #tpu.memory_space<vmem>>, %arg5: memref<1x16x256xf32, #tpu.memory_space<vmem>>, %arg6: memref<8x290xf32, #tpu.memory_space<vmem>>, %arg7: memref<72x256xf32, #tpu.memory_space<vmem>>) attributes {dimension_semantics = [#tpu.dimension_semantics<parallel>], iteration_bounds = array<i64: 2>, scalar_prefetch = 0 : i64, scratch_operands = 2 : i64, tpu.core_type = #tpu.core_type<tc>, window_params = [{transform_indices = @transform_0, window_bounds = array<i64: 1, 8, 256>}, {pipeline_mode = #tpu.pipeline_mode<synchronous>, transform_indices = @transform_1, window_bounds = array<i64: 16, 72>}, {pipeline_mode = #tpu.pipeline_mode<synchronous>, transform_indices = @transform_2, window_bounds = array<i64: 16, 1>}, {pipeline_mode = #tpu.pipeline_mode<synchronous>, transform_indices = @transform_3, window_bounds = array<i64: 16, 1>}, {transform_indices = @transform_4, window_bounds = array<i64: 1, 16, 256>}]} {
    %cst = arith.constant 0.000000e+00 : f32
    %0 = vector.broadcast %cst : f32 to vector<8x290xf32>
    %c0 = arith.constant 0 : index
    %c0_0 = arith.constant 0 : index
    %1 = vector.load %arg6[%c0, %c0_0] : memref<8x290xf32, #tpu.memory_space<vmem>>, vector<8x290xf32>
    tpu.vector_store %arg6[%c0, %c0_0], %0 {strides = array<i32>} : memref<8x290xf32, #tpu.memory_space<vmem>>, vector<8x290xf32>,
    %c0_1 = arith.constant 0 : index
    %c0_2 = arith.constant 0 : index
    %c0_3 = arith.constant 0 : index
    %2 = vector.load %arg1[%c0_1, %c0_2, %c0_3] : memref<1x8x256xf32, #tpu.memory_space<vmem>>, vector<1x8x256xf32>
    %3 = vector.shape_cast %2 : vector<1x8x256xf32> to vector<8x256xf32>
    %c0_4 = arith.constant 0 : index
    %c17 = arith.constant 17 : index
    %4 = vector.load %arg6[%c0_4, %c17] : memref<8x290xf32, #tpu.memory_space<vmem>>, vector<8x256xf32>
    tpu.vector_store %arg6[%c0_4, %c17], %3 {strides = array<i32>} : memref<8x290xf32, #tpu.memory_space<vmem>>, vector<8x256xf32>,
    %5 = tpu.iota {dimensions = array<i32: 1>} : vector<1x256xi32>
    %c16_i32 = arith.constant 16 : i32
    %c0_i32 = arith.constant 0 : i32
    %6 = arith.cmpi eq, %c16_i32, %c0_i32 : i32
    %c1_i32 = arith.constant 1 : i32
    %7 = arith.select %6, %c1_i32, %c16_i32 : i32
    %8 = vector.broadcast %7 : i32 to vector<1x256xi32>
    %9 = arith.remsi %5, %8 : vector<1x256xi32>
    %c0_i32_5 = arith.constant 0 : i32
    %10 = vector.broadcast %c0_i32_5 : i32 to vector<1x256xi32>
    %11 = arith.cmpi ne, %9, %10 : vector<1x256xi32>
    %c0_i32_6 = arith.constant 0 : i32
    %12 = vector.broadcast %c0_i32_6 : i32 to vector<1x256xi32>
    %13 = arith.cmpi slt, %9, %12 : vector<1x256xi32>
    %c0_i32_7 = arith.constant 0 : i32
    %14 = arith.cmpi slt, %7, %c0_i32_7 : i32
    %15 = vector.broadcast %14 : i1 to vector<1x256xi1>
    %16 = vector.broadcast %15 : vector<1x256xi1> to vector<1x256xi1>
    %17 = arith.xori %13, %16 : vector<1x256xi1>
    %18 = arith.andi %17, %11 : vector<1x256xi1>
    %19 = vector.broadcast %7 : i32 to vector<1x256xi32>
    %20 = arith.addi %9, %19 : vector<1x256xi32>
    %21 = arith.select %18, %20, %9 : vector<1x256xi1>, vector<1x256xi32>
    %c0_i32_8 = arith.constant 0 : i32
    %22 = vector.broadcast %c0_i32_8 : i32 to vector<1x256xi32>
    %23 = arith.cmpi ne, %21, %22 : vector<1x256xi32>
    %c15_i32 = arith.constant 15 : i32
    %24 = vector.broadcast %c15_i32 : i32 to vector<1x256xi32>
    %25 = arith.cmpi ne, %21, %24 : vector<1x256xi32>
    %c0_9 = arith.constant 0 : index
    %c0_10 = arith.constant 0 : index
    %26 = vector.load %arg6[%c0_9, %c0_10] : memref<8x290xf32, #tpu.memory_space<vmem>>, vector<8x256xf32>
    %cst_11 = arith.constant 0.000000e+00 : f32
    %27 = vector.shape_cast %23 : vector<1x256xi1> to vector<1x256xi1>
    %28 = vector.broadcast %27 : vector<1x256xi1> to vector<8x256xi1>
    %29 = vector.broadcast %cst_11 : f32 to vector<8x256xf32>
    %30 = arith.select %28, %26, %29 : vector<8x256xi1>, vector<8x256xf32>
    %c0_12 = arith.constant 0 : index
    %c0_13 = arith.constant 0 : index
    %31 = vector.load %arg7[%c0_12, %c0_13] : memref<72x256xf32, #tpu.memory_space<vmem>>, vector<8x256xf32>
    tpu.vector_store %arg7[%c0_12, %c0_13], %30 {strides = array<i32>} : memref<72x256xf32, #tpu.memory_space<vmem>>, vector<8x256xf32>,
    %c0_14 = arith.constant 0 : index
    %c1 = arith.constant 1 : index
    %32 = vector.load %arg6[%c0_14, %c1] : memref<8x290xf32, #tpu.memory_space<vmem>>, vector<8x256xf32>
    %c8 = arith.constant 8 : index
    %c0_15 = arith.constant 0 : index
    %33 = vector.load %arg7[%c8, %c0_15] : memref<72x256xf32, #tpu.memory_space<vmem>>, vector<8x256xf32>
    tpu.vector_store %arg7[%c8, %c0_15], %32 {strides = array<i32>} : memref<72x256xf32, #tpu.memory_space<vmem>>, vector<8x256xf32>,
    %c0_16 = arith.constant 0 : index
    %c2 = arith.constant 2 : index
    %34 = vector.load %arg6[%c0_16, %c2] : memref<8x290xf32, #tpu.memory_space<vmem>>, vector<8x256xf32>
    %cst_17 = arith.constant 0.000000e+00 : f32
    %35 = vector.shape_cast %25 : vector<1x256xi1> to vector<1x256xi1>
    %36 = vector.broadcast %35 : vector<1x256xi1> to vector<8x256xi1>
    %37 = vector.broadcast %cst_17 : f32 to vector<8x256xf32>
    %38 = arith.select %36, %34, %37 : vector<8x256xi1>, vector<8x256xf32>
    %c16 = arith.constant 16 : index
    %c0_18 = arith.constant 0 : index
    %39 = vector.load %arg7[%c16, %c0_18] : memref<72x256xf32, #tpu.memory_space<vmem>>, vector<8x256xf32>
    tpu.vector_store %arg7[%c16, %c0_18], %38 {strides = array<i32>} : memref<72x256xf32, #tpu.memory_space<vmem>>, vector<8x256xf32>,
    %c0_19 = arith.constant 0 : index
    %c16_20 = arith.constant 16 : index
    %40 = vector.load %arg6[%c0_19, %c16_20] : memref<8x290xf32, #tpu.memory_space<vmem>>, vector<8x256xf32>
    %cst_21 = arith.constant 0.000000e+00 : f32
    %41 = vector.shape_cast %23 : vector<1x256xi1> to vector<1x256xi1>
    %42 = vector.broadcast %41 : vector<1x256xi1> to vector<8x256xi1>
    %43 = vector.broadcast %cst_21 : f32 to vector<8x256xf32>
    %44 = arith.select %42, %40, %43 : vector<8x256xi1>, vector<8x256xf32>
    %c24 = arith.constant 24 : index
    %c0_22 = arith.constant 0 : index
    %45 = vector.load %arg7[%c24, %c0_22] : memref<72x256xf32, #tpu.memory_space<vmem>>, vector<8x256xf32>
    tpu.vector_store %arg7[%c24, %c0_22], %44 {strides = array<i32>} : memref<72x256xf32, #tpu.memory_space<vmem>>, vector<8x256xf32>,
    %c0_23 = arith.constant 0 : index
    %c17_24 = arith.constant 17 : index
    %46 = vector.load %arg6[%c0_23, %c17_24] : memref<8x290xf32, #tpu.memory_space<vmem>>, vector<8x256xf32>
    %c32 = arith.constant 32 : index
    %c0_25 = arith.constant 0 : index
    %47 = vector.load %arg7[%c32, %c0_25] : memref<72x256xf32, #tpu.memory_space<vmem>>, vector<8x256xf32>
    tpu.vector_store %arg7[%c32, %c0_25], %46 {strides = array<i32>} : memref<72x256xf32, #tpu.memory_space<vmem>>, vector<8x256xf32>,
    %c0_26 = arith.constant 0 : index
    %c18 = arith.constant 18 : index
    %48 = vector.load %arg6[%c0_26, %c18] : memref<8x290xf32, #tpu.memory_space<vmem>>, vector<8x256xf32>
    %cst_27 = arith.constant 0.000000e+00 : f32
    %49 = vector.shape_cast %25 : vector<1x256xi1> to vector<1x256xi1>
    %50 = vector.broadcast %49 : vector<1x256xi1> to vector<8x256xi1>
    %51 = vector.broadcast %cst_27 : f32 to vector<8x256xf32>
    %52 = arith.select %50, %48, %51 : vector<8x256xi1>, vector<8x256xf32>
    %c40 = arith.constant 40 : index
    %c0_28 = arith.constant 0 : index
    %53 = vector.load %arg7[%c40, %c0_28] : memref<72x256xf32, #tpu.memory_space<vmem>>, vector<8x256xf32>
    tpu.vector_store %arg7[%c40, %c0_28], %52 {strides = array<i32>} : memref<72x256xf32, #tpu.memory_space<vmem>>, vector<8x256xf32>,
    %c0_29 = arith.constant 0 : index
    %c32_30 = arith.constant 32 : index
    %54 = vector.load %arg6[%c0_29, %c32_30] : memref<8x290xf32, #tpu.memory_space<vmem>>, vector<8x256xf32>
    %cst_31 = arith.constant 0.000000e+00 : f32
    %55 = vector.shape_cast %23 : vector<1x256xi1> to vector<1x256xi1>
    %56 = vector.broadcast %55 : vector<1x256xi1> to vector<8x256xi1>
    %57 = vector.broadcast %cst_31 : f32 to vector<8x256xf32>
    %58 = arith.select %56, %54, %57 : vector<8x256xi1>, vector<8x256xf32>
    %c48 = arith.constant 48 : index
    %c0_32 = arith.constant 0 : index
    %59 = vector.load %arg7[%c48, %c0_32] : memref<72x256xf32, #tpu.memory_space<vmem>>, vector<8x256xf32>
    tpu.vector_store %arg7[%c48, %c0_32], %58 {strides = array<i32>} : memref<72x256xf32, #tpu.memory_space<vmem>>, vector<8x256xf32>,
    %c0_33 = arith.constant 0 : index
    %c33 = arith.constant 33 : index
    %60 = vector.load %arg6[%c0_33, %c33] : memref<8x290xf32, #tpu.memory_space<vmem>>, vector<8x256xf32>
    %c56 = arith.constant 56 : index
    %c0_34 = arith.constant 0 : index
    %61 = vector.load %arg7[%c56, %c0_34] : memref<72x256xf32, #tpu.memory_space<vmem>>, vector<8x256xf32>
    tpu.vector_store %arg7[%c56, %c0_34], %60 {strides = array<i32>} : memref<72x256xf32, #tpu.memory_space<vmem>>, vector<8x256xf32>,
    %c0_35 = arith.constant 0 : index
    %c34 = arith.constant 34 : index
    %62 = vector.load %arg6[%c0_35, %c34] : memref<8x290xf32, #tpu.memory_space<vmem>>, vector<8x256xf32>
    %cst_36 = arith.constant 0.000000e+00 : f32
    %63 = vector.shape_cast %25 : vector<1x256xi1> to vector<1x256xi1>
    %64 = vector.broadcast %63 : vector<1x256xi1> to vector<8x256xi1>
    %65 = vector.broadcast %cst_36 : f32 to vector<8x256xf32>
    %66 = arith.select %64, %62, %65 : vector<8x256xi1>, vector<8x256xf32>
    %c64 = arith.constant 64 : index
    %c0_37 = arith.constant 0 : index
    %67 = vector.load %arg7[%c64, %c0_37] : memref<72x256xf32, #tpu.memory_space<vmem>>, vector<8x256xf32>
    tpu.vector_store %arg7[%c64, %c0_37], %66 {strides = array<i32>} : memref<72x256xf32, #tpu.memory_space<vmem>>, vector<8x256xf32>,
    %c0_38 = arith.constant 0 : index
    %c0_39 = arith.constant 0 : index
    %68 = vector.load %arg2[%c0_38, %c0_39] : memref<16x72xf32, #tpu.memory_space<vmem>>, vector<16x72xf32>
    %c0_40 = arith.constant 0 : index
    %c0_41 = arith.constant 0 : index
    %69 = vector.load %arg7[%c0_40, %c0_41] : memref<72x256xf32, #tpu.memory_space<vmem>>, vector<72x256xf32>
    %cst_42 = arith.constant dense<0.000000e+00> : vector<16x256xf32>
    %70 = tpu.matmul %68, %69, %cst_42 {dimension_numbers = #tpu.dot_dimension_numbers<[1], [0], [0], [1], [0, 0, 1, 1], [], []>} : vector<16x72xf32>, vector<72x256xf32>, vector<16x256xf32> -> vector<16x256xf32>
    %c0_43 = arith.constant 0 : index
    %c0_44 = arith.constant 0 : index
    %71 = vector.load %arg3[%c0_43, %c0_44] : memref<16x1xf32, #tpu.memory_space<vmem>>, vector<16x1xf32>
    %72 = vector.broadcast %71 : vector<16x1xf32> to vector<16x256xf32>
    %73 = arith.mulf %70, %72 : vector<16x256xf32>
    %c0_45 = arith.constant 0 : index
    %c0_46 = arith.constant 0 : index
    %74 = vector.load %arg4[%c0_45, %c0_46] : memref<16x1xf32, #tpu.memory_space<vmem>>, vector<16x1xf32>
    %75 = vector.broadcast %74 : vector<16x1xf32> to vector<16x256xf32>
    %76 = arith.addf %73, %75 : vector<16x256xf32>
    %cst_47 = arith.constant 0.000000e+00 : f32
    %77 = vector.broadcast %cst_47 : f32 to vector<16x256xf32>
    %78 = arith.maximumf %76, %77 : vector<16x256xf32>
    %c0_48 = arith.constant 0 : index
    %c0_49 = arith.constant 0 : index
    %c0_50 = arith.constant 0 : index
    %79 = vector.load %arg5[%c0_48, %c0_49, %c0_50] : memref<1x16x256xf32, #tpu.memory_space<vmem>>, vector<1x16x256xf32>
    %80 = vector.shape_cast %79 : vector<1x16x256xf32> to vector<16x256xf32>
    %81 = vector.shape_cast %78 : vector<16x256xf32> to vector<1x16x256xf32>
    tpu.vector_store %arg5[%c0_48, %c0_49, %c0_50], %81 {strides = array<i32>} : memref<1x16x256xf32, #tpu.memory_space<vmem>>, vector<1x16x256xf32>,
    return
  }
  func.func @transform_0(%arg0: i32) -> (i32, i32, i32) {
    %c0_i32 = arith.constant 0 : i32
    %c0_i32_0 = arith.constant 0 : i32
    %c0_i32_1 = arith.constant 0 : i32
    return %arg0, %c0_i32, %c0_i32_0 : i32, i32, i32
  }
  func.func @transform_1(%arg0: i32) -> (i32, i32) {
    %c0_i32 = arith.constant 0 : i32
    %c0_i32_0 = arith.constant 0 : i32
    %c0_i32_1 = arith.constant 0 : i32
    return %c0_i32, %c0_i32_0 : i32, i32
  }
  func.func @transform_2(%arg0: i32) -> (i32, i32) {
    %c0_i32 = arith.constant 0 : i32
    %c0_i32_0 = arith.constant 0 : i32
    %c0_i32_1 = arith.constant 0 : i32
    return %c0_i32, %c0_i32_0 : i32, i32
  }
  func.func @transform_3(%arg0: i32) -> (i32, i32) {
    %c0_i32 = arith.constant 0 : i32
    %c0_i32_0 = arith.constant 0 : i32
    %c0_i32_1 = arith.constant 0 : i32
    return %c0_i32, %c0_i32_0 : i32, i32
  }
  func.func @transform_4(%arg0: i32) -> (i32, i32, i32) {
    %c0_i32 = arith.constant 0 : i32
    %c0_i32_0 = arith.constant 0 : i32
    %c0_i32_1 = arith.constant 0 : i32
    return %arg0, %c0_i32, %c0_i32_0 : i32, i32, i32
  }
}

module attributes {stable_mosaic.version = 11 : i64} {
  func.func @_resblock_kernel(%arg0: i32, %arg1: memref<1x16x64xf32, #tpu.memory_space<vmem>>, %arg2: memref<16x144xf32, #tpu.memory_space<vmem>>, %arg3: memref<16x1xf32, #tpu.memory_space<vmem>>, %arg4: memref<16x1xf32, #tpu.memory_space<vmem>>, %arg5: memref<16x144xf32, #tpu.memory_space<vmem>>, %arg6: memref<16x1xf32, #tpu.memory_space<vmem>>, %arg7: memref<16x1xf32, #tpu.memory_space<vmem>>, %arg8: memref<1x16x64xf32, #tpu.memory_space<vmem>>, %arg9: memref<16x82xf32, #tpu.memory_space<vmem>>, %arg10: memref<144x64xf32, #tpu.memory_space<vmem>>) attributes {dimension_semantics = [#tpu.dimension_semantics<parallel>], iteration_bounds = array<i64: 2>, scalar_prefetch = 0 : i64, scratch_operands = 2 : i64, tpu.core_type = #tpu.core_type<tc>, window_params = [{transform_indices = @transform_0, window_bounds = array<i64: 1, 16, 64>}, {pipeline_mode = #tpu.pipeline_mode<synchronous>, transform_indices = @transform_1, window_bounds = array<i64: 16, 144>}, {pipeline_mode = #tpu.pipeline_mode<synchronous>, transform_indices = @transform_2, window_bounds = array<i64: 16, 1>}, {pipeline_mode = #tpu.pipeline_mode<synchronous>, transform_indices = @transform_3, window_bounds = array<i64: 16, 1>}, {pipeline_mode = #tpu.pipeline_mode<synchronous>, transform_indices = @transform_4, window_bounds = array<i64: 16, 144>}, {pipeline_mode = #tpu.pipeline_mode<synchronous>, transform_indices = @transform_5, window_bounds = array<i64: 16, 1>}, {pipeline_mode = #tpu.pipeline_mode<synchronous>, transform_indices = @transform_6, window_bounds = array<i64: 16, 1>}, {transform_indices = @transform_7, window_bounds = array<i64: 1, 16, 64>}]} {
    %cst = arith.constant 0.000000e+00 : f32
    %0 = vector.broadcast %cst : f32 to vector<16x82xf32>
    %c0 = arith.constant 0 : index
    %c0_0 = arith.constant 0 : index
    %1 = vector.load %arg9[%c0, %c0_0] : memref<16x82xf32, #tpu.memory_space<vmem>>, vector<16x82xf32>
    tpu.vector_store %arg9[%c0, %c0_0], %0 {strides = array<i32>} : memref<16x82xf32, #tpu.memory_space<vmem>>, vector<16x82xf32>,
    %c0_1 = arith.constant 0 : index
    %c0_2 = arith.constant 0 : index
    %c0_3 = arith.constant 0 : index
    %2 = vector.load %arg1[%c0_1, %c0_2, %c0_3] : memref<1x16x64xf32, #tpu.memory_space<vmem>>, vector<1x16x64xf32>
    %3 = vector.shape_cast %2 : vector<1x16x64xf32> to vector<16x64xf32>
    %c0_4 = arith.constant 0 : index
    %c9 = arith.constant 9 : index
    %4 = vector.load %arg9[%c0_4, %c9] : memref<16x82xf32, #tpu.memory_space<vmem>>, vector<16x64xf32>
    tpu.vector_store %arg9[%c0_4, %c9], %3 {strides = array<i32>} : memref<16x82xf32, #tpu.memory_space<vmem>>, vector<16x64xf32>,
    %5 = tpu.iota {dimensions = array<i32: 1>} : vector<1x64xi32>
    %c8_i32 = arith.constant 8 : i32
    %c0_i32 = arith.constant 0 : i32
    %6 = arith.cmpi eq, %c8_i32, %c0_i32 : i32
    %c1_i32 = arith.constant 1 : i32
    %7 = arith.select %6, %c1_i32, %c8_i32 : i32
    %8 = vector.broadcast %7 : i32 to vector<1x64xi32>
    %9 = arith.remsi %5, %8 : vector<1x64xi32>
    %c0_i32_5 = arith.constant 0 : i32
    %10 = vector.broadcast %c0_i32_5 : i32 to vector<1x64xi32>
    %11 = arith.cmpi ne, %9, %10 : vector<1x64xi32>
    %c0_i32_6 = arith.constant 0 : i32
    %12 = vector.broadcast %c0_i32_6 : i32 to vector<1x64xi32>
    %13 = arith.cmpi slt, %9, %12 : vector<1x64xi32>
    %c0_i32_7 = arith.constant 0 : i32
    %14 = arith.cmpi slt, %7, %c0_i32_7 : i32
    %15 = vector.broadcast %14 : i1 to vector<1x64xi1>
    %16 = vector.broadcast %15 : vector<1x64xi1> to vector<1x64xi1>
    %17 = arith.xori %13, %16 : vector<1x64xi1>
    %18 = arith.andi %17, %11 : vector<1x64xi1>
    %19 = vector.broadcast %7 : i32 to vector<1x64xi32>
    %20 = arith.addi %9, %19 : vector<1x64xi32>
    %21 = arith.select %18, %20, %9 : vector<1x64xi1>, vector<1x64xi32>
    %c0_i32_8 = arith.constant 0 : i32
    %22 = vector.broadcast %c0_i32_8 : i32 to vector<1x64xi32>
    %23 = arith.cmpi ne, %21, %22 : vector<1x64xi32>
    %c7_i32 = arith.constant 7 : i32
    %24 = vector.broadcast %c7_i32 : i32 to vector<1x64xi32>
    %25 = arith.cmpi ne, %21, %24 : vector<1x64xi32>
    %c0_9 = arith.constant 0 : index
    %c0_10 = arith.constant 0 : index
    %26 = vector.load %arg9[%c0_9, %c0_10] : memref<16x82xf32, #tpu.memory_space<vmem>>, vector<16x64xf32>
    %cst_11 = arith.constant 0.000000e+00 : f32
    %27 = vector.shape_cast %23 : vector<1x64xi1> to vector<1x64xi1>
    %28 = vector.broadcast %27 : vector<1x64xi1> to vector<16x64xi1>
    %29 = vector.broadcast %cst_11 : f32 to vector<16x64xf32>
    %30 = arith.select %28, %26, %29 : vector<16x64xi1>, vector<16x64xf32>
    %c0_12 = arith.constant 0 : index
    %c0_13 = arith.constant 0 : index
    %31 = vector.load %arg10[%c0_12, %c0_13] : memref<144x64xf32, #tpu.memory_space<vmem>>, vector<16x64xf32>
    tpu.vector_store %arg10[%c0_12, %c0_13], %30 {strides = array<i32>} : memref<144x64xf32, #tpu.memory_space<vmem>>, vector<16x64xf32>,
    %c0_14 = arith.constant 0 : index
    %c1 = arith.constant 1 : index
    %32 = vector.load %arg9[%c0_14, %c1] : memref<16x82xf32, #tpu.memory_space<vmem>>, vector<16x64xf32>
    %c16 = arith.constant 16 : index
    %c0_15 = arith.constant 0 : index
    %33 = vector.load %arg10[%c16, %c0_15] : memref<144x64xf32, #tpu.memory_space<vmem>>, vector<16x64xf32>
    tpu.vector_store %arg10[%c16, %c0_15], %32 {strides = array<i32>} : memref<144x64xf32, #tpu.memory_space<vmem>>, vector<16x64xf32>,
    %c0_16 = arith.constant 0 : index
    %c2 = arith.constant 2 : index
    %34 = vector.load %arg9[%c0_16, %c2] : memref<16x82xf32, #tpu.memory_space<vmem>>, vector<16x64xf32>
    %cst_17 = arith.constant 0.000000e+00 : f32
    %35 = vector.shape_cast %25 : vector<1x64xi1> to vector<1x64xi1>
    %36 = vector.broadcast %35 : vector<1x64xi1> to vector<16x64xi1>
    %37 = vector.broadcast %cst_17 : f32 to vector<16x64xf32>
    %38 = arith.select %36, %34, %37 : vector<16x64xi1>, vector<16x64xf32>
    %c32 = arith.constant 32 : index
    %c0_18 = arith.constant 0 : index
    %39 = vector.load %arg10[%c32, %c0_18] : memref<144x64xf32, #tpu.memory_space<vmem>>, vector<16x64xf32>
    tpu.vector_store %arg10[%c32, %c0_18], %38 {strides = array<i32>} : memref<144x64xf32, #tpu.memory_space<vmem>>, vector<16x64xf32>,
    %c0_19 = arith.constant 0 : index
    %c8 = arith.constant 8 : index
    %40 = vector.load %arg9[%c0_19, %c8] : memref<16x82xf32, #tpu.memory_space<vmem>>, vector<16x64xf32>
    %cst_20 = arith.constant 0.000000e+00 : f32
    %41 = vector.shape_cast %23 : vector<1x64xi1> to vector<1x64xi1>
    %42 = vector.broadcast %41 : vector<1x64xi1> to vector<16x64xi1>
    %43 = vector.broadcast %cst_20 : f32 to vector<16x64xf32>
    %44 = arith.select %42, %40, %43 : vector<16x64xi1>, vector<16x64xf32>
    %c48 = arith.constant 48 : index
    %c0_21 = arith.constant 0 : index
    %45 = vector.load %arg10[%c48, %c0_21] : memref<144x64xf32, #tpu.memory_space<vmem>>, vector<16x64xf32>
    tpu.vector_store %arg10[%c48, %c0_21], %44 {strides = array<i32>} : memref<144x64xf32, #tpu.memory_space<vmem>>, vector<16x64xf32>,
    %c0_22 = arith.constant 0 : index
    %c9_23 = arith.constant 9 : index
    %46 = vector.load %arg9[%c0_22, %c9_23] : memref<16x82xf32, #tpu.memory_space<vmem>>, vector<16x64xf32>
    %c64 = arith.constant 64 : index
    %c0_24 = arith.constant 0 : index
    %47 = vector.load %arg10[%c64, %c0_24] : memref<144x64xf32, #tpu.memory_space<vmem>>, vector<16x64xf32>
    tpu.vector_store %arg10[%c64, %c0_24], %46 {strides = array<i32>} : memref<144x64xf32, #tpu.memory_space<vmem>>, vector<16x64xf32>,
    %c0_25 = arith.constant 0 : index
    %c10 = arith.constant 10 : index
    %48 = vector.load %arg9[%c0_25, %c10] : memref<16x82xf32, #tpu.memory_space<vmem>>, vector<16x64xf32>
    %cst_26 = arith.constant 0.000000e+00 : f32
    %49 = vector.shape_cast %25 : vector<1x64xi1> to vector<1x64xi1>
    %50 = vector.broadcast %49 : vector<1x64xi1> to vector<16x64xi1>
    %51 = vector.broadcast %cst_26 : f32 to vector<16x64xf32>
    %52 = arith.select %50, %48, %51 : vector<16x64xi1>, vector<16x64xf32>
    %c80 = arith.constant 80 : index
    %c0_27 = arith.constant 0 : index
    %53 = vector.load %arg10[%c80, %c0_27] : memref<144x64xf32, #tpu.memory_space<vmem>>, vector<16x64xf32>
    tpu.vector_store %arg10[%c80, %c0_27], %52 {strides = array<i32>} : memref<144x64xf32, #tpu.memory_space<vmem>>, vector<16x64xf32>,
    %c0_28 = arith.constant 0 : index
    %c16_29 = arith.constant 16 : index
    %54 = vector.load %arg9[%c0_28, %c16_29] : memref<16x82xf32, #tpu.memory_space<vmem>>, vector<16x64xf32>
    %cst_30 = arith.constant 0.000000e+00 : f32
    %55 = vector.shape_cast %23 : vector<1x64xi1> to vector<1x64xi1>
    %56 = vector.broadcast %55 : vector<1x64xi1> to vector<16x64xi1>
    %57 = vector.broadcast %cst_30 : f32 to vector<16x64xf32>
    %58 = arith.select %56, %54, %57 : vector<16x64xi1>, vector<16x64xf32>
    %c96 = arith.constant 96 : index
    %c0_31 = arith.constant 0 : index
    %59 = vector.load %arg10[%c96, %c0_31] : memref<144x64xf32, #tpu.memory_space<vmem>>, vector<16x64xf32>
    tpu.vector_store %arg10[%c96, %c0_31], %58 {strides = array<i32>} : memref<144x64xf32, #tpu.memory_space<vmem>>, vector<16x64xf32>,
    %c0_32 = arith.constant 0 : index
    %c17 = arith.constant 17 : index
    %60 = vector.load %arg9[%c0_32, %c17] : memref<16x82xf32, #tpu.memory_space<vmem>>, vector<16x64xf32>
    %c112 = arith.constant 112 : index
    %c0_33 = arith.constant 0 : index
    %61 = vector.load %arg10[%c112, %c0_33] : memref<144x64xf32, #tpu.memory_space<vmem>>, vector<16x64xf32>
    tpu.vector_store %arg10[%c112, %c0_33], %60 {strides = array<i32>} : memref<144x64xf32, #tpu.memory_space<vmem>>, vector<16x64xf32>,
    %c0_34 = arith.constant 0 : index
    %c18 = arith.constant 18 : index
    %62 = vector.load %arg9[%c0_34, %c18] : memref<16x82xf32, #tpu.memory_space<vmem>>, vector<16x64xf32>
    %cst_35 = arith.constant 0.000000e+00 : f32
    %63 = vector.shape_cast %25 : vector<1x64xi1> to vector<1x64xi1>
    %64 = vector.broadcast %63 : vector<1x64xi1> to vector<16x64xi1>
    %65 = vector.broadcast %cst_35 : f32 to vector<16x64xf32>
    %66 = arith.select %64, %62, %65 : vector<16x64xi1>, vector<16x64xf32>
    %c128 = arith.constant 128 : index
    %c0_36 = arith.constant 0 : index
    %67 = vector.load %arg10[%c128, %c0_36] : memref<144x64xf32, #tpu.memory_space<vmem>>, vector<16x64xf32>
    tpu.vector_store %arg10[%c128, %c0_36], %66 {strides = array<i32>} : memref<144x64xf32, #tpu.memory_space<vmem>>, vector<16x64xf32>,
    %c0_37 = arith.constant 0 : index
    %c0_38 = arith.constant 0 : index
    %68 = vector.load %arg2[%c0_37, %c0_38] : memref<16x144xf32, #tpu.memory_space<vmem>>, vector<16x144xf32>
    %c0_39 = arith.constant 0 : index
    %c0_40 = arith.constant 0 : index
    %69 = vector.load %arg10[%c0_39, %c0_40] : memref<144x64xf32, #tpu.memory_space<vmem>>, vector<144x64xf32>
    %cst_41 = arith.constant dense<0.000000e+00> : vector<16x64xf32>
    %70 = tpu.matmul %68, %69, %cst_41 {dimension_numbers = #tpu.dot_dimension_numbers<[1], [0], [0], [1], [0, 0, 1, 1], [], []>} : vector<16x144xf32>, vector<144x64xf32>, vector<16x64xf32> -> vector<16x64xf32>
    %c0_42 = arith.constant 0 : index
    %c0_43 = arith.constant 0 : index
    %71 = vector.load %arg3[%c0_42, %c0_43] : memref<16x1xf32, #tpu.memory_space<vmem>>, vector<16x1xf32>
    %72 = vector.broadcast %71 : vector<16x1xf32> to vector<16x64xf32>
    %73 = arith.mulf %70, %72 : vector<16x64xf32>
    %c0_44 = arith.constant 0 : index
    %c0_45 = arith.constant 0 : index
    %74 = vector.load %arg4[%c0_44, %c0_45] : memref<16x1xf32, #tpu.memory_space<vmem>>, vector<16x1xf32>
    %75 = vector.broadcast %74 : vector<16x1xf32> to vector<16x64xf32>
    %76 = arith.addf %73, %75 : vector<16x64xf32>
    %cst_46 = arith.constant 0.000000e+00 : f32
    %77 = vector.broadcast %cst_46 : f32 to vector<16x64xf32>
    %78 = arith.maximumf %76, %77 : vector<16x64xf32>
    %c0_47 = arith.constant 0 : index
    %c9_48 = arith.constant 9 : index
    %79 = vector.load %arg9[%c0_47, %c9_48] : memref<16x82xf32, #tpu.memory_space<vmem>>, vector<16x64xf32>
    tpu.vector_store %arg9[%c0_47, %c9_48], %78 {strides = array<i32>} : memref<16x82xf32, #tpu.memory_space<vmem>>, vector<16x64xf32>,
    %80 = tpu.iota {dimensions = array<i32: 1>} : vector<1x64xi32>
    %c8_i32_49 = arith.constant 8 : i32
    %c0_i32_50 = arith.constant 0 : i32
    %81 = arith.cmpi eq, %c8_i32_49, %c0_i32_50 : i32
    %c1_i32_51 = arith.constant 1 : i32
    %82 = arith.select %81, %c1_i32_51, %c8_i32_49 : i32
    %83 = vector.broadcast %82 : i32 to vector<1x64xi32>
    %84 = arith.remsi %80, %83 : vector<1x64xi32>
    %c0_i32_52 = arith.constant 0 : i32
    %85 = vector.broadcast %c0_i32_52 : i32 to vector<1x64xi32>
    %86 = arith.cmpi ne, %84, %85 : vector<1x64xi32>
    %c0_i32_53 = arith.constant 0 : i32
    %87 = vector.broadcast %c0_i32_53 : i32 to vector<1x64xi32>
    %88 = arith.cmpi slt, %84, %87 : vector<1x64xi32>
    %c0_i32_54 = arith.constant 0 : i32
    %89 = arith.cmpi slt, %82, %c0_i32_54 : i32
    %90 = vector.broadcast %89 : i1 to vector<1x64xi1>
    %91 = vector.broadcast %90 : vector<1x64xi1> to vector<1x64xi1>
    %92 = arith.xori %88, %91 : vector<1x64xi1>
    %93 = arith.andi %92, %86 : vector<1x64xi1>
    %94 = vector.broadcast %82 : i32 to vector<1x64xi32>
    %95 = arith.addi %84, %94 : vector<1x64xi32>
    %96 = arith.select %93, %95, %84 : vector<1x64xi1>, vector<1x64xi32>
    %c0_i32_55 = arith.constant 0 : i32
    %97 = vector.broadcast %c0_i32_55 : i32 to vector<1x64xi32>
    %98 = arith.cmpi ne, %96, %97 : vector<1x64xi32>
    %c7_i32_56 = arith.constant 7 : i32
    %99 = vector.broadcast %c7_i32_56 : i32 to vector<1x64xi32>
    %100 = arith.cmpi ne, %96, %99 : vector<1x64xi32>
    %c0_57 = arith.constant 0 : index
    %c0_58 = arith.constant 0 : index
    %101 = vector.load %arg9[%c0_57, %c0_58] : memref<16x82xf32, #tpu.memory_space<vmem>>, vector<16x64xf32>
    %cst_59 = arith.constant 0.000000e+00 : f32
    %102 = vector.shape_cast %98 : vector<1x64xi1> to vector<1x64xi1>
    %103 = vector.broadcast %102 : vector<1x64xi1> to vector<16x64xi1>
    %104 = vector.broadcast %cst_59 : f32 to vector<16x64xf32>
    %105 = arith.select %103, %101, %104 : vector<16x64xi1>, vector<16x64xf32>
    %c0_60 = arith.constant 0 : index
    %c0_61 = arith.constant 0 : index
    %106 = vector.load %arg10[%c0_60, %c0_61] : memref<144x64xf32, #tpu.memory_space<vmem>>, vector<16x64xf32>
    tpu.vector_store %arg10[%c0_60, %c0_61], %105 {strides = array<i32>} : memref<144x64xf32, #tpu.memory_space<vmem>>, vector<16x64xf32>,
    %c0_62 = arith.constant 0 : index
    %c1_63 = arith.constant 1 : index
    %107 = vector.load %arg9[%c0_62, %c1_63] : memref<16x82xf32, #tpu.memory_space<vmem>>, vector<16x64xf32>
    %c16_64 = arith.constant 16 : index
    %c0_65 = arith.constant 0 : index
    %108 = vector.load %arg10[%c16_64, %c0_65] : memref<144x64xf32, #tpu.memory_space<vmem>>, vector<16x64xf32>
    tpu.vector_store %arg10[%c16_64, %c0_65], %107 {strides = array<i32>} : memref<144x64xf32, #tpu.memory_space<vmem>>, vector<16x64xf32>,
    %c0_66 = arith.constant 0 : index
    %c2_67 = arith.constant 2 : index
    %109 = vector.load %arg9[%c0_66, %c2_67] : memref<16x82xf32, #tpu.memory_space<vmem>>, vector<16x64xf32>
    %cst_68 = arith.constant 0.000000e+00 : f32
    %110 = vector.shape_cast %100 : vector<1x64xi1> to vector<1x64xi1>
    %111 = vector.broadcast %110 : vector<1x64xi1> to vector<16x64xi1>
    %112 = vector.broadcast %cst_68 : f32 to vector<16x64xf32>
    %113 = arith.select %111, %109, %112 : vector<16x64xi1>, vector<16x64xf32>
    %c32_69 = arith.constant 32 : index
    %c0_70 = arith.constant 0 : index
    %114 = vector.load %arg10[%c32_69, %c0_70] : memref<144x64xf32, #tpu.memory_space<vmem>>, vector<16x64xf32>
    tpu.vector_store %arg10[%c32_69, %c0_70], %113 {strides = array<i32>} : memref<144x64xf32, #tpu.memory_space<vmem>>, vector<16x64xf32>,
    %c0_71 = arith.constant 0 : index
    %c8_72 = arith.constant 8 : index
    %115 = vector.load %arg9[%c0_71, %c8_72] : memref<16x82xf32, #tpu.memory_space<vmem>>, vector<16x64xf32>
    %cst_73 = arith.constant 0.000000e+00 : f32
    %116 = vector.shape_cast %98 : vector<1x64xi1> to vector<1x64xi1>
    %117 = vector.broadcast %116 : vector<1x64xi1> to vector<16x64xi1>
    %118 = vector.broadcast %cst_73 : f32 to vector<16x64xf32>
    %119 = arith.select %117, %115, %118 : vector<16x64xi1>, vector<16x64xf32>
    %c48_74 = arith.constant 48 : index
    %c0_75 = arith.constant 0 : index
    %120 = vector.load %arg10[%c48_74, %c0_75] : memref<144x64xf32, #tpu.memory_space<vmem>>, vector<16x64xf32>
    tpu.vector_store %arg10[%c48_74, %c0_75], %119 {strides = array<i32>} : memref<144x64xf32, #tpu.memory_space<vmem>>, vector<16x64xf32>,
    %c0_76 = arith.constant 0 : index
    %c9_77 = arith.constant 9 : index
    %121 = vector.load %arg9[%c0_76, %c9_77] : memref<16x82xf32, #tpu.memory_space<vmem>>, vector<16x64xf32>
    %c64_78 = arith.constant 64 : index
    %c0_79 = arith.constant 0 : index
    %122 = vector.load %arg10[%c64_78, %c0_79] : memref<144x64xf32, #tpu.memory_space<vmem>>, vector<16x64xf32>
    tpu.vector_store %arg10[%c64_78, %c0_79], %121 {strides = array<i32>} : memref<144x64xf32, #tpu.memory_space<vmem>>, vector<16x64xf32>,
    %c0_80 = arith.constant 0 : index
    %c10_81 = arith.constant 10 : index
    %123 = vector.load %arg9[%c0_80, %c10_81] : memref<16x82xf32, #tpu.memory_space<vmem>>, vector<16x64xf32>
    %cst_82 = arith.constant 0.000000e+00 : f32
    %124 = vector.shape_cast %100 : vector<1x64xi1> to vector<1x64xi1>
    %125 = vector.broadcast %124 : vector<1x64xi1> to vector<16x64xi1>
    %126 = vector.broadcast %cst_82 : f32 to vector<16x64xf32>
    %127 = arith.select %125, %123, %126 : vector<16x64xi1>, vector<16x64xf32>
    %c80_83 = arith.constant 80 : index
    %c0_84 = arith.constant 0 : index
    %128 = vector.load %arg10[%c80_83, %c0_84] : memref<144x64xf32, #tpu.memory_space<vmem>>, vector<16x64xf32>
    tpu.vector_store %arg10[%c80_83, %c0_84], %127 {strides = array<i32>} : memref<144x64xf32, #tpu.memory_space<vmem>>, vector<16x64xf32>,
    %c0_85 = arith.constant 0 : index
    %c16_86 = arith.constant 16 : index
    %129 = vector.load %arg9[%c0_85, %c16_86] : memref<16x82xf32, #tpu.memory_space<vmem>>, vector<16x64xf32>
    %cst_87 = arith.constant 0.000000e+00 : f32
    %130 = vector.shape_cast %98 : vector<1x64xi1> to vector<1x64xi1>
    %131 = vector.broadcast %130 : vector<1x64xi1> to vector<16x64xi1>
    %132 = vector.broadcast %cst_87 : f32 to vector<16x64xf32>
    %133 = arith.select %131, %129, %132 : vector<16x64xi1>, vector<16x64xf32>
    %c96_88 = arith.constant 96 : index
    %c0_89 = arith.constant 0 : index
    %134 = vector.load %arg10[%c96_88, %c0_89] : memref<144x64xf32, #tpu.memory_space<vmem>>, vector<16x64xf32>
    tpu.vector_store %arg10[%c96_88, %c0_89], %133 {strides = array<i32>} : memref<144x64xf32, #tpu.memory_space<vmem>>, vector<16x64xf32>,
    %c0_90 = arith.constant 0 : index
    %c17_91 = arith.constant 17 : index
    %135 = vector.load %arg9[%c0_90, %c17_91] : memref<16x82xf32, #tpu.memory_space<vmem>>, vector<16x64xf32>
    %c112_92 = arith.constant 112 : index
    %c0_93 = arith.constant 0 : index
    %136 = vector.load %arg10[%c112_92, %c0_93] : memref<144x64xf32, #tpu.memory_space<vmem>>, vector<16x64xf32>
    tpu.vector_store %arg10[%c112_92, %c0_93], %135 {strides = array<i32>} : memref<144x64xf32, #tpu.memory_space<vmem>>, vector<16x64xf32>,
    %c0_94 = arith.constant 0 : index
    %c18_95 = arith.constant 18 : index
    %137 = vector.load %arg9[%c0_94, %c18_95] : memref<16x82xf32, #tpu.memory_space<vmem>>, vector<16x64xf32>
    %cst_96 = arith.constant 0.000000e+00 : f32
    %138 = vector.shape_cast %100 : vector<1x64xi1> to vector<1x64xi1>
    %139 = vector.broadcast %138 : vector<1x64xi1> to vector<16x64xi1>
    %140 = vector.broadcast %cst_96 : f32 to vector<16x64xf32>
    %141 = arith.select %139, %137, %140 : vector<16x64xi1>, vector<16x64xf32>
    %c128_97 = arith.constant 128 : index
    %c0_98 = arith.constant 0 : index
    %142 = vector.load %arg10[%c128_97, %c0_98] : memref<144x64xf32, #tpu.memory_space<vmem>>, vector<16x64xf32>
    tpu.vector_store %arg10[%c128_97, %c0_98], %141 {strides = array<i32>} : memref<144x64xf32, #tpu.memory_space<vmem>>, vector<16x64xf32>,
    %c0_99 = arith.constant 0 : index
    %c0_100 = arith.constant 0 : index
    %143 = vector.load %arg5[%c0_99, %c0_100] : memref<16x144xf32, #tpu.memory_space<vmem>>, vector<16x144xf32>
    %c0_101 = arith.constant 0 : index
    %c0_102 = arith.constant 0 : index
    %144 = vector.load %arg10[%c0_101, %c0_102] : memref<144x64xf32, #tpu.memory_space<vmem>>, vector<144x64xf32>
    %cst_103 = arith.constant dense<0.000000e+00> : vector<16x64xf32>
    %145 = tpu.matmul %143, %144, %cst_103 {dimension_numbers = #tpu.dot_dimension_numbers<[1], [0], [0], [1], [0, 0, 1, 1], [], []>} : vector<16x144xf32>, vector<144x64xf32>, vector<16x64xf32> -> vector<16x64xf32>
    %c0_104 = arith.constant 0 : index
    %c0_105 = arith.constant 0 : index
    %146 = vector.load %arg6[%c0_104, %c0_105] : memref<16x1xf32, #tpu.memory_space<vmem>>, vector<16x1xf32>
    %147 = vector.broadcast %146 : vector<16x1xf32> to vector<16x64xf32>
    %148 = arith.mulf %145, %147 : vector<16x64xf32>
    %c0_106 = arith.constant 0 : index
    %c0_107 = arith.constant 0 : index
    %149 = vector.load %arg7[%c0_106, %c0_107] : memref<16x1xf32, #tpu.memory_space<vmem>>, vector<16x1xf32>
    %150 = vector.broadcast %149 : vector<16x1xf32> to vector<16x64xf32>
    %151 = arith.addf %148, %150 : vector<16x64xf32>
    %152 = arith.addf %151, %3 : vector<16x64xf32>
    %cst_108 = arith.constant 0.000000e+00 : f32
    %153 = vector.broadcast %cst_108 : f32 to vector<16x64xf32>
    %154 = arith.maximumf %152, %153 : vector<16x64xf32>
    %c0_109 = arith.constant 0 : index
    %c9_110 = arith.constant 9 : index
    %155 = vector.load %arg9[%c0_109, %c9_110] : memref<16x82xf32, #tpu.memory_space<vmem>>, vector<16x64xf32>
    tpu.vector_store %arg9[%c0_109, %c9_110], %154 {strides = array<i32>} : memref<16x82xf32, #tpu.memory_space<vmem>>, vector<16x64xf32>,
    %156 = tpu.iota {dimensions = array<i32: 1>} : vector<1x64xi32>
    %c8_i32_111 = arith.constant 8 : i32
    %c0_i32_112 = arith.constant 0 : i32
    %157 = arith.cmpi eq, %c8_i32_111, %c0_i32_112 : i32
    %c1_i32_113 = arith.constant 1 : i32
    %158 = arith.select %157, %c1_i32_113, %c8_i32_111 : i32
    %159 = vector.broadcast %158 : i32 to vector<1x64xi32>
    %160 = arith.remsi %156, %159 : vector<1x64xi32>
    %c0_i32_114 = arith.constant 0 : i32
    %161 = vector.broadcast %c0_i32_114 : i32 to vector<1x64xi32>
    %162 = arith.cmpi ne, %160, %161 : vector<1x64xi32>
    %c0_i32_115 = arith.constant 0 : i32
    %163 = vector.broadcast %c0_i32_115 : i32 to vector<1x64xi32>
    %164 = arith.cmpi slt, %160, %163 : vector<1x64xi32>
    %c0_i32_116 = arith.constant 0 : i32
    %165 = arith.cmpi slt, %158, %c0_i32_116 : i32
    %166 = vector.broadcast %165 : i1 to vector<1x64xi1>
    %167 = vector.broadcast %166 : vector<1x64xi1> to vector<1x64xi1>
    %168 = arith.xori %164, %167 : vector<1x64xi1>
    %169 = arith.andi %168, %162 : vector<1x64xi1>
    %170 = vector.broadcast %158 : i32 to vector<1x64xi32>
    %171 = arith.addi %160, %170 : vector<1x64xi32>
    %172 = arith.select %169, %171, %160 : vector<1x64xi1>, vector<1x64xi32>
    %c0_i32_117 = arith.constant 0 : i32
    %173 = vector.broadcast %c0_i32_117 : i32 to vector<1x64xi32>
    %174 = arith.cmpi ne, %172, %173 : vector<1x64xi32>
    %c7_i32_118 = arith.constant 7 : i32
    %175 = vector.broadcast %c7_i32_118 : i32 to vector<1x64xi32>
    %176 = arith.cmpi ne, %172, %175 : vector<1x64xi32>
    %cst_119 = arith.constant 0.000000e+00 : f32
    %177 = vector.broadcast %cst_119 : f32 to vector<16x64xf32>
    %c0_120 = arith.constant 0 : index
    %c0_121 = arith.constant 0 : index
    %178 = vector.load %arg9[%c0_120, %c0_121] : memref<16x82xf32, #tpu.memory_space<vmem>>, vector<16x64xf32>
    %cst_122 = arith.constant 0.000000e+00 : f32
    %179 = vector.shape_cast %174 : vector<1x64xi1> to vector<1x64xi1>
    %180 = vector.broadcast %179 : vector<1x64xi1> to vector<16x64xi1>
    %181 = vector.broadcast %cst_122 : f32 to vector<16x64xf32>
    %182 = arith.select %180, %178, %181 : vector<16x64xi1>, vector<16x64xf32>
    %183 = arith.addf %177, %182 : vector<16x64xf32>
    %c0_123 = arith.constant 0 : index
    %c1_124 = arith.constant 1 : index
    %184 = vector.load %arg9[%c0_123, %c1_124] : memref<16x82xf32, #tpu.memory_space<vmem>>, vector<16x64xf32>
    %185 = arith.addf %183, %184 : vector<16x64xf32>
    %c0_125 = arith.constant 0 : index
    %c2_126 = arith.constant 2 : index
    %186 = vector.load %arg9[%c0_125, %c2_126] : memref<16x82xf32, #tpu.memory_space<vmem>>, vector<16x64xf32>
    %cst_127 = arith.constant 0.000000e+00 : f32
    %187 = vector.shape_cast %176 : vector<1x64xi1> to vector<1x64xi1>
    %188 = vector.broadcast %187 : vector<1x64xi1> to vector<16x64xi1>
    %189 = vector.broadcast %cst_127 : f32 to vector<16x64xf32>
    %190 = arith.select %188, %186, %189 : vector<16x64xi1>, vector<16x64xf32>
    %191 = arith.addf %185, %190 : vector<16x64xf32>
    %c0_128 = arith.constant 0 : index
    %c8_129 = arith.constant 8 : index
    %192 = vector.load %arg9[%c0_128, %c8_129] : memref<16x82xf32, #tpu.memory_space<vmem>>, vector<16x64xf32>
    %cst_130 = arith.constant 0.000000e+00 : f32
    %193 = vector.shape_cast %174 : vector<1x64xi1> to vector<1x64xi1>
    %194 = vector.broadcast %193 : vector<1x64xi1> to vector<16x64xi1>
    %195 = vector.broadcast %cst_130 : f32 to vector<16x64xf32>
    %196 = arith.select %194, %192, %195 : vector<16x64xi1>, vector<16x64xf32>
    %197 = arith.addf %191, %196 : vector<16x64xf32>
    %c0_131 = arith.constant 0 : index
    %c9_132 = arith.constant 9 : index
    %198 = vector.load %arg9[%c0_131, %c9_132] : memref<16x82xf32, #tpu.memory_space<vmem>>, vector<16x64xf32>
    %199 = arith.addf %197, %198 : vector<16x64xf32>
    %c0_133 = arith.constant 0 : index
    %c10_134 = arith.constant 10 : index
    %200 = vector.load %arg9[%c0_133, %c10_134] : memref<16x82xf32, #tpu.memory_space<vmem>>, vector<16x64xf32>
    %cst_135 = arith.constant 0.000000e+00 : f32
    %201 = vector.shape_cast %176 : vector<1x64xi1> to vector<1x64xi1>
    %202 = vector.broadcast %201 : vector<1x64xi1> to vector<16x64xi1>
    %203 = vector.broadcast %cst_135 : f32 to vector<16x64xf32>
    %204 = arith.select %202, %200, %203 : vector<16x64xi1>, vector<16x64xf32>
    %205 = arith.addf %199, %204 : vector<16x64xf32>
    %c0_136 = arith.constant 0 : index
    %c16_137 = arith.constant 16 : index
    %206 = vector.load %arg9[%c0_136, %c16_137] : memref<16x82xf32, #tpu.memory_space<vmem>>, vector<16x64xf32>
    %cst_138 = arith.constant 0.000000e+00 : f32
    %207 = vector.shape_cast %174 : vector<1x64xi1> to vector<1x64xi1>
    %208 = vector.broadcast %207 : vector<1x64xi1> to vector<16x64xi1>
    %209 = vector.broadcast %cst_138 : f32 to vector<16x64xf32>
    %210 = arith.select %208, %206, %209 : vector<16x64xi1>, vector<16x64xf32>
    %211 = arith.addf %205, %210 : vector<16x64xf32>
    %c0_139 = arith.constant 0 : index
    %c17_140 = arith.constant 17 : index
    %212 = vector.load %arg9[%c0_139, %c17_140] : memref<16x82xf32, #tpu.memory_space<vmem>>, vector<16x64xf32>
    %213 = arith.addf %211, %212 : vector<16x64xf32>
    %c0_141 = arith.constant 0 : index
    %c18_142 = arith.constant 18 : index
    %214 = vector.load %arg9[%c0_141, %c18_142] : memref<16x82xf32, #tpu.memory_space<vmem>>, vector<16x64xf32>
    %cst_143 = arith.constant 0.000000e+00 : f32
    %215 = vector.shape_cast %176 : vector<1x64xi1> to vector<1x64xi1>
    %216 = vector.broadcast %215 : vector<1x64xi1> to vector<16x64xi1>
    %217 = vector.broadcast %cst_143 : f32 to vector<16x64xf32>
    %218 = arith.select %216, %214, %217 : vector<16x64xi1>, vector<16x64xf32>
    %219 = arith.addf %213, %218 : vector<16x64xf32>
    %cst_144 = arith.constant 0.111111112 : f32
    %220 = vector.broadcast %cst_144 : f32 to vector<16x64xf32>
    %221 = arith.mulf %219, %220 : vector<16x64xf32>
    %c0_145 = arith.constant 0 : index
    %c0_146 = arith.constant 0 : index
    %c0_147 = arith.constant 0 : index
    %222 = vector.load %arg8[%c0_145, %c0_146, %c0_147] : memref<1x16x64xf32, #tpu.memory_space<vmem>>, vector<1x16x64xf32>
    %223 = vector.shape_cast %222 : vector<1x16x64xf32> to vector<16x64xf32>
    %224 = vector.shape_cast %221 : vector<16x64xf32> to vector<1x16x64xf32>
    tpu.vector_store %arg8[%c0_145, %c0_146, %c0_147], %224 {strides = array<i32>} : memref<1x16x64xf32, #tpu.memory_space<vmem>>, vector<1x16x64xf32>,
    return
  }
  func.func @transform_0(%arg0: i32) -> (i32, i32, i32) {
    %c0_i32 = arith.constant 0 : i32
    %c0_i32_0 = arith.constant 0 : i32
    %c0_i32_1 = arith.constant 0 : i32
    return %arg0, %c0_i32, %c0_i32_0 : i32, i32, i32
  }
  func.func @transform_1(%arg0: i32) -> (i32, i32) {
    %c0_i32 = arith.constant 0 : i32
    %c0_i32_0 = arith.constant 0 : i32
    %c0_i32_1 = arith.constant 0 : i32
    return %c0_i32, %c0_i32_0 : i32, i32
  }
  func.func @transform_2(%arg0: i32) -> (i32, i32) {
    %c0_i32 = arith.constant 0 : i32
    %c0_i32_0 = arith.constant 0 : i32
    %c0_i32_1 = arith.constant 0 : i32
    return %c0_i32, %c0_i32_0 : i32, i32
  }
  func.func @transform_3(%arg0: i32) -> (i32, i32) {
    %c0_i32 = arith.constant 0 : i32
    %c0_i32_0 = arith.constant 0 : i32
    %c0_i32_1 = arith.constant 0 : i32
    return %c0_i32, %c0_i32_0 : i32, i32
  }
  func.func @transform_4(%arg0: i32) -> (i32, i32) {
    %c0_i32 = arith.constant 0 : i32
    %c0_i32_0 = arith.constant 0 : i32
    %c0_i32_1 = arith.constant 0 : i32
    return %c0_i32, %c0_i32_0 : i32, i32
  }
  func.func @transform_5(%arg0: i32) -> (i32, i32) {
    %c0_i32 = arith.constant 0 : i32
    %c0_i32_0 = arith.constant 0 : i32
    %c0_i32_1 = arith.constant 0 : i32
    return %c0_i32, %c0_i32_0 : i32, i32
  }
  func.func @transform_6(%arg0: i32) -> (i32, i32) {
    %c0_i32 = arith.constant 0 : i32
    %c0_i32_0 = arith.constant 0 : i32
    %c0_i32_1 = arith.constant 0 : i32
    return %c0_i32, %c0_i32_0 : i32, i32
  }
  func.func @transform_7(%arg0: i32) -> (i32, i32, i32) {
    %c0_i32 = arith.constant 0 : i32
    %c0_i32_0 = arith.constant 0 : i32
    %c0_i32_1 = arith.constant 0 : i32
    return %arg0, %c0_i32, %c0_i32_0 : i32, i32, i32
  }
}

module attributes {stable_mosaic.version = 11 : i64} {
  func.func @_conv_kernel(%arg0: i32, %arg1: memref<1x8x256xf32, #tpu.memory_space<vmem>>, %arg2: memref<16x72xf32, #tpu.memory_space<vmem>>, %arg3: memref<16x1xf32, #tpu.memory_space<vmem>>, %arg4: memref<16x1xf32, #tpu.memory_space<vmem>>, %arg5: memref<1x16x256xf32, #tpu.memory_space<vmem>>, %arg6: memref<8x290xf32, #tpu.memory_space<vmem>>, %arg7: memref<72x256xf32, #tpu.memory_space<vmem>>) attributes {dimension_semantics = [#tpu.dimension_semantics<parallel>], iteration_bounds = array<i64: 2>, scalar_prefetch = 0 : i64, scratch_operands = 2 : i64, tpu.core_type = #tpu.core_type<tc>, window_params = [{transform_indices = @transform_0, window_bounds = array<i64: 1, 8, 256>}, {pipeline_mode = #tpu.pipeline_mode<synchronous>, transform_indices = @transform_1, window_bounds = array<i64: 16, 72>}, {pipeline_mode = #tpu.pipeline_mode<synchronous>, transform_indices = @transform_2, window_bounds = array<i64: 16, 1>}, {pipeline_mode = #tpu.pipeline_mode<synchronous>, transform_indices = @transform_3, window_bounds = array<i64: 16, 1>}, {transform_indices = @transform_4, window_bounds = array<i64: 1, 16, 256>}]} {
    %cst = arith.constant 0.000000e+00 : f32
    %0 = vector.broadcast %cst : f32 to vector<8x290xf32>
    %c0 = arith.constant 0 : index
    %c0_0 = arith.constant 0 : index
    %1 = vector.load %arg6[%c0, %c0_0] : memref<8x290xf32, #tpu.memory_space<vmem>>, vector<8x290xf32>
    tpu.vector_store %arg6[%c0, %c0_0], %0 {strides = array<i32>} : memref<8x290xf32, #tpu.memory_space<vmem>>, vector<8x290xf32>,
    %c0_1 = arith.constant 0 : index
    %c0_2 = arith.constant 0 : index
    %c0_3 = arith.constant 0 : index
    %2 = vector.load %arg1[%c0_1, %c0_2, %c0_3] : memref<1x8x256xf32, #tpu.memory_space<vmem>>, vector<1x8x256xf32>
    %3 = vector.shape_cast %2 : vector<1x8x256xf32> to vector<8x256xf32>
    %c0_4 = arith.constant 0 : index
    %c17 = arith.constant 17 : index
    %4 = vector.load %arg6[%c0_4, %c17] : memref<8x290xf32, #tpu.memory_space<vmem>>, vector<8x256xf32>
    tpu.vector_store %arg6[%c0_4, %c17], %3 {strides = array<i32>} : memref<8x290xf32, #tpu.memory_space<vmem>>, vector<8x256xf32>,
    %5 = tpu.iota {dimensions = array<i32: 1>} : vector<1x256xi32>
    %c16_i32 = arith.constant 16 : i32
    %c0_i32 = arith.constant 0 : i32
    %6 = arith.cmpi eq, %c16_i32, %c0_i32 : i32
    %c1_i32 = arith.constant 1 : i32
    %7 = arith.select %6, %c1_i32, %c16_i32 : i32
    %8 = vector.broadcast %7 : i32 to vector<1x256xi32>
    %9 = arith.remsi %5, %8 : vector<1x256xi32>
    %c0_i32_5 = arith.constant 0 : i32
    %10 = vector.broadcast %c0_i32_5 : i32 to vector<1x256xi32>
    %11 = arith.cmpi ne, %9, %10 : vector<1x256xi32>
    %c0_i32_6 = arith.constant 0 : i32
    %12 = vector.broadcast %c0_i32_6 : i32 to vector<1x256xi32>
    %13 = arith.cmpi slt, %9, %12 : vector<1x256xi32>
    %c0_i32_7 = arith.constant 0 : i32
    %14 = arith.cmpi slt, %7, %c0_i32_7 : i32
    %15 = vector.broadcast %14 : i1 to vector<1x256xi1>
    %16 = vector.broadcast %15 : vector<1x256xi1> to vector<1x256xi1>
    %17 = arith.xori %13, %16 : vector<1x256xi1>
    %18 = arith.andi %17, %11 : vector<1x256xi1>
    %19 = vector.broadcast %7 : i32 to vector<1x256xi32>
    %20 = arith.addi %9, %19 : vector<1x256xi32>
    %21 = arith.select %18, %20, %9 : vector<1x256xi1>, vector<1x256xi32>
    %c0_i32_8 = arith.constant 0 : i32
    %22 = vector.broadcast %c0_i32_8 : i32 to vector<1x256xi32>
    %23 = arith.cmpi ne, %21, %22 : vector<1x256xi32>
    %c15_i32 = arith.constant 15 : i32
    %24 = vector.broadcast %c15_i32 : i32 to vector<1x256xi32>
    %25 = arith.cmpi ne, %21, %24 : vector<1x256xi32>
    %c0_9 = arith.constant 0 : index
    %c0_10 = arith.constant 0 : index
    %26 = vector.load %arg6[%c0_9, %c0_10] : memref<8x290xf32, #tpu.memory_space<vmem>>, vector<8x256xf32>
    %cst_11 = arith.constant 0.000000e+00 : f32
    %27 = vector.shape_cast %23 : vector<1x256xi1> to vector<1x256xi1>
    %28 = vector.broadcast %27 : vector<1x256xi1> to vector<8x256xi1>
    %29 = vector.broadcast %cst_11 : f32 to vector<8x256xf32>
    %30 = arith.select %28, %26, %29 : vector<8x256xi1>, vector<8x256xf32>
    %c0_12 = arith.constant 0 : index
    %c0_13 = arith.constant 0 : index
    %31 = vector.load %arg7[%c0_12, %c0_13] : memref<72x256xf32, #tpu.memory_space<vmem>>, vector<8x256xf32>
    tpu.vector_store %arg7[%c0_12, %c0_13], %30 {strides = array<i32>} : memref<72x256xf32, #tpu.memory_space<vmem>>, vector<8x256xf32>,
    %c0_14 = arith.constant 0 : index
    %c1 = arith.constant 1 : index
    %32 = vector.load %arg6[%c0_14, %c1] : memref<8x290xf32, #tpu.memory_space<vmem>>, vector<8x256xf32>
    %c8 = arith.constant 8 : index
    %c0_15 = arith.constant 0 : index
    %33 = vector.load %arg7[%c8, %c0_15] : memref<72x256xf32, #tpu.memory_space<vmem>>, vector<8x256xf32>
    tpu.vector_store %arg7[%c8, %c0_15], %32 {strides = array<i32>} : memref<72x256xf32, #tpu.memory_space<vmem>>, vector<8x256xf32>,
    %c0_16 = arith.constant 0 : index
    %c2 = arith.constant 2 : index
    %34 = vector.load %arg6[%c0_16, %c2] : memref<8x290xf32, #tpu.memory_space<vmem>>, vector<8x256xf32>
    %cst_17 = arith.constant 0.000000e+00 : f32
    %35 = vector.shape_cast %25 : vector<1x256xi1> to vector<1x256xi1>
    %36 = vector.broadcast %35 : vector<1x256xi1> to vector<8x256xi1>
    %37 = vector.broadcast %cst_17 : f32 to vector<8x256xf32>
    %38 = arith.select %36, %34, %37 : vector<8x256xi1>, vector<8x256xf32>
    %c16 = arith.constant 16 : index
    %c0_18 = arith.constant 0 : index
    %39 = vector.load %arg7[%c16, %c0_18] : memref<72x256xf32, #tpu.memory_space<vmem>>, vector<8x256xf32>
    tpu.vector_store %arg7[%c16, %c0_18], %38 {strides = array<i32>} : memref<72x256xf32, #tpu.memory_space<vmem>>, vector<8x256xf32>,
    %c0_19 = arith.constant 0 : index
    %c16_20 = arith.constant 16 : index
    %40 = vector.load %arg6[%c0_19, %c16_20] : memref<8x290xf32, #tpu.memory_space<vmem>>, vector<8x256xf32>
    %cst_21 = arith.constant 0.000000e+00 : f32
    %41 = vector.shape_cast %23 : vector<1x256xi1> to vector<1x256xi1>
    %42 = vector.broadcast %41 : vector<1x256xi1> to vector<8x256xi1>
    %43 = vector.broadcast %cst_21 : f32 to vector<8x256xf32>
    %44 = arith.select %42, %40, %43 : vector<8x256xi1>, vector<8x256xf32>
    %c24 = arith.constant 24 : index
    %c0_22 = arith.constant 0 : index
    %45 = vector.load %arg7[%c24, %c0_22] : memref<72x256xf32, #tpu.memory_space<vmem>>, vector<8x256xf32>
    tpu.vector_store %arg7[%c24, %c0_22], %44 {strides = array<i32>} : memref<72x256xf32, #tpu.memory_space<vmem>>, vector<8x256xf32>,
    %c0_23 = arith.constant 0 : index
    %c17_24 = arith.constant 17 : index
    %46 = vector.load %arg6[%c0_23, %c17_24] : memref<8x290xf32, #tpu.memory_space<vmem>>, vector<8x256xf32>
    %c32 = arith.constant 32 : index
    %c0_25 = arith.constant 0 : index
    %47 = vector.load %arg7[%c32, %c0_25] : memref<72x256xf32, #tpu.memory_space<vmem>>, vector<8x256xf32>
    tpu.vector_store %arg7[%c32, %c0_25], %46 {strides = array<i32>} : memref<72x256xf32, #tpu.memory_space<vmem>>, vector<8x256xf32>,
    %c0_26 = arith.constant 0 : index
    %c18 = arith.constant 18 : index
    %48 = vector.load %arg6[%c0_26, %c18] : memref<8x290xf32, #tpu.memory_space<vmem>>, vector<8x256xf32>
    %cst_27 = arith.constant 0.000000e+00 : f32
    %49 = vector.shape_cast %25 : vector<1x256xi1> to vector<1x256xi1>
    %50 = vector.broadcast %49 : vector<1x256xi1> to vector<8x256xi1>
    %51 = vector.broadcast %cst_27 : f32 to vector<8x256xf32>
    %52 = arith.select %50, %48, %51 : vector<8x256xi1>, vector<8x256xf32>
    %c40 = arith.constant 40 : index
    %c0_28 = arith.constant 0 : index
    %53 = vector.load %arg7[%c40, %c0_28] : memref<72x256xf32, #tpu.memory_space<vmem>>, vector<8x256xf32>
    tpu.vector_store %arg7[%c40, %c0_28], %52 {strides = array<i32>} : memref<72x256xf32, #tpu.memory_space<vmem>>, vector<8x256xf32>,
    %c0_29 = arith.constant 0 : index
    %c32_30 = arith.constant 32 : index
    %54 = vector.load %arg6[%c0_29, %c32_30] : memref<8x290xf32, #tpu.memory_space<vmem>>, vector<8x256xf32>
    %cst_31 = arith.constant 0.000000e+00 : f32
    %55 = vector.shape_cast %23 : vector<1x256xi1> to vector<1x256xi1>
    %56 = vector.broadcast %55 : vector<1x256xi1> to vector<8x256xi1>
    %57 = vector.broadcast %cst_31 : f32 to vector<8x256xf32>
    %58 = arith.select %56, %54, %57 : vector<8x256xi1>, vector<8x256xf32>
    %c48 = arith.constant 48 : index
    %c0_32 = arith.constant 0 : index
    %59 = vector.load %arg7[%c48, %c0_32] : memref<72x256xf32, #tpu.memory_space<vmem>>, vector<8x256xf32>
    tpu.vector_store %arg7[%c48, %c0_32], %58 {strides = array<i32>} : memref<72x256xf32, #tpu.memory_space<vmem>>, vector<8x256xf32>,
    %c0_33 = arith.constant 0 : index
    %c33 = arith.constant 33 : index
    %60 = vector.load %arg6[%c0_33, %c33] : memref<8x290xf32, #tpu.memory_space<vmem>>, vector<8x256xf32>
    %c56 = arith.constant 56 : index
    %c0_34 = arith.constant 0 : index
    %61 = vector.load %arg7[%c56, %c0_34] : memref<72x256xf32, #tpu.memory_space<vmem>>, vector<8x256xf32>
    tpu.vector_store %arg7[%c56, %c0_34], %60 {strides = array<i32>} : memref<72x256xf32, #tpu.memory_space<vmem>>, vector<8x256xf32>,
    %c0_35 = arith.constant 0 : index
    %c34 = arith.constant 34 : index
    %62 = vector.load %arg6[%c0_35, %c34] : memref<8x290xf32, #tpu.memory_space<vmem>>, vector<8x256xf32>
    %cst_36 = arith.constant 0.000000e+00 : f32
    %63 = vector.shape_cast %25 : vector<1x256xi1> to vector<1x256xi1>
    %64 = vector.broadcast %63 : vector<1x256xi1> to vector<8x256xi1>
    %65 = vector.broadcast %cst_36 : f32 to vector<8x256xf32>
    %66 = arith.select %64, %62, %65 : vector<8x256xi1>, vector<8x256xf32>
    %c64 = arith.constant 64 : index
    %c0_37 = arith.constant 0 : index
    %67 = vector.load %arg7[%c64, %c0_37] : memref<72x256xf32, #tpu.memory_space<vmem>>, vector<8x256xf32>
    tpu.vector_store %arg7[%c64, %c0_37], %66 {strides = array<i32>} : memref<72x256xf32, #tpu.memory_space<vmem>>, vector<8x256xf32>,
    %c0_38 = arith.constant 0 : index
    %c0_39 = arith.constant 0 : index
    %68 = vector.load %arg2[%c0_38, %c0_39] : memref<16x72xf32, #tpu.memory_space<vmem>>, vector<16x72xf32>
    %c0_40 = arith.constant 0 : index
    %c0_41 = arith.constant 0 : index
    %69 = vector.load %arg7[%c0_40, %c0_41] : memref<72x256xf32, #tpu.memory_space<vmem>>, vector<72x256xf32>
    %cst_42 = arith.constant dense<0.000000e+00> : vector<16x256xf32>
    %70 = tpu.matmul %68, %69, %cst_42 {dimension_numbers = #tpu.dot_dimension_numbers<[1], [0], [0], [1], [0, 0, 1, 1], [], []>} : vector<16x72xf32>, vector<72x256xf32>, vector<16x256xf32> -> vector<16x256xf32>
    %c0_43 = arith.constant 0 : index
    %c0_44 = arith.constant 0 : index
    %71 = vector.load %arg3[%c0_43, %c0_44] : memref<16x1xf32, #tpu.memory_space<vmem>>, vector<16x1xf32>
    %72 = vector.broadcast %71 : vector<16x1xf32> to vector<16x256xf32>
    %73 = arith.mulf %70, %72 : vector<16x256xf32>
    %c0_45 = arith.constant 0 : index
    %c0_46 = arith.constant 0 : index
    %74 = vector.load %arg4[%c0_45, %c0_46] : memref<16x1xf32, #tpu.memory_space<vmem>>, vector<16x1xf32>
    %75 = vector.broadcast %74 : vector<16x1xf32> to vector<16x256xf32>
    %76 = arith.addf %73, %75 : vector<16x256xf32>
    %c0_47 = arith.constant 0 : index
    %c0_48 = arith.constant 0 : index
    %c0_49 = arith.constant 0 : index
    %77 = vector.load %arg5[%c0_47, %c0_48, %c0_49] : memref<1x16x256xf32, #tpu.memory_space<vmem>>, vector<1x16x256xf32>
    %78 = vector.shape_cast %77 : vector<1x16x256xf32> to vector<16x256xf32>
    %79 = vector.shape_cast %76 : vector<16x256xf32> to vector<1x16x256xf32>
    tpu.vector_store %arg5[%c0_47, %c0_48, %c0_49], %79 {strides = array<i32>} : memref<1x16x256xf32, #tpu.memory_space<vmem>>, vector<1x16x256xf32>,
    return
  }
  func.func @transform_0(%arg0: i32) -> (i32, i32, i32) {
    %c0_i32 = arith.constant 0 : i32
    %c0_i32_0 = arith.constant 0 : i32
    %c0_i32_1 = arith.constant 0 : i32
    return %arg0, %c0_i32, %c0_i32_0 : i32, i32, i32
  }
  func.func @transform_1(%arg0: i32) -> (i32, i32) {
    %c0_i32 = arith.constant 0 : i32
    %c0_i32_0 = arith.constant 0 : i32
    %c0_i32_1 = arith.constant 0 : i32
    return %c0_i32, %c0_i32_0 : i32, i32
  }
  func.func @transform_2(%arg0: i32) -> (i32, i32) {
    %c0_i32 = arith.constant 0 : i32
    %c0_i32_0 = arith.constant 0 : i32
    %c0_i32_1 = arith.constant 0 : i32
    return %c0_i32, %c0_i32_0 : i32, i32
  }
  func.func @transform_3(%arg0: i32) -> (i32, i32) {
    %c0_i32 = arith.constant 0 : i32
    %c0_i32_0 = arith.constant 0 : i32
    %c0_i32_1 = arith.constant 0 : i32
    return %c0_i32, %c0_i32_0 : i32, i32
  }
  func.func @transform_4(%arg0: i32) -> (i32, i32, i32) {
    %c0_i32 = arith.constant 0 : i32
    %c0_i32_0 = arith.constant 0 : i32
    %c0_i32_1 = arith.constant 0 : i32
    return %arg0, %c0_i32, %c0_i32_0 : i32, i32, i32
  }
}

module attributes {stable_mosaic.version = 11 : i64} {
  func.func @_conv_kernel(%arg0: i32, %arg1: memref<1x16x64xf32, #tpu.memory_space<vmem>>, %arg2: memref<16x144xf32, #tpu.memory_space<vmem>>, %arg3: memref<16x1xf32, #tpu.memory_space<vmem>>, %arg4: memref<16x1xf32, #tpu.memory_space<vmem>>, %arg5: memref<1x16x64xf32, #tpu.memory_space<vmem>>, %arg6: memref<1x16x64xf32, #tpu.memory_space<vmem>>, %arg7: memref<16x82xf32, #tpu.memory_space<vmem>>, %arg8: memref<144x64xf32, #tpu.memory_space<vmem>>) attributes {dimension_semantics = [#tpu.dimension_semantics<parallel>], iteration_bounds = array<i64: 2>, scalar_prefetch = 0 : i64, scratch_operands = 2 : i64, tpu.core_type = #tpu.core_type<tc>, window_params = [{transform_indices = @transform_0, window_bounds = array<i64: 1, 16, 64>}, {pipeline_mode = #tpu.pipeline_mode<synchronous>, transform_indices = @transform_1, window_bounds = array<i64: 16, 144>}, {pipeline_mode = #tpu.pipeline_mode<synchronous>, transform_indices = @transform_2, window_bounds = array<i64: 16, 1>}, {pipeline_mode = #tpu.pipeline_mode<synchronous>, transform_indices = @transform_3, window_bounds = array<i64: 16, 1>}, {transform_indices = @transform_4, window_bounds = array<i64: 1, 16, 64>}, {transform_indices = @transform_5, window_bounds = array<i64: 1, 16, 64>}]} {
    %cst = arith.constant 0.000000e+00 : f32
    %0 = vector.broadcast %cst : f32 to vector<16x82xf32>
    %c0 = arith.constant 0 : index
    %c0_0 = arith.constant 0 : index
    %1 = vector.load %arg7[%c0, %c0_0] : memref<16x82xf32, #tpu.memory_space<vmem>>, vector<16x82xf32>
    tpu.vector_store %arg7[%c0, %c0_0], %0 {strides = array<i32>} : memref<16x82xf32, #tpu.memory_space<vmem>>, vector<16x82xf32>,
    %c0_1 = arith.constant 0 : index
    %c0_2 = arith.constant 0 : index
    %c0_3 = arith.constant 0 : index
    %2 = vector.load %arg1[%c0_1, %c0_2, %c0_3] : memref<1x16x64xf32, #tpu.memory_space<vmem>>, vector<1x16x64xf32>
    %3 = vector.shape_cast %2 : vector<1x16x64xf32> to vector<16x64xf32>
    %c0_4 = arith.constant 0 : index
    %c9 = arith.constant 9 : index
    %4 = vector.load %arg7[%c0_4, %c9] : memref<16x82xf32, #tpu.memory_space<vmem>>, vector<16x64xf32>
    tpu.vector_store %arg7[%c0_4, %c9], %3 {strides = array<i32>} : memref<16x82xf32, #tpu.memory_space<vmem>>, vector<16x64xf32>,
    %5 = tpu.iota {dimensions = array<i32: 1>} : vector<1x64xi32>
    %c8_i32 = arith.constant 8 : i32
    %c0_i32 = arith.constant 0 : i32
    %6 = arith.cmpi eq, %c8_i32, %c0_i32 : i32
    %c1_i32 = arith.constant 1 : i32
    %7 = arith.select %6, %c1_i32, %c8_i32 : i32
    %8 = vector.broadcast %7 : i32 to vector<1x64xi32>
    %9 = arith.remsi %5, %8 : vector<1x64xi32>
    %c0_i32_5 = arith.constant 0 : i32
    %10 = vector.broadcast %c0_i32_5 : i32 to vector<1x64xi32>
    %11 = arith.cmpi ne, %9, %10 : vector<1x64xi32>
    %c0_i32_6 = arith.constant 0 : i32
    %12 = vector.broadcast %c0_i32_6 : i32 to vector<1x64xi32>
    %13 = arith.cmpi slt, %9, %12 : vector<1x64xi32>
    %c0_i32_7 = arith.constant 0 : i32
    %14 = arith.cmpi slt, %7, %c0_i32_7 : i32
    %15 = vector.broadcast %14 : i1 to vector<1x64xi1>
    %16 = vector.broadcast %15 : vector<1x64xi1> to vector<1x64xi1>
    %17 = arith.xori %13, %16 : vector<1x64xi1>
    %18 = arith.andi %17, %11 : vector<1x64xi1>
    %19 = vector.broadcast %7 : i32 to vector<1x64xi32>
    %20 = arith.addi %9, %19 : vector<1x64xi32>
    %21 = arith.select %18, %20, %9 : vector<1x64xi1>, vector<1x64xi32>
    %c0_i32_8 = arith.constant 0 : i32
    %22 = vector.broadcast %c0_i32_8 : i32 to vector<1x64xi32>
    %23 = arith.cmpi ne, %21, %22 : vector<1x64xi32>
    %c7_i32 = arith.constant 7 : i32
    %24 = vector.broadcast %c7_i32 : i32 to vector<1x64xi32>
    %25 = arith.cmpi ne, %21, %24 : vector<1x64xi32>
    %c0_9 = arith.constant 0 : index
    %c0_10 = arith.constant 0 : index
    %26 = vector.load %arg7[%c0_9, %c0_10] : memref<16x82xf32, #tpu.memory_space<vmem>>, vector<16x64xf32>
    %cst_11 = arith.constant 0.000000e+00 : f32
    %27 = vector.shape_cast %23 : vector<1x64xi1> to vector<1x64xi1>
    %28 = vector.broadcast %27 : vector<1x64xi1> to vector<16x64xi1>
    %29 = vector.broadcast %cst_11 : f32 to vector<16x64xf32>
    %30 = arith.select %28, %26, %29 : vector<16x64xi1>, vector<16x64xf32>
    %c0_12 = arith.constant 0 : index
    %c0_13 = arith.constant 0 : index
    %31 = vector.load %arg8[%c0_12, %c0_13] : memref<144x64xf32, #tpu.memory_space<vmem>>, vector<16x64xf32>
    tpu.vector_store %arg8[%c0_12, %c0_13], %30 {strides = array<i32>} : memref<144x64xf32, #tpu.memory_space<vmem>>, vector<16x64xf32>,
    %c0_14 = arith.constant 0 : index
    %c1 = arith.constant 1 : index
    %32 = vector.load %arg7[%c0_14, %c1] : memref<16x82xf32, #tpu.memory_space<vmem>>, vector<16x64xf32>
    %c16 = arith.constant 16 : index
    %c0_15 = arith.constant 0 : index
    %33 = vector.load %arg8[%c16, %c0_15] : memref<144x64xf32, #tpu.memory_space<vmem>>, vector<16x64xf32>
    tpu.vector_store %arg8[%c16, %c0_15], %32 {strides = array<i32>} : memref<144x64xf32, #tpu.memory_space<vmem>>, vector<16x64xf32>,
    %c0_16 = arith.constant 0 : index
    %c2 = arith.constant 2 : index
    %34 = vector.load %arg7[%c0_16, %c2] : memref<16x82xf32, #tpu.memory_space<vmem>>, vector<16x64xf32>
    %cst_17 = arith.constant 0.000000e+00 : f32
    %35 = vector.shape_cast %25 : vector<1x64xi1> to vector<1x64xi1>
    %36 = vector.broadcast %35 : vector<1x64xi1> to vector<16x64xi1>
    %37 = vector.broadcast %cst_17 : f32 to vector<16x64xf32>
    %38 = arith.select %36, %34, %37 : vector<16x64xi1>, vector<16x64xf32>
    %c32 = arith.constant 32 : index
    %c0_18 = arith.constant 0 : index
    %39 = vector.load %arg8[%c32, %c0_18] : memref<144x64xf32, #tpu.memory_space<vmem>>, vector<16x64xf32>
    tpu.vector_store %arg8[%c32, %c0_18], %38 {strides = array<i32>} : memref<144x64xf32, #tpu.memory_space<vmem>>, vector<16x64xf32>,
    %c0_19 = arith.constant 0 : index
    %c8 = arith.constant 8 : index
    %40 = vector.load %arg7[%c0_19, %c8] : memref<16x82xf32, #tpu.memory_space<vmem>>, vector<16x64xf32>
    %cst_20 = arith.constant 0.000000e+00 : f32
    %41 = vector.shape_cast %23 : vector<1x64xi1> to vector<1x64xi1>
    %42 = vector.broadcast %41 : vector<1x64xi1> to vector<16x64xi1>
    %43 = vector.broadcast %cst_20 : f32 to vector<16x64xf32>
    %44 = arith.select %42, %40, %43 : vector<16x64xi1>, vector<16x64xf32>
    %c48 = arith.constant 48 : index
    %c0_21 = arith.constant 0 : index
    %45 = vector.load %arg8[%c48, %c0_21] : memref<144x64xf32, #tpu.memory_space<vmem>>, vector<16x64xf32>
    tpu.vector_store %arg8[%c48, %c0_21], %44 {strides = array<i32>} : memref<144x64xf32, #tpu.memory_space<vmem>>, vector<16x64xf32>,
    %c0_22 = arith.constant 0 : index
    %c9_23 = arith.constant 9 : index
    %46 = vector.load %arg7[%c0_22, %c9_23] : memref<16x82xf32, #tpu.memory_space<vmem>>, vector<16x64xf32>
    %c64 = arith.constant 64 : index
    %c0_24 = arith.constant 0 : index
    %47 = vector.load %arg8[%c64, %c0_24] : memref<144x64xf32, #tpu.memory_space<vmem>>, vector<16x64xf32>
    tpu.vector_store %arg8[%c64, %c0_24], %46 {strides = array<i32>} : memref<144x64xf32, #tpu.memory_space<vmem>>, vector<16x64xf32>,
    %c0_25 = arith.constant 0 : index
    %c10 = arith.constant 10 : index
    %48 = vector.load %arg7[%c0_25, %c10] : memref<16x82xf32, #tpu.memory_space<vmem>>, vector<16x64xf32>
    %cst_26 = arith.constant 0.000000e+00 : f32
    %49 = vector.shape_cast %25 : vector<1x64xi1> to vector<1x64xi1>
    %50 = vector.broadcast %49 : vector<1x64xi1> to vector<16x64xi1>
    %51 = vector.broadcast %cst_26 : f32 to vector<16x64xf32>
    %52 = arith.select %50, %48, %51 : vector<16x64xi1>, vector<16x64xf32>
    %c80 = arith.constant 80 : index
    %c0_27 = arith.constant 0 : index
    %53 = vector.load %arg8[%c80, %c0_27] : memref<144x64xf32, #tpu.memory_space<vmem>>, vector<16x64xf32>
    tpu.vector_store %arg8[%c80, %c0_27], %52 {strides = array<i32>} : memref<144x64xf32, #tpu.memory_space<vmem>>, vector<16x64xf32>,
    %c0_28 = arith.constant 0 : index
    %c16_29 = arith.constant 16 : index
    %54 = vector.load %arg7[%c0_28, %c16_29] : memref<16x82xf32, #tpu.memory_space<vmem>>, vector<16x64xf32>
    %cst_30 = arith.constant 0.000000e+00 : f32
    %55 = vector.shape_cast %23 : vector<1x64xi1> to vector<1x64xi1>
    %56 = vector.broadcast %55 : vector<1x64xi1> to vector<16x64xi1>
    %57 = vector.broadcast %cst_30 : f32 to vector<16x64xf32>
    %58 = arith.select %56, %54, %57 : vector<16x64xi1>, vector<16x64xf32>
    %c96 = arith.constant 96 : index
    %c0_31 = arith.constant 0 : index
    %59 = vector.load %arg8[%c96, %c0_31] : memref<144x64xf32, #tpu.memory_space<vmem>>, vector<16x64xf32>
    tpu.vector_store %arg8[%c96, %c0_31], %58 {strides = array<i32>} : memref<144x64xf32, #tpu.memory_space<vmem>>, vector<16x64xf32>,
    %c0_32 = arith.constant 0 : index
    %c17 = arith.constant 17 : index
    %60 = vector.load %arg7[%c0_32, %c17] : memref<16x82xf32, #tpu.memory_space<vmem>>, vector<16x64xf32>
    %c112 = arith.constant 112 : index
    %c0_33 = arith.constant 0 : index
    %61 = vector.load %arg8[%c112, %c0_33] : memref<144x64xf32, #tpu.memory_space<vmem>>, vector<16x64xf32>
    tpu.vector_store %arg8[%c112, %c0_33], %60 {strides = array<i32>} : memref<144x64xf32, #tpu.memory_space<vmem>>, vector<16x64xf32>,
    %c0_34 = arith.constant 0 : index
    %c18 = arith.constant 18 : index
    %62 = vector.load %arg7[%c0_34, %c18] : memref<16x82xf32, #tpu.memory_space<vmem>>, vector<16x64xf32>
    %cst_35 = arith.constant 0.000000e+00 : f32
    %63 = vector.shape_cast %25 : vector<1x64xi1> to vector<1x64xi1>
    %64 = vector.broadcast %63 : vector<1x64xi1> to vector<16x64xi1>
    %65 = vector.broadcast %cst_35 : f32 to vector<16x64xf32>
    %66 = arith.select %64, %62, %65 : vector<16x64xi1>, vector<16x64xf32>
    %c128 = arith.constant 128 : index
    %c0_36 = arith.constant 0 : index
    %67 = vector.load %arg8[%c128, %c0_36] : memref<144x64xf32, #tpu.memory_space<vmem>>, vector<16x64xf32>
    tpu.vector_store %arg8[%c128, %c0_36], %66 {strides = array<i32>} : memref<144x64xf32, #tpu.memory_space<vmem>>, vector<16x64xf32>,
    %c0_37 = arith.constant 0 : index
    %c0_38 = arith.constant 0 : index
    %68 = vector.load %arg2[%c0_37, %c0_38] : memref<16x144xf32, #tpu.memory_space<vmem>>, vector<16x144xf32>
    %c0_39 = arith.constant 0 : index
    %c0_40 = arith.constant 0 : index
    %69 = vector.load %arg8[%c0_39, %c0_40] : memref<144x64xf32, #tpu.memory_space<vmem>>, vector<144x64xf32>
    %cst_41 = arith.constant dense<0.000000e+00> : vector<16x64xf32>
    %70 = tpu.matmul %68, %69, %cst_41 {dimension_numbers = #tpu.dot_dimension_numbers<[1], [0], [0], [1], [0, 0, 1, 1], [], []>} : vector<16x144xf32>, vector<144x64xf32>, vector<16x64xf32> -> vector<16x64xf32>
    %c0_42 = arith.constant 0 : index
    %c0_43 = arith.constant 0 : index
    %71 = vector.load %arg3[%c0_42, %c0_43] : memref<16x1xf32, #tpu.memory_space<vmem>>, vector<16x1xf32>
    %72 = vector.broadcast %71 : vector<16x1xf32> to vector<16x64xf32>
    %73 = arith.mulf %70, %72 : vector<16x64xf32>
    %c0_44 = arith.constant 0 : index
    %c0_45 = arith.constant 0 : index
    %74 = vector.load %arg4[%c0_44, %c0_45] : memref<16x1xf32, #tpu.memory_space<vmem>>, vector<16x1xf32>
    %75 = vector.broadcast %74 : vector<16x1xf32> to vector<16x64xf32>
    %76 = arith.addf %73, %75 : vector<16x64xf32>
    %c0_46 = arith.constant 0 : index
    %c0_47 = arith.constant 0 : index
    %c0_48 = arith.constant 0 : index
    %77 = vector.load %arg5[%c0_46, %c0_47, %c0_48] : memref<1x16x64xf32, #tpu.memory_space<vmem>>, vector<1x16x64xf32>
    %78 = vector.shape_cast %77 : vector<1x16x64xf32> to vector<16x64xf32>
    %79 = arith.addf %76, %78 : vector<16x64xf32>
    %cst_49 = arith.constant 0.000000e+00 : f32
    %80 = vector.broadcast %cst_49 : f32 to vector<16x64xf32>
    %81 = arith.maximumf %79, %80 : vector<16x64xf32>
    %c0_50 = arith.constant 0 : index
    %c0_51 = arith.constant 0 : index
    %c0_52 = arith.constant 0 : index
    %82 = vector.load %arg6[%c0_50, %c0_51, %c0_52] : memref<1x16x64xf32, #tpu.memory_space<vmem>>, vector<1x16x64xf32>
    %83 = vector.shape_cast %82 : vector<1x16x64xf32> to vector<16x64xf32>
    %84 = vector.shape_cast %81 : vector<16x64xf32> to vector<1x16x64xf32>
    tpu.vector_store %arg6[%c0_50, %c0_51, %c0_52], %84 {strides = array<i32>} : memref<1x16x64xf32, #tpu.memory_space<vmem>>, vector<1x16x64xf32>,
    return
  }
  func.func @transform_0(%arg0: i32) -> (i32, i32, i32) {
    %c0_i32 = arith.constant 0 : i32
    %c0_i32_0 = arith.constant 0 : i32
    %c0_i32_1 = arith.constant 0 : i32
    return %arg0, %c0_i32, %c0_i32_0 : i32, i32, i32
  }
  func.func @transform_1(%arg0: i32) -> (i32, i32) {
    %c0_i32 = arith.constant 0 : i32
    %c0_i32_0 = arith.constant 0 : i32
    %c0_i32_1 = arith.constant 0 : i32
    return %c0_i32, %c0_i32_0 : i32, i32
  }
  func.func @transform_2(%arg0: i32) -> (i32, i32) {
    %c0_i32 = arith.constant 0 : i32
    %c0_i32_0 = arith.constant 0 : i32
    %c0_i32_1 = arith.constant 0 : i32
    return %c0_i32, %c0_i32_0 : i32, i32
  }
  func.func @transform_3(%arg0: i32) -> (i32, i32) {
    %c0_i32 = arith.constant 0 : i32
    %c0_i32_0 = arith.constant 0 : i32
    %c0_i32_1 = arith.constant 0 : i32
    return %c0_i32, %c0_i32_0 : i32, i32
  }
  func.func @transform_4(%arg0: i32) -> (i32, i32, i32) {
    %c0_i32 = arith.constant 0 : i32
    %c0_i32_0 = arith.constant 0 : i32
    %c0_i32_1 = arith.constant 0 : i32
    return %arg0, %c0_i32, %c0_i32_0 : i32, i32, i32
  }
  func.func @transform_5(%arg0: i32) -> (i32, i32, i32) {
    %c0_i32 = arith.constant 0 : i32
    %c0_i32_0 = arith.constant 0 : i32
    %c0_i32_1 = arith.constant 0 : i32
    return %arg0, %c0_i32, %c0_i32_0 : i32, i32, i32
  }
}

module attributes {stable_mosaic.version = 11 : i64} {
  func.func @_resblock_kernel(%arg0: i32, %arg1: memref<1x16x16xf32, #tpu.memory_space<vmem>>, %arg2: memref<16x144xf32, #tpu.memory_space<vmem>>, %arg3: memref<16x1xf32, #tpu.memory_space<vmem>>, %arg4: memref<16x1xf32, #tpu.memory_space<vmem>>, %arg5: memref<16x144xf32, #tpu.memory_space<vmem>>, %arg6: memref<16x1xf32, #tpu.memory_space<vmem>>, %arg7: memref<16x1xf32, #tpu.memory_space<vmem>>, %arg8: memref<1x16x16xf32, #tpu.memory_space<vmem>>, %arg9: memref<16x26xf32, #tpu.memory_space<vmem>>, %arg10: memref<144x16xf32, #tpu.memory_space<vmem>>) attributes {dimension_semantics = [#tpu.dimension_semantics<parallel>], iteration_bounds = array<i64: 2>, scalar_prefetch = 0 : i64, scratch_operands = 2 : i64, tpu.core_type = #tpu.core_type<tc>, window_params = [{transform_indices = @transform_0, window_bounds = array<i64: 1, 16, 16>}, {pipeline_mode = #tpu.pipeline_mode<synchronous>, transform_indices = @transform_1, window_bounds = array<i64: 16, 144>}, {pipeline_mode = #tpu.pipeline_mode<synchronous>, transform_indices = @transform_2, window_bounds = array<i64: 16, 1>}, {pipeline_mode = #tpu.pipeline_mode<synchronous>, transform_indices = @transform_3, window_bounds = array<i64: 16, 1>}, {pipeline_mode = #tpu.pipeline_mode<synchronous>, transform_indices = @transform_4, window_bounds = array<i64: 16, 144>}, {pipeline_mode = #tpu.pipeline_mode<synchronous>, transform_indices = @transform_5, window_bounds = array<i64: 16, 1>}, {pipeline_mode = #tpu.pipeline_mode<synchronous>, transform_indices = @transform_6, window_bounds = array<i64: 16, 1>}, {transform_indices = @transform_7, window_bounds = array<i64: 1, 16, 16>}]} {
    %cst = arith.constant 0.000000e+00 : f32
    %0 = vector.broadcast %cst : f32 to vector<16x26xf32>
    %c0 = arith.constant 0 : index
    %c0_0 = arith.constant 0 : index
    %1 = vector.load %arg9[%c0, %c0_0] : memref<16x26xf32, #tpu.memory_space<vmem>>, vector<16x26xf32>
    tpu.vector_store %arg9[%c0, %c0_0], %0 {strides = array<i32>} : memref<16x26xf32, #tpu.memory_space<vmem>>, vector<16x26xf32>,
    %c0_1 = arith.constant 0 : index
    %c0_2 = arith.constant 0 : index
    %c0_3 = arith.constant 0 : index
    %2 = vector.load %arg1[%c0_1, %c0_2, %c0_3] : memref<1x16x16xf32, #tpu.memory_space<vmem>>, vector<1x16x16xf32>
    %3 = vector.shape_cast %2 : vector<1x16x16xf32> to vector<16x16xf32>
    %c0_4 = arith.constant 0 : index
    %c5 = arith.constant 5 : index
    %4 = vector.load %arg9[%c0_4, %c5] : memref<16x26xf32, #tpu.memory_space<vmem>>, vector<16x16xf32>
    tpu.vector_store %arg9[%c0_4, %c5], %3 {strides = array<i32>} : memref<16x26xf32, #tpu.memory_space<vmem>>, vector<16x16xf32>,
    %5 = tpu.iota {dimensions = array<i32: 1>} : vector<1x16xi32>
    %c4_i32 = arith.constant 4 : i32
    %c0_i32 = arith.constant 0 : i32
    %6 = arith.cmpi eq, %c4_i32, %c0_i32 : i32
    %c1_i32 = arith.constant 1 : i32
    %7 = arith.select %6, %c1_i32, %c4_i32 : i32
    %8 = vector.broadcast %7 : i32 to vector<1x16xi32>
    %9 = arith.remsi %5, %8 : vector<1x16xi32>
    %c0_i32_5 = arith.constant 0 : i32
    %10 = vector.broadcast %c0_i32_5 : i32 to vector<1x16xi32>
    %11 = arith.cmpi ne, %9, %10 : vector<1x16xi32>
    %c0_i32_6 = arith.constant 0 : i32
    %12 = vector.broadcast %c0_i32_6 : i32 to vector<1x16xi32>
    %13 = arith.cmpi slt, %9, %12 : vector<1x16xi32>
    %c0_i32_7 = arith.constant 0 : i32
    %14 = arith.cmpi slt, %7, %c0_i32_7 : i32
    %15 = vector.broadcast %14 : i1 to vector<1x16xi1>
    %16 = vector.broadcast %15 : vector<1x16xi1> to vector<1x16xi1>
    %17 = arith.xori %13, %16 : vector<1x16xi1>
    %18 = arith.andi %17, %11 : vector<1x16xi1>
    %19 = vector.broadcast %7 : i32 to vector<1x16xi32>
    %20 = arith.addi %9, %19 : vector<1x16xi32>
    %21 = arith.select %18, %20, %9 : vector<1x16xi1>, vector<1x16xi32>
    %c0_i32_8 = arith.constant 0 : i32
    %22 = vector.broadcast %c0_i32_8 : i32 to vector<1x16xi32>
    %23 = arith.cmpi ne, %21, %22 : vector<1x16xi32>
    %c3_i32 = arith.constant 3 : i32
    %24 = vector.broadcast %c3_i32 : i32 to vector<1x16xi32>
    %25 = arith.cmpi ne, %21, %24 : vector<1x16xi32>
    %c0_9 = arith.constant 0 : index
    %c0_10 = arith.constant 0 : index
    %26 = vector.load %arg9[%c0_9, %c0_10] : memref<16x26xf32, #tpu.memory_space<vmem>>, vector<16x16xf32>
    %cst_11 = arith.constant 0.000000e+00 : f32
    %27 = vector.shape_cast %23 : vector<1x16xi1> to vector<1x16xi1>
    %28 = vector.broadcast %27 : vector<1x16xi1> to vector<16x16xi1>
    %29 = vector.broadcast %cst_11 : f32 to vector<16x16xf32>
    %30 = arith.select %28, %26, %29 : vector<16x16xi1>, vector<16x16xf32>
    %c0_12 = arith.constant 0 : index
    %c0_13 = arith.constant 0 : index
    %31 = vector.load %arg10[%c0_12, %c0_13] : memref<144x16xf32, #tpu.memory_space<vmem>>, vector<16x16xf32>
    tpu.vector_store %arg10[%c0_12, %c0_13], %30 {strides = array<i32>} : memref<144x16xf32, #tpu.memory_space<vmem>>, vector<16x16xf32>,
    %c0_14 = arith.constant 0 : index
    %c1 = arith.constant 1 : index
    %32 = vector.load %arg9[%c0_14, %c1] : memref<16x26xf32, #tpu.memory_space<vmem>>, vector<16x16xf32>
    %c16 = arith.constant 16 : index
    %c0_15 = arith.constant 0 : index
    %33 = vector.load %arg10[%c16, %c0_15] : memref<144x16xf32, #tpu.memory_space<vmem>>, vector<16x16xf32>
    tpu.vector_store %arg10[%c16, %c0_15], %32 {strides = array<i32>} : memref<144x16xf32, #tpu.memory_space<vmem>>, vector<16x16xf32>,
    %c0_16 = arith.constant 0 : index
    %c2 = arith.constant 2 : index
    %34 = vector.load %arg9[%c0_16, %c2] : memref<16x26xf32, #tpu.memory_space<vmem>>, vector<16x16xf32>
    %cst_17 = arith.constant 0.000000e+00 : f32
    %35 = vector.shape_cast %25 : vector<1x16xi1> to vector<1x16xi1>
    %36 = vector.broadcast %35 : vector<1x16xi1> to vector<16x16xi1>
    %37 = vector.broadcast %cst_17 : f32 to vector<16x16xf32>
    %38 = arith.select %36, %34, %37 : vector<16x16xi1>, vector<16x16xf32>
    %c32 = arith.constant 32 : index
    %c0_18 = arith.constant 0 : index
    %39 = vector.load %arg10[%c32, %c0_18] : memref<144x16xf32, #tpu.memory_space<vmem>>, vector<16x16xf32>
    tpu.vector_store %arg10[%c32, %c0_18], %38 {strides = array<i32>} : memref<144x16xf32, #tpu.memory_space<vmem>>, vector<16x16xf32>,
    %c0_19 = arith.constant 0 : index
    %c4 = arith.constant 4 : index
    %40 = vector.load %arg9[%c0_19, %c4] : memref<16x26xf32, #tpu.memory_space<vmem>>, vector<16x16xf32>
    %cst_20 = arith.constant 0.000000e+00 : f32
    %41 = vector.shape_cast %23 : vector<1x16xi1> to vector<1x16xi1>
    %42 = vector.broadcast %41 : vector<1x16xi1> to vector<16x16xi1>
    %43 = vector.broadcast %cst_20 : f32 to vector<16x16xf32>
    %44 = arith.select %42, %40, %43 : vector<16x16xi1>, vector<16x16xf32>
    %c48 = arith.constant 48 : index
    %c0_21 = arith.constant 0 : index
    %45 = vector.load %arg10[%c48, %c0_21] : memref<144x16xf32, #tpu.memory_space<vmem>>, vector<16x16xf32>
    tpu.vector_store %arg10[%c48, %c0_21], %44 {strides = array<i32>} : memref<144x16xf32, #tpu.memory_space<vmem>>, vector<16x16xf32>,
    %c0_22 = arith.constant 0 : index
    %c5_23 = arith.constant 5 : index
    %46 = vector.load %arg9[%c0_22, %c5_23] : memref<16x26xf32, #tpu.memory_space<vmem>>, vector<16x16xf32>
    %c64 = arith.constant 64 : index
    %c0_24 = arith.constant 0 : index
    %47 = vector.load %arg10[%c64, %c0_24] : memref<144x16xf32, #tpu.memory_space<vmem>>, vector<16x16xf32>
    tpu.vector_store %arg10[%c64, %c0_24], %46 {strides = array<i32>} : memref<144x16xf32, #tpu.memory_space<vmem>>, vector<16x16xf32>,
    %c0_25 = arith.constant 0 : index
    %c6 = arith.constant 6 : index
    %48 = vector.load %arg9[%c0_25, %c6] : memref<16x26xf32, #tpu.memory_space<vmem>>, vector<16x16xf32>
    %cst_26 = arith.constant 0.000000e+00 : f32
    %49 = vector.shape_cast %25 : vector<1x16xi1> to vector<1x16xi1>
    %50 = vector.broadcast %49 : vector<1x16xi1> to vector<16x16xi1>
    %51 = vector.broadcast %cst_26 : f32 to vector<16x16xf32>
    %52 = arith.select %50, %48, %51 : vector<16x16xi1>, vector<16x16xf32>
    %c80 = arith.constant 80 : index
    %c0_27 = arith.constant 0 : index
    %53 = vector.load %arg10[%c80, %c0_27] : memref<144x16xf32, #tpu.memory_space<vmem>>, vector<16x16xf32>
    tpu.vector_store %arg10[%c80, %c0_27], %52 {strides = array<i32>} : memref<144x16xf32, #tpu.memory_space<vmem>>, vector<16x16xf32>,
    %c0_28 = arith.constant 0 : index
    %c8 = arith.constant 8 : index
    %54 = vector.load %arg9[%c0_28, %c8] : memref<16x26xf32, #tpu.memory_space<vmem>>, vector<16x16xf32>
    %cst_29 = arith.constant 0.000000e+00 : f32
    %55 = vector.shape_cast %23 : vector<1x16xi1> to vector<1x16xi1>
    %56 = vector.broadcast %55 : vector<1x16xi1> to vector<16x16xi1>
    %57 = vector.broadcast %cst_29 : f32 to vector<16x16xf32>
    %58 = arith.select %56, %54, %57 : vector<16x16xi1>, vector<16x16xf32>
    %c96 = arith.constant 96 : index
    %c0_30 = arith.constant 0 : index
    %59 = vector.load %arg10[%c96, %c0_30] : memref<144x16xf32, #tpu.memory_space<vmem>>, vector<16x16xf32>
    tpu.vector_store %arg10[%c96, %c0_30], %58 {strides = array<i32>} : memref<144x16xf32, #tpu.memory_space<vmem>>, vector<16x16xf32>,
    %c0_31 = arith.constant 0 : index
    %c9 = arith.constant 9 : index
    %60 = vector.load %arg9[%c0_31, %c9] : memref<16x26xf32, #tpu.memory_space<vmem>>, vector<16x16xf32>
    %c112 = arith.constant 112 : index
    %c0_32 = arith.constant 0 : index
    %61 = vector.load %arg10[%c112, %c0_32] : memref<144x16xf32, #tpu.memory_space<vmem>>, vector<16x16xf32>
    tpu.vector_store %arg10[%c112, %c0_32], %60 {strides = array<i32>} : memref<144x16xf32, #tpu.memory_space<vmem>>, vector<16x16xf32>,
    %c0_33 = arith.constant 0 : index
    %c10 = arith.constant 10 : index
    %62 = vector.load %arg9[%c0_33, %c10] : memref<16x26xf32, #tpu.memory_space<vmem>>, vector<16x16xf32>
    %cst_34 = arith.constant 0.000000e+00 : f32
    %63 = vector.shape_cast %25 : vector<1x16xi1> to vector<1x16xi1>
    %64 = vector.broadcast %63 : vector<1x16xi1> to vector<16x16xi1>
    %65 = vector.broadcast %cst_34 : f32 to vector<16x16xf32>
    %66 = arith.select %64, %62, %65 : vector<16x16xi1>, vector<16x16xf32>
    %c128 = arith.constant 128 : index
    %c0_35 = arith.constant 0 : index
    %67 = vector.load %arg10[%c128, %c0_35] : memref<144x16xf32, #tpu.memory_space<vmem>>, vector<16x16xf32>
    tpu.vector_store %arg10[%c128, %c0_35], %66 {strides = array<i32>} : memref<144x16xf32, #tpu.memory_space<vmem>>, vector<16x16xf32>,
    %c0_36 = arith.constant 0 : index
    %c0_37 = arith.constant 0 : index
    %68 = vector.load %arg2[%c0_36, %c0_37] : memref<16x144xf32, #tpu.memory_space<vmem>>, vector<16x144xf32>
    %c0_38 = arith.constant 0 : index
    %c0_39 = arith.constant 0 : index
    %69 = vector.load %arg10[%c0_38, %c0_39] : memref<144x16xf32, #tpu.memory_space<vmem>>, vector<144x16xf32>
    %cst_40 = arith.constant dense<0.000000e+00> : vector<16x16xf32>
    %70 = tpu.matmul %68, %69, %cst_40 {dimension_numbers = #tpu.dot_dimension_numbers<[1], [0], [0], [1], [0, 0, 1, 1], [], []>} : vector<16x144xf32>, vector<144x16xf32>, vector<16x16xf32> -> vector<16x16xf32>
    %c0_41 = arith.constant 0 : index
    %c0_42 = arith.constant 0 : index
    %71 = vector.load %arg3[%c0_41, %c0_42] : memref<16x1xf32, #tpu.memory_space<vmem>>, vector<16x1xf32>
    %72 = vector.broadcast %71 : vector<16x1xf32> to vector<16x16xf32>
    %73 = arith.mulf %70, %72 : vector<16x16xf32>
    %c0_43 = arith.constant 0 : index
    %c0_44 = arith.constant 0 : index
    %74 = vector.load %arg4[%c0_43, %c0_44] : memref<16x1xf32, #tpu.memory_space<vmem>>, vector<16x1xf32>
    %75 = vector.broadcast %74 : vector<16x1xf32> to vector<16x16xf32>
    %76 = arith.addf %73, %75 : vector<16x16xf32>
    %cst_45 = arith.constant 0.000000e+00 : f32
    %77 = vector.broadcast %cst_45 : f32 to vector<16x16xf32>
    %78 = arith.maximumf %76, %77 : vector<16x16xf32>
    %c0_46 = arith.constant 0 : index
    %c5_47 = arith.constant 5 : index
    %79 = vector.load %arg9[%c0_46, %c5_47] : memref<16x26xf32, #tpu.memory_space<vmem>>, vector<16x16xf32>
    tpu.vector_store %arg9[%c0_46, %c5_47], %78 {strides = array<i32>} : memref<16x26xf32, #tpu.memory_space<vmem>>, vector<16x16xf32>,
    %80 = tpu.iota {dimensions = array<i32: 1>} : vector<1x16xi32>
    %c4_i32_48 = arith.constant 4 : i32
    %c0_i32_49 = arith.constant 0 : i32
    %81 = arith.cmpi eq, %c4_i32_48, %c0_i32_49 : i32
    %c1_i32_50 = arith.constant 1 : i32
    %82 = arith.select %81, %c1_i32_50, %c4_i32_48 : i32
    %83 = vector.broadcast %82 : i32 to vector<1x16xi32>
    %84 = arith.remsi %80, %83 : vector<1x16xi32>
    %c0_i32_51 = arith.constant 0 : i32
    %85 = vector.broadcast %c0_i32_51 : i32 to vector<1x16xi32>
    %86 = arith.cmpi ne, %84, %85 : vector<1x16xi32>
    %c0_i32_52 = arith.constant 0 : i32
    %87 = vector.broadcast %c0_i32_52 : i32 to vector<1x16xi32>
    %88 = arith.cmpi slt, %84, %87 : vector<1x16xi32>
    %c0_i32_53 = arith.constant 0 : i32
    %89 = arith.cmpi slt, %82, %c0_i32_53 : i32
    %90 = vector.broadcast %89 : i1 to vector<1x16xi1>
    %91 = vector.broadcast %90 : vector<1x16xi1> to vector<1x16xi1>
    %92 = arith.xori %88, %91 : vector<1x16xi1>
    %93 = arith.andi %92, %86 : vector<1x16xi1>
    %94 = vector.broadcast %82 : i32 to vector<1x16xi32>
    %95 = arith.addi %84, %94 : vector<1x16xi32>
    %96 = arith.select %93, %95, %84 : vector<1x16xi1>, vector<1x16xi32>
    %c0_i32_54 = arith.constant 0 : i32
    %97 = vector.broadcast %c0_i32_54 : i32 to vector<1x16xi32>
    %98 = arith.cmpi ne, %96, %97 : vector<1x16xi32>
    %c3_i32_55 = arith.constant 3 : i32
    %99 = vector.broadcast %c3_i32_55 : i32 to vector<1x16xi32>
    %100 = arith.cmpi ne, %96, %99 : vector<1x16xi32>
    %c0_56 = arith.constant 0 : index
    %c0_57 = arith.constant 0 : index
    %101 = vector.load %arg9[%c0_56, %c0_57] : memref<16x26xf32, #tpu.memory_space<vmem>>, vector<16x16xf32>
    %cst_58 = arith.constant 0.000000e+00 : f32
    %102 = vector.shape_cast %98 : vector<1x16xi1> to vector<1x16xi1>
    %103 = vector.broadcast %102 : vector<1x16xi1> to vector<16x16xi1>
    %104 = vector.broadcast %cst_58 : f32 to vector<16x16xf32>
    %105 = arith.select %103, %101, %104 : vector<16x16xi1>, vector<16x16xf32>
    %c0_59 = arith.constant 0 : index
    %c0_60 = arith.constant 0 : index
    %106 = vector.load %arg10[%c0_59, %c0_60] : memref<144x16xf32, #tpu.memory_space<vmem>>, vector<16x16xf32>
    tpu.vector_store %arg10[%c0_59, %c0_60], %105 {strides = array<i32>} : memref<144x16xf32, #tpu.memory_space<vmem>>, vector<16x16xf32>,
    %c0_61 = arith.constant 0 : index
    %c1_62 = arith.constant 1 : index
    %107 = vector.load %arg9[%c0_61, %c1_62] : memref<16x26xf32, #tpu.memory_space<vmem>>, vector<16x16xf32>
    %c16_63 = arith.constant 16 : index
    %c0_64 = arith.constant 0 : index
    %108 = vector.load %arg10[%c16_63, %c0_64] : memref<144x16xf32, #tpu.memory_space<vmem>>, vector<16x16xf32>
    tpu.vector_store %arg10[%c16_63, %c0_64], %107 {strides = array<i32>} : memref<144x16xf32, #tpu.memory_space<vmem>>, vector<16x16xf32>,
    %c0_65 = arith.constant 0 : index
    %c2_66 = arith.constant 2 : index
    %109 = vector.load %arg9[%c0_65, %c2_66] : memref<16x26xf32, #tpu.memory_space<vmem>>, vector<16x16xf32>
    %cst_67 = arith.constant 0.000000e+00 : f32
    %110 = vector.shape_cast %100 : vector<1x16xi1> to vector<1x16xi1>
    %111 = vector.broadcast %110 : vector<1x16xi1> to vector<16x16xi1>
    %112 = vector.broadcast %cst_67 : f32 to vector<16x16xf32>
    %113 = arith.select %111, %109, %112 : vector<16x16xi1>, vector<16x16xf32>
    %c32_68 = arith.constant 32 : index
    %c0_69 = arith.constant 0 : index
    %114 = vector.load %arg10[%c32_68, %c0_69] : memref<144x16xf32, #tpu.memory_space<vmem>>, vector<16x16xf32>
    tpu.vector_store %arg10[%c32_68, %c0_69], %113 {strides = array<i32>} : memref<144x16xf32, #tpu.memory_space<vmem>>, vector<16x16xf32>,
    %c0_70 = arith.constant 0 : index
    %c4_71 = arith.constant 4 : index
    %115 = vector.load %arg9[%c0_70, %c4_71] : memref<16x26xf32, #tpu.memory_space<vmem>>, vector<16x16xf32>
    %cst_72 = arith.constant 0.000000e+00 : f32
    %116 = vector.shape_cast %98 : vector<1x16xi1> to vector<1x16xi1>
    %117 = vector.broadcast %116 : vector<1x16xi1> to vector<16x16xi1>
    %118 = vector.broadcast %cst_72 : f32 to vector<16x16xf32>
    %119 = arith.select %117, %115, %118 : vector<16x16xi1>, vector<16x16xf32>
    %c48_73 = arith.constant 48 : index
    %c0_74 = arith.constant 0 : index
    %120 = vector.load %arg10[%c48_73, %c0_74] : memref<144x16xf32, #tpu.memory_space<vmem>>, vector<16x16xf32>
    tpu.vector_store %arg10[%c48_73, %c0_74], %119 {strides = array<i32>} : memref<144x16xf32, #tpu.memory_space<vmem>>, vector<16x16xf32>,
    %c0_75 = arith.constant 0 : index
    %c5_76 = arith.constant 5 : index
    %121 = vector.load %arg9[%c0_75, %c5_76] : memref<16x26xf32, #tpu.memory_space<vmem>>, vector<16x16xf32>
    %c64_77 = arith.constant 64 : index
    %c0_78 = arith.constant 0 : index
    %122 = vector.load %arg10[%c64_77, %c0_78] : memref<144x16xf32, #tpu.memory_space<vmem>>, vector<16x16xf32>
    tpu.vector_store %arg10[%c64_77, %c0_78], %121 {strides = array<i32>} : memref<144x16xf32, #tpu.memory_space<vmem>>, vector<16x16xf32>,
    %c0_79 = arith.constant 0 : index
    %c6_80 = arith.constant 6 : index
    %123 = vector.load %arg9[%c0_79, %c6_80] : memref<16x26xf32, #tpu.memory_space<vmem>>, vector<16x16xf32>
    %cst_81 = arith.constant 0.000000e+00 : f32
    %124 = vector.shape_cast %100 : vector<1x16xi1> to vector<1x16xi1>
    %125 = vector.broadcast %124 : vector<1x16xi1> to vector<16x16xi1>
    %126 = vector.broadcast %cst_81 : f32 to vector<16x16xf32>
    %127 = arith.select %125, %123, %126 : vector<16x16xi1>, vector<16x16xf32>
    %c80_82 = arith.constant 80 : index
    %c0_83 = arith.constant 0 : index
    %128 = vector.load %arg10[%c80_82, %c0_83] : memref<144x16xf32, #tpu.memory_space<vmem>>, vector<16x16xf32>
    tpu.vector_store %arg10[%c80_82, %c0_83], %127 {strides = array<i32>} : memref<144x16xf32, #tpu.memory_space<vmem>>, vector<16x16xf32>,
    %c0_84 = arith.constant 0 : index
    %c8_85 = arith.constant 8 : index
    %129 = vector.load %arg9[%c0_84, %c8_85] : memref<16x26xf32, #tpu.memory_space<vmem>>, vector<16x16xf32>
    %cst_86 = arith.constant 0.000000e+00 : f32
    %130 = vector.shape_cast %98 : vector<1x16xi1> to vector<1x16xi1>
    %131 = vector.broadcast %130 : vector<1x16xi1> to vector<16x16xi1>
    %132 = vector.broadcast %cst_86 : f32 to vector<16x16xf32>
    %133 = arith.select %131, %129, %132 : vector<16x16xi1>, vector<16x16xf32>
    %c96_87 = arith.constant 96 : index
    %c0_88 = arith.constant 0 : index
    %134 = vector.load %arg10[%c96_87, %c0_88] : memref<144x16xf32, #tpu.memory_space<vmem>>, vector<16x16xf32>
    tpu.vector_store %arg10[%c96_87, %c0_88], %133 {strides = array<i32>} : memref<144x16xf32, #tpu.memory_space<vmem>>, vector<16x16xf32>,
    %c0_89 = arith.constant 0 : index
    %c9_90 = arith.constant 9 : index
    %135 = vector.load %arg9[%c0_89, %c9_90] : memref<16x26xf32, #tpu.memory_space<vmem>>, vector<16x16xf32>
    %c112_91 = arith.constant 112 : index
    %c0_92 = arith.constant 0 : index
    %136 = vector.load %arg10[%c112_91, %c0_92] : memref<144x16xf32, #tpu.memory_space<vmem>>, vector<16x16xf32>
    tpu.vector_store %arg10[%c112_91, %c0_92], %135 {strides = array<i32>} : memref<144x16xf32, #tpu.memory_space<vmem>>, vector<16x16xf32>,
    %c0_93 = arith.constant 0 : index
    %c10_94 = arith.constant 10 : index
    %137 = vector.load %arg9[%c0_93, %c10_94] : memref<16x26xf32, #tpu.memory_space<vmem>>, vector<16x16xf32>
    %cst_95 = arith.constant 0.000000e+00 : f32
    %138 = vector.shape_cast %100 : vector<1x16xi1> to vector<1x16xi1>
    %139 = vector.broadcast %138 : vector<1x16xi1> to vector<16x16xi1>
    %140 = vector.broadcast %cst_95 : f32 to vector<16x16xf32>
    %141 = arith.select %139, %137, %140 : vector<16x16xi1>, vector<16x16xf32>
    %c128_96 = arith.constant 128 : index
    %c0_97 = arith.constant 0 : index
    %142 = vector.load %arg10[%c128_96, %c0_97] : memref<144x16xf32, #tpu.memory_space<vmem>>, vector<16x16xf32>
    tpu.vector_store %arg10[%c128_96, %c0_97], %141 {strides = array<i32>} : memref<144x16xf32, #tpu.memory_space<vmem>>, vector<16x16xf32>,
    %c0_98 = arith.constant 0 : index
    %c0_99 = arith.constant 0 : index
    %143 = vector.load %arg5[%c0_98, %c0_99] : memref<16x144xf32, #tpu.memory_space<vmem>>, vector<16x144xf32>
    %c0_100 = arith.constant 0 : index
    %c0_101 = arith.constant 0 : index
    %144 = vector.load %arg10[%c0_100, %c0_101] : memref<144x16xf32, #tpu.memory_space<vmem>>, vector<144x16xf32>
    %cst_102 = arith.constant dense<0.000000e+00> : vector<16x16xf32>
    %145 = tpu.matmul %143, %144, %cst_102 {dimension_numbers = #tpu.dot_dimension_numbers<[1], [0], [0], [1], [0, 0, 1, 1], [], []>} : vector<16x144xf32>, vector<144x16xf32>, vector<16x16xf32> -> vector<16x16xf32>
    %c0_103 = arith.constant 0 : index
    %c0_104 = arith.constant 0 : index
    %146 = vector.load %arg6[%c0_103, %c0_104] : memref<16x1xf32, #tpu.memory_space<vmem>>, vector<16x1xf32>
    %147 = vector.broadcast %146 : vector<16x1xf32> to vector<16x16xf32>
    %148 = arith.mulf %145, %147 : vector<16x16xf32>
    %c0_105 = arith.constant 0 : index
    %c0_106 = arith.constant 0 : index
    %149 = vector.load %arg7[%c0_105, %c0_106] : memref<16x1xf32, #tpu.memory_space<vmem>>, vector<16x1xf32>
    %150 = vector.broadcast %149 : vector<16x1xf32> to vector<16x16xf32>
    %151 = arith.addf %148, %150 : vector<16x16xf32>
    %152 = arith.addf %151, %3 : vector<16x16xf32>
    %cst_107 = arith.constant 0.000000e+00 : f32
    %153 = vector.broadcast %cst_107 : f32 to vector<16x16xf32>
    %154 = arith.maximumf %152, %153 : vector<16x16xf32>
    %c0_108 = arith.constant 0 : index
    %c5_109 = arith.constant 5 : index
    %155 = vector.load %arg9[%c0_108, %c5_109] : memref<16x26xf32, #tpu.memory_space<vmem>>, vector<16x16xf32>
    tpu.vector_store %arg9[%c0_108, %c5_109], %154 {strides = array<i32>} : memref<16x26xf32, #tpu.memory_space<vmem>>, vector<16x16xf32>,
    %156 = tpu.iota {dimensions = array<i32: 1>} : vector<1x16xi32>
    %c4_i32_110 = arith.constant 4 : i32
    %c0_i32_111 = arith.constant 0 : i32
    %157 = arith.cmpi eq, %c4_i32_110, %c0_i32_111 : i32
    %c1_i32_112 = arith.constant 1 : i32
    %158 = arith.select %157, %c1_i32_112, %c4_i32_110 : i32
    %159 = vector.broadcast %158 : i32 to vector<1x16xi32>
    %160 = arith.remsi %156, %159 : vector<1x16xi32>
    %c0_i32_113 = arith.constant 0 : i32
    %161 = vector.broadcast %c0_i32_113 : i32 to vector<1x16xi32>
    %162 = arith.cmpi ne, %160, %161 : vector<1x16xi32>
    %c0_i32_114 = arith.constant 0 : i32
    %163 = vector.broadcast %c0_i32_114 : i32 to vector<1x16xi32>
    %164 = arith.cmpi slt, %160, %163 : vector<1x16xi32>
    %c0_i32_115 = arith.constant 0 : i32
    %165 = arith.cmpi slt, %158, %c0_i32_115 : i32
    %166 = vector.broadcast %165 : i1 to vector<1x16xi1>
    %167 = vector.broadcast %166 : vector<1x16xi1> to vector<1x16xi1>
    %168 = arith.xori %164, %167 : vector<1x16xi1>
    %169 = arith.andi %168, %162 : vector<1x16xi1>
    %170 = vector.broadcast %158 : i32 to vector<1x16xi32>
    %171 = arith.addi %160, %170 : vector<1x16xi32>
    %172 = arith.select %169, %171, %160 : vector<1x16xi1>, vector<1x16xi32>
    %c0_i32_116 = arith.constant 0 : i32
    %173 = vector.broadcast %c0_i32_116 : i32 to vector<1x16xi32>
    %174 = arith.cmpi ne, %172, %173 : vector<1x16xi32>
    %c3_i32_117 = arith.constant 3 : i32
    %175 = vector.broadcast %c3_i32_117 : i32 to vector<1x16xi32>
    %176 = arith.cmpi ne, %172, %175 : vector<1x16xi32>
    %cst_118 = arith.constant 0.000000e+00 : f32
    %177 = vector.broadcast %cst_118 : f32 to vector<16x16xf32>
    %c0_119 = arith.constant 0 : index
    %c0_120 = arith.constant 0 : index
    %178 = vector.load %arg9[%c0_119, %c0_120] : memref<16x26xf32, #tpu.memory_space<vmem>>, vector<16x16xf32>
    %cst_121 = arith.constant 0.000000e+00 : f32
    %179 = vector.shape_cast %174 : vector<1x16xi1> to vector<1x16xi1>
    %180 = vector.broadcast %179 : vector<1x16xi1> to vector<16x16xi1>
    %181 = vector.broadcast %cst_121 : f32 to vector<16x16xf32>
    %182 = arith.select %180, %178, %181 : vector<16x16xi1>, vector<16x16xf32>
    %183 = arith.addf %177, %182 : vector<16x16xf32>
    %c0_122 = arith.constant 0 : index
    %c1_123 = arith.constant 1 : index
    %184 = vector.load %arg9[%c0_122, %c1_123] : memref<16x26xf32, #tpu.memory_space<vmem>>, vector<16x16xf32>
    %185 = arith.addf %183, %184 : vector<16x16xf32>
    %c0_124 = arith.constant 0 : index
    %c2_125 = arith.constant 2 : index
    %186 = vector.load %arg9[%c0_124, %c2_125] : memref<16x26xf32, #tpu.memory_space<vmem>>, vector<16x16xf32>
    %cst_126 = arith.constant 0.000000e+00 : f32
    %187 = vector.shape_cast %176 : vector<1x16xi1> to vector<1x16xi1>
    %188 = vector.broadcast %187 : vector<1x16xi1> to vector<16x16xi1>
    %189 = vector.broadcast %cst_126 : f32 to vector<16x16xf32>
    %190 = arith.select %188, %186, %189 : vector<16x16xi1>, vector<16x16xf32>
    %191 = arith.addf %185, %190 : vector<16x16xf32>
    %c0_127 = arith.constant 0 : index
    %c4_128 = arith.constant 4 : index
    %192 = vector.load %arg9[%c0_127, %c4_128] : memref<16x26xf32, #tpu.memory_space<vmem>>, vector<16x16xf32>
    %cst_129 = arith.constant 0.000000e+00 : f32
    %193 = vector.shape_cast %174 : vector<1x16xi1> to vector<1x16xi1>
    %194 = vector.broadcast %193 : vector<1x16xi1> to vector<16x16xi1>
    %195 = vector.broadcast %cst_129 : f32 to vector<16x16xf32>
    %196 = arith.select %194, %192, %195 : vector<16x16xi1>, vector<16x16xf32>
    %197 = arith.addf %191, %196 : vector<16x16xf32>
    %c0_130 = arith.constant 0 : index
    %c5_131 = arith.constant 5 : index
    %198 = vector.load %arg9[%c0_130, %c5_131] : memref<16x26xf32, #tpu.memory_space<vmem>>, vector<16x16xf32>
    %199 = arith.addf %197, %198 : vector<16x16xf32>
    %c0_132 = arith.constant 0 : index
    %c6_133 = arith.constant 6 : index
    %200 = vector.load %arg9[%c0_132, %c6_133] : memref<16x26xf32, #tpu.memory_space<vmem>>, vector<16x16xf32>
    %cst_134 = arith.constant 0.000000e+00 : f32
    %201 = vector.shape_cast %176 : vector<1x16xi1> to vector<1x16xi1>
    %202 = vector.broadcast %201 : vector<1x16xi1> to vector<16x16xi1>
    %203 = vector.broadcast %cst_134 : f32 to vector<16x16xf32>
    %204 = arith.select %202, %200, %203 : vector<16x16xi1>, vector<16x16xf32>
    %205 = arith.addf %199, %204 : vector<16x16xf32>
    %c0_135 = arith.constant 0 : index
    %c8_136 = arith.constant 8 : index
    %206 = vector.load %arg9[%c0_135, %c8_136] : memref<16x26xf32, #tpu.memory_space<vmem>>, vector<16x16xf32>
    %cst_137 = arith.constant 0.000000e+00 : f32
    %207 = vector.shape_cast %174 : vector<1x16xi1> to vector<1x16xi1>
    %208 = vector.broadcast %207 : vector<1x16xi1> to vector<16x16xi1>
    %209 = vector.broadcast %cst_137 : f32 to vector<16x16xf32>
    %210 = arith.select %208, %206, %209 : vector<16x16xi1>, vector<16x16xf32>
    %211 = arith.addf %205, %210 : vector<16x16xf32>
    %c0_138 = arith.constant 0 : index
    %c9_139 = arith.constant 9 : index
    %212 = vector.load %arg9[%c0_138, %c9_139] : memref<16x26xf32, #tpu.memory_space<vmem>>, vector<16x16xf32>
    %213 = arith.addf %211, %212 : vector<16x16xf32>
    %c0_140 = arith.constant 0 : index
    %c10_141 = arith.constant 10 : index
    %214 = vector.load %arg9[%c0_140, %c10_141] : memref<16x26xf32, #tpu.memory_space<vmem>>, vector<16x16xf32>
    %cst_142 = arith.constant 0.000000e+00 : f32
    %215 = vector.shape_cast %176 : vector<1x16xi1> to vector<1x16xi1>
    %216 = vector.broadcast %215 : vector<1x16xi1> to vector<16x16xi1>
    %217 = vector.broadcast %cst_142 : f32 to vector<16x16xf32>
    %218 = arith.select %216, %214, %217 : vector<16x16xi1>, vector<16x16xf32>
    %219 = arith.addf %213, %218 : vector<16x16xf32>
    %cst_143 = arith.constant 0.111111112 : f32
    %220 = vector.broadcast %cst_143 : f32 to vector<16x16xf32>
    %221 = arith.mulf %219, %220 : vector<16x16xf32>
    %c0_144 = arith.constant 0 : index
    %c0_145 = arith.constant 0 : index
    %c0_146 = arith.constant 0 : index
    %222 = vector.load %arg8[%c0_144, %c0_145, %c0_146] : memref<1x16x16xf32, #tpu.memory_space<vmem>>, vector<1x16x16xf32>
    %223 = vector.shape_cast %222 : vector<1x16x16xf32> to vector<16x16xf32>
    %224 = vector.shape_cast %221 : vector<16x16xf32> to vector<1x16x16xf32>
    tpu.vector_store %arg8[%c0_144, %c0_145, %c0_146], %224 {strides = array<i32>} : memref<1x16x16xf32, #tpu.memory_space<vmem>>, vector<1x16x16xf32>,
    return
  }
  func.func @transform_0(%arg0: i32) -> (i32, i32, i32) {
    %c0_i32 = arith.constant 0 : i32
    %c0_i32_0 = arith.constant 0 : i32
    %c0_i32_1 = arith.constant 0 : i32
    return %arg0, %c0_i32, %c0_i32_0 : i32, i32, i32
  }
  func.func @transform_1(%arg0: i32) -> (i32, i32) {
    %c0_i32 = arith.constant 0 : i32
    %c0_i32_0 = arith.constant 0 : i32
    %c0_i32_1 = arith.constant 0 : i32
    return %c0_i32, %c0_i32_0 : i32, i32
  }
  func.func @transform_2(%arg0: i32) -> (i32, i32) {
    %c0_i32 = arith.constant 0 : i32
    %c0_i32_0 = arith.constant 0 : i32
    %c0_i32_1 = arith.constant 0 : i32
    return %c0_i32, %c0_i32_0 : i32, i32
  }
  func.func @transform_3(%arg0: i32) -> (i32, i32) {
    %c0_i32 = arith.constant 0 : i32
    %c0_i32_0 = arith.constant 0 : i32
    %c0_i32_1 = arith.constant 0 : i32
    return %c0_i32, %c0_i32_0 : i32, i32
  }
  func.func @transform_4(%arg0: i32) -> (i32, i32) {
    %c0_i32 = arith.constant 0 : i32
    %c0_i32_0 = arith.constant 0 : i32
    %c0_i32_1 = arith.constant 0 : i32
    return %c0_i32, %c0_i32_0 : i32, i32
  }
  func.func @transform_5(%arg0: i32) -> (i32, i32) {
    %c0_i32 = arith.constant 0 : i32
    %c0_i32_0 = arith.constant 0 : i32
    %c0_i32_1 = arith.constant 0 : i32
    return %c0_i32, %c0_i32_0 : i32, i32
  }
  func.func @transform_6(%arg0: i32) -> (i32, i32) {
    %c0_i32 = arith.constant 0 : i32
    %c0_i32_0 = arith.constant 0 : i32
    %c0_i32_1 = arith.constant 0 : i32
    return %c0_i32, %c0_i32_0 : i32, i32
  }
  func.func @transform_7(%arg0: i32) -> (i32, i32, i32) {
    %c0_i32 = arith.constant 0 : i32
    %c0_i32_0 = arith.constant 0 : i32
    %c0_i32_1 = arith.constant 0 : i32
    return %arg0, %c0_i32, %c0_i32_0 : i32, i32, i32
  }
}

module attributes {stable_mosaic.version = 11 : i64} {
  func.func @_resblock_kernel(%arg0: i32, %arg1: memref<1x16x4xf32, #tpu.memory_space<vmem>>, %arg2: memref<16x144xf32, #tpu.memory_space<vmem>>, %arg3: memref<16x1xf32, #tpu.memory_space<vmem>>, %arg4: memref<16x1xf32, #tpu.memory_space<vmem>>, %arg5: memref<16x144xf32, #tpu.memory_space<vmem>>, %arg6: memref<16x1xf32, #tpu.memory_space<vmem>>, %arg7: memref<16x1xf32, #tpu.memory_space<vmem>>, %arg8: memref<1x16x4xf32, #tpu.memory_space<vmem>>, %arg9: memref<16x10xf32, #tpu.memory_space<vmem>>, %arg10: memref<144x4xf32, #tpu.memory_space<vmem>>) attributes {dimension_semantics = [#tpu.dimension_semantics<parallel>], iteration_bounds = array<i64: 2>, scalar_prefetch = 0 : i64, scratch_operands = 2 : i64, tpu.core_type = #tpu.core_type<tc>, window_params = [{transform_indices = @transform_0, window_bounds = array<i64: 1, 16, 4>}, {pipeline_mode = #tpu.pipeline_mode<synchronous>, transform_indices = @transform_1, window_bounds = array<i64: 16, 144>}, {pipeline_mode = #tpu.pipeline_mode<synchronous>, transform_indices = @transform_2, window_bounds = array<i64: 16, 1>}, {pipeline_mode = #tpu.pipeline_mode<synchronous>, transform_indices = @transform_3, window_bounds = array<i64: 16, 1>}, {pipeline_mode = #tpu.pipeline_mode<synchronous>, transform_indices = @transform_4, window_bounds = array<i64: 16, 144>}, {pipeline_mode = #tpu.pipeline_mode<synchronous>, transform_indices = @transform_5, window_bounds = array<i64: 16, 1>}, {pipeline_mode = #tpu.pipeline_mode<synchronous>, transform_indices = @transform_6, window_bounds = array<i64: 16, 1>}, {transform_indices = @transform_7, window_bounds = array<i64: 1, 16, 4>}]} {
    %cst = arith.constant 0.000000e+00 : f32
    %0 = vector.broadcast %cst : f32 to vector<16x10xf32>
    %c0 = arith.constant 0 : index
    %c0_0 = arith.constant 0 : index
    %1 = vector.load %arg9[%c0, %c0_0] : memref<16x10xf32, #tpu.memory_space<vmem>>, vector<16x10xf32>
    tpu.vector_store %arg9[%c0, %c0_0], %0 {strides = array<i32>} : memref<16x10xf32, #tpu.memory_space<vmem>>, vector<16x10xf32>,
    %c0_1 = arith.constant 0 : index
    %c0_2 = arith.constant 0 : index
    %c0_3 = arith.constant 0 : index
    %2 = vector.load %arg1[%c0_1, %c0_2, %c0_3] : memref<1x16x4xf32, #tpu.memory_space<vmem>>, vector<1x16x4xf32>
    %3 = vector.shape_cast %2 : vector<1x16x4xf32> to vector<16x4xf32>
    %c0_4 = arith.constant 0 : index
    %c3 = arith.constant 3 : index
    %4 = vector.load %arg9[%c0_4, %c3] : memref<16x10xf32, #tpu.memory_space<vmem>>, vector<16x4xf32>
    tpu.vector_store %arg9[%c0_4, %c3], %3 {strides = array<i32>} : memref<16x10xf32, #tpu.memory_space<vmem>>, vector<16x4xf32>,
    %5 = tpu.iota {dimensions = array<i32: 1>} : vector<1x4xi32>
    %c2_i32 = arith.constant 2 : i32
    %c0_i32 = arith.constant 0 : i32
    %6 = arith.cmpi eq, %c2_i32, %c0_i32 : i32
    %c1_i32 = arith.constant 1 : i32
    %7 = arith.select %6, %c1_i32, %c2_i32 : i32
    %8 = vector.broadcast %7 : i32 to vector<1x4xi32>
    %9 = arith.remsi %5, %8 : vector<1x4xi32>
    %c0_i32_5 = arith.constant 0 : i32
    %10 = vector.broadcast %c0_i32_5 : i32 to vector<1x4xi32>
    %11 = arith.cmpi ne, %9, %10 : vector<1x4xi32>
    %c0_i32_6 = arith.constant 0 : i32
    %12 = vector.broadcast %c0_i32_6 : i32 to vector<1x4xi32>
    %13 = arith.cmpi slt, %9, %12 : vector<1x4xi32>
    %c0_i32_7 = arith.constant 0 : i32
    %14 = arith.cmpi slt, %7, %c0_i32_7 : i32
    %15 = vector.broadcast %14 : i1 to vector<1x4xi1>
    %16 = vector.broadcast %15 : vector<1x4xi1> to vector<1x4xi1>
    %17 = arith.xori %13, %16 : vector<1x4xi1>
    %18 = arith.andi %17, %11 : vector<1x4xi1>
    %19 = vector.broadcast %7 : i32 to vector<1x4xi32>
    %20 = arith.addi %9, %19 : vector<1x4xi32>
    %21 = arith.select %18, %20, %9 : vector<1x4xi1>, vector<1x4xi32>
    %c0_i32_8 = arith.constant 0 : i32
    %22 = vector.broadcast %c0_i32_8 : i32 to vector<1x4xi32>
    %23 = arith.cmpi ne, %21, %22 : vector<1x4xi32>
    %c1_i32_9 = arith.constant 1 : i32
    %24 = vector.broadcast %c1_i32_9 : i32 to vector<1x4xi32>
    %25 = arith.cmpi ne, %21, %24 : vector<1x4xi32>
    %c0_10 = arith.constant 0 : index
    %c0_11 = arith.constant 0 : index
    %26 = vector.load %arg9[%c0_10, %c0_11] : memref<16x10xf32, #tpu.memory_space<vmem>>, vector<16x4xf32>
    %cst_12 = arith.constant 0.000000e+00 : f32
    %27 = vector.shape_cast %23 : vector<1x4xi1> to vector<1x4xi1>
    %28 = vector.broadcast %27 : vector<1x4xi1> to vector<16x4xi1>
    %29 = vector.broadcast %cst_12 : f32 to vector<16x4xf32>
    %30 = arith.select %28, %26, %29 : vector<16x4xi1>, vector<16x4xf32>
    %c0_13 = arith.constant 0 : index
    %c0_14 = arith.constant 0 : index
    %31 = vector.load %arg10[%c0_13, %c0_14] : memref<144x4xf32, #tpu.memory_space<vmem>>, vector<16x4xf32>
    tpu.vector_store %arg10[%c0_13, %c0_14], %30 {strides = array<i32>} : memref<144x4xf32, #tpu.memory_space<vmem>>, vector<16x4xf32>,
    %c0_15 = arith.constant 0 : index
    %c1 = arith.constant 1 : index
    %32 = vector.load %arg9[%c0_15, %c1] : memref<16x10xf32, #tpu.memory_space<vmem>>, vector<16x4xf32>
    %c16 = arith.constant 16 : index
    %c0_16 = arith.constant 0 : index
    %33 = vector.load %arg10[%c16, %c0_16] : memref<144x4xf32, #tpu.memory_space<vmem>>, vector<16x4xf32>
    tpu.vector_store %arg10[%c16, %c0_16], %32 {strides = array<i32>} : memref<144x4xf32, #tpu.memory_space<vmem>>, vector<16x4xf32>,
    %c0_17 = arith.constant 0 : index
    %c2 = arith.constant 2 : index
    %34 = vector.load %arg9[%c0_17, %c2] : memref<16x10xf32, #tpu.memory_space<vmem>>, vector<16x4xf32>
    %cst_18 = arith.constant 0.000000e+00 : f32
    %35 = vector.shape_cast %25 : vector<1x4xi1> to vector<1x4xi1>
    %36 = vector.broadcast %35 : vector<1x4xi1> to vector<16x4xi1>
    %37 = vector.broadcast %cst_18 : f32 to vector<16x4xf32>
    %38 = arith.select %36, %34, %37 : vector<16x4xi1>, vector<16x4xf32>
    %c32 = arith.constant 32 : index
    %c0_19 = arith.constant 0 : index
    %39 = vector.load %arg10[%c32, %c0_19] : memref<144x4xf32, #tpu.memory_space<vmem>>, vector<16x4xf32>
    tpu.vector_store %arg10[%c32, %c0_19], %38 {strides = array<i32>} : memref<144x4xf32, #tpu.memory_space<vmem>>, vector<16x4xf32>,
    %c0_20 = arith.constant 0 : index
    %c2_21 = arith.constant 2 : index
    %40 = vector.load %arg9[%c0_20, %c2_21] : memref<16x10xf32, #tpu.memory_space<vmem>>, vector<16x4xf32>
    %cst_22 = arith.constant 0.000000e+00 : f32
    %41 = vector.shape_cast %23 : vector<1x4xi1> to vector<1x4xi1>
    %42 = vector.broadcast %41 : vector<1x4xi1> to vector<16x4xi1>
    %43 = vector.broadcast %cst_22 : f32 to vector<16x4xf32>
    %44 = arith.select %42, %40, %43 : vector<16x4xi1>, vector<16x4xf32>
    %c48 = arith.constant 48 : index
    %c0_23 = arith.constant 0 : index
    %45 = vector.load %arg10[%c48, %c0_23] : memref<144x4xf32, #tpu.memory_space<vmem>>, vector<16x4xf32>
    tpu.vector_store %arg10[%c48, %c0_23], %44 {strides = array<i32>} : memref<144x4xf32, #tpu.memory_space<vmem>>, vector<16x4xf32>,
    %c0_24 = arith.constant 0 : index
    %c3_25 = arith.constant 3 : index
    %46 = vector.load %arg9[%c0_24, %c3_25] : memref<16x10xf32, #tpu.memory_space<vmem>>, vector<16x4xf32>
    %c64 = arith.constant 64 : index
    %c0_26 = arith.constant 0 : index
    %47 = vector.load %arg10[%c64, %c0_26] : memref<144x4xf32, #tpu.memory_space<vmem>>, vector<16x4xf32>
    tpu.vector_store %arg10[%c64, %c0_26], %46 {strides = array<i32>} : memref<144x4xf32, #tpu.memory_space<vmem>>, vector<16x4xf32>,
    %c0_27 = arith.constant 0 : index
    %c4 = arith.constant 4 : index
    %48 = vector.load %arg9[%c0_27, %c4] : memref<16x10xf32, #tpu.memory_space<vmem>>, vector<16x4xf32>
    %cst_28 = arith.constant 0.000000e+00 : f32
    %49 = vector.shape_cast %25 : vector<1x4xi1> to vector<1x4xi1>
    %50 = vector.broadcast %49 : vector<1x4xi1> to vector<16x4xi1>
    %51 = vector.broadcast %cst_28 : f32 to vector<16x4xf32>
    %52 = arith.select %50, %48, %51 : vector<16x4xi1>, vector<16x4xf32>
    %c80 = arith.constant 80 : index
    %c0_29 = arith.constant 0 : index
    %53 = vector.load %arg10[%c80, %c0_29] : memref<144x4xf32, #tpu.memory_space<vmem>>, vector<16x4xf32>
    tpu.vector_store %arg10[%c80, %c0_29], %52 {strides = array<i32>} : memref<144x4xf32, #tpu.memory_space<vmem>>, vector<16x4xf32>,
    %c0_30 = arith.constant 0 : index
    %c4_31 = arith.constant 4 : index
    %54 = vector.load %arg9[%c0_30, %c4_31] : memref<16x10xf32, #tpu.memory_space<vmem>>, vector<16x4xf32>
    %cst_32 = arith.constant 0.000000e+00 : f32
    %55 = vector.shape_cast %23 : vector<1x4xi1> to vector<1x4xi1>
    %56 = vector.broadcast %55 : vector<1x4xi1> to vector<16x4xi1>
    %57 = vector.broadcast %cst_32 : f32 to vector<16x4xf32>
    %58 = arith.select %56, %54, %57 : vector<16x4xi1>, vector<16x4xf32>
    %c96 = arith.constant 96 : index
    %c0_33 = arith.constant 0 : index
    %59 = vector.load %arg10[%c96, %c0_33] : memref<144x4xf32, #tpu.memory_space<vmem>>, vector<16x4xf32>
    tpu.vector_store %arg10[%c96, %c0_33], %58 {strides = array<i32>} : memref<144x4xf32, #tpu.memory_space<vmem>>, vector<16x4xf32>,
    %c0_34 = arith.constant 0 : index
    %c5 = arith.constant 5 : index
    %60 = vector.load %arg9[%c0_34, %c5] : memref<16x10xf32, #tpu.memory_space<vmem>>, vector<16x4xf32>
    %c112 = arith.constant 112 : index
    %c0_35 = arith.constant 0 : index
    %61 = vector.load %arg10[%c112, %c0_35] : memref<144x4xf32, #tpu.memory_space<vmem>>, vector<16x4xf32>
    tpu.vector_store %arg10[%c112, %c0_35], %60 {strides = array<i32>} : memref<144x4xf32, #tpu.memory_space<vmem>>, vector<16x4xf32>,
    %c0_36 = arith.constant 0 : index
    %c6 = arith.constant 6 : index
    %62 = vector.load %arg9[%c0_36, %c6] : memref<16x10xf32, #tpu.memory_space<vmem>>, vector<16x4xf32>
    %cst_37 = arith.constant 0.000000e+00 : f32
    %63 = vector.shape_cast %25 : vector<1x4xi1> to vector<1x4xi1>
    %64 = vector.broadcast %63 : vector<1x4xi1> to vector<16x4xi1>
    %65 = vector.broadcast %cst_37 : f32 to vector<16x4xf32>
    %66 = arith.select %64, %62, %65 : vector<16x4xi1>, vector<16x4xf32>
    %c128 = arith.constant 128 : index
    %c0_38 = arith.constant 0 : index
    %67 = vector.load %arg10[%c128, %c0_38] : memref<144x4xf32, #tpu.memory_space<vmem>>, vector<16x4xf32>
    tpu.vector_store %arg10[%c128, %c0_38], %66 {strides = array<i32>} : memref<144x4xf32, #tpu.memory_space<vmem>>, vector<16x4xf32>,
    %c0_39 = arith.constant 0 : index
    %c0_40 = arith.constant 0 : index
    %68 = vector.load %arg2[%c0_39, %c0_40] : memref<16x144xf32, #tpu.memory_space<vmem>>, vector<16x144xf32>
    %c0_41 = arith.constant 0 : index
    %c0_42 = arith.constant 0 : index
    %69 = vector.load %arg10[%c0_41, %c0_42] : memref<144x4xf32, #tpu.memory_space<vmem>>, vector<144x4xf32>
    %cst_43 = arith.constant dense<0.000000e+00> : vector<16x4xf32>
    %70 = tpu.matmul %68, %69, %cst_43 {dimension_numbers = #tpu.dot_dimension_numbers<[1], [0], [0], [1], [0, 0, 1, 1], [], []>} : vector<16x144xf32>, vector<144x4xf32>, vector<16x4xf32> -> vector<16x4xf32>
    %c0_44 = arith.constant 0 : index
    %c0_45 = arith.constant 0 : index
    %71 = vector.load %arg3[%c0_44, %c0_45] : memref<16x1xf32, #tpu.memory_space<vmem>>, vector<16x1xf32>
    %72 = vector.broadcast %71 : vector<16x1xf32> to vector<16x4xf32>
    %73 = arith.mulf %70, %72 : vector<16x4xf32>
    %c0_46 = arith.constant 0 : index
    %c0_47 = arith.constant 0 : index
    %74 = vector.load %arg4[%c0_46, %c0_47] : memref<16x1xf32, #tpu.memory_space<vmem>>, vector<16x1xf32>
    %75 = vector.broadcast %74 : vector<16x1xf32> to vector<16x4xf32>
    %76 = arith.addf %73, %75 : vector<16x4xf32>
    %cst_48 = arith.constant 0.000000e+00 : f32
    %77 = vector.broadcast %cst_48 : f32 to vector<16x4xf32>
    %78 = arith.maximumf %76, %77 : vector<16x4xf32>
    %c0_49 = arith.constant 0 : index
    %c3_50 = arith.constant 3 : index
    %79 = vector.load %arg9[%c0_49, %c3_50] : memref<16x10xf32, #tpu.memory_space<vmem>>, vector<16x4xf32>
    tpu.vector_store %arg9[%c0_49, %c3_50], %78 {strides = array<i32>} : memref<16x10xf32, #tpu.memory_space<vmem>>, vector<16x4xf32>,
    %80 = tpu.iota {dimensions = array<i32: 1>} : vector<1x4xi32>
    %c2_i32_51 = arith.constant 2 : i32
    %c0_i32_52 = arith.constant 0 : i32
    %81 = arith.cmpi eq, %c2_i32_51, %c0_i32_52 : i32
    %c1_i32_53 = arith.constant 1 : i32
    %82 = arith.select %81, %c1_i32_53, %c2_i32_51 : i32
    %83 = vector.broadcast %82 : i32 to vector<1x4xi32>
    %84 = arith.remsi %80, %83 : vector<1x4xi32>
    %c0_i32_54 = arith.constant 0 : i32
    %85 = vector.broadcast %c0_i32_54 : i32 to vector<1x4xi32>
    %86 = arith.cmpi ne, %84, %85 : vector<1x4xi32>
    %c0_i32_55 = arith.constant 0 : i32
    %87 = vector.broadcast %c0_i32_55 : i32 to vector<1x4xi32>
    %88 = arith.cmpi slt, %84, %87 : vector<1x4xi32>
    %c0_i32_56 = arith.constant 0 : i32
    %89 = arith.cmpi slt, %82, %c0_i32_56 : i32
    %90 = vector.broadcast %89 : i1 to vector<1x4xi1>
    %91 = vector.broadcast %90 : vector<1x4xi1> to vector<1x4xi1>
    %92 = arith.xori %88, %91 : vector<1x4xi1>
    %93 = arith.andi %92, %86 : vector<1x4xi1>
    %94 = vector.broadcast %82 : i32 to vector<1x4xi32>
    %95 = arith.addi %84, %94 : vector<1x4xi32>
    %96 = arith.select %93, %95, %84 : vector<1x4xi1>, vector<1x4xi32>
    %c0_i32_57 = arith.constant 0 : i32
    %97 = vector.broadcast %c0_i32_57 : i32 to vector<1x4xi32>
    %98 = arith.cmpi ne, %96, %97 : vector<1x4xi32>
    %c1_i32_58 = arith.constant 1 : i32
    %99 = vector.broadcast %c1_i32_58 : i32 to vector<1x4xi32>
    %100 = arith.cmpi ne, %96, %99 : vector<1x4xi32>
    %c0_59 = arith.constant 0 : index
    %c0_60 = arith.constant 0 : index
    %101 = vector.load %arg9[%c0_59, %c0_60] : memref<16x10xf32, #tpu.memory_space<vmem>>, vector<16x4xf32>
    %cst_61 = arith.constant 0.000000e+00 : f32
    %102 = vector.shape_cast %98 : vector<1x4xi1> to vector<1x4xi1>
    %103 = vector.broadcast %102 : vector<1x4xi1> to vector<16x4xi1>
    %104 = vector.broadcast %cst_61 : f32 to vector<16x4xf32>
    %105 = arith.select %103, %101, %104 : vector<16x4xi1>, vector<16x4xf32>
    %c0_62 = arith.constant 0 : index
    %c0_63 = arith.constant 0 : index
    %106 = vector.load %arg10[%c0_62, %c0_63] : memref<144x4xf32, #tpu.memory_space<vmem>>, vector<16x4xf32>
    tpu.vector_store %arg10[%c0_62, %c0_63], %105 {strides = array<i32>} : memref<144x4xf32, #tpu.memory_space<vmem>>, vector<16x4xf32>,
    %c0_64 = arith.constant 0 : index
    %c1_65 = arith.constant 1 : index
    %107 = vector.load %arg9[%c0_64, %c1_65] : memref<16x10xf32, #tpu.memory_space<vmem>>, vector<16x4xf32>
    %c16_66 = arith.constant 16 : index
    %c0_67 = arith.constant 0 : index
    %108 = vector.load %arg10[%c16_66, %c0_67] : memref<144x4xf32, #tpu.memory_space<vmem>>, vector<16x4xf32>
    tpu.vector_store %arg10[%c16_66, %c0_67], %107 {strides = array<i32>} : memref<144x4xf32, #tpu.memory_space<vmem>>, vector<16x4xf32>,
    %c0_68 = arith.constant 0 : index
    %c2_69 = arith.constant 2 : index
    %109 = vector.load %arg9[%c0_68, %c2_69] : memref<16x10xf32, #tpu.memory_space<vmem>>, vector<16x4xf32>
    %cst_70 = arith.constant 0.000000e+00 : f32
    %110 = vector.shape_cast %100 : vector<1x4xi1> to vector<1x4xi1>
    %111 = vector.broadcast %110 : vector<1x4xi1> to vector<16x4xi1>
    %112 = vector.broadcast %cst_70 : f32 to vector<16x4xf32>
    %113 = arith.select %111, %109, %112 : vector<16x4xi1>, vector<16x4xf32>
    %c32_71 = arith.constant 32 : index
    %c0_72 = arith.constant 0 : index
    %114 = vector.load %arg10[%c32_71, %c0_72] : memref<144x4xf32, #tpu.memory_space<vmem>>, vector<16x4xf32>
    tpu.vector_store %arg10[%c32_71, %c0_72], %113 {strides = array<i32>} : memref<144x4xf32, #tpu.memory_space<vmem>>, vector<16x4xf32>,
    %c0_73 = arith.constant 0 : index
    %c2_74 = arith.constant 2 : index
    %115 = vector.load %arg9[%c0_73, %c2_74] : memref<16x10xf32, #tpu.memory_space<vmem>>, vector<16x4xf32>
    %cst_75 = arith.constant 0.000000e+00 : f32
    %116 = vector.shape_cast %98 : vector<1x4xi1> to vector<1x4xi1>
    %117 = vector.broadcast %116 : vector<1x4xi1> to vector<16x4xi1>
    %118 = vector.broadcast %cst_75 : f32 to vector<16x4xf32>
    %119 = arith.select %117, %115, %118 : vector<16x4xi1>, vector<16x4xf32>
    %c48_76 = arith.constant 48 : index
    %c0_77 = arith.constant 0 : index
    %120 = vector.load %arg10[%c48_76, %c0_77] : memref<144x4xf32, #tpu.memory_space<vmem>>, vector<16x4xf32>
    tpu.vector_store %arg10[%c48_76, %c0_77], %119 {strides = array<i32>} : memref<144x4xf32, #tpu.memory_space<vmem>>, vector<16x4xf32>,
    %c0_78 = arith.constant 0 : index
    %c3_79 = arith.constant 3 : index
    %121 = vector.load %arg9[%c0_78, %c3_79] : memref<16x10xf32, #tpu.memory_space<vmem>>, vector<16x4xf32>
    %c64_80 = arith.constant 64 : index
    %c0_81 = arith.constant 0 : index
    %122 = vector.load %arg10[%c64_80, %c0_81] : memref<144x4xf32, #tpu.memory_space<vmem>>, vector<16x4xf32>
    tpu.vector_store %arg10[%c64_80, %c0_81], %121 {strides = array<i32>} : memref<144x4xf32, #tpu.memory_space<vmem>>, vector<16x4xf32>,
    %c0_82 = arith.constant 0 : index
    %c4_83 = arith.constant 4 : index
    %123 = vector.load %arg9[%c0_82, %c4_83] : memref<16x10xf32, #tpu.memory_space<vmem>>, vector<16x4xf32>
    %cst_84 = arith.constant 0.000000e+00 : f32
    %124 = vector.shape_cast %100 : vector<1x4xi1> to vector<1x4xi1>
    %125 = vector.broadcast %124 : vector<1x4xi1> to vector<16x4xi1>
    %126 = vector.broadcast %cst_84 : f32 to vector<16x4xf32>
    %127 = arith.select %125, %123, %126 : vector<16x4xi1>, vector<16x4xf32>
    %c80_85 = arith.constant 80 : index
    %c0_86 = arith.constant 0 : index
    %128 = vector.load %arg10[%c80_85, %c0_86] : memref<144x4xf32, #tpu.memory_space<vmem>>, vector<16x4xf32>
    tpu.vector_store %arg10[%c80_85, %c0_86], %127 {strides = array<i32>} : memref<144x4xf32, #tpu.memory_space<vmem>>, vector<16x4xf32>,
    %c0_87 = arith.constant 0 : index
    %c4_88 = arith.constant 4 : index
    %129 = vector.load %arg9[%c0_87, %c4_88] : memref<16x10xf32, #tpu.memory_space<vmem>>, vector<16x4xf32>
    %cst_89 = arith.constant 0.000000e+00 : f32
    %130 = vector.shape_cast %98 : vector<1x4xi1> to vector<1x4xi1>
    %131 = vector.broadcast %130 : vector<1x4xi1> to vector<16x4xi1>
    %132 = vector.broadcast %cst_89 : f32 to vector<16x4xf32>
    %133 = arith.select %131, %129, %132 : vector<16x4xi1>, vector<16x4xf32>
    %c96_90 = arith.constant 96 : index
    %c0_91 = arith.constant 0 : index
    %134 = vector.load %arg10[%c96_90, %c0_91] : memref<144x4xf32, #tpu.memory_space<vmem>>, vector<16x4xf32>
    tpu.vector_store %arg10[%c96_90, %c0_91], %133 {strides = array<i32>} : memref<144x4xf32, #tpu.memory_space<vmem>>, vector<16x4xf32>,
    %c0_92 = arith.constant 0 : index
    %c5_93 = arith.constant 5 : index
    %135 = vector.load %arg9[%c0_92, %c5_93] : memref<16x10xf32, #tpu.memory_space<vmem>>, vector<16x4xf32>
    %c112_94 = arith.constant 112 : index
    %c0_95 = arith.constant 0 : index
    %136 = vector.load %arg10[%c112_94, %c0_95] : memref<144x4xf32, #tpu.memory_space<vmem>>, vector<16x4xf32>
    tpu.vector_store %arg10[%c112_94, %c0_95], %135 {strides = array<i32>} : memref<144x4xf32, #tpu.memory_space<vmem>>, vector<16x4xf32>,
    %c0_96 = arith.constant 0 : index
    %c6_97 = arith.constant 6 : index
    %137 = vector.load %arg9[%c0_96, %c6_97] : memref<16x10xf32, #tpu.memory_space<vmem>>, vector<16x4xf32>
    %cst_98 = arith.constant 0.000000e+00 : f32
    %138 = vector.shape_cast %100 : vector<1x4xi1> to vector<1x4xi1>
    %139 = vector.broadcast %138 : vector<1x4xi1> to vector<16x4xi1>
    %140 = vector.broadcast %cst_98 : f32 to vector<16x4xf32>
    %141 = arith.select %139, %137, %140 : vector<16x4xi1>, vector<16x4xf32>
    %c128_99 = arith.constant 128 : index
    %c0_100 = arith.constant 0 : index
    %142 = vector.load %arg10[%c128_99, %c0_100] : memref<144x4xf32, #tpu.memory_space<vmem>>, vector<16x4xf32>
    tpu.vector_store %arg10[%c128_99, %c0_100], %141 {strides = array<i32>} : memref<144x4xf32, #tpu.memory_space<vmem>>, vector<16x4xf32>,
    %c0_101 = arith.constant 0 : index
    %c0_102 = arith.constant 0 : index
    %143 = vector.load %arg5[%c0_101, %c0_102] : memref<16x144xf32, #tpu.memory_space<vmem>>, vector<16x144xf32>
    %c0_103 = arith.constant 0 : index
    %c0_104 = arith.constant 0 : index
    %144 = vector.load %arg10[%c0_103, %c0_104] : memref<144x4xf32, #tpu.memory_space<vmem>>, vector<144x4xf32>
    %cst_105 = arith.constant dense<0.000000e+00> : vector<16x4xf32>
    %145 = tpu.matmul %143, %144, %cst_105 {dimension_numbers = #tpu.dot_dimension_numbers<[1], [0], [0], [1], [0, 0, 1, 1], [], []>} : vector<16x144xf32>, vector<144x4xf32>, vector<16x4xf32> -> vector<16x4xf32>
    %c0_106 = arith.constant 0 : index
    %c0_107 = arith.constant 0 : index
    %146 = vector.load %arg6[%c0_106, %c0_107] : memref<16x1xf32, #tpu.memory_space<vmem>>, vector<16x1xf32>
    %147 = vector.broadcast %146 : vector<16x1xf32> to vector<16x4xf32>
    %148 = arith.mulf %145, %147 : vector<16x4xf32>
    %c0_108 = arith.constant 0 : index
    %c0_109 = arith.constant 0 : index
    %149 = vector.load %arg7[%c0_108, %c0_109] : memref<16x1xf32, #tpu.memory_space<vmem>>, vector<16x1xf32>
    %150 = vector.broadcast %149 : vector<16x1xf32> to vector<16x4xf32>
    %151 = arith.addf %148, %150 : vector<16x4xf32>
    %152 = arith.addf %151, %3 : vector<16x4xf32>
    %cst_110 = arith.constant 0.000000e+00 : f32
    %153 = vector.broadcast %cst_110 : f32 to vector<16x4xf32>
    %154 = arith.maximumf %152, %153 : vector<16x4xf32>
    %c0_111 = arith.constant 0 : index
    %c0_112 = arith.constant 0 : index
    %c0_113 = arith.constant 0 : index
    %155 = vector.load %arg8[%c0_111, %c0_112, %c0_113] : memref<1x16x4xf32, #tpu.memory_space<vmem>>, vector<1x16x4xf32>
    %156 = vector.shape_cast %155 : vector<1x16x4xf32> to vector<16x4xf32>
    %157 = vector.shape_cast %154 : vector<16x4xf32> to vector<1x16x4xf32>
    tpu.vector_store %arg8[%c0_111, %c0_112, %c0_113], %157 {strides = array<i32>} : memref<1x16x4xf32, #tpu.memory_space<vmem>>, vector<1x16x4xf32>,
    return
  }
  func.func @transform_0(%arg0: i32) -> (i32, i32, i32) {
    %c0_i32 = arith.constant 0 : i32
    %c0_i32_0 = arith.constant 0 : i32
    %c0_i32_1 = arith.constant 0 : i32
    return %arg0, %c0_i32, %c0_i32_0 : i32, i32, i32
  }
  func.func @transform_1(%arg0: i32) -> (i32, i32) {
    %c0_i32 = arith.constant 0 : i32
    %c0_i32_0 = arith.constant 0 : i32
    %c0_i32_1 = arith.constant 0 : i32
    return %c0_i32, %c0_i32_0 : i32, i32
  }
  func.func @transform_2(%arg0: i32) -> (i32, i32) {
    %c0_i32 = arith.constant 0 : i32
    %c0_i32_0 = arith.constant 0 : i32
    %c0_i32_1 = arith.constant 0 : i32
    return %c0_i32, %c0_i32_0 : i32, i32
  }
  func.func @transform_3(%arg0: i32) -> (i32, i32) {
    %c0_i32 = arith.constant 0 : i32
    %c0_i32_0 = arith.constant 0 : i32
    %c0_i32_1 = arith.constant 0 : i32
    return %c0_i32, %c0_i32_0 : i32, i32
  }
  func.func @transform_4(%arg0: i32) -> (i32, i32) {
    %c0_i32 = arith.constant 0 : i32
    %c0_i32_0 = arith.constant 0 : i32
    %c0_i32_1 = arith.constant 0 : i32
    return %c0_i32, %c0_i32_0 : i32, i32
  }
  func.func @transform_5(%arg0: i32) -> (i32, i32) {
    %c0_i32 = arith.constant 0 : i32
    %c0_i32_0 = arith.constant 0 : i32
    %c0_i32_1 = arith.constant 0 : i32
    return %c0_i32, %c0_i32_0 : i32, i32
  }
  func.func @transform_6(%arg0: i32) -> (i32, i32) {
    %c0_i32 = arith.constant 0 : i32
    %c0_i32_0 = arith.constant 0 : i32
    %c0_i32_1 = arith.constant 0 : i32
    return %c0_i32, %c0_i32_0 : i32, i32
  }
  func.func @transform_7(%arg0: i32) -> (i32, i32, i32) {
    %c0_i32 = arith.constant 0 : i32
    %c0_i32_0 = arith.constant 0 : i32
    %c0_i32_1 = arith.constant 0 : i32
    return %arg0, %c0_i32, %c0_i32_0 : i32, i32, i32
  }
}

</mosaic_0001>

<bundles_post_ra>
// kernel: representation_forward.10
= control target key start
LH: loop header
LB: loop body
LE: loop exit
PB: predicated region body
PF: predicated region fallthrough
CT: control target
= control target key end

     0   :  { %s722_s15 = smov 0   ;;  %s855_s0 = inlined_call_operand.vmem [shape: f32[2,8,256], index: 0, kind: input, shape index: {}]   ;;  %s856_s1 = inlined_call_operand.vmem [shape: f32[16,72], index: 1, kind: input, shape index: {}]   ;;  %s857_s2 = inlined_call_operand.vmem [shape: f32[16,1], index: 2, kind: input, shape index: {}]   ;;  %s858_s3 = inlined_call_operand.vmem [shape: f32[16,1], index: 3, kind: input, shape index: {}]   ;;  %s859_s4 = inlined_call_operand.vmem [shape: f32[2,16,256], index: 4, kind: output, shape index: {}]  }
   0x1 LB: > { %s594_s16 = sadd.s32 4294967295, %s684_s15   ;;  %p598_p0 = scmp.ge.s32.totalorder %s684_s15, 1  ;;  %s684_s15 = sphi %s722_s15, %s14_s15  }
   0x2   : > { %p162_p1 = scmp.lt.s32.totalorder %s684_s15, 3 }
   0x4   : > { %p163_p2 = pnand %p598_p0, %p162_p1 }
   0x5   : > { %p188_p3 = scmp.lt.s32.totalorder (!%p163_p2), %s594_s16, 1  ;;  %s687_s21 = smov (!%p163_p2), 17  }
   0x6   : > { %166 = sbr.rel (%p163_p2) target bundleno = 452 (0x1c4), region = 36  ;;  %s688_s22 = smov (!%p163_p2), 94  }
   0x7   : > { %s689_s23 = smov (!%p163_p2), 96   ;;  %s690_s24 = smov (!%p163_p2), 95  }
   0x8   : > { %s691_s25 = smov (!%p163_p2), 110   ;;  %s692_s26 = smov (!%p163_p2), 111  }
   0x9   : > { %s693_s27 = smov (!%p163_p2), 112   ;;  %s694_s28 = smov (!%p163_p2), 126  }
   0xa   : > { %s695_s29 = smov (!%p163_p2), 127  }
   0xb   : > { %v686_v0 = vmov 0.0   ;;  %s869_s16 = smov (!%p188_p3, %s594_s16), 1  ;;  %vm200_vm0 = vcmask 277504   ;;  %vm215_vm1 = vcmask 1047688   ;;  %vm210_vm2 = vcmask 138240   ;;  %v500_v42 = vld [vmem:[%s857_s2 + $0x8] sm:$0xff] }
   0xc   : > { %198 = vst [vmem:[#allocation2] sm:$0xff] %v686_v0  ;;  %s609_s17 = sshll.u32 %s869_s16, 4  ;;  %v219_v15 = vlaneseq  ;;  %vm417_vm3 = vcmask 769024   ;;  %vm398_vm6 = vcmask 777216   ;;  %vm377_vm7 = vcmask 785408   ;;  %v515_v43 = vld [vmem:[%s858_s3] sm:$0xff] }
   0xd   : > { %s192_s20 = scalar_lea.vmem %s855_s0, %s609_s17  ;;  %201 = vst.msk [vmem:[#allocation2 + $0x10] sm:$0xff] %vm200_vm0, %v686_v0  ;;  %vm356_vm10 = vcmask 900096   ;;  %vm337_vm11 = vcmask 908288   ;;  %v696_v47 = vmov 0   ;;  %v499_v50 = vld [vmem:[%s857_s2] sm:$0xff]  ;;  %vm316_vm12 = vcmask 916480  }
   0xe   : > { %v202_v1 = vld [vmem:[%s192_s20] sm:$0xff]  ;;  %v203_v2 = vld [vmem:[%s192_s20 + $0x8] sm:$0xff]  ;;  %v220_v17 = vand.u32 127, %v219_v15  ;;  %676 = vset.pattern.permute.xlu0 %v696_v47  ;;  %677 = vset.pattern.permute.xlu1 %v696_v47  ;;  %vm295_vm13 = vcmask 1031168   ;;  %vm272_vm14 = vcmask 1039360   ;;  %vm446_vm15 = vcmask 588800  }
   0xf   : > { %206 = vrot.lane.b32.xlu0 %v202_v1, %s687_s21  ;;  %675 = vset.pattern.permute.xlu2 %v696_v47  ;;  %v516_v55 = vld [vmem:[%s858_s3 + $0x8] sm:$0xff]  ;;  %v426_v1 = vld [vmem:[%s856_s1] sm:$0xff]  ;;  %s610_s18 = sshll.u32 %s869_s16, 5 }
  0x10   : > { %v221_v19 = vadd.s32 128, %v220_v17  ;;  %v226_v22 = vand.u32 15, %v220_v17  ;;  %v427_v0 = vld [vmem:[%s856_s1 + $0x8] sm:$0xff] }
  0x12   : > { %v233_v23 = vand.u32 15, %v221_v19  ;;  %vm756_vm4 = vcmp.ne.s32.totalorder %v226_v22, 15  ;;  %vm772_vm8 = vcmp.ne.s32.totalorder %v226_v22, 0 }
  0x14   : > { %vm760_vm5 = vcmp.ne.s32.totalorder %v233_v23, 15  ;;  %vm776_vm9 = vcmp.ne.s32.totalorder %v233_v23, 0 }
  0x17   : > { %208 = vrot.lane.b32.xlu0 %v203_v2, %s687_s21  ;;  %s197_s21 = scalar_lea.vmem %s859_s4, %s610_s18 }
  0x81   : > { %v207_v3 = vpop.permute.xlu0 %206 }
  0x82   : > { %216 = vst.msk [vmem:[#allocation2] sm:$0xff] %vm215_vm1, %v207_v3 }
  0x89   : > { %v209_v4 = vpop.permute.xlu0 %208  ;;  %v736_v5 = vld [vmem:[#allocation2] sm:$0xff] }
  0x8a   : > { %v738_v6 = vsel %vm210_vm2, %v207_v3, %v209_v4  ;;  %218 = vst.msk [vmem:[#allocation2 + $0x10] sm:$0xff] %vm210_vm2, %v209_v4  ;;  %411 = vrot.lane.b32.xlu1 %v736_v5, %s688_s22 }
  0x8b   : > { %v660_v8 = vpack.i.bf16 %v738_v6, %v736_v5 }
  0x91   : > { %v407_v7 = vld [vmem:[#allocation2 + $0x10] sm:$0xff] }
  0x92   : > { %371 = vrot.lane.b32.xlu1 %v736_v5, %s689_s23  ;;  %415 = vrot.lane.b32.xlu2 %v407_v7, %s688_s22 }
  0x93   : > { %396 = vrot.lane.b32.xlu0 %v407_v7, %s690_s24 }
  0x9a   : > { %350 = vrot.lane.b32.xlu1 %v736_v5, %s691_s25  ;;  %335 = vrot.lane.b32.xlu2 %v407_v7, %s692_s26 }
  0x9b   : > { %375 = vrot.lane.b32.xlu0 %v407_v7, %s689_s23 }
  0xa2   : > { %314 = vrot.lane.b32.xlu2 %v407_v7, %s693_s27  ;;  %413 = vrot.lane.b32.xlu1 %v738_v6, %s688_s22 }
  0xa3   : > { %354 = vrot.lane.b32.xlu0 %v407_v7, %s691_s25 }
  0xaa   : > { %661 = vrot.lane.b32.xlu2 %v660_v8, %s690_s24  ;;  %666 = vrot.lane.b32.xlu1 %v660_v8, %s692_s26 }
  0xab   : > { %310 = vrot.lane.b32.xlu0 %v736_v5, %s693_s27 }
  0xb2   : > { %373 = vrot.lane.b32.xlu2 %v738_v6, %s689_s23  ;;  %312 = vrot.lane.b32.xlu1 %v738_v6, %s693_s27 }
  0xb3   : > { %289 = vrot.lane.b32.xlu0 %v736_v5, %s694_s28 }
  0xba   : > { %352 = vrot.lane.b32.xlu2 %v738_v6, %s691_s25  ;;  %291 = vrot.lane.b32.xlu1 %v738_v6, %s694_s28 }
  0xbb   : > { %671 = vrot.lane.b32.xlu0 %v660_v8, %s695_s29 }
  0xc2   : > { %293 = vrot.lane.b32.xlu2 %v407_v7, %s694_s28  ;;  %270 = vrot.lane.b32.xlu1 %v407_v7, %s695_s29 }
  0xc3   : > { %508 = vperm.xlu0 %676, %v500_v42  }
  0xca   : > { %519 = vperm.xlu1 %677, %v515_v43   ;;  %503 = vperm.xlu2 %675, %v499_v50  }
  0xd2   : > { %524 = vperm.xlu2 %675, %v516_v55  }
  0xec   : > { %v416_v9 = vpop.permute.xlu2 %415 }
  0xf4   : > { %v752_v10 = vpop.permute.xlu2 %335 }
  0xfc   : > { %v412_v11 = vpop.permute.xlu1 %411  ;;  %v754_v12 = vpop.permute.xlu2 %314 }
 0x104   : > { %v372_v13 = vpop.permute.xlu1 %371  ;;  %v662_v14 = vpop.permute.xlu2 %661 }
 0x105   : > { %v397_v16 = vpop.permute.xlu0 %396  ;;  %v664_v24 = vunpack.i.h.bf16 %v662_v14  ;;  %v663_v25 = vunpack.i.l.bf16 %v662_v14 }
 0x107   : > { %v399_v32 = vsel %vm398_vm6, %v663_v25, %v664_v24  ;;  %v400_v35 = vsel %vm398_vm6, %v664_v24, %v397_v16 }
 0x10c   : > { %v351_v18 = vpop.permute.xlu1 %350  ;;  %v374_v21 = vpop.permute.xlu2 %373 }
 0x10d   : > { %v376_v20 = vpop.permute.xlu0 %375  ;;  %v378_v37 = vsel %vm377_vm7, %v372_v13, %v374_v21 }
 0x10e   : > { %v379_v38 = vsel %vm377_vm7, %v374_v21, %v376_v20 }
 0x114   : > { %v414_v27 = vpop.permute.xlu1 %413  ;;  %v353_v34 = vpop.permute.xlu2 %352 }
 0x115   : > { %v355_v29 = vpop.permute.xlu0 %354  ;;  %v418_v30 = vsel %vm417_vm3, %v412_v11, %v414_v27  ;;  %v419_v31 = vsel %vm417_vm3, %v414_v27, %v416_v9  ;;  %v357_v39 = vsel %vm356_vm10, %v351_v18, %v353_v34 }
 0x116   : > { %611 = vmatpush.msk.msra.mxu0 %vm756_vm4, %v418_v30  ;;  %623 = vmatpush.msk.msra.mxu2 %vm756_vm4, %v418_v30  ;;  %v358_v40 = vsel %vm356_vm10, %v353_v34, %v355_v29 }
 0x117   : > { %617 = vmatpush.msk.msra.mxu1 %vm760_vm5, %v419_v31  ;;  %632 = vmatpush.msk.msra.mxu3 %vm760_vm5, %v419_v31 }
 0x118   : > { %461 = vmatpush.msra.mxu0 %v399_v32  ;;  %624 = vmatpush.msra.mxu2 %v399_v32 }
 0x119   : > { %484 = vmatpush.msra.mxu1 %v400_v35  ;;  %633 = vmatpush.msra.mxu3 %v400_v35 }
 0x11a   : > { %612 = vmatpush.msk.msra.mxu0 %vm772_vm8, %v378_v37  ;;  %625 = vmatpush.msk.msra.mxu2 %vm772_vm8, %v378_v37 }
 0x11b   : > { %618 = vmatpush.msk.msra.mxu1 %vm776_vm9, %v379_v38  ;;  %634 = vmatpush.msk.msra.mxu3 %vm776_vm9, %v379_v38 }
 0x11c   : > { %613 = vmatpush.msk.msra.mxu0 %vm756_vm4, %v357_v39  ;;  %626 = vmatpush.msk.msra.mxu2 %vm756_vm4, %v357_v39  ;;  %v667_v41 = vpop.permute.xlu1 %666  ;;  %v294_v56 = vpop.permute.xlu2 %293 }
 0x11d   : > { %v311_v44 = vpop.permute.xlu0 %310  ;;  %619 = vmatpush.msk.msra.mxu1 %vm760_vm5, %v358_v40  ;;  %635 = vmatpush.msk.msra.mxu3 %vm760_vm5, %v358_v40  ;;  %v669_v45 = vunpack.i.h.bf16 %v667_v41  ;;  %v668_v46 = vunpack.i.l.bf16 %v667_v41 }
 0x11f   : > { %v338_v48 = vsel %vm337_vm11, %v668_v46, %v669_v45  ;;  %v339_v49 = vsel %vm337_vm11, %v669_v45, %v752_v10 }
 0x120   : > { %464 = vmatpush.msra.mxu0 %v338_v48  ;;  %627 = vmatpush.msra.mxu2 %v338_v48 }
 0x121   : > { %487 = vmatpush.msra.mxu1 %v339_v49  ;;  %636 = vmatpush.msra.mxu3 %v339_v49 }
 0x124   : > { %v313_v51 = vpop.permute.xlu1 %312  ;;  %v504_v4 = vpop.permute.xlu2 %503 }
 0x125   : > { %v290_v52 = vpop.permute.xlu0 %289  ;;  %v317_v53 = vsel %vm316_vm12, %v311_v44, %v313_v51  ;;  %v318_v54 = vsel %vm316_vm12, %v313_v51, %v754_v12 }
 0x126   : > { %614 = vmatpush.msk.msra.mxu0 %vm772_vm8, %v317_v53  ;;  %628 = vmatpush.msk.msra.mxu2 %vm772_vm8, %v317_v53 }
 0x127   : > { %620 = vmatpush.msk.msra.mxu1 %vm776_vm9, %v318_v54  ;;  %637 = vmatpush.msk.msra.mxu3 %vm776_vm9, %v318_v54 }
 0x12c   : > { %v292_v57 = vpop.permute.xlu1 %291 }
 0x12d   : > { %v672_v58 = vpop.permute.xlu0 %671  ;;  %v296_v59 = vsel %vm295_vm13, %v290_v52, %v292_v57  ;;  %v297_v60 = vsel %vm295_vm13, %v292_v57, %v294_v56 }
 0x12e   : > { %v674_v61 = vunpack.i.h.bf16 %v672_v58  ;;  %v673_v62 = vunpack.i.l.bf16 %v672_v58  ;;  %615 = vmatpush.msk.msra.mxu0 %vm756_vm4, %v296_v59  ;;  %629 = vmatpush.msk.msra.mxu2 %vm756_vm4, %v296_v59 }
 0x12f   : > { %621 = vmatpush.msk.msra.mxu1 %vm760_vm5, %v297_v60  ;;  %638 = vmatpush.msk.msra.mxu3 %vm760_vm5, %v297_v60 }
 0x130   : > { %v273_v63 = vsel %vm272_vm14, %v673_v62, %v674_v61 }
 0x131   : > { %467 = vmatpush.msra.mxu0 %v273_v63  ;;  %630 = vmatpush.msra.mxu2 %v273_v63 }
 0x133   : > { %616 = vmatpush.msk.msra.mxu0 %vm772_vm8, %v736_v5  ;;  %631 = vmatpush.msk.msra.mxu2 %vm772_vm8, %v736_v5 }
 0x134   : > { %604 = vmatmul.msk.f32.vlgmr.msra.gmra.mxu2 %vm446_vm15, %v427_v0  ;;  %v271_v2 = vpop.permute.xlu1 %270  ;;  %603 = vmatmul.msk.f32.vlgmr.msra.gmra.mxu0 %vm446_vm15, %v426_v1 }
 0x135   : > { %v274_v3 = vsel %vm272_vm14, %v674_v61, %v271_v2  ;;  %v509_v10 = vpop.permute.xlu0 %508 }
 0x136   : > { %490 = vmatpush.msra.mxu1 %v274_v3  ;;  %639 = vmatpush.msra.mxu3 %v274_v3 }
 0x138   : > { %622 = vmatpush.msk.msra.mxu1 %vm776_vm9, %v738_v6  ;;  %640 = vmatpush.msk.msra.mxu3 %vm776_vm9, %v738_v6  ;;  %v525_v6 = vpop.permute.xlu2 %524 }
 0x139   : > { %605 = vmatmul.msk.f32.vlgmr.msra.gmra.mxu1 %vm446_vm15, %v426_v1  ;;  %606 = vmatmul.msk.f32.vlgmr.msra.gmra.mxu3 %vm446_vm15, %v427_v0 }
 0x13c   : > { %v520_v5 = vpop.permute.xlu1 %519 }
 0x1b1   : > { %v470_v7 = vpop.f32.mrf.mxu0 }
 0x1b2   : > { %v511_v8 = vmul.f32 %v504_v4, %v470_v7 }
 0x1b4   : > { %v527_v9 = vadd.f32 %v520_v5, %v511_v8 }
 0x1b6   : > { %v493_v11 = vpop.f32.mrf.mxu1  ;;  %v531_v12 = vmax.f32 %v527_v9, 0.0 }
 0x1b7   : > { %v473_v13 = vpop.f32.mrf.mxu2  ;;  %v512_v14 = vmul.f32 %v504_v4, %v493_v11 }
 0x1b8   : > { %v513_v15 = vmul.f32 %v509_v10, %v473_v13  ;;  %535 = vst [vmem:[%s197_s21] sm:$0xff] %v531_v12 }
 0x1b9   : > { %v528_v16 = vadd.f32 %v520_v5, %v512_v14 }
 0x1ba   : > { %v529_v17 = vadd.f32 %v525_v6, %v513_v15 }
 0x1bb   : > { %v532_v18 = vmax.f32 %v528_v16, 0.0 }
 0x1bc   : > { %v533_v19 = vmax.f32 %v529_v17, 0.0  ;;  %v496_v20 = vpop.f32.mrf.mxu3 }
 0x1bd   : > { %536 = vst [vmem:[%s197_s21 + $0x8] sm:$0xff] %v532_v18  ;;  %v514_v21 = vmul.f32 %v509_v10, %v496_v20 }
 0x1be   : > { %537 = vst [vmem:[%s197_s21 + $0x10] sm:$0xff] %v533_v19 }
 0x1bf   : > { %v530_v22 = vadd.f32 %v525_v6, %v514_v21 }
 0x1c1   : > { %v534_v23 = vmax.f32 %v530_v22, 0.0 }
 0x1c3   : > { %538 = vst [vmem:[%s197_s21 + $0x18] sm:$0xff] %v534_v23 }
 0x1c4 PF: > { %s14_s15 = sadd.s32 1, %s684_s15  }
 0x1c5   : > { %p11_p4 = scmp.ge.s32.totalorder %s14_s15, 4  }
 0x1c7   :  { %13 = sbr.rel (!%p11_p4) target bundleno = 1 (0x1), region = 66 }

// kernel: representation_forward.8
= control target key start
LH: loop header
LB: loop body
LE: loop exit
PB: predicated region body
PF: predicated region fallthrough
CT: control target
= control target key end

     0   :  { %s1502_s15 = smov 0   ;;  %s2113_s0 = inlined_call_operand.vmem [shape: f32[2,8,1024], index: 0, kind: input, shape index: {}]   ;;  %s2114_s1 = inlined_call_operand.vmem [shape: f32[8,72], index: 1, kind: input, shape index: {}]   ;;  %s2115_s2 = inlined_call_operand.vmem [shape: f32[8,1], index: 2, kind: input, shape index: {}]   ;;  %s2116_s3 = inlined_call_operand.vmem [shape: f32[8,1], index: 3, kind: input, shape index: {}]   ;;  %s2117_s4 = inlined_call_operand.vmem [shape: f32[2,8,1024], index: 4, kind: output, shape index: {}]  }
   0x1 LB: > { %s1308_s16 = sadd.s32 4294967295, %s1464_s15   ;;  %p1312_p0 = scmp.ge.s32.totalorder %s1464_s15, 1  ;;  %s1464_s15 = sphi %s1502_s15, %s14_s15  }
   0x2   : > { %p162_p1 = scmp.lt.s32.totalorder %s1464_s15, 3 }
   0x4   : > { %p163_p2 = pnand %p1312_p0, %p162_p1 }
   0x5   : > { %p188_p3 = scmp.lt.s32.totalorder (!%p163_p2), %s1308_s16, 1  ;;  %s1467_s21 = smov (!%p163_p2), 33  }
   0x6   : > { %166 = sbr.rel (%p163_p2) target bundleno = 563 (0x233), region = 36  ;;  %s1468_s22 = smov (!%p163_p2), 64  }
   0x7   : > { %s1469_s23 = smov (!%p163_p2), 94   ;;  %s1470_s24 = smov (!%p163_p2), 127  }
   0x8   : > { %s1471_s25 = smov (!%p163_p2), 62   ;;  %s1472_s26 = smov (!%p163_p2), 63  }
   0x9   : > { %s1473_s27 = smov (!%p163_p2), 95   ;;  %s1474_s28 = smov (!%p163_p2), 96  }
   0xa   : > { %s1475_s29 = smov (!%p163_p2), 126  }
   0xb   : > { %v1466_v0 = vmov 0.0   ;;  %s2173_s16 = smov (!%p188_p3, %s1308_s16), 1  ;;  %vm257_vm0 = vcmask 1047816   ;;  %vm206_vm1 = vcmask 539648   ;;  %vm240_vm2 = vcmask 269312  }
   0xc   : > { %198 = vst [vmem:[#allocation2] sm:$0xff] %v1466_v0  ;;  %s1327_s17 = sshll.u32 %s2173_s16, 6  ;;  %vm464_vm3 = vcmask 1039360   ;;  %v267_v45 = vlaneseq  ;;  %vm939_vm4 = vcmask 506880   ;;  %vm878_vm7 = vcmask 515072  }
   0xd   : > { %s192_s20 = scalar_lea.vmem %s2113_s0, %s1327_s17  ;;  %207 = vst.msk [vmem:[#allocation2 + $0x40] sm:$0xff] %vm206_vm1, %v1466_v0  ;;  %vm809_vm8 = vcmask 523264   ;;  %vm2122_vm11 = vcmask 769024   ;;  %vm2121_vm12 = vcmask 777216   ;;  %vm2119_vm15 = vcmask 785408   ;;  %s2100_s12 = scalar_lea.vmem %s2117_s4, %s1327_s17 }
   0xe   : > { %v211_v1 = vld [vmem:[%s192_s20 + $0x18] sm:$0xff]  ;;  %v209_v2 = vld [vmem:[%s192_s20 + $0x8] sm:$0xff]  ;;  %v208_v3 = vld [vmem:[%s192_s20] sm:$0xff]  ;;  %v1680_v49 = vand.u32 127, %v267_v45 }
   0xf   : > { %230 = vrot.lane.b32.xlu1 %v211_v1, %s1467_s21  ;;  %226 = vrot.lane.b32.xlu0 %v209_v2, %s1467_s21  ;;  %v212_v4 = vld [vmem:[%s192_s20 + $0x20] sm:$0xff]  ;;  %v210_v5 = vld [vmem:[%s192_s20 + $0x10] sm:$0xff] }
  0x10   : > { %224 = vrot.lane.b32.xlu2 %v208_v3, %s1467_s21  ;;  %v213_v6 = vld [vmem:[%s192_s20 + $0x28] sm:$0xff]  ;;  %v215_v7 = vld [vmem:[%s192_s20 + $0x38] sm:$0xff]  ;;  %v214_v8 = vld [vmem:[%s192_s20 + $0x30] sm:$0xff]  ;;  %v270_v50 = vadd.s32 256, %v1680_v49  ;;  %v271_v61 = vadd.s32 384, %v1680_v49  ;;  %v269_v45 = vadd.s32 128, %v1680_v49 }
  0x12   : > { %v294_v56 = vand.u32 31, %v270_v50 }
  0x14   : > { %vm1704_vm5 = vcmp.ne.s32.totalorder %v294_v56, 31  ;;  %vm1755_vm9 = vcmp.ne.s32.totalorder %v294_v56, 0 }
  0x17   : > { %232 = vrot.lane.b32.xlu1 %v212_v4, %s1467_s21  ;;  %228 = vrot.lane.b32.xlu0 %v210_v5, %s1467_s21  ;;  %v301_v4 = vand.u32 31, %v271_v61  ;;  %v280_v61 = vand.u32 31, %v1680_v49 }
  0x18   : > { %234 = vrot.lane.b32.xlu2 %v213_v6, %s1467_s21 }
  0x19   : > { %vm1736_vm6 = vcmp.ne.s32.totalorder %v301_v4, 31  ;;  %vm1759_vm10 = vcmp.ne.s32.totalorder %v301_v4, 0  ;;  %vm1791_vm13 = vcmp.ne.s32.totalorder %v280_v61, 31 }
  0x1f   : > { %238 = vrot.lane.b32.xlu1 %v215_v7, %s1467_s21  ;;  %236 = vrot.lane.b32.xlu0 %v214_v8, %s1467_s21 }
  0x6a   : > { %v225_v9 = vpop.permute.xlu2 %224 }
  0x6b   : > { %258 = vst.msk [vmem:[#allocation2] sm:$0xff] %vm257_vm0, %v225_v9  ;;  %vm1836_vm0 = vcmp.ne.s32.totalorder %v280_v61, 0  ;;  %v274_v61 = vadd.s32 768, %v1680_v49 }
  0x72   : > { %v1518_v10 = vld [vmem:[#allocation2] sm:$0xff]  ;;  %v235_v15 = vpop.permute.xlu2 %234 }
  0x73   : > { %791 = vrot.lane.b32.xlu2 %v1518_v10, %s1468_s22 }
  0x7b   : > { %722 = vrot.lane.b32.xlu2 %v1518_v10, %s1469_s23 }
  0x81   : > { %v231_v11 = vpop.permute.xlu1 %230  ;;  %v227_v12 = vpop.permute.xlu0 %226 }
  0x82   : > { %v1525_v13 = vsel %vm240_vm2, %v225_v9, %v227_v12 }
  0x83   : > { %v1396_v14 = vpack.i.bf16 %v1525_v13, %v1518_v10 }
  0x85   : > { %1397 = vrot.lane.b32.xlu2 %v1396_v14, %s1470_s24 }
  0x89   : > { %v233_v16 = vpop.permute.xlu1 %232  ;;  %v229_v17 = vpop.permute.xlu0 %228 }
  0x8a   : > { %v1531_v18 = vsel %vm240_vm2, %v231_v11, %v233_v16  ;;  %v1534_v19 = vsel %vm240_vm2, %v229_v17, %v231_v11  ;;  %v1537_v20 = vsel %vm240_vm2, %v227_v12, %v229_v17  ;;  %v1540_v21 = vsel %vm240_vm2, %v233_v16, %v235_v15 }
  0x8b   : > { %v1421_v28 = vpack.i.bf16 %v1518_v10, %v1531_v18  ;;  %v1406_v29 = vpack.i.bf16 %v1540_v21, %v1531_v18  ;;  %v1401_v30 = vpack.i.bf16 %v1534_v19, %v1537_v20 }
  0x91   : > { %v239_v22 = vpop.permute.xlu1 %238  ;;  %v237_v23 = vpop.permute.xlu0 %236 }
  0x92   : > { %266 = vst.msk [vmem:[#allocation2 + $0x40] sm:$0xff] %vm240_vm2, %v239_v22  ;;  %v1544_v24 = vsel %vm240_vm2, %v235_v15, %v237_v23  ;;  %v1547_v25 = vsel %vm240_vm2, %v237_v23, %v239_v22  ;;  %vm2120_vm2 = vcmask 1031168  }
  0x93   : > { %v1411_v26 = vpack.i.bf16 %v1547_v25, %v1544_v24  ;;  %v1436_v32 = vpack.i.bf16 %v1544_v24, %v1525_v13 }
  0x95   : > { %1412 = vrot.lane.b32.xlu2 %v1411_v26, %s1470_s24 }
  0x99   : > { %v1552_v27 = vld [vmem:[#allocation2 + $0x40] sm:$0xff] }
  0x9a   : > { %937 = vrot.lane.b32.xlu1 %v1552_v27, %s1471_s25  ;;  %462 = vrot.lane.b32.xlu0 %v1552_v27, %s1470_s24  ;;  %v1441_v35 = vpack.i.bf16 %v1552_v27, %v1547_v25 }
  0x9d   : > { %927 = vrot.lane.b32.xlu2 %v1534_v19, %s1471_s25 }
  0xa2   : > { %738 = vrot.lane.b32.xlu1 %v1552_v27, %s1469_s23  ;;  %921 = vrot.lane.b32.xlu0 %v1518_v10, %s1471_s25 }
  0xa5   : > { %1422 = vrot.lane.b32.xlu2 %v1421_v28, %s1472_s26 }
  0xaa   : > { %807 = vrot.lane.b32.xlu0 %v1552_v27, %s1468_s22  ;;  %1407 = vrot.lane.b32.xlu1 %v1406_v29, %s1470_s24 }
  0xad   : > { %799 = vrot.lane.b32.xlu2 %v1531_v18, %s1468_s22 }
  0xb2   : > { %1402 = vrot.lane.b32.xlu0 %v1401_v30, %s1470_s24  ;;  %925 = vrot.lane.b32.xlu1 %v1537_v20, %s1471_s25 }
  0xb5   : > { %730 = vrot.lane.b32.xlu2 %v1531_v18, %s1469_s23 }
  0xba   : > { %929 = vrot.lane.b32.xlu0 %v1531_v18, %s1471_s25  ;;  %1417 = vrot.lane.b32.xlu1 %v1401_v30, %s1472_s26 }
  0xbd   : > { %1427 = vrot.lane.b32.xlu2 %v1401_v30, %s1473_s27 }
  0xc2   : > { %795 = vrot.lane.b32.xlu0 %v1537_v20, %s1468_s22  ;;  %797 = vrot.lane.b32.xlu1 %v1534_v19, %s1468_s22 }
  0xc5   : > { %933 = vrot.lane.b32.xlu2 %v1544_v24, %s1471_s25 }
  0xca   : > { %726 = vrot.lane.b32.xlu0 %v1537_v20, %s1469_s23  ;;  %728 = vrot.lane.b32.xlu1 %v1534_v19, %s1469_s23 }
  0xcd   : > { %596 = vrot.lane.b32.xlu2 %v1537_v20, %s1474_s28  ;;  %v1597_v31 = vpop.permute.xlu2 %791 }
  0xd2   : > { %1432 = vrot.lane.b32.xlu0 %v1421_v28, %s1473_s27  ;;  %923 = vrot.lane.b32.xlu1 %v1525_v13, %s1471_s25 }
  0xd5   : > { %527 = vrot.lane.b32.xlu2 %v1537_v20, %s1475_s29  ;;  %v1609_v33 = vpop.permute.xlu2 %722 }
  0xda   : > { %935 = vrot.lane.b32.xlu0 %v1547_v25, %s1471_s25  ;;  %1437 = vrot.lane.b32.xlu1 %v1436_v32, %s1472_s26 }
  0xdd   : > { %805 = vrot.lane.b32.xlu2 %v1547_v25, %s1468_s22 }
  0xdf   : > { %v1619_v34 = vpop.permute.xlu2 %1397 }
  0xe0   : > { %v1400_v0 = vunpack.i.h.bf16 %v1619_v34 }
  0xe2   : > { %598 = vrot.lane.b32.xlu0 %v1534_v19, %s1474_s28  ;;  %600 = vrot.lane.b32.xlu1 %v1531_v18, %s1474_s28 }
  0xe5   : > { %734 = vrot.lane.b32.xlu2 %v1544_v24, %s1469_s23 }
  0xea   : > { %793 = vrot.lane.b32.xlu0 %v1525_v13, %s1468_s22  ;;  %1442 = vrot.lane.b32.xlu1 %v1441_v35, %s1472_s26 }
  0xed   : > { %931 = vrot.lane.b32.xlu2 %v1540_v21, %s1471_s25 }
  0xef   : > { %v1628_v36 = vpop.permute.xlu2 %1412 }
  0xf0   : > { %v1415_v40 = vunpack.i.h.bf16 %v1628_v36  ;;  %v1414_v53 = vunpack.i.l.bf16 %v1628_v36 }
  0xf2   : > { %529 = vrot.lane.b32.xlu0 %v1534_v19, %s1475_s29  ;;  %531 = vrot.lane.b32.xlu1 %v1531_v18, %s1475_s29 }
  0xf5   : > { %1452 = vrot.lane.b32.xlu2 %v1441_v35, %s1473_s27 }
  0xf7   : > { %v1635_v37 = vpop.permute.xlu2 %927 }
  0xfa   : > { %724 = vrot.lane.b32.xlu0 %v1525_v13, %s1469_s23  ;;  %803 = vrot.lane.b32.xlu1 %v1544_v24, %s1468_s22 }
  0xfd   : > { %525 = vrot.lane.b32.xlu2 %v1525_v13, %s1475_s29 }
  0xff   : > { %v1643_v38 = vpop.permute.xlu2 %1422 }
 0x100   : > { %v1424_v12 = vunpack.i.l.bf16 %v1643_v38 }
 0x102   : > { %736 = vrot.lane.b32.xlu0 %v1547_v25, %s1469_s23  ;;  %1447 = vrot.lane.b32.xlu1 %v1436_v32, %s1473_s27 }
 0x105   : > { %608 = vrot.lane.b32.xlu2 %v1552_v27, %s1474_s28 }
 0x107   : > { %v1650_v39 = vpop.permute.xlu2 %799 }
 0x10a   : > { %592 = vrot.lane.b32.xlu0 %v1518_v10, %s1474_s28  ;;  %594 = vrot.lane.b32.xlu1 %v1525_v13, %s1474_s28 }
 0x10c   : > { %v1657_v41 = vpop.permute.xlu1 %937  ;;  %v463_v42 = vpop.permute.xlu0 %462 }
 0x10d   : > { %537 = vrot.lane.b32.xlu2 %v1547_v25, %s1475_s29  ;;  %v1664_v43 = vsel %vm464_vm3, %v1415_v40, %v463_v42 }
 0x10f   : > { %v1666_v44 = vpop.permute.xlu2 %730 }
 0x112   : > { %870 = vrot.lane.b32.xlu0 %v1540_v21, %s1472_s26  ;;  %523 = vrot.lane.b32.xlu1 %v1518_v10, %s1475_s29 }
 0x114   : > { %v1672_v46 = vpop.permute.xlu1 %738  ;;  %v1674_v47 = vpop.permute.xlu0 %921 }
 0x115   : > { %671 = vrot.lane.b32.xlu2 %v1540_v21, %s1473_s27 }
 0x117   : > { %v1678_v48 = vpop.permute.xlu2 %1427 }
 0x118   : > { %v1429_v42 = vunpack.i.l.bf16 %v1678_v48 }
 0x11a   : > { %604 = vrot.lane.b32.xlu0 %v1544_v24, %s1474_s28  ;;  %606 = vrot.lane.b32.xlu1 %v1547_v25, %s1474_s28 }
 0x11c   : > { %v1687_v51 = vpop.permute.xlu0 %807  ;;  %v1408_v52 = vpop.permute.xlu1 %1407 }
 0x11d   : > { %v1410_v54 = vunpack.i.h.bf16 %v1408_v52  ;;  %v1409_v55 = vunpack.i.l.bf16 %v1408_v52 }
 0x11f   : > { %v1690_v57 = vpop.permute.xlu2 %933  ;;  %v1693_v58 = vsel %vm464_vm3, %v1409_v55, %v1410_v54  ;;  %v1698_v59 = vsel %vm464_vm3, %v1410_v54, %v1414_v53 }
 0x122   : > { %801 = vrot.lane.b32.xlu0 %v1540_v21, %s1468_s22  ;;  %535 = vrot.lane.b32.xlu1 %v1544_v24, %s1475_s29 }
 0x124   : > { %v1709_v62 = vpop.permute.xlu0 %1402  ;;  %v926_v63 = vpop.permute.xlu1 %925 }
 0x125   : > { %v1405_v1 = vunpack.i.h.bf16 %v1709_v62  ;;  %v1404_v2 = vunpack.i.l.bf16 %v1709_v62  ;;  %v942_v3 = vsel %vm939_vm4, %v926_v63, %v1635_v37 }
 0x126   : > { %1341 = vmatpush.msk.msra.mxu2 %vm1704_vm5, %v942_v3  ;;  %v287_v3 = vand.u32 31, %v269_v45 }
 0x127   : > { %v1718_v5 = vpop.permute.xlu2 %596  ;;  %v1723_v6 = vsel %vm464_vm3, %v1405_v1, %v1409_v55  ;;  %v1730_v7 = vsel %vm464_vm3, %v1400_v0, %v1404_v2 }
 0x128   : > { %vm1795_vm14 = vcmp.ne.s32.totalorder %v287_v3, 31  ;;  %vm1840_vm1 = vcmp.ne.s32.totalorder %v287_v3, 0  ;;  %v275_v3 = vadd.s32 896, %v1680_v49 }
 0x12a   : > { %539 = vrot.lane.b32.xlu0 %v1552_v27, %s1475_s29  ;;  %732 = vrot.lane.b32.xlu1 %v1540_v21, %s1469_s23 }
 0x12c   : > { %v930_v9 = vpop.permute.xlu0 %929  ;;  %v1418_v11 = vpop.permute.xlu1 %1417 }
 0x12d   : > { %v1420_v14 = vunpack.i.h.bf16 %v1418_v11  ;;  %v1419_v15 = vunpack.i.l.bf16 %v1418_v11  ;;  %v943_v16 = vsel %vm939_vm4, %v1635_v37, %v930_v9  ;;  %v1430_v37 = vunpack.i.h.bf16 %v1678_v48 }
 0x12e   : > { %1347 = vmatpush.msk.msra.mxu3 %vm1736_vm6, %v943_v16 }
 0x12f   : > { %v881_v17 = vsel %vm878_vm7, %v1419_v15, %v1420_v14  ;;  %v882_v22 = vsel %vm878_vm7, %v1420_v14, %v1424_v12  ;;  %v1749_v23 = vpop.permute.xlu2 %527  ;;  %v682_v56 = vsel %vm2121_vm12, %v1429_v42, %v1430_v37 }
 0x130   : > { %1097 = vmatpush.msra.mxu2 %v881_v17  ;;  %1117 = vmatpush.msra.mxu3 %v882_v22 }
 0x132   : > { %602 = vrot.lane.b32.xlu0 %v1540_v21, %s1474_s28  ;;  %533 = vrot.lane.b32.xlu1 %v1540_v21, %s1475_s29 }
 0x134   : > { %v796_v28 = vpop.permute.xlu0 %795  ;;  %v798_v29 = vpop.permute.xlu1 %797 }
 0x135   : > { %v812_v30 = vsel %vm809_vm8, %v796_v28, %v798_v29  ;;  %v813_v32 = vsel %vm809_vm8, %v798_v29, %v1650_v39 }
 0x136   : > { %1342 = vmatpush.msk.msra.mxu2 %vm1755_vm9, %v812_v30  ;;  %1348 = vmatpush.msk.msra.mxu3 %vm1759_vm10, %v813_v32 }
 0x137   : > { %v1770_v35 = vpop.permute.xlu2 %805 }
 0x13c   : > { %v1775_v50 = vpop.permute.xlu0 %726  ;;  %v729_v52 = vpop.permute.xlu1 %728 }
 0x13d   : > { %v743_v54 = vsel %vm2122_vm11, %v1775_v50, %v729_v52  ;;  %v744_v55 = vsel %vm2122_vm11, %v729_v52, %v1666_v44 }
 0x13e   : > { %1343 = vmatpush.msk.msra.mxu2 %vm1704_vm5, %v743_v54  ;;  %1349 = vmatpush.msk.msra.mxu3 %vm1736_vm6, %v744_v55 }
 0x13f   : > { %v1789_v4 = vpop.permute.xlu2 %734 }
 0x140   : > { %1100 = vmatpush.msra.mxu2 %v682_v56 }
 0x144   : > { %v1799_v16 = vpop.permute.xlu0 %1432  ;;  %v924_v17 = vpop.permute.xlu1 %923 }
 0x145   : > { %v2118_v22 = vunpack.i.l.bf16 %v1799_v16  ;;  %v940_v29 = vsel %vm939_vm4, %v1674_v47, %v924_v17  ;;  %v941_v30 = vsel %vm939_vm4, %v924_v17, %v926_v63  ;;  %v1425_v63 = vunpack.i.h.bf16 %v1643_v38 }
 0x146   : > { %1329 = vmatpush.msk.msra.mxu0 %vm1791_vm13, %v940_v29  ;;  %1335 = vmatpush.msk.msra.mxu1 %vm1795_vm14, %v941_v30  ;;  %v1476_v38 = vmov 0  }
 0x147   : > { %v683_v32 = vsel %vm2121_vm12, %v1430_v37, %v2118_v22  ;;  %v1812_v45 = vpop.permute.xlu2 %931  ;;  %v329_v22 = vand.u32 31, %v275_v3  ;;  %1457 = vset.pattern.permute.xlu0 %v1476_v38  ;;  %1456 = vset.pattern.permute.xlu2 %v1476_v38 }
 0x148   : > { %1120 = vmatpush.msra.mxu3 %v683_v32  ;;  %v1816_v52 = vsel %vm939_vm4, %v930_v9, %v1812_v45 }
 0x14c   : > { %v936_v47 = vpop.permute.xlu0 %935  ;;  %v1818_v54 = vpop.permute.xlu1 %1437 }
 0x14d   : > { %v1439_v55 = vunpack.i.l.bf16 %v1818_v54  ;;  %v947_v56 = vsel %vm939_vm4, %v936_v47, %v1657_v41  ;;  %v1440_v8 = vunpack.i.h.bf16 %v1818_v54  ;;  %v946_v62 = vsel %vm939_vm4, %v1690_v57, %v936_v47 }
 0x14f   : > { %v879_v17 = vsel %vm878_vm7, %v1425_v63, %v1439_v55  ;;  %v880_v37 = vsel %vm878_vm7, %v1439_v55, %v1419_v15 }
 0x150   : > { %1057 = vmatpush.msra.mxu0 %v879_v17  ;;  %1077 = vmatpush.msra.mxu1 %v880_v37 }
 0x154   : > { %v599_v29 = vpop.permute.xlu0 %598  ;;  %v1826_v9 = vpop.permute.xlu1 %600 }
 0x155   : > { %v613_v30 = vsel %vm2119_vm15, %v1718_v5, %v599_v29  ;;  %v614_v32 = vsel %vm2119_vm15, %v599_v29, %v1826_v9 }
 0x156   : > { %1344 = vmatpush.msk.msra.mxu2 %vm1755_vm9, %v613_v30  ;;  %1350 = vmatpush.msk.msra.mxu3 %vm1759_vm10, %v614_v32  ;;  %v322_v32 = vand.u32 31, %v274_v61 }
 0x158   : > { %vm1869_vm15 = vcmp.ne.s32.totalorder %v322_v32, 31 }
 0x15c   : > { %v794_v63 = vpop.permute.xlu0 %793  ;;  %v1443_v55 = vpop.permute.xlu1 %1442 }
 0x15d   : > { %v810_v17 = vsel %vm809_vm8, %v1597_v31, %v794_v63  ;;  %v811_v37 = vsel %vm809_vm8, %v794_v63, %v796_v28  ;;  %v467_v63 = vsel %vm464_vm3, %v1404_v2, %v1405_v1 }
 0x15e   : > { %1330 = vmatpush.msk.msra.mxu0 %vm1836_vm0, %v810_v17  ;;  %1336 = vmatpush.msk.msra.mxu1 %vm1840_vm1, %v811_v37  ;;  %v1445_v17 = vunpack.i.h.bf16 %v1443_v55  ;;  %v1444_v37 = vunpack.i.l.bf16 %v1443_v55 }
 0x164   : > { %v530_v29 = vpop.permute.xlu0 %529  ;;  %v1853_v30 = vpop.permute.xlu1 %531 }
 0x165   : > { %v544_v31 = vsel %vm2120_vm2, %v1749_v23, %v530_v29  ;;  %v545_v28 = vsel %vm2120_vm2, %v530_v29, %v1853_v30  ;;  %vm1873_vm2 = vcmp.ne.s32.totalorder %v329_v22, 31 }
 0x166   : > { %1345 = vmatpush.msk.msra.mxu2 %vm1704_vm5, %v544_v31  ;;  %1351 = vmatpush.msk.msra.mxu3 %vm1736_vm6, %v545_v28  ;;  %vm1896_vm5 = vcmp.ne.s32.totalorder %v322_v32, 0  ;;  %vm1900_vm6 = vcmp.ne.s32.totalorder %v329_v22, 0  ;;  %v817_v22 = vsel %vm809_vm8, %v1770_v35, %v1687_v51 }
 0x168   : > { %1103 = vmatpush.msra.mxu2 %v467_v63  ;;  %1123 = vmatpush.msra.mxu3 %v1723_v6  ;;  %v886_v6 = vsel %vm878_vm7, %v1444_v37, %v1445_v17 }
 0x16a   : > { %1346 = vmatpush.msk.msra.mxu2 %vm1755_vm9, %v1537_v20  ;;  %1352 = vmatpush.msk.msra.mxu3 %vm1759_vm10, %v1534_v19  ;;  %v885_v20 = vsel %vm878_vm7, %v1440_v8, %v1444_v37  ;;  %vm2147_vm9 = vcmask 785408  }
 0x16b   : > { %vm2148_vm10 = vmmov %vm2147_vm9 }
 0x16c   : > { %1365 = vmatpush.msk.msrb.mxu2 %vm1869_vm15, %v946_v62  ;;  %1371 = vmatpush.msk.msrb.mxu3 %vm1873_vm2, %v947_v56  ;;  %v725_v1 = vpop.permute.xlu0 %724  ;;  %v1890_v2 = vpop.permute.xlu1 %803  ;;  %v273_v62 = vadd.s32 640, %v1680_v49 }
 0x16d   : > { %v741_v27 = vsel %vm2122_vm11, %v1609_v33, %v725_v1  ;;  %v742_v47 = vsel %vm2122_vm11, %v725_v1, %v1775_v50  ;;  %v816_v56 = vsel %vm809_vm8, %v1890_v2, %v1770_v35  ;;  %v1453_v33 = vpop.permute.xlu2 %1452  ;;  %v1435_v50 = vunpack.i.h.bf16 %v1799_v16 }
 0x16e   : > { %1177 = vmatpush.msrb.mxu2 %v885_v20  ;;  %1197 = vmatpush.msrb.mxu3 %v886_v6  ;;  %v1455_v55 = vunpack.i.h.bf16 %v1453_v33  ;;  %v1454_v3 = vunpack.i.l.bf16 %v1453_v33 }
 0x16f   : > { %1331 = vmatpush.msk.msra.mxu0 %vm1791_vm13, %v741_v27  ;;  %1337 = vmatpush.msk.msra.mxu1 %vm1795_vm14, %v742_v47 }
 0x170   : > { %1366 = vmatpush.msk.msrb.mxu2 %vm1896_vm5, %v816_v56  ;;  %1372 = vmatpush.msk.msrb.mxu3 %vm1900_vm6, %v817_v22  ;;  %v1956_v56 = vld [vmem:[%s2114_s1] sm:$0xff]  ;;  %v1399_v22 = vunpack.i.l.bf16 %v1619_v34 }
 0x174   : > { %v737_v29 = vpop.permute.xlu0 %736  ;;  %v1923_v32 = vpop.permute.xlu1 %1447 }
 0x175   : > { %v1450_v31 = vunpack.i.h.bf16 %v1923_v32  ;;  %v1449_v28 = vunpack.i.l.bf16 %v1923_v32  ;;  %v747_v51 = vsel %vm2122_vm11, %v1789_v4, %v737_v29  ;;  %v748_v35 = vsel %vm2122_vm11, %v737_v29, %v1672_v46  ;;  %v526_v1 = vpop.permute.xlu2 %525 }
 0x176   : > { %1367 = vmatpush.msk.msrb.mxu2 %vm1869_vm15, %v747_v51  ;;  %1373 = vmatpush.msk.msrb.mxu3 %vm1873_vm2, %v748_v35  ;;  %v687_v46 = vsel %vm2121_vm12, %v1454_v3, %v1455_v55  ;;  %vm1045_vm11 = vcmask 588800  }
 0x177   : > { %v680_v63 = vsel %vm2121_vm12, %v1435_v50, %v1449_v28  ;;  %v681_v17 = vsel %vm2121_vm12, %v1449_v28, %v1429_v42  ;;  %v686_v37 = vsel %vm2121_vm12, %v1450_v31, %v1454_v3  ;;  %v315_v42 = vand.u32 31, %v273_v62  ;;  %1319 = vmatmul.msk.f32.vlgmr.msra.gmra.mxu2 %vm1045_vm11, %v1956_v56  ;;  %1320 = vmatmul.msk.f32.vlgmr.msra.gmra.mxu3 %vm1045_vm11, %v1956_v56 }
 0x178   : > { %1060 = vmatpush.msra.mxu0 %v680_v63  ;;  %1080 = vmatpush.msra.mxu1 %v681_v17  ;;  %vm2149_vm12 = vcmask 1031168  }
 0x179   : > { %1180 = vmatpush.msrb.mxu2 %v686_v37  ;;  %1200 = vmatpush.msrb.mxu3 %v687_v46  ;;  %v543_v47 = vsel %vm2149_vm12, %v526_v1, %v1749_v23  ;;  %vm1966_vm12 = vcmp.ne.s32.totalorder %v315_v42, 31 }
 0x17c   : > { %v593_v20 = vpop.permute.xlu0 %592  ;;  %v595_v6 = vpop.permute.xlu1 %594 }
 0x17d   : > { %v611_v27 = vsel %vm2147_vm9, %v593_v20, %v595_v6  ;;  %v612_v48 = vsel %vm2148_vm10, %v595_v6, %v1718_v5  ;;  %v272_v5 = vadd.s32 512, %v1680_v49  ;;  %v945_v49 = vsel %vm939_vm4, %v1812_v45, %v1690_v57 }
 0x17e   : > { %1332 = vmatpush.msk.msra.mxu0 %vm1836_vm0, %v611_v27  ;;  %1338 = vmatpush.msk.msra.mxu1 %vm1840_vm1, %v612_v48  ;;  %v465_v57 = vsel %vm464_vm3, %v1399_v22, %v1400_v0 }
 0x17f   : > { %v308_v14 = vand.u32 31, %v272_v5 }
 0x180   : > { %1339 = vmatpush.msk.msra.mxu1 %vm1795_vm14, %v543_v47  ;;  %vm2152_vm14 = vcmask 1031168  }
 0x181   : > { %vm1990_vm4 = vcmp.ne.s32.totalorder %v308_v14, 31 }
 0x182   : > { %1083 = vmatpush.msra.mxu1 %v1730_v7 }
 0x184   : > { %v871_v33 = vpop.permute.xlu0 %870  ;;  %v524_v50 = vpop.permute.xlu1 %523  ;;  %1340 = vmatpush.msk.msra.mxu1 %vm1840_vm1, %v1525_v13  ;;  %vm2156_vm1 = vmmov %vm2147_vm9 }
 0x185   : > { %v542_v7 = vsel %vm2152_vm14, %v524_v50, %v526_v1  ;;  %v884_v55 = vsel %vm878_vm7, %v871_v33, %v1440_v8  ;;  %1318 = vmatmul.msk.f32.vlgmr.msra.gmra.mxu1 %vm1045_vm11, %v1956_v56  ;;  %v609_v13 = vpop.permute.xlu2 %608  ;;  %v883_v34 = vsel %vm878_vm7, %v1424_v12, %v871_v33  ;;  %vm2017_vm7 = vcmp.ne.s32.totalorder %v308_v14, 0 }
 0x186   : > { %1359 = vmatpush.msk.msrb.mxu1 %vm1966_vm12, %v945_v49  ;;  %1333 = vmatpush.msk.msra.mxu0 %vm1791_vm13, %v542_v7  ;;  %vm2155_vm13 = vmmov %vm2147_vm9 }
 0x187   : > { %vm2161_vm9 = vmmov %vm2152_vm14 }
 0x188   : > { %1157 = vmatpush.msrb.mxu1 %v884_v55  ;;  %1063 = vmatpush.msra.mxu0 %v465_v57  ;;  %vm2164_vm10 = vmmov %vm2161_vm9 }
 0x189   : > { %vm2169_vm14 = vmmov %vm2156_vm1 }
 0x18a   : > { %1334 = vmatpush.msk.msra.mxu0 %vm1836_vm0, %v1518_v10  ;;  %v1223_v10 = vld [vmem:[%s2116_s3] sm:$0xff]  ;;  %vm2021_vm0 = vcmp.ne.s32.totalorder %v315_v42, 0 }
 0x18b   : > { %1317 = vmatmul.msk.f32.vlgmr.msra.gmra.mxu0 %vm1045_vm11, %v1956_v56  ;;  %1226 = vperm.xlu0 %1457, %v1223_v10  }
 0x18c   : > { %1353 = vmatpush.msk.msrb.mxu0 %vm1990_vm4, %v1816_v52  ;;  %v605_v11 = vpop.permute.xlu0 %604  ;;  %v607_v54 = vpop.permute.xlu1 %606  ;;  %v1209_v52 = vld [vmem:[%s2115_s2] sm:$0xff] }
 0x18d   : > { %v617_v0 = vsel %vm2155_vm13, %v605_v11, %v607_v54  ;;  %v618_v15 = vsel %vm2156_vm1, %v607_v54, %v609_v13  ;;  %1212 = vperm.xlu2 %1456, %v1209_v52   ;;  %v538_v12 = vpop.permute.xlu2 %537  ;;  %vm2170_vm13 = vmmov %vm2161_vm9 }
 0x18e   : > { %1137 = vmatpush.msrb.mxu0 %v883_v34  ;;  %1368 = vmatpush.msk.msrb.mxu2 %vm1896_vm5, %v617_v0 }
 0x18f   : > { %1374 = vmatpush.msk.msrb.mxu3 %vm1900_vm6, %v618_v15 }
 0x194   : > { %v802_v3 = vpop.permute.xlu0 %801  ;;  %v536_v29 = vpop.permute.xlu1 %535 }
 0x195   : > { %v814_v28 = vsel %vm809_vm8, %v1650_v39, %v802_v3  ;;  %v815_v51 = vsel %vm809_vm8, %v802_v3, %v1890_v2  ;;  %v548_v35 = vsel %vm2161_vm9, %v536_v29, %v538_v12  ;;  %v471_v39 = vsel %vm464_vm3, %v1414_v53, %v1415_v40  ;;  %v672_v63 = vpop.permute.xlu2 %671 }
 0x196   : > { %1354 = vmatpush.msk.msrb.mxu0 %vm2017_vm7, %v814_v28  ;;  %1360 = vmatpush.msk.msrb.mxu1 %vm2021_vm0, %v815_v51  ;;  %vm2162_vm8 = vcmask 769024   ;;  %vm2166_vm3 = vcmask 777216  }
 0x197   : > { %1369 = vmatpush.msk.msrb.mxu2 %vm1869_vm15, %v548_v35  ;;  %vm2163_vm15 = vmmov %vm2162_vm8 }
 0x199   : > { %1183 = vmatpush.msrb.mxu2 %v471_v39 }
 0x19b   : > { %1370 = vmatpush.msk.msrb.mxu2 %vm1896_vm5, %v1544_v24  ;;  %v2165_v24 = vunpack.i.l.bf16 %v1799_v16  ;;  %vm2167_vm5 = vmmov %vm2166_vm3 }
 0x19c   : > { %v540_v2 = vpop.permute.xlu0 %539  ;;  %v733_v17 = vpop.permute.xlu1 %732  ;;  %1323 = vmatmul.msk.f32.vlgmr.msrb.gmra.mxu2 %vm1045_vm11, %v1956_v56 }
 0x19d   : > { %v745_v61 = vsel %vm2162_vm8, %v1666_v44, %v733_v17  ;;  %v746_v37 = vsel %vm2163_vm15, %v733_v17, %v1789_v4  ;;  %v549_v36 = vsel %vm2164_vm10, %v538_v12, %v540_v2  ;;  %v684_v40 = vsel %vm2166_vm3, %v2165_v24, %v672_v63 }
 0x19e   : > { %1355 = vmatpush.msk.msrb.mxu0 %vm1990_vm4, %v745_v61  ;;  %1361 = vmatpush.msk.msrb.mxu1 %vm1966_vm12, %v746_v37  ;;  %v685_v44 = vsel %vm2167_vm5, %v672_v63, %v1450_v31 }
 0x19f   : > { %1375 = vmatpush.msk.msrb.mxu3 %vm1873_vm2, %v549_v36  ;;  %vm2168_vm2 = vmmov %vm2156_vm1 }
 0x1a0   : > { %1140 = vmatpush.msrb.mxu0 %v684_v40  ;;  %1160 = vmatpush.msrb.mxu1 %v685_v44 }
 0x1a1   : > { %1203 = vmatpush.msrb.mxu3 %v1664_v43 }
 0x1a3   : > { %1376 = vmatpush.msk.msrb.mxu3 %vm1900_vm6, %v1547_v25  ;;  %vm2171_vm6 = vmmov %vm2161_vm9 }
 0x1a4   : > { %v603_v53 = vpop.permute.xlu0 %602  ;;  %v534_v4 = vpop.permute.xlu1 %533  ;;  %1324 = vmatmul.msk.f32.vlgmr.msrb.gmra.mxu3 %vm1045_vm11, %v1956_v56 }
 0x1a5   : > { %v615_v16 = vsel %vm2168_vm2, %v1826_v9, %v603_v53  ;;  %v616_v60 = vsel %vm2169_vm14, %v603_v53, %v605_v11  ;;  %v546_v43 = vsel %vm2170_vm13, %v1853_v30, %v534_v4  ;;  %v547_v25 = vsel %vm2171_vm6, %v534_v4, %v536_v29 }
 0x1a6   : > { %1356 = vmatpush.msk.msrb.mxu0 %vm2017_vm7, %v615_v16  ;;  %1362 = vmatpush.msk.msrb.mxu1 %vm2021_vm0, %v616_v60 }
 0x1a8   : > { %1357 = vmatpush.msk.msrb.mxu0 %vm1990_vm4, %v546_v43  ;;  %1363 = vmatpush.msk.msrb.mxu1 %vm1966_vm12, %v547_v25 }
 0x1aa   : > { %1143 = vmatpush.msrb.mxu0 %v1693_v58  ;;  %1163 = vmatpush.msrb.mxu1 %v1698_v59 }
 0x1ac   : > { %1358 = vmatpush.msk.msrb.mxu0 %vm2017_vm7, %v1531_v18  ;;  %1364 = vmatpush.msk.msrb.mxu1 %vm2021_vm0, %v1540_v21 }
 0x1ad   : > { %1321 = vmatmul.msk.f32.vlgmr.msrb.gmra.mxu0 %vm1045_vm11, %v1956_v56  ;;  %1322 = vmatmul.msk.f32.vlgmr.msrb.gmra.mxu1 %vm1045_vm11, %v1956_v56 }
 0x1e7   : > { %v1213_v9 = vpop.permute.xlu2 %1212 }
 0x1fa   : > { %v1106_v19 = vpop.f32.mrf.mxu2  ;;  %v1126_v32 = vpop.f32.mrf.mxu3 }
 0x1fb   : > { %v1217_v59 = vmul.f32 %v1213_v9, %v1106_v19  ;;  %v1218_v31 = vmul.f32 %v1213_v9, %v1126_v32 }
 0x1fd   : > { %v1227_v30 = vpop.permute.xlu0 %1226 }
 0x1fe   : > { %v1231_v18 = vadd.f32 %v1227_v30, %v1217_v59  ;;  %v1232_v21 = vadd.f32 %v1227_v30, %v1218_v31 }
 0x200   : > { %v1239_v1 = vmax.f32 %v1231_v18, 0.0  ;;  %v1240_v6 = vmax.f32 %v1232_v21, 0.0 }
 0x202   : > { %v1086_v58 = vpop.f32.mrf.mxu1  ;;  %1247 = vst [vmem:[%s2100_s12 + $0x10] sm:$0xff] %v1239_v1 }
 0x203   : > { %v1216_v26 = vmul.f32 %v1213_v9, %v1086_v58  ;;  %1248 = vst [vmem:[%s2100_s12 + $0x18] sm:$0xff] %v1240_v6 }
 0x205   : > { %v1230_v46 = vadd.f32 %v1227_v30, %v1216_v26 }
 0x207   : > { %v1238_v62 = vmax.f32 %v1230_v46, 0.0 }
 0x208   : > { %v1066_v20 = vpop.f32.mrf.mxu0 }
 0x209   : > { %v1215_v27 = vmul.f32 %v1213_v9, %v1066_v20  ;;  %1246 = vst [vmem:[%s2100_s12 + $0x8] sm:$0xff] %v1238_v62 }
 0x20b   : > { %v1229_v48 = vadd.f32 %v1227_v30, %v1215_v27 }
 0x20d   : > { %v1237_v42 = vmax.f32 %v1229_v48, 0.0 }
 0x20f   : > { %1245 = vst [vmem:[%s2100_s12] sm:$0xff] %v1237_v42 }
 0x21f   : > { %v1186_v47 = vpop.f32.mrf.mxu2 }
 0x220   : > { %v1221_v56 = vmul.f32 %v1213_v9, %v1186_v47 }
 0x222   : > { %v1235_v5 = vadd.f32 %v1227_v30, %v1221_v56 }
 0x224   : > { %v1243_v23 = vmax.f32 %v1235_v5, 0.0 }
 0x226   : > { %1251 = vst [vmem:[%s2100_s12 + $0x30] sm:$0xff] %v1243_v23 }
 0x227   : > { %v1206_v22 = vpop.f32.mrf.mxu3 }
 0x228   : > { %v1222_v33 = vmul.f32 %v1213_v9, %v1206_v22 }
 0x22a   : > { %v1146_v50 = vpop.f32.mrf.mxu0  ;;  %v1166_v49 = vpop.f32.mrf.mxu1  ;;  %v1236_v14 = vadd.f32 %v1227_v30, %v1222_v33 }
 0x22b   : > { %v1219_v7 = vmul.f32 %v1213_v9, %v1146_v50  ;;  %v1220_v55 = vmul.f32 %v1213_v9, %v1166_v49 }
 0x22c   : > { %v1244_v13 = vmax.f32 %v1236_v14, 0.0 }
 0x22d   : > { %v1233_v57 = vadd.f32 %v1227_v30, %v1219_v7  ;;  %v1234_v45 = vadd.f32 %v1227_v30, %v1220_v55 }
 0x22e   : > { %1252 = vst [vmem:[%s2100_s12 + $0x38] sm:$0xff] %v1244_v13 }
 0x22f   : > { %v1241_v11 = vmax.f32 %v1233_v57, 0.0  ;;  %v1242_v54 = vmax.f32 %v1234_v45, 0.0 }
 0x231   : > { %1249 = vst [vmem:[%s2100_s12 + $0x20] sm:$0xff] %v1241_v11 }
 0x232   : > { %1250 = vst [vmem:[%s2100_s12 + $0x28] sm:$0xff] %v1242_v54 }
 0x233 PF: > { %s14_s15 = sadd.s32 1, %s1464_s15  }
 0x234   : > { %p11_p4 = scmp.ge.s32.totalorder %s14_s15, 4  }
 0x236   :  { %13 = sbr.rel (!%p11_p4) target bundleno = 1 (0x1), region = 66 }

// kernel: representation_forward.9
= control target key start
LH: loop header
LB: loop body
LE: loop exit
PB: predicated region body
PF: predicated region fallthrough
CT: control target
= control target key end

     0   :  { %s1052_s24 = smov 0   ;;  %s1293_s0 = inlined_call_operand.vmem [shape: f32[2,8,256], index: 0, kind: input, shape index: {}]   ;;  %s1294_s1 = inlined_call_operand.vmem [shape: f32[8,72], index: 1, kind: input, shape index: {}]   ;;  %s1295_s2 = inlined_call_operand.vmem [shape: f32[8,1], index: 2, kind: input, shape index: {}]   ;;  %s1296_s3 = inlined_call_operand.vmem [shape: f32[8,1], index: 3, kind: input, shape index: {}]   ;;  %s1297_s4 = inlined_call_operand.vmem [shape: f32[8,72], index: 4, kind: input, shape index: {}]   ;;  %s1298_s5 = inlined_call_operand.vmem [shape: f32[8,1], index: 5, kind: input, shape index: {}]   ;;  %s1299_s6 = inlined_call_operand.vmem [shape: f32[8,1], index: 6, kind: input, shape index: {}]   ;;  %s1300_s7 = inlined_call_operand.vmem [shape: f32[2,8,256], index: 7, kind: output, shape index: {}]  }
   0x1 LB: > { %s900_s25 = sadd.s32 4294967295, %s999_s24   ;;  %p904_p0 = scmp.ge.s32.totalorder %s999_s24, 1  ;;  %s999_s24 = sphi %s1052_s24, %s17_s24  }
   0x2   : > { %p237_p1 = scmp.lt.s32.totalorder %s999_s24, 3 }
   0x4   : > { %p238_p2 = pnand %p904_p0, %p237_p1 }
   0x5   : > { %p269_p3 = scmp.lt.s32.totalorder (!%p238_p2), %s900_s25, 1  ;;  %s1002_s30 = smov (!%p238_p2), 17  }
   0x6   : > { %241 = sbr.rel (%p238_p2) target bundleno = 873 (0x369), region = 48  ;;  %s1003_s8 = smov (!%p238_p2), 94  }
   0x7   : > { %s1004_s9 = smov (!%p238_p2), 96   ;;  %s1005_s10 = smov (!%p238_p2), 95  }
   0x8   : > { %s1006_s11 = smov (!%p238_p2), 110   ;;  %s1007_s12 = smov (!%p238_p2), 111  }
   0x9   : > { %s1008_s13 = smov (!%p238_p2), 112   ;;  %s1009_s14 = smov (!%p238_p2), 126  }
   0xa   : > { %s1010_s15 = smov (!%p238_p2), 127  }
   0xb   : > { %v1001_v0 = vmov 0.0   ;;  %s1310_s25 = smov (!%p269_p3, %s900_s25), 1  ;;  %vm281_vm0 = vcmask 277504   ;;  %vm296_vm1 = vcmask 1047688   ;;  %vm291_vm2 = vcmask 138240   ;;  %v578_v39 = vld [vmem:[%s1296_s3] sm:$0xff] }
   0xc   : > { %279 = vst [vmem:[#allocation2] sm:$0xff] %v1001_v0  ;;  %s915_s26 = sshll.u32 %s1310_s25, 4  ;;  %v300_v13 = vlaneseq  ;;  %vm498_vm3 = vcmask 769024   ;;  %vm479_vm6 = vcmask 777216   ;;  %vm458_vm7 = vcmask 785408   ;;  %v570_v40 = vld [vmem:[%s1295_s2] sm:$0xff] }
   0xd   : > { %s273_s29 = scalar_lea.vmem %s1293_s0, %s915_s26  ;;  %282 = vst.msk [vmem:[#allocation2 + $0x10] sm:$0xff] %vm281_vm0, %v1001_v0  ;;  %vm437_vm10 = vcmask 900096   ;;  %v1011_v43 = vmov 0   ;;  %vm418_vm11 = vcmask 908288   ;;  %vm397_vm12 = vcmask 916480   ;;  %v507_v62 = vld [vmem:[%s1294_s1] sm:$0xff] }
   0xe   : > { %v1068_v1 = vld [vmem:[%s273_s29] sm:$0xff]  ;;  %v1072_v2 = vld [vmem:[%s273_s29 + $0x8] sm:$0xff]  ;;  %v301_v17 = vand.u32 127, %v300_v13  ;;  %976 = vset.pattern.permute.xlu0 %v1011_v43  ;;  %975 = vset.pattern.permute.xlu2 %v1011_v43  ;;  %vm376_vm13 = vcmask 1031168   ;;  %vm353_vm14 = vcmask 1039360   ;;  %vm526_vm15 = vcmask 588800  }
   0xf   : > { %287 = vrot.lane.b32.xlu0 %v1068_v1, %s1002_s30  ;;  %992 = vset.pattern.permute.xlu1 %v1011_v43 }
  0x10   : > { %v302_v18 = vadd.s32 128, %v301_v17  ;;  %v307_v22 = vand.u32 15, %v301_v17 }
  0x12   : > { %v314_v23 = vand.u32 15, %v302_v18  ;;  %vm1118_vm4 = vcmp.ne.s32.totalorder %v307_v22, 15  ;;  %vm1134_vm8 = vcmp.ne.s32.totalorder %v307_v22, 0 }
  0x14   : > { %vm1122_vm5 = vcmp.ne.s32.totalorder %v314_v23, 15  ;;  %vm1138_vm9 = vcmp.ne.s32.totalorder %v314_v23, 0 }
  0x17   : > { %289 = vrot.lane.b32.xlu0 %v1072_v2, %s1002_s30 }
  0x81   : > { %v288_v3 = vpop.permute.xlu0 %287 }
  0x82   : > { %297 = vst.msk [vmem:[#allocation2] sm:$0xff] %vm296_vm1, %v288_v3 }
  0x89   : > { %v290_v4 = vpop.permute.xlu0 %289  ;;  %v1077_v5 = vld [vmem:[#allocation2] sm:$0xff] }
  0x8a   : > { %299 = vst.msk [vmem:[#allocation2 + $0x10] sm:$0xff] %vm291_vm2, %v290_v4  ;;  %492 = vrot.lane.b32.xlu1 %v1077_v5, %s1003_s8  ;;  %v1091_v7 = vsel %vm291_vm2, %v288_v3, %v290_v4 }
  0x8b   : > { %v960_v8 = vpack.i.bf16 %v1091_v7, %v1077_v5 }
  0x91   : > { %v488_v6 = vld [vmem:[#allocation2 + $0x10] sm:$0xff] }
  0x92   : > { %452 = vrot.lane.b32.xlu1 %v1077_v5, %s1004_s9  ;;  %496 = vrot.lane.b32.xlu2 %v488_v6, %s1003_s8 }
  0x93   : > { %477 = vrot.lane.b32.xlu0 %v488_v6, %s1005_s10 }
  0x9a   : > { %431 = vrot.lane.b32.xlu1 %v1077_v5, %s1006_s11  ;;  %416 = vrot.lane.b32.xlu2 %v488_v6, %s1007_s12 }
  0x9b   : > { %456 = vrot.lane.b32.xlu0 %v488_v6, %s1004_s9 }
  0xa2   : > { %395 = vrot.lane.b32.xlu2 %v488_v6, %s1008_s13  ;;  %494 = vrot.lane.b32.xlu1 %v1091_v7, %s1003_s8 }
  0xa3   : > { %435 = vrot.lane.b32.xlu0 %v488_v6, %s1006_s11 }
  0xaa   : > { %961 = vrot.lane.b32.xlu2 %v960_v8, %s1005_s10  ;;  %966 = vrot.lane.b32.xlu1 %v960_v8, %s1007_s12 }
  0xab   : > { %391 = vrot.lane.b32.xlu0 %v1077_v5, %s1008_s13 }
  0xb2   : > { %454 = vrot.lane.b32.xlu2 %v1091_v7, %s1004_s9  ;;  %393 = vrot.lane.b32.xlu1 %v1091_v7, %s1008_s13 }
  0xb3   : > { %370 = vrot.lane.b32.xlu0 %v1077_v5, %s1009_s14 }
  0xba   : > { %433 = vrot.lane.b32.xlu2 %v1091_v7, %s1006_s11  ;;  %372 = vrot.lane.b32.xlu1 %v1091_v7, %s1009_s14 }
  0xbb   : > { %971 = vrot.lane.b32.xlu0 %v960_v8, %s1010_s15 }
  0xc2   : > { %374 = vrot.lane.b32.xlu2 %v488_v6, %s1009_s14  ;;  %351 = vrot.lane.b32.xlu1 %v488_v6, %s1010_s15 }
  0xc3   : > { %581 = vperm.xlu0 %976, %v578_v39  }
  0xca   : > { %573 = vperm.xlu2 %975, %v570_v40  }
  0xec   : > { %v497_v9 = vpop.permute.xlu2 %496 }
  0xf4   : > { %v417_v10 = vpop.permute.xlu2 %416 }
  0xfc   : > { %v493_v11 = vpop.permute.xlu1 %492  ;;  %v1116_v12 = vpop.permute.xlu2 %395 }
 0x104   : > { %v453_v14 = vpop.permute.xlu1 %452  ;;  %v962_v15 = vpop.permute.xlu2 %961 }
 0x105   : > { %v478_v16 = vpop.permute.xlu0 %477  ;;  %v964_v24 = vunpack.i.h.bf16 %v962_v15  ;;  %v963_v25 = vunpack.i.l.bf16 %v962_v15 }
 0x107   : > { %v480_v32 = vsel %vm479_vm6, %v963_v25, %v964_v24  ;;  %v481_v33 = vsel %vm479_vm6, %v964_v24, %v478_v16 }
 0x10c   : > { %v432_v19 = vpop.permute.xlu1 %431  ;;  %v455_v21 = vpop.permute.xlu2 %454 }
 0x10d   : > { %v457_v20 = vpop.permute.xlu0 %456  ;;  %v459_v37 = vsel %vm458_vm7, %v453_v14, %v455_v21 }
 0x10e   : > { %v460_v38 = vsel %vm458_vm7, %v455_v21, %v457_v20 }
 0x114   : > { %v495_v28 = vpop.permute.xlu1 %494  ;;  %v434_v36 = vpop.permute.xlu2 %433 }
 0x115   : > { %v436_v29 = vpop.permute.xlu0 %435  ;;  %v499_v30 = vsel %vm498_vm3, %v493_v11, %v495_v28  ;;  %v500_v31 = vsel %vm498_vm3, %v495_v28, %v497_v9  ;;  %v438_v41 = vsel %vm437_vm10, %v432_v19, %v434_v36  ;;  %v831_v19 = vld [vmem:[%s1299_s6] sm:$0xff] }
 0x116   : > { %917 = vmatpush.msk.msra.mxu0 %vm1118_vm4, %v499_v30  ;;  %923 = vmatpush.msk.msra.mxu1 %vm1122_vm5, %v500_v31  ;;  %v439_v42 = vsel %vm437_vm10, %v434_v36, %v436_v29 }
 0x118   : > { %538 = vmatpush.msra.mxu0 %v480_v32  ;;  %558 = vmatpush.msra.mxu1 %v481_v33 }
 0x11a   : > { %918 = vmatpush.msk.msra.mxu0 %vm1134_vm8, %v459_v37  ;;  %924 = vmatpush.msk.msra.mxu1 %vm1138_vm9, %v460_v38  ;;  %v823_v38 = vld [vmem:[%s1298_s5] sm:$0xff] }
 0x11c   : > { %919 = vmatpush.msk.msra.mxu0 %vm1118_vm4, %v438_v41  ;;  %925 = vmatpush.msk.msra.mxu1 %vm1122_vm5, %v439_v42  ;;  %v967_v44 = vpop.permute.xlu1 %966  ;;  %v375_v54 = vpop.permute.xlu2 %374 }
 0x11d   : > { %v392_v45 = vpop.permute.xlu0 %391  ;;  %v969_v46 = vunpack.i.h.bf16 %v967_v44  ;;  %v968_v47 = vunpack.i.l.bf16 %v967_v44 }
 0x11f   : > { %v419_v48 = vsel %vm418_vm11, %v968_v47, %v969_v46  ;;  %v420_v49 = vsel %vm418_vm11, %v969_v46, %v417_v10 }
 0x120   : > { %541 = vmatpush.msra.mxu0 %v419_v48  ;;  %561 = vmatpush.msra.mxu1 %v420_v49 }
 0x124   : > { %v394_v50 = vpop.permute.xlu1 %393  ;;  %v574_v3 = vpop.permute.xlu2 %573 }
 0x125   : > { %v371_v51 = vpop.permute.xlu0 %370  ;;  %v398_v52 = vsel %vm397_vm12, %v392_v45, %v394_v50  ;;  %v399_v53 = vsel %vm397_vm12, %v394_v50, %v1116_v12 }
 0x126   : > { %920 = vmatpush.msk.msra.mxu0 %vm1134_vm8, %v398_v52  ;;  %926 = vmatpush.msk.msra.mxu1 %vm1138_vm9, %v399_v53 }
 0x12c   : > { %v373_v55 = vpop.permute.xlu1 %372 }
 0x12d   : > { %v972_v56 = vpop.permute.xlu0 %971  ;;  %v377_v57 = vsel %vm376_vm13, %v371_v51, %v373_v55  ;;  %v378_v58 = vsel %vm376_vm13, %v373_v55, %v375_v54 }
 0x12e   : > { %v974_v59 = vunpack.i.h.bf16 %v972_v56  ;;  %v973_v60 = vunpack.i.l.bf16 %v972_v56  ;;  %921 = vmatpush.msk.msra.mxu0 %vm1118_vm4, %v377_v57  ;;  %927 = vmatpush.msk.msra.mxu1 %vm1122_vm5, %v378_v58 }
 0x130   : > { %v354_v61 = vsel %vm353_vm14, %v973_v60, %v974_v59 }
 0x131   : > { %544 = vmatpush.msra.mxu0 %v354_v61 }
 0x133   : > { %922 = vmatpush.msk.msra.mxu0 %vm1134_vm8, %v1077_v5 }
 0x134   : > { %909 = vmatmul.msk.f32.vlgmr.msra.gmra.mxu0 %vm526_vm15, %v507_v62  ;;  %v352_v63 = vpop.permute.xlu1 %351 }
 0x135   : > { %v355_v0 = vsel %vm353_vm14, %v974_v59, %v352_v63  ;;  %v582_v6 = vpop.permute.xlu0 %581 }
 0x136   : > { %564 = vmatpush.msra.mxu1 %v355_v0 }
 0x138   : > { %928 = vmatpush.msk.msra.mxu1 %vm1138_vm9, %v1091_v7 }
 0x139   : > { %910 = vmatmul.msk.f32.vlgmr.msra.gmra.mxu1 %vm526_vm15, %v507_v62 }
 0x1b1   : > { %v547_v4 = vpop.f32.mrf.mxu0 }
 0x1b2   : > { %v576_v8 = vmul.f32 %v574_v3, %v547_v4 }
 0x1b4   : > { %v584_v9 = vadd.f32 %v582_v6, %v576_v8 }
 0x1b6   : > { %v586_v10 = vmax.f32 %v584_v9, 0.0  ;;  %v567_v11 = vpop.f32.mrf.mxu1 }
 0x1b7   : > { %v577_v5 = vmul.f32 %v574_v3, %v567_v11 }
 0x1b8   : > { %590 = vrot.lane.b32.xlu1 %v586_v10, %s1002_s30 }
 0x1b9   : > { %v585_v12 = vadd.f32 %v582_v6, %v577_v5  ;;  %v761_v6 = vld [vmem:[%s1297_s4] sm:$0xff] }
 0x1bb   : > { %v587_v13 = vmax.f32 %v585_v12, 0.0 }
 0x1bd   : > { %592 = vrot.lane.b32.xlu2 %v587_v13, %s1002_s30 }
 0x217   : > { %v593_v14 = vpop.permute.xlu2 %592 }
 0x218   : > { %600 = vst.msk [vmem:[#allocation2 + $0x10] sm:$0xff] %vm291_vm2, %v593_v14 }
 0x21f   : > { %v743_v7 = vld [vmem:[#allocation2 + $0x10] sm:$0xff] }
 0x220   : > { %751 = vrot.lane.b32.xlu0 %v743_v7, %s1003_s8  ;;  %733 = vrot.lane.b32.xlu2 %v743_v7, %s1005_s10 }
 0x228   : > { %713 = vrot.lane.b32.xlu2 %v743_v7, %s1004_s9 }
 0x22a   : > { %v591_v15 = vpop.permute.xlu1 %590 }
 0x22b   : > { %v1195_v16 = vsel %vm291_vm2, %v591_v15, %v593_v14  ;;  %598 = vst.msk [vmem:[#allocation2] sm:$0xff] %vm296_vm1, %v591_v15 }
 0x230   : > { %693 = vrot.lane.b32.xlu2 %v743_v7, %s1006_s11 }
 0x232   : > { %v1199_v17 = vld [vmem:[#allocation2] sm:$0xff] }
 0x233   : > { %747 = vrot.lane.b32.xlu1 %v1199_v17, %s1003_s8  ;;  %709 = vrot.lane.b32.xlu0 %v1199_v17, %s1004_s9  ;;  %v982_v18 = vpack.i.bf16 %v1195_v16, %v1199_v17 }
 0x238   : > { %651 = vrot.lane.b32.xlu2 %v1199_v17, %s1008_s13 }
 0x23b   : > { %689 = vrot.lane.b32.xlu0 %v1199_v17, %s1006_s11  ;;  %675 = vrot.lane.b32.xlu1 %v743_v7, %s1007_s12 }
 0x240   : > { %749 = vrot.lane.b32.xlu2 %v1195_v16, %s1003_s8 }
 0x243   : > { %655 = vrot.lane.b32.xlu1 %v743_v7, %s1008_s13  ;;  %983 = vrot.lane.b32.xlu0 %v982_v18, %s1007_s12 }
 0x248   : > { %631 = vrot.lane.b32.xlu2 %v1199_v17, %s1009_s14 }
 0x24b   : > { %978 = vrot.lane.b32.xlu1 %v982_v18, %s1005_s10  ;;  %653 = vrot.lane.b32.xlu0 %v1195_v16, %s1008_s13  ;;  %s278_s10 = scalar_lea.vmem %s1300_s7, %s915_s26 }
 0x250   : > { %988 = vrot.lane.b32.xlu2 %v982_v18, %s1010_s15 }
 0x253   : > { %711 = vrot.lane.b32.xlu1 %v1195_v16, %s1004_s9  ;;  %633 = vrot.lane.b32.xlu0 %v1195_v16, %s1009_s14 }
 0x258   : > { %834 = vperm.xlu2 %975, %v831_v19  }
 0x25b   : > { %691 = vrot.lane.b32.xlu1 %v1195_v16, %s1006_s11  ;;  %617 = vrot.lane.b32.xlu0 %v743_v7, %s1010_s15 }
 0x263   : > { %635 = vrot.lane.b32.xlu1 %v743_v7, %s1009_s14 }
 0x26b   : > { %826 = vperm.xlu1 %992, %v823_v38  }
 0x27a   : > { %v734_v20 = vpop.permute.xlu2 %733 }
 0x282   : > { %v714_v21 = vpop.permute.xlu2 %713 }
 0x28a   : > { %v694_v22 = vpop.permute.xlu2 %693 }
 0x292   : > { %v652_v23 = vpop.permute.xlu2 %651  ;;  %v752_v24 = vpop.permute.xlu0 %751 }
 0x29a   : > { %v750_v25 = vpop.permute.xlu2 %749 }
 0x29b   : > { %v754_v28 = vsel %vm498_vm3, %v750_v25, %v752_v24 }
 0x29c   : > { %935 = vmatpush.msk.msra.mxu3 %vm1122_vm5, %v754_v28 }
 0x2a2   : > { %v632_v45 = vpop.permute.xlu2 %631 }
 0x2a5   : > { %v748_v29 = vpop.permute.xlu1 %747  ;;  %v710_v30 = vpop.permute.xlu0 %709 }
 0x2a6   : > { %v753_v31 = vsel %vm498_vm3, %v748_v29, %v750_v25 }
 0x2a7   : > { %929 = vmatpush.msk.msra.mxu2 %vm1118_vm4, %v753_v31 }
 0x2aa   : > { %v989_v55 = vpop.permute.xlu2 %988 }
 0x2ab   : > { %v991_v58 = vunpack.i.h.bf16 %v989_v55  ;;  %v990_v59 = vunpack.i.l.bf16 %v989_v55 }
 0x2ad   : > { %v690_v32 = vpop.permute.xlu0 %689  ;;  %v676_v33 = vpop.permute.xlu1 %675  ;;  %v619_v3 = vsel %vm353_vm14, %v990_v59, %v991_v58 }
 0x2b2   : > { %v835_v10 = vpop.permute.xlu2 %834 }
 0x2b5   : > { %v656_v36 = vpop.permute.xlu1 %655  ;;  %v984_v37 = vpop.permute.xlu0 %983 }
 0x2b6   : > { %v986_v50 = vunpack.i.h.bf16 %v984_v37  ;;  %v985_v51 = vunpack.i.l.bf16 %v984_v37 }
 0x2b8   : > { %v677_v56 = vsel %vm418_vm11, %v985_v51, %v986_v50  ;;  %v678_v57 = vsel %vm418_vm11, %v986_v50, %v676_v33 }
 0x2bd   : > { %v979_v39 = vpop.permute.xlu1 %978  ;;  %v654_v44 = vpop.permute.xlu0 %653 }
 0x2be   : > { %v981_v40 = vunpack.i.h.bf16 %v979_v39  ;;  %v980_v41 = vunpack.i.l.bf16 %v979_v39  ;;  %v657_v60 = vsel %vm397_vm12, %v652_v23, %v654_v44  ;;  %v658_v61 = vsel %vm397_vm12, %v654_v44, %v656_v36 }
 0x2c0   : > { %v735_v42 = vsel %vm479_vm6, %v980_v41, %v981_v40  ;;  %v736_v43 = vsel %vm479_vm6, %v981_v40, %v734_v20 }
 0x2c1   : > { %791 = vmatpush.msra.mxu2 %v735_v42  ;;  %811 = vmatpush.msra.mxu3 %v736_v43 }
 0x2c5   : > { %v712_v46 = vpop.permute.xlu1 %711  ;;  %v634_v49 = vpop.permute.xlu0 %633 }
 0x2c6   : > { %v715_v47 = vsel %vm458_vm7, %v710_v30, %v712_v46  ;;  %v716_v48 = vsel %vm458_vm7, %v712_v46, %v714_v21  ;;  %v637_v62 = vsel %vm376_vm13, %v632_v45, %v634_v49 }
 0x2c7   : > { %930 = vmatpush.msk.msra.mxu2 %vm1134_vm8, %v715_v47  ;;  %936 = vmatpush.msk.msra.mxu3 %vm1138_vm9, %v716_v48 }
 0x2cd   : > { %v692_v52 = vpop.permute.xlu1 %691  ;;  %v618_v63 = vpop.permute.xlu0 %617 }
 0x2ce   : > { %v695_v53 = vsel %vm437_vm10, %v690_v32, %v692_v52  ;;  %v696_v54 = vsel %vm437_vm10, %v692_v52, %v694_v22  ;;  %v620_v8 = vsel %vm353_vm14, %v991_v58, %v618_v63 }
 0x2cf   : > { %931 = vmatpush.msk.msra.mxu2 %vm1118_vm4, %v695_v53  ;;  %937 = vmatpush.msk.msra.mxu3 %vm1122_vm5, %v696_v54 }
 0x2d1   : > { %794 = vmatpush.msra.mxu2 %v677_v56  ;;  %814 = vmatpush.msra.mxu3 %v678_v57 }
 0x2d3   : > { %932 = vmatpush.msk.msra.mxu2 %vm1134_vm8, %v657_v60  ;;  %938 = vmatpush.msk.msra.mxu3 %vm1138_vm9, %v658_v61 }
 0x2d5   : > { %v636_v0 = vpop.permute.xlu1 %635  ;;  %933 = vmatpush.msk.msra.mxu2 %vm1118_vm4, %v637_v62 }
 0x2d6   : > { %v638_v4 = vsel %vm376_vm13, %v634_v49, %v636_v0 }
 0x2d7   : > { %797 = vmatpush.msra.mxu2 %v619_v3  ;;  %939 = vmatpush.msk.msra.mxu3 %vm1122_vm5, %v638_v4 }
 0x2d9   : > { %934 = vmatpush.msk.msra.mxu2 %vm1134_vm8, %v1199_v17  ;;  %817 = vmatpush.msra.mxu3 %v620_v8 }
 0x2da   : > { %911 = vmatmul.msk.f32.vlgmr.msra.gmra.mxu2 %vm526_vm15, %v761_v6 }
 0x2db   : > { %940 = vmatpush.msk.msra.mxu3 %vm1138_vm9, %v1195_v16 }
 0x2dc   : > { %912 = vmatmul.msk.f32.vlgmr.msra.gmra.mxu3 %vm526_vm15, %v761_v6 }
 0x2dd   : > { %v827_v26 = vpop.permute.xlu1 %826 }
 0x35d   : > { %v800_v27 = vpop.f32.mrf.mxu2 }
 0x35e   : > { %v829_v9 = vmul.f32 %v827_v26, %v800_v27 }
 0x35f   : > { %v820_v11 = vpop.f32.mrf.mxu3 }
 0x360   : > { %v837_v5 = vadd.f32 %v835_v10, %v829_v9  ;;  %v830_v12 = vmul.f32 %v827_v26, %v820_v11 }
 0x362   : > { %v839_v13 = vadd.f32 %v837_v5, %v1068_v1  ;;  %v838_v34 = vadd.f32 %v835_v10, %v830_v12 }
 0x364   : > { %v841_v14 = vmax.f32 %v839_v13, 0.0  ;;  %v840_v35 = vadd.f32 %v838_v34, %v1072_v2 }
 0x366   : > { %843 = vst [vmem:[%s278_s10] sm:$0xff] %v841_v14  ;;  %v842_v7 = vmax.f32 %v840_v35, 0.0 }
 0x368   : > { %844 = vst [vmem:[%s278_s10 + $0x8] sm:$0xff] %v842_v7 }
 0x369 PF: > { %s17_s24 = sadd.s32 1, %s999_s24  }
 0x36a   : > { %p14_p4 = scmp.ge.s32.totalorder %s17_s24, 4  }
 0x36c   :  { %16 = sbr.rel (!%p14_p4) target bundleno = 1 (0x1), region = 78 }

// kernel: representation_forward.11
= control target key start
LH: loop header
LB: loop body
LE: loop exit
PB: predicated region body
PF: predicated region fallthrough
CT: control target
= control target key end

     0   :  { %s718_s15 = smov 0   ;;  %s851_s0 = inlined_call_operand.vmem [shape: f32[2,8,256], index: 0, kind: input, shape index: {}]   ;;  %s852_s1 = inlined_call_operand.vmem [shape: f32[16,72], index: 1, kind: input, shape index: {}]   ;;  %s853_s2 = inlined_call_operand.vmem [shape: f32[16,1], index: 2, kind: input, shape index: {}]   ;;  %s854_s3 = inlined_call_operand.vmem [shape: f32[16,1], index: 3, kind: input, shape index: {}]   ;;  %s855_s4 = inlined_call_operand.vmem [shape: f32[2,16,256], index: 4, kind: output, shape index: {}]  }
   0x1 LB: > { %s590_s16 = sadd.s32 4294967295, %s680_s15   ;;  %p594_p0 = scmp.ge.s32.totalorder %s680_s15, 1  ;;  %s680_s15 = sphi %s718_s15, %s14_s15  }
   0x2   : > { %p162_p1 = scmp.lt.s32.totalorder %s680_s15, 3 }
   0x4   : > { %p163_p2 = pnand %p594_p0, %p162_p1 }
   0x5   : > { %p188_p3 = scmp.lt.s32.totalorder (!%p163_p2), %s590_s16, 1  ;;  %s683_s21 = smov (!%p163_p2), 17  }
   0x6   : > { %166 = sbr.rel (%p163_p2) target bundleno = 450 (0x1c2), region = 36  ;;  %s684_s22 = smov (!%p163_p2), 94  }
   0x7   : > { %s685_s23 = smov (!%p163_p2), 96   ;;  %s686_s24 = smov (!%p163_p2), 95  }
   0x8   : > { %s687_s25 = smov (!%p163_p2), 110   ;;  %s688_s26 = smov (!%p163_p2), 111  }
   0x9   : > { %s689_s27 = smov (!%p163_p2), 112   ;;  %s690_s28 = smov (!%p163_p2), 126  }
   0xa   : > { %s691_s29 = smov (!%p163_p2), 127  }
   0xb   : > { %v682_v0 = vmov 0.0   ;;  %s865_s16 = smov (!%p188_p3, %s590_s16), 1  ;;  %vm200_vm0 = vcmask 277504   ;;  %vm215_vm1 = vcmask 1047688   ;;  %vm210_vm2 = vcmask 138240   ;;  %v500_v42 = vld [vmem:[%s853_s2 + $0x8] sm:$0xff] }
   0xc   : > { %198 = vst [vmem:[#allocation2] sm:$0xff] %v682_v0  ;;  %s605_s17 = sshll.u32 %s865_s16, 4  ;;  %v219_v15 = vlaneseq  ;;  %vm417_vm3 = vcmask 769024   ;;  %vm398_vm6 = vcmask 777216   ;;  %vm377_vm7 = vcmask 785408   ;;  %v515_v43 = vld [vmem:[%s854_s3] sm:$0xff] }
   0xd   : > { %s192_s20 = scalar_lea.vmem %s851_s0, %s605_s17  ;;  %201 = vst.msk [vmem:[#allocation2 + $0x10] sm:$0xff] %vm200_vm0, %v682_v0  ;;  %vm356_vm10 = vcmask 900096   ;;  %vm337_vm11 = vcmask 908288   ;;  %v692_v47 = vmov 0   ;;  %v499_v50 = vld [vmem:[%s853_s2] sm:$0xff]  ;;  %vm316_vm12 = vcmask 916480  }
   0xe   : > { %v202_v1 = vld [vmem:[%s192_s20] sm:$0xff]  ;;  %v203_v2 = vld [vmem:[%s192_s20 + $0x8] sm:$0xff]  ;;  %v220_v17 = vand.u32 127, %v219_v15  ;;  %672 = vset.pattern.permute.xlu0 %v692_v47  ;;  %673 = vset.pattern.permute.xlu1 %v692_v47  ;;  %vm295_vm13 = vcmask 1031168   ;;  %vm272_vm14 = vcmask 1039360   ;;  %vm446_vm15 = vcmask 588800  }
   0xf   : > { %206 = vrot.lane.b32.xlu0 %v202_v1, %s683_s21  ;;  %671 = vset.pattern.permute.xlu2 %v692_v47  ;;  %v516_v55 = vld [vmem:[%s854_s3 + $0x8] sm:$0xff]  ;;  %v426_v1 = vld [vmem:[%s852_s1] sm:$0xff]  ;;  %s606_s18 = sshll.u32 %s865_s16, 5 }
  0x10   : > { %v221_v19 = vadd.s32 128, %v220_v17  ;;  %v226_v22 = vand.u32 15, %v220_v17  ;;  %v427_v0 = vld [vmem:[%s852_s1 + $0x8] sm:$0xff] }
  0x12   : > { %v233_v23 = vand.u32 15, %v221_v19  ;;  %vm752_vm4 = vcmp.ne.s32.totalorder %v226_v22, 15  ;;  %vm768_vm8 = vcmp.ne.s32.totalorder %v226_v22, 0 }
  0x14   : > { %vm756_vm5 = vcmp.ne.s32.totalorder %v233_v23, 15  ;;  %vm772_vm9 = vcmp.ne.s32.totalorder %v233_v23, 0 }
  0x17   : > { %208 = vrot.lane.b32.xlu0 %v203_v2, %s683_s21  ;;  %s197_s21 = scalar_lea.vmem %s855_s4, %s606_s18 }
  0x81   : > { %v207_v3 = vpop.permute.xlu0 %206 }
  0x82   : > { %216 = vst.msk [vmem:[#allocation2] sm:$0xff] %vm215_vm1, %v207_v3 }
  0x89   : > { %v209_v4 = vpop.permute.xlu0 %208  ;;  %v732_v5 = vld [vmem:[#allocation2] sm:$0xff] }
  0x8a   : > { %v734_v6 = vsel %vm210_vm2, %v207_v3, %v209_v4  ;;  %218 = vst.msk [vmem:[#allocation2 + $0x10] sm:$0xff] %vm210_vm2, %v209_v4  ;;  %411 = vrot.lane.b32.xlu1 %v732_v5, %s684_s22 }
  0x8b   : > { %v656_v8 = vpack.i.bf16 %v734_v6, %v732_v5 }
  0x91   : > { %v407_v7 = vld [vmem:[#allocation2 + $0x10] sm:$0xff] }
  0x92   : > { %371 = vrot.lane.b32.xlu1 %v732_v5, %s685_s23  ;;  %415 = vrot.lane.b32.xlu2 %v407_v7, %s684_s22 }
  0x93   : > { %396 = vrot.lane.b32.xlu0 %v407_v7, %s686_s24 }
  0x9a   : > { %350 = vrot.lane.b32.xlu1 %v732_v5, %s687_s25  ;;  %335 = vrot.lane.b32.xlu2 %v407_v7, %s688_s26 }
  0x9b   : > { %375 = vrot.lane.b32.xlu0 %v407_v7, %s685_s23 }
  0xa2   : > { %314 = vrot.lane.b32.xlu2 %v407_v7, %s689_s27  ;;  %413 = vrot.lane.b32.xlu1 %v734_v6, %s684_s22 }
  0xa3   : > { %354 = vrot.lane.b32.xlu0 %v407_v7, %s687_s25 }
  0xaa   : > { %657 = vrot.lane.b32.xlu2 %v656_v8, %s686_s24  ;;  %662 = vrot.lane.b32.xlu1 %v656_v8, %s688_s26 }
  0xab   : > { %310 = vrot.lane.b32.xlu0 %v732_v5, %s689_s27 }
  0xb2   : > { %373 = vrot.lane.b32.xlu2 %v734_v6, %s685_s23  ;;  %312 = vrot.lane.b32.xlu1 %v734_v6, %s689_s27 }
  0xb3   : > { %289 = vrot.lane.b32.xlu0 %v732_v5, %s690_s28 }
  0xba   : > { %352 = vrot.lane.b32.xlu2 %v734_v6, %s687_s25  ;;  %291 = vrot.lane.b32.xlu1 %v734_v6, %s690_s28 }
  0xbb   : > { %667 = vrot.lane.b32.xlu0 %v656_v8, %s691_s29 }
  0xc2   : > { %293 = vrot.lane.b32.xlu2 %v407_v7, %s690_s28  ;;  %270 = vrot.lane.b32.xlu1 %v407_v7, %s691_s29 }
  0xc3   : > { %508 = vperm.xlu0 %672, %v500_v42  }
  0xca   : > { %519 = vperm.xlu1 %673, %v515_v43   ;;  %503 = vperm.xlu2 %671, %v499_v50  }
  0xd2   : > { %524 = vperm.xlu2 %671, %v516_v55  }
  0xec   : > { %v416_v9 = vpop.permute.xlu2 %415 }
  0xf4   : > { %v748_v10 = vpop.permute.xlu2 %335 }
  0xfc   : > { %v412_v11 = vpop.permute.xlu1 %411  ;;  %v750_v12 = vpop.permute.xlu2 %314 }
 0x104   : > { %v372_v13 = vpop.permute.xlu1 %371  ;;  %v658_v14 = vpop.permute.xlu2 %657 }
 0x105   : > { %v397_v16 = vpop.permute.xlu0 %396  ;;  %v660_v24 = vunpack.i.h.bf16 %v658_v14  ;;  %v659_v25 = vunpack.i.l.bf16 %v658_v14 }
 0x107   : > { %v399_v32 = vsel %vm398_vm6, %v659_v25, %v660_v24  ;;  %v400_v35 = vsel %vm398_vm6, %v660_v24, %v397_v16 }
 0x10c   : > { %v351_v18 = vpop.permute.xlu1 %350  ;;  %v374_v21 = vpop.permute.xlu2 %373 }
 0x10d   : > { %v376_v20 = vpop.permute.xlu0 %375  ;;  %v378_v37 = vsel %vm377_vm7, %v372_v13, %v374_v21 }
 0x10e   : > { %v379_v38 = vsel %vm377_vm7, %v374_v21, %v376_v20 }
 0x114   : > { %v414_v27 = vpop.permute.xlu1 %413  ;;  %v353_v34 = vpop.permute.xlu2 %352 }
 0x115   : > { %v355_v29 = vpop.permute.xlu0 %354  ;;  %v418_v30 = vsel %vm417_vm3, %v412_v11, %v414_v27  ;;  %v419_v31 = vsel %vm417_vm3, %v414_v27, %v416_v9  ;;  %v357_v39 = vsel %vm356_vm10, %v351_v18, %v353_v34 }
 0x116   : > { %607 = vmatpush.msk.msra.mxu0 %vm752_vm4, %v418_v30  ;;  %619 = vmatpush.msk.msra.mxu2 %vm752_vm4, %v418_v30  ;;  %v358_v40 = vsel %vm356_vm10, %v353_v34, %v355_v29 }
 0x117   : > { %613 = vmatpush.msk.msra.mxu1 %vm756_vm5, %v419_v31  ;;  %628 = vmatpush.msk.msra.mxu3 %vm756_vm5, %v419_v31 }
 0x118   : > { %461 = vmatpush.msra.mxu0 %v399_v32  ;;  %620 = vmatpush.msra.mxu2 %v399_v32 }
 0x119   : > { %484 = vmatpush.msra.mxu1 %v400_v35  ;;  %629 = vmatpush.msra.mxu3 %v400_v35 }
 0x11a   : > { %608 = vmatpush.msk.msra.mxu0 %vm768_vm8, %v378_v37  ;;  %621 = vmatpush.msk.msra.mxu2 %vm768_vm8, %v378_v37 }
 0x11b   : > { %614 = vmatpush.msk.msra.mxu1 %vm772_vm9, %v379_v38  ;;  %630 = vmatpush.msk.msra.mxu3 %vm772_vm9, %v379_v38 }
 0x11c   : > { %609 = vmatpush.msk.msra.mxu0 %vm752_vm4, %v357_v39  ;;  %622 = vmatpush.msk.msra.mxu2 %vm752_vm4, %v357_v39  ;;  %v663_v41 = vpop.permute.xlu1 %662  ;;  %v294_v56 = vpop.permute.xlu2 %293 }
 0x11d   : > { %v311_v44 = vpop.permute.xlu0 %310  ;;  %615 = vmatpush.msk.msra.mxu1 %vm756_vm5, %v358_v40  ;;  %631 = vmatpush.msk.msra.mxu3 %vm756_vm5, %v358_v40  ;;  %v665_v45 = vunpack.i.h.bf16 %v663_v41  ;;  %v664_v46 = vunpack.i.l.bf16 %v663_v41 }
 0x11f   : > { %v338_v48 = vsel %vm337_vm11, %v664_v46, %v665_v45  ;;  %v339_v49 = vsel %vm337_vm11, %v665_v45, %v748_v10 }
 0x120   : > { %464 = vmatpush.msra.mxu0 %v338_v48  ;;  %623 = vmatpush.msra.mxu2 %v338_v48 }
 0x121   : > { %487 = vmatpush.msra.mxu1 %v339_v49  ;;  %632 = vmatpush.msra.mxu3 %v339_v49 }
 0x124   : > { %v313_v51 = vpop.permute.xlu1 %312  ;;  %v504_v4 = vpop.permute.xlu2 %503 }
 0x125   : > { %v290_v52 = vpop.permute.xlu0 %289  ;;  %v317_v53 = vsel %vm316_vm12, %v311_v44, %v313_v51  ;;  %v318_v54 = vsel %vm316_vm12, %v313_v51, %v750_v12 }
 0x126   : > { %610 = vmatpush.msk.msra.mxu0 %vm768_vm8, %v317_v53  ;;  %624 = vmatpush.msk.msra.mxu2 %vm768_vm8, %v317_v53 }
 0x127   : > { %616 = vmatpush.msk.msra.mxu1 %vm772_vm9, %v318_v54  ;;  %633 = vmatpush.msk.msra.mxu3 %vm772_vm9, %v318_v54 }
 0x12c   : > { %v292_v57 = vpop.permute.xlu1 %291  ;;  %v525_v15 = vpop.permute.xlu2 %524 }
 0x12d   : > { %v668_v58 = vpop.permute.xlu0 %667  ;;  %v296_v59 = vsel %vm295_vm13, %v290_v52, %v292_v57  ;;  %v297_v60 = vsel %vm295_vm13, %v292_v57, %v294_v56 }
 0x12e   : > { %v670_v61 = vunpack.i.h.bf16 %v668_v58  ;;  %v669_v62 = vunpack.i.l.bf16 %v668_v58  ;;  %611 = vmatpush.msk.msra.mxu0 %vm752_vm4, %v296_v59  ;;  %625 = vmatpush.msk.msra.mxu2 %vm752_vm4, %v296_v59 }
 0x12f   : > { %617 = vmatpush.msk.msra.mxu1 %vm756_vm5, %v297_v60  ;;  %634 = vmatpush.msk.msra.mxu3 %vm756_vm5, %v297_v60 }
 0x130   : > { %v273_v63 = vsel %vm272_vm14, %v669_v62, %v670_v61 }
 0x131   : > { %467 = vmatpush.msra.mxu0 %v273_v63  ;;  %626 = vmatpush.msra.mxu2 %v273_v63 }
 0x133   : > { %612 = vmatpush.msk.msra.mxu0 %vm768_vm8, %v732_v5  ;;  %627 = vmatpush.msk.msra.mxu2 %vm768_vm8, %v732_v5 }
 0x134   : > { %600 = vmatmul.msk.f32.vlgmr.msra.gmra.mxu2 %vm446_vm15, %v427_v0  ;;  %v271_v2 = vpop.permute.xlu1 %270  ;;  %599 = vmatmul.msk.f32.vlgmr.msra.gmra.mxu0 %vm446_vm15, %v426_v1 }
 0x135   : > { %v274_v3 = vsel %vm272_vm14, %v670_v61, %v271_v2  ;;  %v509_v10 = vpop.permute.xlu0 %508 }
 0x136   : > { %490 = vmatpush.msra.mxu1 %v274_v3  ;;  %635 = vmatpush.msra.mxu3 %v274_v3 }
 0x138   : > { %618 = vmatpush.msk.msra.mxu1 %vm772_vm9, %v734_v6  ;;  %636 = vmatpush.msk.msra.mxu3 %vm772_vm9, %v734_v6 }
 0x139   : > { %601 = vmatmul.msk.f32.vlgmr.msra.gmra.mxu1 %vm446_vm15, %v426_v1  ;;  %602 = vmatmul.msk.f32.vlgmr.msra.gmra.mxu3 %vm446_vm15, %v427_v0 }
 0x13c   : > { %v520_v7 = vpop.permute.xlu1 %519 }
 0x1b1   : > { %v470_v5 = vpop.f32.mrf.mxu0 }
 0x1b2   : > { %v511_v8 = vmul.f32 %v504_v4, %v470_v5 }
 0x1b4   : > { %v527_v9 = vadd.f32 %v520_v7, %v511_v8 }
 0x1b6   : > { %v493_v11 = vpop.f32.mrf.mxu1  ;;  %531 = vst [vmem:[%s197_s21] sm:$0xff] %v527_v9 }
 0x1b7   : > { %v473_v12 = vpop.f32.mrf.mxu2  ;;  %v512_v13 = vmul.f32 %v504_v4, %v493_v11 }
 0x1b8   : > { %v513_v14 = vmul.f32 %v509_v10, %v473_v12 }
 0x1b9   : > { %v528_v6 = vadd.f32 %v520_v7, %v512_v13 }
 0x1ba   : > { %v529_v16 = vadd.f32 %v525_v15, %v513_v14 }
 0x1bb   : > { %532 = vst [vmem:[%s197_s21 + $0x8] sm:$0xff] %v528_v6 }
 0x1bc   : > { %533 = vst [vmem:[%s197_s21 + $0x10] sm:$0xff] %v529_v16  ;;  %v496_v17 = vpop.f32.mrf.mxu3 }
 0x1bd   : > { %v514_v18 = vmul.f32 %v509_v10, %v496_v17 }
 0x1bf   : > { %v530_v19 = vadd.f32 %v525_v15, %v514_v18 }
 0x1c1   : > { %534 = vst [vmem:[%s197_s21 + $0x18] sm:$0xff] %v530_v19 }
 0x1c2 PF: > { %s14_s15 = sadd.s32 1, %s680_s15  }
 0x1c3   : > { %p11_p4 = scmp.ge.s32.totalorder %s14_s15, 4  }
 0x1c5   :  { %13 = sbr.rel (!%p11_p4) target bundleno = 1 (0x1), region = 66 }

// kernel: representation_forward.12
= control target key start
LH: loop header
LB: loop body
LE: loop exit
PB: predicated region body
PF: predicated region fallthrough
CT: control target
= control target key end

     0   :  { %s677_s18 = smov 0   ;;  %s778_s0 = inlined_call_operand.vmem [shape: f32[2,16,64], index: 0, kind: input, shape index: {}]   ;;  %s779_s1 = inlined_call_operand.vmem [shape: f32[16,144], index: 1, kind: input, shape index: {}]   ;;  %s780_s2 = inlined_call_operand.vmem [shape: f32[16,1], index: 2, kind: input, shape index: {}]   ;;  %s781_s3 = inlined_call_operand.vmem [shape: f32[16,1], index: 3, kind: input, shape index: {}]   ;;  %s782_s4 = inlined_call_operand.vmem [shape: f32[2,16,64], index: 4, kind: input, shape index: {}]   ;;  %s783_s5 = inlined_call_operand.vmem [shape: f32[2,16,64], index: 5, kind: output, shape index: {}]  }
   0x1 LB: > { %s572_s19 = sadd.s32 4294967295, %s634_s18   ;;  %p576_p0 = scmp.ge.s32.totalorder %s634_s18, 1  ;;  %s634_s18 = sphi %s677_s18, %s15_s18  }
   0x2   : > { %p197_p1 = scmp.lt.s32.totalorder %s634_s18, 3 }
   0x4   : > { %p198_p2 = pnand %p576_p0, %p197_p1 }
   0x5   : > { %p230_p3 = scmp.lt.s32.totalorder (!%p198_p2), %s572_s19, 1  ;;  %s637_s24 = smov (!%p198_p2), 9  }
   0x6   : > { %201 = sbr.rel (%p198_p2) target bundleno = 449 (0x1c1), region = 40  ;;  %s638_s25 = smov (!%p198_p2), 111  }
   0x7   : > { %s639_s26 = smov (!%p198_p2), 112   ;;  %s640_s27 = smov (!%p198_p2), 118  }
   0x8   : > { %s641_s28 = smov (!%p198_p2), 119   ;;  %s642_s29 = smov (!%p198_p2), 126  }
   0x9   : > { %s643_s30 = smov (!%p198_p2), 120   ;;  %s644_s6 = smov (!%p198_p2), 110  }
   0xa   : > { %s645_s7 = smov (!%p198_p2), 127  }
   0xb   : > { %vm245_vm0 = vcmask 670720   ;;  %v636_v0 = vmov 0.0   ;;  %s789_s19 = smov (!%p230_p3, %s572_s19), 1  ;;  %v261_v3 = vlaneseq  ;;  %vm258_vm1 = vcmask 597064   ;;  %v470_v38 = vld [vmem:[%s780_s2 + $0x8] sm:$0xff]  ;;  %v469_v39 = vld [vmem:[%s780_s2] sm:$0xff] }
   0xc   : > { %247 = vst.msk [vmem:[#allocation2 + $0x8] sm:$0xff] %vm245_vm0, %v636_v0  ;;  %s685_s20 = sshll.u32 %s789_s19, 4  ;;  %vm283_vm3 = vcmask 523264   ;;  %v646_v41 = vmov 0   ;;  %v483_v46 = vld [vmem:[%s781_s3] sm:$0xff]  ;;  %v484_v49 = vld [vmem:[%s781_s3 + $0x8] sm:$0xff] }
   0xd   : > { %246 = vst.msk [vmem:[#allocation2] sm:$0xff] %vm245_vm0, %v636_v0  ;;  %s234_s23 = scalar_lea.vmem %s778_s0, %s685_s20  ;;  %v262_v4 = vand.u32 127, %v261_v3  ;;  %626 = vset.pattern.permute.xlu1 %v646_v41  ;;  %625 = vset.pattern.permute.xlu0 %v646_v41  ;;  %v395_v56 = vld [vmem:[%s779_s1 + $0x8] sm:$0xff]  ;;  %vm416_vm5 = vcmask 130048   ;;  %v397_v61 = vld [vmem:[%s779_s1 + $0x18] sm:$0xff]  ;;  %v394_v0 = vld [vmem:[%s779_s1] sm:$0xff] }
   0xe   : > { %v249_v1 = vld [vmem:[%s234_s23 + $0x8] sm:$0xff]  ;;  %v248_v2 = vld [vmem:[%s234_s23] sm:$0xff]  ;;  %627 = vset.pattern.permute.xlu2 %v646_v41 }
   0xf   : > { %254 = vrot.lane.b32.xlu0 %v249_v1, %s637_s24  ;;  %v267_v6 = vand.u32 7, %v262_v4  ;;  %v396_v1 = vld [vmem:[%s779_s1 + $0x10] sm:$0xff] }
  0x11   : > { %vm691_vm2 = vcmp.ne.s32.totalorder %v267_v6, 0  ;;  %vm708_vm4 = vcmp.ne.s32.totalorder %v267_v6, 7 }
  0x17   : > { %252 = vrot.lane.b32.xlu0 %v248_v2, %s637_s24 }
  0x81   : > { %v255_v5 = vpop.permute.xlu0 %254 }
  0x82   : > { %260 = vst.msk [vmem:[#allocation2 + $0x8] sm:$0xff] %vm258_vm1, %v255_v5 }
  0x89   : > { %v253_v8 = vpop.permute.xlu0 %252  ;;  %v369_v9 = vld [vmem:[#allocation2 + $0x8] sm:$0xff] }
  0x8a   : > { %259 = vst.msk [vmem:[#allocation2] sm:$0xff] %vm258_vm1, %v253_v8  ;;  %374 = vrot.lane.b32.xlu1 %v369_v9, %s638_s25  ;;  %360 = vrot.lane.b32.xlu2 %v369_v9, %s639_s26  ;;  %v282_v10 = vsel %vm691_vm2, %v369_v9, 0.0 }
  0x8b   : > { %346 = vrot.lane.b32.xlu0 %v369_v9, %s640_s27  ;;  %285 = vst.msk [vmem:[#allocation3 + $0x8] sm:$0xff] %vm283_vm3, %v282_v10 }
  0x91   : > { %v368_v11 = vld [vmem:[#allocation2] sm:$0xff] }
  0x92   : > { %372 = vrot.lane.b32.xlu1 %v368_v11, %s638_s25  ;;  %358 = vrot.lane.b32.xlu2 %v368_v11, %s639_s26  ;;  %v281_v12 = vsel %vm691_vm2, %v368_v11, 0.0  ;;  %v399_v63 = vld [vmem:[#allocation3 + $0x8] sm:$0xff] }
  0x93   : > { %332 = vrot.lane.b32.xlu0 %v368_v11, %s641_s28  ;;  %284 = vst.msk [vmem:[#allocation3] sm:$0xff] %vm283_vm3, %v281_v12 }
  0x9a   : > { %334 = vrot.lane.b32.xlu2 %v369_v9, %s641_s28  ;;  %344 = vrot.lane.b32.xlu1 %v368_v11, %s640_s27  ;;  %v398_v2 = vld [vmem:[#allocation3] sm:$0xff]  ;;  %s239_s28 = scalar_lea.vmem %s782_s4, %s685_s20 }
  0x9b   : > { %306 = vrot.lane.b32.xlu0 %v369_v9, %s642_s29  ;;  %v497_v10 = vld [vmem:[%s239_s28] sm:$0xff] }
  0xa2   : > { %320 = vrot.lane.b32.xlu1 %v369_v9, %s643_s30  ;;  %318 = vrot.lane.b32.xlu2 %v368_v11, %s643_s30 }
  0xa3   : > { %386 = vrot.lane.b32.xlu0 %v369_v9, %s644_s6 }
  0xaa   : > { %292 = vrot.lane.b32.xlu2 %v369_v9, %s645_s7  ;;  %304 = vrot.lane.b32.xlu1 %v368_v11, %s642_s29 }
  0xab   : > { %473 = vperm.xlu0 %625, %v469_v39  }
  0xb2   : > { %384 = vrot.lane.b32.xlu2 %v368_v11, %s644_s6  ;;  %290 = vrot.lane.b32.xlu1 %v368_v11, %s645_s7  ;;  %s244_s6 = scalar_lea.vmem %s783_s5, %s685_s20 }
  0xba   : > { %478 = vperm.xlu1 %626, %v470_v38   ;;  %487 = vperm.xlu2 %627, %v483_v46  }
  0xc2   : > { %492 = vperm.xlu1 %626, %v484_v49  }
  0xe4   : > { %v361_v13 = vpop.permute.xlu2 %360 }
  0xe5   : > { %v365_v14 = vsel %vm691_vm2, %v361_v13, 0.0 }
  0xe6   : > { %367 = vst.msk [vmem:[#allocation3 + $0x68] sm:$0xff] %vm283_vm3, %v365_v14 }
  0xec   : > { %v359_v15 = vpop.permute.xlu2 %358 }
  0xed   : > { %v364_v16 = vsel %vm691_vm2, %v359_v15, 0.0  ;;  %v411_v35 = vld [vmem:[#allocation3 + $0x68] sm:$0xff] }
  0xee   : > { %366 = vst.msk [vmem:[#allocation3 + $0x60] sm:$0xff] %vm283_vm3, %v364_v16 }
  0xf4   : > { %v335_v17 = vpop.permute.xlu2 %334 }
  0xf5   : > { %339 = vst.msk [vmem:[#allocation3 + $0x48] sm:$0xff] %vm283_vm3, %v335_v17  ;;  %v410_v36 = vld [vmem:[#allocation3 + $0x60] sm:$0xff] }
  0xfc   : > { %v375_v19 = vpop.permute.xlu1 %374  ;;  %v319_v20 = vpop.permute.xlu2 %318  ;;  %v407_v47 = vld [vmem:[#allocation3 + $0x48] sm:$0xff] }
  0xfd   : > { %379 = vst.msk [vmem:[#allocation3 + $0x78] sm:$0xff] %vm283_vm3, %v375_v19  ;;  %v324_v21 = vsel %vm691_vm2, %v319_v20, 0.0  ;;  %v347_v22 = vpop.permute.xlu0 %346  ;;  %v498_v19 = vld [vmem:[%s239_s28 + $0x8] sm:$0xff] }
  0xfe   : > { %326 = vst.msk [vmem:[#allocation3 + $0x30] sm:$0xff] %vm283_vm3, %v324_v21  ;;  %v351_v23 = vsel %vm708_vm4, %v347_v22, 0.0 }
  0xff   : > { %353 = vst.msk [vmem:[#allocation3 + $0x58] sm:$0xff] %vm283_vm3, %v351_v23 }
 0x104   : > { %v373_v24 = vpop.permute.xlu1 %372  ;;  %v293_v25 = vpop.permute.xlu2 %292  ;;  %v413_v26 = vld [vmem:[#allocation3 + $0x78] sm:$0xff] }
 0x105   : > { %378 = vst.msk [vmem:[#allocation3 + $0x70] sm:$0xff] %vm283_vm3, %v373_v24  ;;  %v333_v27 = vpop.permute.xlu0 %332  ;;  %423 = vmatpush.msra.mxu0 %v413_v26  ;;  %590 = vmatpush.msra.mxu2 %v413_v26  ;;  %v404_v54 = vld [vmem:[#allocation3 + $0x30] sm:$0xff] }
 0x106   : > { %297 = vst.msk [vmem:[#allocation3 + $0x18] sm:$0xff] %vm283_vm3, %v293_v25  ;;  %v409_v37 = vld [vmem:[#allocation3 + $0x58] sm:$0xff] }
 0x107   : > { %338 = vst.msk [vmem:[#allocation3 + $0x40] sm:$0xff] %vm283_vm3, %v333_v27 }
 0x10c   : > { %v345_v28 = vpop.permute.xlu1 %344  ;;  %v385_v29 = vpop.permute.xlu2 %384  ;;  %v412_v30 = vld [vmem:[#allocation3 + $0x70] sm:$0xff] }
 0x10d   : > { %v350_v31 = vsel %vm708_vm4, %v345_v28, 0.0  ;;  %v390_v32 = vsel %vm708_vm4, %v385_v29, 0.0  ;;  %v307_v33 = vpop.permute.xlu0 %306  ;;  %424 = vmatpush.msra.mxu0 %v412_v30  ;;  %591 = vmatpush.msra.mxu2 %v412_v30  ;;  %v401_v60 = vld [vmem:[#allocation3 + $0x18] sm:$0xff] }
 0x10e   : > { %352 = vst.msk [vmem:[#allocation3 + $0x50] sm:$0xff] %vm283_vm3, %v350_v31  ;;  %v311_v34 = vsel %vm708_vm4, %v307_v33, 0.0  ;;  %v406_v48 = vld [vmem:[#allocation3 + $0x40] sm:$0xff] }
 0x10f   : > { %392 = vst.msk [vmem:[#allocation3 + $0x80] sm:$0xff] %vm283_vm3, %v390_v32  ;;  %425 = vmatpush.msra.mxu0 %v411_v35  ;;  %592 = vmatpush.msra.mxu2 %v411_v35 }
 0x110   : > { %313 = vst.msk [vmem:[#allocation3 + $0x28] sm:$0xff] %vm283_vm3, %v311_v34 }
 0x111   : > { %426 = vmatpush.msra.mxu0 %v410_v36  ;;  %593 = vmatpush.msra.mxu2 %v410_v36 }
 0x113   : > { %427 = vmatpush.msra.mxu0 %v409_v37  ;;  %594 = vmatpush.msra.mxu2 %v409_v37 }
 0x114   : > { %v321_v40 = vpop.permute.xlu1 %320  ;;  %v488_v8 = vpop.permute.xlu2 %487 }
 0x115   : > { %v325_v42 = vsel %vm691_vm2, %v321_v40, 0.0  ;;  %v387_v43 = vpop.permute.xlu0 %386  ;;  %v408_v44 = vld [vmem:[#allocation3 + $0x50] sm:$0xff] }
 0x116   : > { %327 = vst.msk [vmem:[#allocation3 + $0x38] sm:$0xff] %vm283_vm3, %v325_v42  ;;  %v391_v45 = vsel %vm708_vm4, %v387_v43, 0.0  ;;  %428 = vmatpush.msra.mxu0 %v408_v44  ;;  %595 = vmatpush.msra.mxu2 %v408_v44  ;;  %v414_v55 = vld [vmem:[#allocation3 + $0x80] sm:$0xff] }
 0x117   : > { %393 = vst.msk [vmem:[#allocation3 + $0x88] sm:$0xff] %vm283_vm3, %v391_v45  ;;  %v403_v57 = vld [vmem:[#allocation3 + $0x28] sm:$0xff] }
 0x118   : > { %429 = vmatpush.msra.mxu0 %v407_v47  ;;  %596 = vmatpush.msra.mxu2 %v407_v47 }
 0x11a   : > { %430 = vmatpush.msra.mxu0 %v406_v48  ;;  %597 = vmatpush.msra.mxu2 %v406_v48 }
 0x11c   : > { %v305_v50 = vpop.permute.xlu1 %304 }
 0x11d   : > { %v310_v51 = vsel %vm708_vm4, %v305_v50, 0.0  ;;  %v405_v52 = vld [vmem:[#allocation3 + $0x38] sm:$0xff]  ;;  %v474_v6 = vpop.permute.xlu0 %473 }
 0x11e   : > { %312 = vst.msk [vmem:[#allocation3 + $0x20] sm:$0xff] %vm283_vm3, %v310_v51  ;;  %431 = vmatpush.msra.mxu0 %v405_v52  ;;  %598 = vmatpush.msra.mxu2 %v405_v52  ;;  %v415_v53 = vld [vmem:[#allocation3 + $0x88] sm:$0xff] }
 0x11f   : > { %460 = vmatpush.msra.mxu1 %v415_v53 }
 0x120   : > { %432 = vmatpush.msra.mxu0 %v404_v54  ;;  %599 = vmatpush.msra.mxu2 %v404_v54 }
 0x121   : > { %461 = vmatpush.msra.mxu1 %v414_v55 }
 0x122   : > { %433 = vmatpush.msra.mxu0 %v403_v57  ;;  %600 = vmatpush.msra.mxu2 %v403_v57 }
 0x123   : > { %583 = vmatmul.msk.f32.vlgmr.msra.gmra.mxu1 %vm416_vm5, %v395_v56 }
 0x124   : > { %v291_v58 = vpop.permute.xlu1 %290 }
 0x125   : > { %296 = vst.msk [vmem:[#allocation3 + $0x10] sm:$0xff] %vm283_vm3, %v291_v58  ;;  %v402_v59 = vld [vmem:[#allocation3 + $0x20] sm:$0xff] }
 0x126   : > { %434 = vmatpush.msra.mxu0 %v402_v59  ;;  %601 = vmatpush.msra.mxu2 %v402_v59 }
 0x128   : > { %435 = vmatpush.msra.mxu0 %v401_v60  ;;  %602 = vmatpush.msra.mxu2 %v401_v60 }
 0x12b   : > { %584 = vmatmul.msk.f32.gmra.mxu1 %vm416_vm5, %v397_v61 }
 0x12c   : > { %v400_v62 = vld [vmem:[#allocation3 + $0x10] sm:$0xff]  ;;  %v479_v4 = vpop.permute.xlu1 %478 }
 0x12d   : > { %436 = vmatpush.msra.mxu0 %v400_v62  ;;  %603 = vmatpush.msra.mxu2 %v400_v62 }
 0x12f   : > { %437 = vmatpush.msra.mxu0 %v399_v63  ;;  %604 = vmatpush.msra.mxu2 %v399_v63 }
 0x131   : > { %438 = vmatpush.msra.mxu0 %v398_v2  ;;  %605 = vmatpush.msra.mxu2 %v398_v2 }
 0x132   : > { %439 = vmatmul.f32.vlgmr.msra.gmra.mxu0 %v394_v0  ;;  %442 = vmatmul.f32.vlgmr.msra.gmra.mxu2 %v396_v1 }
 0x134   : > { %v493_v18 = vpop.permute.xlu1 %492 }
 0x1a0   : > { %v463_v3 = vpop.f32.mrf.mxu1 }
 0x1a8   : > { %v466_v11 = vpop.f32.mrf.mxu1 }
 0x1af   : > { %v440_v5 = vpop.f32.mrf.mxu0 }
 0x1b0   : > { %v464_v7 = vadd.f32 %v463_v3, %v440_v5 }
 0x1b2   : > { %v481_v9 = vmul.f32 %v474_v6, %v464_v7 }
 0x1b4   : > { %v495_v12 = vadd.f32 %v488_v8, %v481_v9 }
 0x1b5   : > { %v443_v13 = vpop.f32.mrf.mxu2 }
 0x1b6   : > { %v499_v14 = vadd.f32 %v497_v10, %v495_v12  ;;  %v467_v15 = vadd.f32 %v466_v11, %v443_v13 }
 0x1b8   : > { %v501_v16 = vmax.f32 %v499_v14, 0.0  ;;  %v482_v17 = vmul.f32 %v479_v4, %v467_v15 }
 0x1ba   : > { %503 = vst.msk [vmem:[%s244_s6] sm:$0xff] %vm283_vm3, %v501_v16  ;;  %v496_v20 = vadd.f32 %v493_v18, %v482_v17 }
 0x1bc   : > { %v500_v21 = vadd.f32 %v498_v19, %v496_v20 }
 0x1be   : > { %v502_v22 = vmax.f32 %v500_v21, 0.0 }
 0x1c0   : > { %504 = vst.msk [vmem:[%s244_s6 + $0x8] sm:$0xff] %vm283_vm3, %v502_v22 }
 0x1c1 PF: > { %s15_s18 = sadd.s32 1, %s634_s18  }
 0x1c2   : > { %p12_p4 = scmp.ge.s32.totalorder %s15_s18, 4  }
 0x1c4   :  { %14 = sbr.rel (!%p12_p4) target bundleno = 1 (0x1), region = 73 }

// kernel: representation_forward.13
= control target key start
LH: loop header
LB: loop body
LE: loop exit
PB: predicated region body
PF: predicated region fallthrough
CT: control target
= control target key end

     0   :  { %s1010_s24 = smov 0   ;;  %s1272_s0 = inlined_call_operand.vmem [shape: f32[2,16,64], index: 0, kind: input, shape index: {}]   ;;  %s1273_s1 = inlined_call_operand.vmem [shape: f32[16,144], index: 1, kind: input, shape index: {}]   ;;  %s1274_s2 = inlined_call_operand.vmem [shape: f32[16,1], index: 2, kind: input, shape index: {}]   ;;  %s1275_s3 = inlined_call_operand.vmem [shape: f32[16,1], index: 3, kind: input, shape index: {}]   ;;  %s1276_s4 = inlined_call_operand.vmem [shape: f32[16,144], index: 4, kind: input, shape index: {}]   ;;  %s1277_s5 = inlined_call_operand.vmem [shape: f32[16,1], index: 5, kind: input, shape index: {}]   ;;  %s1278_s6 = inlined_call_operand.vmem [shape: f32[16,1], index: 6, kind: input, shape index: {}]   ;;  %s1279_s7 = inlined_call_operand.vmem [shape: f32[2,16,64], index: 7, kind: output, shape index: {}]  }
   0x1 LB: > { %s912_s25 = sadd.s32 4294967295, %s957_s24   ;;  %p916_p0 = scmp.ge.s32.totalorder %s957_s24, 1  ;;  %s957_s24 = sphi %s1010_s24, %s17_s24  }
   0x2   : > { %p237_p1 = scmp.lt.s32.totalorder %s957_s24, 3 }
   0x4   : > { %p238_p2 = pnand %p916_p0, %p237_p1 }
   0x5   : > { %p269_p3 = scmp.lt.s32.totalorder (!%p238_p2), %s912_s25, 1  ;;  %s960_s30 = smov (!%p238_p2), 9  }
   0x6   : > { %241 = sbr.rel (%p238_p2) target bundleno = 1147 (0x47b), region = 48  ;;  %s961_s8 = smov (!%p238_p2), 111  }
   0x7   : > { %s962_s9 = smov (!%p238_p2), 112   ;;  %s963_s10 = smov (!%p238_p2), 118  }
   0x8   : > { %s964_s11 = smov (!%p238_p2), 119   ;;  %s965_s12 = smov (!%p238_p2), 126  }
   0x9   : > { %s966_s13 = smov (!%p238_p2), 120   ;;  %s967_s14 = smov (!%p238_p2), 127  }
   0xa   : > { %s968_s15 = smov (!%p238_p2), 110  }
   0xb   : > { %vm279_vm0 = vcmask 670720   ;;  %v959_v0 = vmov 0.0   ;;  %s1285_s25 = smov (!%p269_p3, %s912_s25), 1  ;;  %v295_v3 = vlaneseq  ;;  %vm292_vm1 = vcmask 597064   ;;  %v503_v36 = vld [vmem:[%s1274_s2] sm:$0xff]  ;;  %v504_v47 = vld [vmem:[%s1274_s2 + $0x8] sm:$0xff] }
   0xc   : > { %281 = vst.msk [vmem:[#allocation2 + $0x8] sm:$0xff] %vm279_vm0, %v959_v0  ;;  %s927_s26 = sshll.u32 %s1285_s25, 4  ;;  %vm317_vm3 = vcmask 523264   ;;  %v969_v37 = vmov 0   ;;  %v517_v44 = vld [vmem:[%s1275_s3] sm:$0xff]  ;;  %v518_v48 = vld [vmem:[%s1275_s3 + $0x8] sm:$0xff] }
   0xd   : > { %280 = vst.msk [vmem:[#allocation2] sm:$0xff] %vm279_vm0, %v959_v0  ;;  %s273_s29 = scalar_lea.vmem %s1272_s0, %s927_s26  ;;  %v296_v4 = vand.u32 127, %v295_v3  ;;  %949 = vset.pattern.permute.xlu1 %v969_v37  ;;  %948 = vset.pattern.permute.xlu0 %v969_v37  ;;  %v428_v60 = vld [vmem:[%s1273_s1] sm:$0xff]  ;;  %v429_v63 = vld [vmem:[%s1273_s1 + $0x8] sm:$0xff]  ;;  %vm450_vm5 = vcmask 130048   ;;  %v430_v3 = vld [vmem:[%s1273_s1 + $0x10] sm:$0xff] }
   0xe   : > { %v1026_v1 = vld [vmem:[%s273_s29 + $0x8] sm:$0xff]  ;;  %v1030_v2 = vld [vmem:[%s273_s29] sm:$0xff]  ;;  %950 = vset.pattern.permute.xlu2 %v969_v37 }
   0xf   : > { %288 = vrot.lane.b32.xlu0 %v1026_v1, %s960_s30  ;;  %v301_v6 = vand.u32 7, %v296_v4  ;;  %v431_v4 = vld [vmem:[%s1273_s1 + $0x18] sm:$0xff] }
  0x11   : > { %vm1035_vm2 = vcmp.ne.s32.totalorder %v301_v6, 0  ;;  %vm1069_vm4 = vcmp.ne.s32.totalorder %v301_v6, 7 }
  0x17   : > { %286 = vrot.lane.b32.xlu0 %v1030_v2, %s960_s30 }
  0x81   : > { %v289_v5 = vpop.permute.xlu0 %288 }
  0x82   : > { %294 = vst.msk [vmem:[#allocation2 + $0x8] sm:$0xff] %vm292_vm1, %v289_v5 }
  0x89   : > { %v312_v8 = vld [vmem:[#allocation2 + $0x8] sm:$0xff]  ;;  %v287_v9 = vpop.permute.xlu0 %286 }
  0x8a   : > { %293 = vst.msk [vmem:[#allocation2] sm:$0xff] %vm292_vm1, %v287_v9  ;;  %408 = vrot.lane.b32.xlu1 %v312_v8, %s961_s8  ;;  %394 = vrot.lane.b32.xlu2 %v312_v8, %s962_s9  ;;  %v316_v10 = vsel %vm1035_vm2, %v312_v8, 0.0 }
  0x8b   : > { %380 = vrot.lane.b32.xlu0 %v312_v8, %s963_s10  ;;  %319 = vst.msk [vmem:[#allocation3 + $0x8] sm:$0xff] %vm317_vm3, %v316_v10 }
  0x91   : > { %v311_v11 = vld [vmem:[#allocation2] sm:$0xff] }
  0x92   : > { %406 = vrot.lane.b32.xlu1 %v311_v11, %s961_s8  ;;  %392 = vrot.lane.b32.xlu2 %v311_v11, %s962_s9  ;;  %v315_v12 = vsel %vm1035_vm2, %v311_v11, 0.0  ;;  %v433_v59 = vld [vmem:[#allocation3 + $0x8] sm:$0xff] }
  0x93   : > { %366 = vrot.lane.b32.xlu0 %v311_v11, %s964_s11  ;;  %318 = vst.msk [vmem:[#allocation3] sm:$0xff] %vm317_vm3, %v315_v12 }
  0x9a   : > { %368 = vrot.lane.b32.xlu2 %v312_v8, %s964_s11  ;;  %378 = vrot.lane.b32.xlu1 %v311_v11, %s963_s10  ;;  %v432_v61 = vld [vmem:[#allocation3] sm:$0xff] }
  0x9b   : > { %340 = vrot.lane.b32.xlu0 %v312_v8, %s965_s12 }
  0xa2   : > { %354 = vrot.lane.b32.xlu1 %v312_v8, %s966_s13  ;;  %352 = vrot.lane.b32.xlu2 %v311_v11, %s966_s13 }
  0xa3   : > { %324 = vrot.lane.b32.xlu0 %v311_v11, %s967_s14 }
  0xaa   : > { %326 = vrot.lane.b32.xlu2 %v312_v8, %s967_s14  ;;  %338 = vrot.lane.b32.xlu1 %v311_v11, %s965_s12 }
  0xab   : > { %512 = vperm.xlu0 %948, %v504_v47  }
  0xb2   : > { %418 = vrot.lane.b32.xlu2 %v311_v11, %s968_s15  ;;  %420 = vrot.lane.b32.xlu1 %v312_v8, %s968_s15 }
  0xba   : > { %507 = vperm.xlu1 %949, %v503_v36   ;;  %526 = vperm.xlu2 %950, %v518_v48  }
  0xc2   : > { %521 = vperm.xlu1 %949, %v517_v44  }
  0xe4   : > { %v395_v13 = vpop.permute.xlu2 %394 }
  0xe5   : > { %v399_v14 = vsel %vm1035_vm2, %v395_v13, 0.0 }
  0xe6   : > { %401 = vst.msk [vmem:[#allocation3 + $0x68] sm:$0xff] %vm317_vm3, %v399_v14 }
  0xec   : > { %v393_v15 = vpop.permute.xlu2 %392 }
  0xed   : > { %v398_v16 = vsel %vm1035_vm2, %v393_v15, 0.0  ;;  %v445_v35 = vld [vmem:[#allocation3 + $0x68] sm:$0xff] }
  0xee   : > { %400 = vst.msk [vmem:[#allocation3 + $0x60] sm:$0xff] %vm317_vm3, %v398_v16 }
  0xf4   : > { %v369_v17 = vpop.permute.xlu2 %368 }
  0xf5   : > { %373 = vst.msk [vmem:[#allocation3 + $0x48] sm:$0xff] %vm317_vm3, %v369_v17  ;;  %v444_v38 = vld [vmem:[#allocation3 + $0x60] sm:$0xff] }
  0xfc   : > { %v409_v19 = vpop.permute.xlu1 %408  ;;  %v353_v20 = vpop.permute.xlu2 %352  ;;  %v441_v45 = vld [vmem:[#allocation3 + $0x48] sm:$0xff] }
  0xfd   : > { %413 = vst.msk [vmem:[#allocation3 + $0x78] sm:$0xff] %vm317_vm3, %v409_v19  ;;  %v358_v21 = vsel %vm1035_vm2, %v353_v20, 0.0  ;;  %v381_v22 = vpop.permute.xlu0 %380 }
  0xfe   : > { %360 = vst.msk [vmem:[#allocation3 + $0x30] sm:$0xff] %vm317_vm3, %v358_v21  ;;  %v385_v23 = vsel %vm1069_vm4, %v381_v22, 0.0 }
  0xff   : > { %387 = vst.msk [vmem:[#allocation3 + $0x58] sm:$0xff] %vm317_vm3, %v385_v23 }
 0x104   : > { %v407_v24 = vpop.permute.xlu1 %406  ;;  %v327_v25 = vpop.permute.xlu2 %326  ;;  %v447_v26 = vld [vmem:[#allocation3 + $0x78] sm:$0xff] }
 0x105   : > { %412 = vst.msk [vmem:[#allocation3 + $0x70] sm:$0xff] %vm317_vm3, %v407_v24  ;;  %v367_v27 = vpop.permute.xlu0 %366  ;;  %457 = vmatpush.msra.mxu0 %v447_v26  ;;  %v438_v52 = vld [vmem:[#allocation3 + $0x30] sm:$0xff] }
 0x106   : > { %331 = vst.msk [vmem:[#allocation3 + $0x18] sm:$0xff] %vm317_vm3, %v327_v25  ;;  %v443_v39 = vld [vmem:[#allocation3 + $0x58] sm:$0xff] }
 0x107   : > { %372 = vst.msk [vmem:[#allocation3 + $0x40] sm:$0xff] %vm317_vm3, %v367_v27 }
 0x10c   : > { %v379_v28 = vpop.permute.xlu1 %378  ;;  %v419_v29 = vpop.permute.xlu2 %418  ;;  %v446_v30 = vld [vmem:[#allocation3 + $0x70] sm:$0xff] }
 0x10d   : > { %v384_v31 = vsel %vm1069_vm4, %v379_v28, 0.0  ;;  %v424_v32 = vsel %vm1069_vm4, %v419_v29, 0.0  ;;  %v341_v33 = vpop.permute.xlu0 %340  ;;  %458 = vmatpush.msra.mxu0 %v446_v30  ;;  %v435_v57 = vld [vmem:[#allocation3 + $0x18] sm:$0xff]  ;;  %v729_v29 = vld [vmem:[%s1277_s5] sm:$0xff] }
 0x10e   : > { %386 = vst.msk [vmem:[#allocation3 + $0x50] sm:$0xff] %vm317_vm3, %v384_v31  ;;  %v345_v34 = vsel %vm1069_vm4, %v341_v33, 0.0  ;;  %v440_v46 = vld [vmem:[#allocation3 + $0x40] sm:$0xff]  ;;  %v730_v30 = vld [vmem:[%s1277_s5 + $0x8] sm:$0xff]  ;;  %v743_v31 = vld [vmem:[%s1278_s6] sm:$0xff] }
 0x10f   : > { %426 = vst.msk [vmem:[#allocation3 + $0x80] sm:$0xff] %vm317_vm3, %v424_v32  ;;  %459 = vmatpush.msra.mxu0 %v445_v35  ;;  %v744_v32 = vld [vmem:[%s1278_s6 + $0x8] sm:$0xff] }
 0x110   : > { %347 = vst.msk [vmem:[#allocation3 + $0x28] sm:$0xff] %vm317_vm3, %v345_v34 }
 0x111   : > { %460 = vmatpush.msra.mxu0 %v444_v38 }
 0x113   : > { %461 = vmatpush.msra.mxu0 %v443_v39 }
 0x114   : > { %v355_v40 = vpop.permute.xlu1 %354  ;;  %v527_v19 = vpop.permute.xlu2 %526 }
 0x115   : > { %v359_v41 = vsel %vm1035_vm2, %v355_v40, 0.0  ;;  %v325_v42 = vpop.permute.xlu0 %324  ;;  %v442_v43 = vld [vmem:[#allocation3 + $0x50] sm:$0xff] }
 0x116   : > { %361 = vst.msk [vmem:[#allocation3 + $0x38] sm:$0xff] %vm317_vm3, %v359_v41  ;;  %462 = vmatpush.msra.mxu0 %v442_v43  ;;  %v448_v0 = vld [vmem:[#allocation3 + $0x80] sm:$0xff] }
 0x117   : > { %330 = vst.msk [vmem:[#allocation3 + $0x10] sm:$0xff] %vm317_vm3, %v325_v42  ;;  %v437_v53 = vld [vmem:[#allocation3 + $0x28] sm:$0xff] }
 0x118   : > { %463 = vmatpush.msra.mxu0 %v441_v45 }
 0x11a   : > { %464 = vmatpush.msra.mxu0 %v440_v46 }
 0x11c   : > { %v339_v49 = vpop.permute.xlu1 %338 }
 0x11d   : > { %v344_v50 = vsel %vm1069_vm4, %v339_v49, 0.0  ;;  %v439_v51 = vld [vmem:[#allocation3 + $0x38] sm:$0xff]  ;;  %v513_v16 = vpop.permute.xlu0 %512 }
 0x11e   : > { %346 = vst.msk [vmem:[#allocation3 + $0x20] sm:$0xff] %vm317_vm3, %v344_v50  ;;  %465 = vmatpush.msra.mxu0 %v439_v51  ;;  %v434_v58 = vld [vmem:[#allocation3 + $0x10] sm:$0xff] }
 0x120   : > { %466 = vmatpush.msra.mxu0 %v438_v52 }
 0x122   : > { %467 = vmatpush.msra.mxu0 %v437_v53 }
 0x124   : > { %v421_v54 = vpop.permute.xlu1 %420 }
 0x125   : > { %v425_v55 = vsel %vm1069_vm4, %v421_v54, 0.0  ;;  %v436_v56 = vld [vmem:[#allocation3 + $0x20] sm:$0xff] }
 0x126   : > { %427 = vst.msk [vmem:[#allocation3 + $0x88] sm:$0xff] %vm317_vm3, %v425_v55  ;;  %468 = vmatpush.msra.mxu0 %v436_v56 }
 0x128   : > { %469 = vmatpush.msra.mxu0 %v435_v57 }
 0x12a   : > { %470 = vmatpush.msra.mxu0 %v434_v58 }
 0x12c   : > { %471 = vmatpush.msra.mxu0 %v433_v59  ;;  %v508_v5 = vpop.permute.xlu1 %507 }
 0x12d   : > { %v449_v62 = vld [vmem:[#allocation3 + $0x88] sm:$0xff] }
 0x12e   : > { %472 = vmatpush.msra.mxu0 %v432_v61  ;;  %494 = vmatpush.msra.mxu1 %v449_v62 }
 0x12f   : > { %473 = vmatmul.f32.vlgmr.msra.gmra.mxu0 %v428_v60 }
 0x130   : > { %495 = vmatpush.msra.mxu1 %v448_v0 }
 0x131   : > { %921 = vmatmul.msk.f32.vlgmr.msra.gmra.mxu1 %vm450_vm5, %v429_v63 }
 0x134   : > { %v522_v11 = vpop.permute.xlu1 %521 }
 0x137   : > { %476 = vmatmul.f32.gmra.mxu0 %v430_v3 }
 0x139   : > { %922 = vmatmul.msk.f32.gmra.mxu1 %vm450_vm5, %v431_v4 }
 0x1ac   : > { %v474_v6 = vpop.f32.mrf.mxu0 }
 0x1ae   : > { %v497_v8 = vpop.f32.mrf.mxu1 }
 0x1af   : > { %v498_v9 = vadd.f32 %v497_v8, %v474_v6 }
 0x1b1   : > { %v515_v10 = vmul.f32 %v508_v5, %v498_v9 }
 0x1b3   : > { %v529_v12 = vadd.f32 %v522_v11, %v515_v10 }
 0x1b4   : > { %v477_v13 = vpop.f32.mrf.mxu0 }
 0x1b5   : > { %v531_v14 = vmax.f32 %v529_v12, 0.0 }
 0x1b6   : > { %v500_v15 = vpop.f32.mrf.mxu1 }
 0x1b7   : > { %535 = vrot.lane.b32.xlu0 %v531_v14, %s960_s30  ;;  %v501_v17 = vadd.f32 %v500_v15, %v477_v13  ;;  %v655_v14 = vld [vmem:[%s1276_s4] sm:$0xff] }
 0x1b9   : > { %v516_v20 = vmul.f32 %v513_v16, %v501_v17  ;;  %v656_v16 = vld [vmem:[%s1276_s4 + $0x8] sm:$0xff] }
 0x1bb   : > { %v530_v21 = vadd.f32 %v527_v19, %v516_v20  ;;  %v657_v19 = vld [vmem:[%s1276_s4 + $0x10] sm:$0xff]  ;;  %v658_v20 = vld [vmem:[%s1276_s4 + $0x18] sm:$0xff] }
 0x1bd   : > { %v532_v22 = vmax.f32 %v530_v21, 0.0 }
 0x1bf   : > { %537 = vrot.lane.b32.xlu2 %v532_v22, %s960_s30 }
 0x219   : > { %v538_v23 = vpop.permute.xlu2 %537 }
 0x21a   : > { %542 = vst.msk [vmem:[#allocation2 + $0x8] sm:$0xff] %vm292_vm1, %v538_v23 }
 0x221   : > { %v602_v24 = vld [vmem:[#allocation2 + $0x8] sm:$0xff] }
 0x222   : > { %v546_v25 = vsel %vm1035_vm2, %v602_v24, 0.0 }
 0x223   : > { %548 = vst.msk [vmem:[#allocation3 + $0x8] sm:$0xff] %vm317_vm3, %v546_v25 }
 0x229   : > { %v536_v26 = vpop.permute.xlu0 %535 }
 0x22a   : > { %541 = vst.msk [vmem:[#allocation2] sm:$0xff] %vm292_vm1, %v536_v26  ;;  %v660_v13 = vld [vmem:[#allocation3 + $0x8] sm:$0xff] }
 0x231   : > { %v629_v27 = vld [vmem:[#allocation2] sm:$0xff] }
 0x232   : > { %633 = vrot.lane.b32.xlu2 %v629_v27, %s961_s8  ;;  %619 = vrot.lane.b32.xlu1 %v629_v27, %s962_s9  ;;  %v545_v28 = vsel %vm1035_vm2, %v629_v27, 0.0 }
 0x233   : > { %605 = vrot.lane.b32.xlu0 %v629_v27, %s963_s10  ;;  %547 = vst.msk [vmem:[#allocation3] sm:$0xff] %vm317_vm3, %v545_v28 }
 0x23a   : > { %607 = vrot.lane.b32.xlu2 %v602_v24, %s963_s10  ;;  %635 = vrot.lane.b32.xlu1 %v602_v24, %s961_s8  ;;  %v659_v15 = vld [vmem:[#allocation3] sm:$0xff] }
 0x23b   : > { %621 = vrot.lane.b32.xlu0 %v602_v24, %s962_s9 }
 0x242   : > { %595 = vrot.lane.b32.xlu1 %v602_v24, %s964_s11  ;;  %593 = vrot.lane.b32.xlu2 %v629_v27, %s964_s11 }
 0x243   : > { %581 = vrot.lane.b32.xlu0 %v602_v24, %s966_s13 }
 0x24a   : > { %567 = vrot.lane.b32.xlu2 %v602_v24, %s965_s12  ;;  %579 = vrot.lane.b32.xlu1 %v629_v27, %s966_s13 }
 0x24b   : > { %565 = vrot.lane.b32.xlu0 %v629_v27, %s965_s12 }
 0x252   : > { %555 = vrot.lane.b32.xlu1 %v602_v24, %s967_s14  ;;  %553 = vrot.lane.b32.xlu2 %v629_v27, %s967_s14 }
 0x253   : > { %647 = vrot.lane.b32.xlu0 %v602_v24, %s968_s15 }
 0x25a   : > { %645 = vrot.lane.b32.xlu1 %v629_v27, %s968_s15  ;;  %733 = vperm.xlu2 %950, %v729_v29  }
 0x25b   : > { %738 = vperm.xlu0 %948, %v730_v30  }
 0x262   : > { %747 = vperm.xlu1 %949, %v743_v31   ;;  %752 = vperm.xlu2 %950, %v744_v32  }
 0x28c   : > { %v634_v33 = vpop.permute.xlu2 %633 }
 0x28d   : > { %639 = vst.msk [vmem:[#allocation3 + $0x70] sm:$0xff] %vm317_vm3, %v634_v33 }
 0x294   : > { %v608_v34 = vpop.permute.xlu2 %607  ;;  %v673_v51 = vld [vmem:[#allocation3 + $0x70] sm:$0xff] }
 0x295   : > { %v612_v35 = vsel %vm1069_vm4, %v608_v34, 0.0 }
 0x296   : > { %614 = vst.msk [vmem:[#allocation3 + $0x58] sm:$0xff] %vm317_vm3, %v612_v35 }
 0x29c   : > { %v594_v36 = vpop.permute.xlu2 %593 }
 0x29d   : > { %599 = vst.msk [vmem:[#allocation3 + $0x40] sm:$0xff] %vm317_vm3, %v594_v36  ;;  %v670_v55 = vld [vmem:[#allocation3 + $0x58] sm:$0xff] }
 0x2a4   : > { %v620_v37 = vpop.permute.xlu1 %619  ;;  %v568_v38 = vpop.permute.xlu2 %567  ;;  %v667_v61 = vld [vmem:[#allocation3 + $0x40] sm:$0xff] }
 0x2a5   : > { %v625_v39 = vsel %vm1035_vm2, %v620_v37, 0.0  ;;  %v606_v40 = vpop.permute.xlu0 %605  ;;  %v572_v41 = vsel %vm1069_vm4, %v568_v38, 0.0 }
 0x2a6   : > { %627 = vst.msk [vmem:[#allocation3 + $0x60] sm:$0xff] %vm317_vm3, %v625_v39  ;;  %v611_v42 = vsel %vm1069_vm4, %v606_v40, 0.0 }
 0x2a7   : > { %613 = vst.msk [vmem:[#allocation3 + $0x50] sm:$0xff] %vm317_vm3, %v611_v42 }
 0x2a8   : > { %574 = vst.msk [vmem:[#allocation3 + $0x28] sm:$0xff] %vm317_vm3, %v572_v41 }
 0x2ac   : > { %v636_v43 = vpop.permute.xlu1 %635  ;;  %v554_v44 = vpop.permute.xlu2 %553 }
 0x2ad   : > { %640 = vst.msk [vmem:[#allocation3 + $0x78] sm:$0xff] %vm317_vm3, %v636_v43  ;;  %v622_v45 = vpop.permute.xlu0 %621  ;;  %v671_v53 = vld [vmem:[#allocation3 + $0x60] sm:$0xff] }
 0x2ae   : > { %v626_v46 = vsel %vm1035_vm2, %v622_v45, 0.0  ;;  %559 = vst.msk [vmem:[#allocation3 + $0x10] sm:$0xff] %vm317_vm3, %v554_v44  ;;  %v669_v59 = vld [vmem:[#allocation3 + $0x50] sm:$0xff] }
 0x2af   : > { %628 = vst.msk [vmem:[#allocation3 + $0x68] sm:$0xff] %vm317_vm3, %v626_v46  ;;  %v664_v5 = vld [vmem:[#allocation3 + $0x28] sm:$0xff] }
 0x2b4   : > { %v596_v47 = vpop.permute.xlu1 %595  ;;  %v674_v48 = vld [vmem:[#allocation3 + $0x78] sm:$0xff]  ;;  %v734_v24 = vpop.permute.xlu2 %733 }
 0x2b5   : > { %600 = vst.msk [vmem:[#allocation3 + $0x48] sm:$0xff] %vm317_vm3, %v596_v47  ;;  %v582_v49 = vpop.permute.xlu0 %581  ;;  %683 = vmatpush.msra.mxu2 %v674_v48  ;;  %v661_v12 = vld [vmem:[#allocation3 + $0x10] sm:$0xff] }
 0x2b6   : > { %v586_v50 = vsel %vm1035_vm2, %v582_v49, 0.0  ;;  %v672_v52 = vld [vmem:[#allocation3 + $0x68] sm:$0xff] }
 0x2b7   : > { %588 = vst.msk [vmem:[#allocation3 + $0x38] sm:$0xff] %vm317_vm3, %v586_v50  ;;  %684 = vmatpush.msra.mxu2 %v673_v51 }
 0x2b9   : > { %685 = vmatpush.msra.mxu2 %v672_v52 }
 0x2bb   : > { %686 = vmatpush.msra.mxu2 %v671_v53 }
 0x2bc   : > { %v580_v54 = vpop.permute.xlu1 %579  ;;  %v668_v60 = vld [vmem:[#allocation3 + $0x48] sm:$0xff]  ;;  %v753_v35 = vpop.permute.xlu2 %752 }
 0x2bd   : > { %v585_v56 = vsel %vm1035_vm2, %v580_v54, 0.0  ;;  %v566_v57 = vpop.permute.xlu0 %565  ;;  %687 = vmatpush.msra.mxu2 %v670_v55 }
 0x2be   : > { %587 = vst.msk [vmem:[#allocation3 + $0x30] sm:$0xff] %vm317_vm3, %v585_v56  ;;  %v571_v58 = vsel %vm1069_vm4, %v566_v57, 0.0  ;;  %v666_v63 = vld [vmem:[#allocation3 + $0x38] sm:$0xff] }
 0x2bf   : > { %573 = vst.msk [vmem:[#allocation3 + $0x20] sm:$0xff] %vm317_vm3, %v571_v58  ;;  %688 = vmatpush.msra.mxu2 %v669_v59 }
 0x2c1   : > { %689 = vmatpush.msra.mxu2 %v668_v60 }
 0x2c3   : > { %690 = vmatpush.msra.mxu2 %v667_v61 }
 0x2c4   : > { %v556_v62 = vpop.permute.xlu1 %555 }
 0x2c5   : > { %560 = vst.msk [vmem:[#allocation3 + $0x18] sm:$0xff] %vm317_vm3, %v556_v62  ;;  %v648_v0 = vpop.permute.xlu0 %647  ;;  %691 = vmatpush.msra.mxu2 %v666_v63  ;;  %v665_v3 = vld [vmem:[#allocation3 + $0x30] sm:$0xff] }
 0x2c6   : > { %v652_v4 = vsel %vm1069_vm4, %v648_v0, 0.0  ;;  %v663_v6 = vld [vmem:[#allocation3 + $0x20] sm:$0xff] }
 0x2c7   : > { %654 = vst.msk [vmem:[#allocation3 + $0x88] sm:$0xff] %vm317_vm3, %v652_v4  ;;  %692 = vmatpush.msra.mxu2 %v665_v3 }
 0x2c9   : > { %693 = vmatpush.msra.mxu2 %v664_v5 }
 0x2cb   : > { %694 = vmatpush.msra.mxu2 %v663_v6 }
 0x2cc   : > { %v646_v8 = vpop.permute.xlu1 %645  ;;  %v662_v9 = vld [vmem:[#allocation3 + $0x18] sm:$0xff] }
 0x2cd   : > { %v651_v10 = vsel %vm1069_vm4, %v646_v8, 0.0  ;;  %695 = vmatpush.msra.mxu2 %v662_v9  ;;  %v739_v33 = vpop.permute.xlu0 %738 }
 0x2ce   : > { %653 = vst.msk [vmem:[#allocation3 + $0x80] sm:$0xff] %vm317_vm3, %v651_v10  ;;  %v676_v11 = vld [vmem:[#allocation3 + $0x88] sm:$0xff] }
 0x2cf   : > { %720 = vmatpush.msra.mxu3 %v676_v11  ;;  %696 = vmatpush.msra.mxu2 %v661_v12 }
 0x2d1   : > { %697 = vmatpush.msra.mxu2 %v660_v13 }
 0x2d3   : > { %698 = vmatpush.msra.mxu2 %v659_v15 }
 0x2d4   : > { %699 = vmatmul.f32.vlgmr.msra.gmra.mxu2 %v655_v14  ;;  %v748_v26 = vpop.permute.xlu1 %747 }
 0x2d5   : > { %v675_v17 = vld [vmem:[#allocation3 + $0x80] sm:$0xff] }
 0x2d6   : > { %721 = vmatpush.msra.mxu3 %v675_v17 }
 0x2d7   : > { %923 = vmatmul.msk.f32.vlgmr.msra.gmra.mxu3 %vm450_vm5, %v656_v16 }
 0x2dc   : > { %702 = vmatmul.f32.gmra.mxu2 %v657_v19 }
 0x2df   : > { %924 = vmatmul.msk.f32.gmra.mxu3 %vm450_vm5, %v658_v20 }
 0x357   : > { %v700_v21 = vpop.f32.mrf.mxu2 }
 0x35a   : > { %v723_v22 = vpop.f32.mrf.mxu3 }
 0x35b   : > { %v724_v23 = vadd.f32 %v723_v22, %v700_v21 }
 0x35d   : > { %v741_v25 = vmul.f32 %v734_v24, %v724_v23 }
 0x35f   : > { %v755_v27 = vadd.f32 %v748_v26, %v741_v25  ;;  %v703_v28 = vpop.f32.mrf.mxu2 }
 0x361   : > { %v757_v29 = vadd.f32 %v755_v27, %v1030_v2 }
 0x362   : > { %v726_v30 = vpop.f32.mrf.mxu3 }
 0x363   : > { %v727_v31 = vadd.f32 %v726_v30, %v703_v28  ;;  %v759_v32 = vmax.f32 %v757_v29, 0.0 }
 0x365   : > { %v742_v34 = vmul.f32 %v739_v33, %v727_v31  ;;  %763 = vrot.lane.b32.xlu0 %v759_v32, %s960_s30 }
 0x367   : > { %v756_v36 = vadd.f32 %v753_v35, %v742_v34 }
 0x369   : > { %v758_v37 = vadd.f32 %v756_v36, %v1026_v1 }
 0x36b   : > { %v760_v38 = vmax.f32 %v758_v37, 0.0 }
 0x36d   : > { %765 = vrot.lane.b32.xlu1 %v760_v38, %s960_s30 }
 0x3d7   : > { %v764_v39 = vpop.permute.xlu0 %763 }
 0x3d8   : > { %769 = vst.msk [vmem:[#allocation2] sm:$0xff] %vm292_vm1, %v764_v39 }
 0x3df   : > { %v766_v40 = vpop.permute.xlu1 %765  ;;  %v771_v41 = vld [vmem:[#allocation2] sm:$0xff] }
 0x3e0   : > { %770 = vst.msk [vmem:[#allocation2 + $0x8] sm:$0xff] %vm292_vm1, %v766_v40  ;;  %797 = vrot.lane.b32.xlu0 %v771_v41, %s966_s13  ;;  %779 = vrot.lane.b32.xlu2 %v771_v41, %s967_s14  ;;  %v773_v49 = vsel %vm1035_vm2, %v771_v41, 0.0 }
 0x3e1   : > { %787 = vrot.lane.b32.xlu1 %v771_v41, %s965_s12 }
 0x3e7   : > { %v772_v1 = vld [vmem:[#allocation2 + $0x8] sm:$0xff] }
 0x3e8   : > { %825 = vrot.lane.b32.xlu0 %v771_v41, %s962_s9  ;;  %807 = vrot.lane.b32.xlu2 %v771_v41, %s964_s11  ;;  %v774_v54 = vsel %vm1035_vm2, %v772_v1, 0.0 }
 0x3e9   : > { %815 = vrot.lane.b32.xlu1 %v771_v41, %s963_s10 }
 0x3f0   : > { %835 = vrot.lane.b32.xlu2 %v771_v41, %s961_s8  ;;  %781 = vrot.lane.b32.xlu0 %v772_v1, %s967_s14 }
 0x3f1   : > { %799 = vrot.lane.b32.xlu1 %v772_v1, %s966_s13 }
 0x3f8   : > { %789 = vrot.lane.b32.xlu2 %v772_v1, %s965_s12  ;;  %809 = vrot.lane.b32.xlu0 %v772_v1, %s964_s11 }
 0x3f9   : > { %827 = vrot.lane.b32.xlu1 %v772_v1, %s962_s9  ;;  %s278_s9 = scalar_lea.vmem %s1279_s7, %s927_s26 }
 0x400   : > { %817 = vrot.lane.b32.xlu2 %v772_v1, %s963_s10  ;;  %837 = vrot.lane.b32.xlu0 %v772_v1, %s961_s8 }
 0x401   : > { %843 = vrot.lane.b32.xlu1 %v771_v41, %s968_s15 }
 0x408   : > { %845 = vrot.lane.b32.xlu2 %v772_v1, %s968_s15 }
 0x43a   : > { %v780_v2 = vpop.permute.xlu2 %779 }
 0x43b   : > { %v785_v51 = vadd.f32 %v780_v2, %v773_v49 }
 0x442   : > { %v808_v42 = vpop.permute.xlu2 %807 }
 0x44a   : > { %v836_v44 = vpop.permute.xlu2 %835 }
 0x452   : > { %v798_v43 = vpop.permute.xlu0 %797  ;;  %v790_v48 = vpop.permute.xlu2 %789 }
 0x453   : > { %v788_v45 = vpop.permute.xlu1 %787  ;;  %v803_v57 = vsel %vm1035_vm2, %v798_v43, 0.0  ;;  %v794_v58 = vsel %vm1069_vm4, %v790_v48, 0.0 }
 0x454   : > { %v793_v50 = vsel %vm1069_vm4, %v788_v45, 0.0 }
 0x455   : > { %v795_v52 = vadd.f32 %v793_v50, %v785_v51 }
 0x457   : > { %v805_v59 = vadd.f32 %v803_v57, %v795_v52 }
 0x459   : > { %v813_v0 = vadd.f32 %v808_v42, %v805_v59 }
 0x45a   : > { %v826_v46 = vpop.permute.xlu0 %825  ;;  %v818_v61 = vpop.permute.xlu2 %817 }
 0x45b   : > { %v816_v47 = vpop.permute.xlu1 %815  ;;  %v822_v9 = vsel %vm1069_vm4, %v818_v61, 0.0  ;;  %v831_v11 = vsel %vm1035_vm2, %v826_v46, 0.0 }
 0x45c   : > { %v821_v62 = vsel %vm1069_vm4, %v816_v47, 0.0 }
 0x45d   : > { %v823_v5 = vadd.f32 %v821_v62, %v813_v0 }
 0x45f   : > { %v833_v12 = vadd.f32 %v831_v11, %v823_v5 }
 0x461   : > { %v841_v19 = vadd.f32 %v836_v44, %v833_v12 }
 0x462   : > { %v782_v53 = vpop.permute.xlu0 %781  ;;  %v846_v14 = vpop.permute.xlu2 %845 }
 0x463   : > { %v786_v55 = vadd.f32 %v782_v53, %v774_v54  ;;  %v800_v56 = vpop.permute.xlu1 %799  ;;  %v850_v21 = vsel %vm1069_vm4, %v846_v14, 0.0 }
 0x464   : > { %v804_v63 = vsel %vm1035_vm2, %v800_v56, 0.0 }
 0x465   : > { %v796_v60 = vadd.f32 %v794_v58, %v786_v55 }
 0x467   : > { %v806_v3 = vadd.f32 %v804_v63, %v796_v60 }
 0x46a   : > { %v810_v4 = vpop.permute.xlu0 %809 }
 0x46b   : > { %v814_v6 = vadd.f32 %v810_v4, %v806_v3  ;;  %v828_v8 = vpop.permute.xlu1 %827 }
 0x46c   : > { %v832_v13 = vsel %vm1035_vm2, %v828_v8, 0.0 }
 0x46d   : > { %v824_v10 = vadd.f32 %v822_v9, %v814_v6 }
 0x46f   : > { %v834_v15 = vadd.f32 %v832_v13, %v824_v10 }
 0x472   : > { %v838_v16 = vpop.permute.xlu0 %837 }
 0x473   : > { %v842_v17 = vadd.f32 %v838_v16, %v834_v15  ;;  %v844_v20 = vpop.permute.xlu1 %843 }
 0x474   : > { %v849_v22 = vsel %vm1069_vm4, %v844_v20, 0.0 }
 0x475   : > { %v852_v23 = vadd.f32 %v850_v21, %v842_v17  ;;  %v851_v24 = vadd.f32 %v849_v22, %v841_v19 }
 0x477   : > { %v854_v7 = vmul.f32 0.11111111, %v852_v23  ;;  %v853_v25 = vmul.f32 0.11111111, %v851_v24 }
 0x479   : > { %856 = vst.msk [vmem:[%s278_s9 + $0x8] sm:$0xff] %vm317_vm3, %v854_v7 }
 0x47a   : > { %855 = vst.msk [vmem:[%s278_s9] sm:$0xff] %vm317_vm3, %v853_v25 }
 0x47b PF: > { %s17_s24 = sadd.s32 1, %s957_s24  }
 0x47c   : > { %p14_p4 = scmp.ge.s32.totalorder %s17_s24, 4  }
 0x47e   :  { %16 = sbr.rel (!%p14_p4) target bundleno = 1 (0x1), region = 78 }

// kernel: representation_forward.14
= control target key start
LH: loop header
LB: loop body
LE: loop exit
PB: predicated region body
PF: predicated region fallthrough
CT: control target
= control target key end

     0   :  { %s1009_s24 = smov 0   ;;  %s1271_s0 = inlined_call_operand.vmem [shape: f32[2,16,16], index: 0, kind: input, shape index: {}]   ;;  %s1272_s1 = inlined_call_operand.vmem [shape: f32[16,144], index: 1, kind: input, shape index: {}]   ;;  %s1273_s2 = inlined_call_operand.vmem [shape: f32[16,1], index: 2, kind: input, shape index: {}]   ;;  %s1274_s3 = inlined_call_operand.vmem [shape: f32[16,1], index: 3, kind: input, shape index: {}]   ;;  %s1275_s4 = inlined_call_operand.vmem [shape: f32[16,144], index: 4, kind: input, shape index: {}]   ;;  %s1276_s5 = inlined_call_operand.vmem [shape: f32[16,1], index: 5, kind: input, shape index: {}]   ;;  %s1277_s6 = inlined_call_operand.vmem [shape: f32[16,1], index: 6, kind: input, shape index: {}]   ;;  %s1278_s7 = inlined_call_operand.vmem [shape: f32[2,16,16], index: 7, kind: output, shape index: {}]  }
   0x1 LB: > { %s911_s25 = sadd.s32 4294967295, %s956_s24   ;;  %p915_p0 = scmp.ge.s32.totalorder %s956_s24, 1  ;;  %s956_s24 = sphi %s1009_s24, %s17_s24  }
   0x2   : > { %p237_p1 = scmp.lt.s32.totalorder %s956_s24, 3 }
   0x4   : > { %p238_p2 = pnand %p915_p0, %p237_p1 }
   0x5   : > { %p269_p3 = scmp.lt.s32.totalorder (!%p238_p2), %s911_s25, 1  ;;  %s959_s30 = smov (!%p238_p2), 5  }
   0x6   : > { %241 = sbr.rel (%p238_p2) target bundleno = 1147 (0x47b), region = 48  ;;  %s960_s8 = smov (!%p238_p2), 119  }
   0x7   : > { %s961_s9 = smov (!%p238_p2), 120   ;;  %s962_s10 = smov (!%p238_p2), 122  }
   0x8   : > { %s963_s11 = smov (!%p238_p2), 123   ;;  %s964_s12 = smov (!%p238_p2), 126  }
   0x9   : > { %s965_s13 = smov (!%p238_p2), 124   ;;  %s966_s14 = smov (!%p238_p2), 127  }
   0xa   : > { %s967_s15 = smov (!%p238_p2), 118  }
   0xb   : > { %vm279_vm0 = vcmask 211968   ;;  %v958_v0 = vmov 0.0   ;;  %s1284_s25 = smov (!%p269_p3, %s911_s25), 1  ;;  %v295_v3 = vlaneseq  ;;  %vm292_vm1 = vcmask 171048   ;;  %v502_v36 = vld [vmem:[%s1273_s2] sm:$0xff]  ;;  %v503_v47 = vld [vmem:[%s1273_s2 + $0x8] sm:$0xff] }
   0xc   : > { %281 = vst.msk [vmem:[#allocation2 + $0x8] sm:$0xff] %vm279_vm0, %v958_v0  ;;  %s926_s26 = sshll.u32 %s1284_s25, 4  ;;  %vm317_vm3 = vcmask 130048   ;;  %v968_v37 = vmov 0   ;;  %v516_v44 = vld [vmem:[%s1274_s3] sm:$0xff]  ;;  %v517_v48 = vld [vmem:[%s1274_s3 + $0x8] sm:$0xff] }
   0xd   : > { %280 = vst.msk [vmem:[#allocation2] sm:$0xff] %vm279_vm0, %v958_v0  ;;  %s273_s29 = scalar_lea.vmem %s1271_s0, %s926_s26  ;;  %v296_v4 = vand.u32 127, %v295_v3  ;;  %948 = vset.pattern.permute.xlu1 %v968_v37  ;;  %947 = vset.pattern.permute.xlu0 %v968_v37  ;;  %v428_v60 = vld [vmem:[%s1272_s1] sm:$0xff]  ;;  %v429_v63 = vld [vmem:[%s1272_s1 + $0x8] sm:$0xff]  ;;  %v430_v3 = vld [vmem:[%s1272_s1 + $0x10] sm:$0xff] }
   0xe   : > { %v1025_v1 = vld [vmem:[%s273_s29 + $0x8] sm:$0xff]  ;;  %v1029_v2 = vld [vmem:[%s273_s29] sm:$0xff]  ;;  %949 = vset.pattern.permute.xlu2 %v968_v37 }
   0xf   : > { %288 = vrot.lane.b32.xlu0 %v1025_v1, %s959_s30  ;;  %v301_v6 = vand.u32 3, %v296_v4  ;;  %v431_v4 = vld [vmem:[%s1272_s1 + $0x18] sm:$0xff] }
  0x11   : > { %vm1034_vm2 = vcmp.ne.s32.totalorder %v301_v6, 0  ;;  %vm1068_vm4 = vcmp.ne.s32.totalorder %v301_v6, 3 }
  0x17   : > { %286 = vrot.lane.b32.xlu0 %v1029_v2, %s959_s30 }
  0x81   : > { %v289_v5 = vpop.permute.xlu0 %288 }
  0x82   : > { %294 = vst.msk [vmem:[#allocation2 + $0x8] sm:$0xff] %vm292_vm1, %v289_v5 }
  0x89   : > { %v312_v8 = vld [vmem:[#allocation2 + $0x8] sm:$0xff]  ;;  %v287_v9 = vpop.permute.xlu0 %286 }
  0x8a   : > { %293 = vst.msk [vmem:[#allocation2] sm:$0xff] %vm292_vm1, %v287_v9  ;;  %408 = vrot.lane.b32.xlu1 %v312_v8, %s960_s8  ;;  %394 = vrot.lane.b32.xlu2 %v312_v8, %s961_s9  ;;  %v316_v10 = vsel %vm1034_vm2, %v312_v8, 0.0 }
  0x8b   : > { %380 = vrot.lane.b32.xlu0 %v312_v8, %s962_s10  ;;  %319 = vst.msk [vmem:[#allocation3 + $0x8] sm:$0xff] %vm317_vm3, %v316_v10 }
  0x91   : > { %v311_v11 = vld [vmem:[#allocation2] sm:$0xff] }
  0x92   : > { %406 = vrot.lane.b32.xlu1 %v311_v11, %s960_s8  ;;  %392 = vrot.lane.b32.xlu2 %v311_v11, %s961_s9  ;;  %v315_v12 = vsel %vm1034_vm2, %v311_v11, 0.0  ;;  %v433_v59 = vld [vmem:[#allocation3 + $0x8] sm:$0xff] }
  0x93   : > { %366 = vrot.lane.b32.xlu0 %v311_v11, %s963_s11  ;;  %318 = vst.msk [vmem:[#allocation3] sm:$0xff] %vm317_vm3, %v315_v12 }
  0x9a   : > { %368 = vrot.lane.b32.xlu2 %v312_v8, %s963_s11  ;;  %378 = vrot.lane.b32.xlu1 %v311_v11, %s962_s10  ;;  %v432_v61 = vld [vmem:[#allocation3] sm:$0xff] }
  0x9b   : > { %340 = vrot.lane.b32.xlu0 %v312_v8, %s964_s12 }
  0xa2   : > { %354 = vrot.lane.b32.xlu1 %v312_v8, %s965_s13  ;;  %352 = vrot.lane.b32.xlu2 %v311_v11, %s965_s13 }
  0xa3   : > { %324 = vrot.lane.b32.xlu0 %v311_v11, %s966_s14 }
  0xaa   : > { %326 = vrot.lane.b32.xlu2 %v312_v8, %s966_s14  ;;  %338 = vrot.lane.b32.xlu1 %v311_v11, %s964_s12 }
  0xab   : > { %511 = vperm.xlu0 %947, %v503_v47  }
  0xb2   : > { %418 = vrot.lane.b32.xlu2 %v311_v11, %s967_s15  ;;  %420 = vrot.lane.b32.xlu1 %v312_v8, %s967_s15 }
  0xba   : > { %506 = vperm.xlu1 %948, %v502_v36   ;;  %525 = vperm.xlu2 %949, %v517_v48  }
  0xc2   : > { %520 = vperm.xlu1 %948, %v516_v44  }
  0xe4   : > { %v395_v13 = vpop.permute.xlu2 %394 }
  0xe5   : > { %v399_v14 = vsel %vm1034_vm2, %v395_v13, 0.0 }
  0xe6   : > { %401 = vst.msk [vmem:[#allocation3 + $0x68] sm:$0xff] %vm317_vm3, %v399_v14 }
  0xec   : > { %v393_v15 = vpop.permute.xlu2 %392 }
  0xed   : > { %v398_v16 = vsel %vm1034_vm2, %v393_v15, 0.0  ;;  %v445_v35 = vld [vmem:[#allocation3 + $0x68] sm:$0xff] }
  0xee   : > { %400 = vst.msk [vmem:[#allocation3 + $0x60] sm:$0xff] %vm317_vm3, %v398_v16 }
  0xf4   : > { %v369_v17 = vpop.permute.xlu2 %368 }
  0xf5   : > { %373 = vst.msk [vmem:[#allocation3 + $0x48] sm:$0xff] %vm317_vm3, %v369_v17  ;;  %v444_v38 = vld [vmem:[#allocation3 + $0x60] sm:$0xff] }
  0xfc   : > { %v409_v19 = vpop.permute.xlu1 %408  ;;  %v353_v20 = vpop.permute.xlu2 %352  ;;  %v441_v45 = vld [vmem:[#allocation3 + $0x48] sm:$0xff] }
  0xfd   : > { %413 = vst.msk [vmem:[#allocation3 + $0x78] sm:$0xff] %vm317_vm3, %v409_v19  ;;  %v358_v21 = vsel %vm1034_vm2, %v353_v20, 0.0  ;;  %v381_v22 = vpop.permute.xlu0 %380 }
  0xfe   : > { %360 = vst.msk [vmem:[#allocation3 + $0x30] sm:$0xff] %vm317_vm3, %v358_v21  ;;  %v385_v23 = vsel %vm1068_vm4, %v381_v22, 0.0 }
  0xff   : > { %387 = vst.msk [vmem:[#allocation3 + $0x58] sm:$0xff] %vm317_vm3, %v385_v23 }
 0x104   : > { %v407_v24 = vpop.permute.xlu1 %406  ;;  %v327_v25 = vpop.permute.xlu2 %326  ;;  %v447_v26 = vld [vmem:[#allocation3 + $0x78] sm:$0xff] }
 0x105   : > { %412 = vst.msk [vmem:[#allocation3 + $0x70] sm:$0xff] %vm317_vm3, %v407_v24  ;;  %v367_v27 = vpop.permute.xlu0 %366  ;;  %456 = vmatpush.msra.mxu0 %v447_v26  ;;  %v438_v52 = vld [vmem:[#allocation3 + $0x30] sm:$0xff] }
 0x106   : > { %331 = vst.msk [vmem:[#allocation3 + $0x18] sm:$0xff] %vm317_vm3, %v327_v25  ;;  %v443_v39 = vld [vmem:[#allocation3 + $0x58] sm:$0xff] }
 0x107   : > { %372 = vst.msk [vmem:[#allocation3 + $0x40] sm:$0xff] %vm317_vm3, %v367_v27 }
 0x10c   : > { %v379_v28 = vpop.permute.xlu1 %378  ;;  %v419_v29 = vpop.permute.xlu2 %418  ;;  %v446_v30 = vld [vmem:[#allocation3 + $0x70] sm:$0xff] }
 0x10d   : > { %v384_v31 = vsel %vm1068_vm4, %v379_v28, 0.0  ;;  %v424_v32 = vsel %vm1068_vm4, %v419_v29, 0.0  ;;  %v341_v33 = vpop.permute.xlu0 %340  ;;  %457 = vmatpush.msra.mxu0 %v446_v30  ;;  %v435_v57 = vld [vmem:[#allocation3 + $0x18] sm:$0xff]  ;;  %v728_v29 = vld [vmem:[%s1276_s5] sm:$0xff] }
 0x10e   : > { %386 = vst.msk [vmem:[#allocation3 + $0x50] sm:$0xff] %vm317_vm3, %v384_v31  ;;  %v345_v34 = vsel %vm1068_vm4, %v341_v33, 0.0  ;;  %v440_v46 = vld [vmem:[#allocation3 + $0x40] sm:$0xff]  ;;  %v729_v30 = vld [vmem:[%s1276_s5 + $0x8] sm:$0xff]  ;;  %v742_v31 = vld [vmem:[%s1277_s6] sm:$0xff] }
 0x10f   : > { %426 = vst.msk [vmem:[#allocation3 + $0x80] sm:$0xff] %vm317_vm3, %v424_v32  ;;  %458 = vmatpush.msra.mxu0 %v445_v35  ;;  %v743_v32 = vld [vmem:[%s1277_s6 + $0x8] sm:$0xff] }
 0x110   : > { %347 = vst.msk [vmem:[#allocation3 + $0x28] sm:$0xff] %vm317_vm3, %v345_v34 }
 0x111   : > { %459 = vmatpush.msra.mxu0 %v444_v38 }
 0x113   : > { %460 = vmatpush.msra.mxu0 %v443_v39 }
 0x114   : > { %v355_v40 = vpop.permute.xlu1 %354  ;;  %v526_v19 = vpop.permute.xlu2 %525 }
 0x115   : > { %v359_v41 = vsel %vm1034_vm2, %v355_v40, 0.0  ;;  %v325_v42 = vpop.permute.xlu0 %324  ;;  %v442_v43 = vld [vmem:[#allocation3 + $0x50] sm:$0xff] }
 0x116   : > { %361 = vst.msk [vmem:[#allocation3 + $0x38] sm:$0xff] %vm317_vm3, %v359_v41  ;;  %461 = vmatpush.msra.mxu0 %v442_v43  ;;  %v448_v0 = vld [vmem:[#allocation3 + $0x80] sm:$0xff] }
 0x117   : > { %330 = vst.msk [vmem:[#allocation3 + $0x10] sm:$0xff] %vm317_vm3, %v325_v42  ;;  %v437_v53 = vld [vmem:[#allocation3 + $0x28] sm:$0xff] }
 0x118   : > { %462 = vmatpush.msra.mxu0 %v441_v45 }
 0x11a   : > { %463 = vmatpush.msra.mxu0 %v440_v46 }
 0x11c   : > { %v339_v49 = vpop.permute.xlu1 %338 }
 0x11d   : > { %v344_v50 = vsel %vm1068_vm4, %v339_v49, 0.0  ;;  %v439_v51 = vld [vmem:[#allocation3 + $0x38] sm:$0xff]  ;;  %v512_v16 = vpop.permute.xlu0 %511 }
 0x11e   : > { %346 = vst.msk [vmem:[#allocation3 + $0x20] sm:$0xff] %vm317_vm3, %v344_v50  ;;  %464 = vmatpush.msra.mxu0 %v439_v51  ;;  %v434_v58 = vld [vmem:[#allocation3 + $0x10] sm:$0xff] }
 0x120   : > { %465 = vmatpush.msra.mxu0 %v438_v52 }
 0x122   : > { %466 = vmatpush.msra.mxu0 %v437_v53 }
 0x124   : > { %v421_v54 = vpop.permute.xlu1 %420 }
 0x125   : > { %v425_v55 = vsel %vm1068_vm4, %v421_v54, 0.0  ;;  %v436_v56 = vld [vmem:[#allocation3 + $0x20] sm:$0xff] }
 0x126   : > { %427 = vst.msk [vmem:[#allocation3 + $0x88] sm:$0xff] %vm317_vm3, %v425_v55  ;;  %467 = vmatpush.msra.mxu0 %v436_v56 }
 0x128   : > { %468 = vmatpush.msra.mxu0 %v435_v57 }
 0x12a   : > { %469 = vmatpush.msra.mxu0 %v434_v58 }
 0x12c   : > { %470 = vmatpush.msra.mxu0 %v433_v59  ;;  %v507_v5 = vpop.permute.xlu1 %506 }
 0x12d   : > { %v449_v62 = vld [vmem:[#allocation3 + $0x88] sm:$0xff] }
 0x12e   : > { %471 = vmatpush.msra.mxu0 %v432_v61  ;;  %493 = vmatpush.msra.mxu1 %v449_v62 }
 0x12f   : > { %472 = vmatmul.f32.vlgmr.msra.gmra.mxu0 %v428_v60 }
 0x130   : > { %494 = vmatpush.msra.mxu1 %v448_v0 }
 0x131   : > { %920 = vmatmul.msk.f32.vlgmr.msra.gmra.mxu1 %vm317_vm3, %v429_v63 }
 0x134   : > { %v521_v11 = vpop.permute.xlu1 %520 }
 0x137   : > { %475 = vmatmul.f32.gmra.mxu0 %v430_v3 }
 0x139   : > { %921 = vmatmul.msk.f32.gmra.mxu1 %vm317_vm3, %v431_v4 }
 0x1ac   : > { %v473_v6 = vpop.f32.mrf.mxu0 }
 0x1ae   : > { %v496_v8 = vpop.f32.mrf.mxu1 }
 0x1af   : > { %v497_v9 = vadd.f32 %v496_v8, %v473_v6 }
 0x1b1   : > { %v514_v10 = vmul.f32 %v507_v5, %v497_v9 }
 0x1b3   : > { %v528_v12 = vadd.f32 %v521_v11, %v514_v10 }
 0x1b4   : > { %v476_v13 = vpop.f32.mrf.mxu0 }
 0x1b5   : > { %v530_v14 = vmax.f32 %v528_v12, 0.0 }
 0x1b6   : > { %v499_v15 = vpop.f32.mrf.mxu1 }
 0x1b7   : > { %534 = vrot.lane.b32.xlu0 %v530_v14, %s959_s30  ;;  %v500_v17 = vadd.f32 %v499_v15, %v476_v13  ;;  %v654_v14 = vld [vmem:[%s1275_s4] sm:$0xff] }
 0x1b9   : > { %v515_v20 = vmul.f32 %v512_v16, %v500_v17  ;;  %v655_v16 = vld [vmem:[%s1275_s4 + $0x8] sm:$0xff] }
 0x1bb   : > { %v529_v21 = vadd.f32 %v526_v19, %v515_v20  ;;  %v656_v19 = vld [vmem:[%s1275_s4 + $0x10] sm:$0xff]  ;;  %v657_v20 = vld [vmem:[%s1275_s4 + $0x18] sm:$0xff] }
 0x1bd   : > { %v531_v22 = vmax.f32 %v529_v21, 0.0 }
 0x1bf   : > { %536 = vrot.lane.b32.xlu2 %v531_v22, %s959_s30 }
 0x219   : > { %v537_v23 = vpop.permute.xlu2 %536 }
 0x21a   : > { %541 = vst.msk [vmem:[#allocation2 + $0x8] sm:$0xff] %vm292_vm1, %v537_v23 }
 0x221   : > { %v601_v24 = vld [vmem:[#allocation2 + $0x8] sm:$0xff] }
 0x222   : > { %v545_v25 = vsel %vm1034_vm2, %v601_v24, 0.0 }
 0x223   : > { %547 = vst.msk [vmem:[#allocation3 + $0x8] sm:$0xff] %vm317_vm3, %v545_v25 }
 0x229   : > { %v535_v26 = vpop.permute.xlu0 %534 }
 0x22a   : > { %540 = vst.msk [vmem:[#allocation2] sm:$0xff] %vm292_vm1, %v535_v26  ;;  %v659_v13 = vld [vmem:[#allocation3 + $0x8] sm:$0xff] }
 0x231   : > { %v628_v27 = vld [vmem:[#allocation2] sm:$0xff] }
 0x232   : > { %632 = vrot.lane.b32.xlu2 %v628_v27, %s960_s8  ;;  %618 = vrot.lane.b32.xlu1 %v628_v27, %s961_s9  ;;  %v544_v28 = vsel %vm1034_vm2, %v628_v27, 0.0 }
 0x233   : > { %604 = vrot.lane.b32.xlu0 %v628_v27, %s962_s10  ;;  %546 = vst.msk [vmem:[#allocation3] sm:$0xff] %vm317_vm3, %v544_v28 }
 0x23a   : > { %606 = vrot.lane.b32.xlu2 %v601_v24, %s962_s10  ;;  %634 = vrot.lane.b32.xlu1 %v601_v24, %s960_s8  ;;  %v658_v15 = vld [vmem:[#allocation3] sm:$0xff] }
 0x23b   : > { %620 = vrot.lane.b32.xlu0 %v601_v24, %s961_s9 }
 0x242   : > { %594 = vrot.lane.b32.xlu1 %v601_v24, %s963_s11  ;;  %592 = vrot.lane.b32.xlu2 %v628_v27, %s963_s11 }
 0x243   : > { %580 = vrot.lane.b32.xlu0 %v601_v24, %s965_s13 }
 0x24a   : > { %566 = vrot.lane.b32.xlu2 %v601_v24, %s964_s12  ;;  %578 = vrot.lane.b32.xlu1 %v628_v27, %s965_s13 }
 0x24b   : > { %564 = vrot.lane.b32.xlu0 %v628_v27, %s964_s12 }
 0x252   : > { %554 = vrot.lane.b32.xlu1 %v601_v24, %s966_s14  ;;  %552 = vrot.lane.b32.xlu2 %v628_v27, %s966_s14 }
 0x253   : > { %646 = vrot.lane.b32.xlu0 %v601_v24, %s967_s15 }
 0x25a   : > { %644 = vrot.lane.b32.xlu1 %v628_v27, %s967_s15  ;;  %732 = vperm.xlu2 %949, %v728_v29  }
 0x25b   : > { %737 = vperm.xlu0 %947, %v729_v30  }
 0x262   : > { %746 = vperm.xlu1 %948, %v742_v31   ;;  %751 = vperm.xlu2 %949, %v743_v32  }
 0x28c   : > { %v633_v33 = vpop.permute.xlu2 %632 }
 0x28d   : > { %638 = vst.msk [vmem:[#allocation3 + $0x70] sm:$0xff] %vm317_vm3, %v633_v33 }
 0x294   : > { %v607_v34 = vpop.permute.xlu2 %606  ;;  %v672_v51 = vld [vmem:[#allocation3 + $0x70] sm:$0xff] }
 0x295   : > { %v611_v35 = vsel %vm1068_vm4, %v607_v34, 0.0 }
 0x296   : > { %613 = vst.msk [vmem:[#allocation3 + $0x58] sm:$0xff] %vm317_vm3, %v611_v35 }
 0x29c   : > { %v593_v36 = vpop.permute.xlu2 %592 }
 0x29d   : > { %598 = vst.msk [vmem:[#allocation3 + $0x40] sm:$0xff] %vm317_vm3, %v593_v36  ;;  %v669_v55 = vld [vmem:[#allocation3 + $0x58] sm:$0xff] }
 0x2a4   : > { %v619_v37 = vpop.permute.xlu1 %618  ;;  %v567_v38 = vpop.permute.xlu2 %566  ;;  %v666_v61 = vld [vmem:[#allocation3 + $0x40] sm:$0xff] }
 0x2a5   : > { %v624_v39 = vsel %vm1034_vm2, %v619_v37, 0.0  ;;  %v605_v40 = vpop.permute.xlu0 %604  ;;  %v571_v41 = vsel %vm1068_vm4, %v567_v38, 0.0 }
 0x2a6   : > { %626 = vst.msk [vmem:[#allocation3 + $0x60] sm:$0xff] %vm317_vm3, %v624_v39  ;;  %v610_v42 = vsel %vm1068_vm4, %v605_v40, 0.0 }
 0x2a7   : > { %612 = vst.msk [vmem:[#allocation3 + $0x50] sm:$0xff] %vm317_vm3, %v610_v42 }
 0x2a8   : > { %573 = vst.msk [vmem:[#allocation3 + $0x28] sm:$0xff] %vm317_vm3, %v571_v41 }
 0x2ac   : > { %v635_v43 = vpop.permute.xlu1 %634  ;;  %v553_v44 = vpop.permute.xlu2 %552 }
 0x2ad   : > { %639 = vst.msk [vmem:[#allocation3 + $0x78] sm:$0xff] %vm317_vm3, %v635_v43  ;;  %v621_v45 = vpop.permute.xlu0 %620  ;;  %v670_v53 = vld [vmem:[#allocation3 + $0x60] sm:$0xff] }
 0x2ae   : > { %v625_v46 = vsel %vm1034_vm2, %v621_v45, 0.0  ;;  %558 = vst.msk [vmem:[#allocation3 + $0x10] sm:$0xff] %vm317_vm3, %v553_v44  ;;  %v668_v59 = vld [vmem:[#allocation3 + $0x50] sm:$0xff] }
 0x2af   : > { %627 = vst.msk [vmem:[#allocation3 + $0x68] sm:$0xff] %vm317_vm3, %v625_v46  ;;  %v663_v5 = vld [vmem:[#allocation3 + $0x28] sm:$0xff] }
 0x2b4   : > { %v595_v47 = vpop.permute.xlu1 %594  ;;  %v673_v48 = vld [vmem:[#allocation3 + $0x78] sm:$0xff]  ;;  %v733_v24 = vpop.permute.xlu2 %732 }
 0x2b5   : > { %599 = vst.msk [vmem:[#allocation3 + $0x48] sm:$0xff] %vm317_vm3, %v595_v47  ;;  %v581_v49 = vpop.permute.xlu0 %580  ;;  %682 = vmatpush.msra.mxu2 %v673_v48  ;;  %v660_v12 = vld [vmem:[#allocation3 + $0x10] sm:$0xff] }
 0x2b6   : > { %v585_v50 = vsel %vm1034_vm2, %v581_v49, 0.0  ;;  %v671_v52 = vld [vmem:[#allocation3 + $0x68] sm:$0xff] }
 0x2b7   : > { %587 = vst.msk [vmem:[#allocation3 + $0x38] sm:$0xff] %vm317_vm3, %v585_v50  ;;  %683 = vmatpush.msra.mxu2 %v672_v51 }
 0x2b9   : > { %684 = vmatpush.msra.mxu2 %v671_v52 }
 0x2bb   : > { %685 = vmatpush.msra.mxu2 %v670_v53 }
 0x2bc   : > { %v579_v54 = vpop.permute.xlu1 %578  ;;  %v667_v60 = vld [vmem:[#allocation3 + $0x48] sm:$0xff]  ;;  %v752_v35 = vpop.permute.xlu2 %751 }
 0x2bd   : > { %v584_v56 = vsel %vm1034_vm2, %v579_v54, 0.0  ;;  %v565_v57 = vpop.permute.xlu0 %564  ;;  %686 = vmatpush.msra.mxu2 %v669_v55 }
 0x2be   : > { %586 = vst.msk [vmem:[#allocation3 + $0x30] sm:$0xff] %vm317_vm3, %v584_v56  ;;  %v570_v58 = vsel %vm1068_vm4, %v565_v57, 0.0  ;;  %v665_v63 = vld [vmem:[#allocation3 + $0x38] sm:$0xff] }
 0x2bf   : > { %572 = vst.msk [vmem:[#allocation3 + $0x20] sm:$0xff] %vm317_vm3, %v570_v58  ;;  %687 = vmatpush.msra.mxu2 %v668_v59 }
 0x2c1   : > { %688 = vmatpush.msra.mxu2 %v667_v60 }
 0x2c3   : > { %689 = vmatpush.msra.mxu2 %v666_v61 }
 0x2c4   : > { %v555_v62 = vpop.permute.xlu1 %554 }
 0x2c5   : > { %559 = vst.msk [vmem:[#allocation3 + $0x18] sm:$0xff] %vm317_vm3, %v555_v62  ;;  %v647_v0 = vpop.permute.xlu0 %646  ;;  %690 = vmatpush.msra.mxu2 %v665_v63  ;;  %v664_v3 = vld [vmem:[#allocation3 + $0x30] sm:$0xff] }
 0x2c6   : > { %v651_v4 = vsel %vm1068_vm4, %v647_v0, 0.0  ;;  %v662_v6 = vld [vmem:[#allocation3 + $0x20] sm:$0xff] }
 0x2c7   : > { %653 = vst.msk [vmem:[#allocation3 + $0x88] sm:$0xff] %vm317_vm3, %v651_v4  ;;  %691 = vmatpush.msra.mxu2 %v664_v3 }
 0x2c9   : > { %692 = vmatpush.msra.mxu2 %v663_v5 }
 0x2cb   : > { %693 = vmatpush.msra.mxu2 %v662_v6 }
 0x2cc   : > { %v645_v8 = vpop.permute.xlu1 %644  ;;  %v661_v9 = vld [vmem:[#allocation3 + $0x18] sm:$0xff] }
 0x2cd   : > { %v650_v10 = vsel %vm1068_vm4, %v645_v8, 0.0  ;;  %694 = vmatpush.msra.mxu2 %v661_v9  ;;  %v738_v33 = vpop.permute.xlu0 %737 }
 0x2ce   : > { %652 = vst.msk [vmem:[#allocation3 + $0x80] sm:$0xff] %vm317_vm3, %v650_v10  ;;  %v675_v11 = vld [vmem:[#allocation3 + $0x88] sm:$0xff] }
 0x2cf   : > { %719 = vmatpush.msra.mxu3 %v675_v11  ;;  %695 = vmatpush.msra.mxu2 %v660_v12 }
 0x2d1   : > { %696 = vmatpush.msra.mxu2 %v659_v13 }
 0x2d3   : > { %697 = vmatpush.msra.mxu2 %v658_v15 }
 0x2d4   : > { %698 = vmatmul.f32.vlgmr.msra.gmra.mxu2 %v654_v14  ;;  %v747_v26 = vpop.permute.xlu1 %746 }
 0x2d5   : > { %v674_v17 = vld [vmem:[#allocation3 + $0x80] sm:$0xff] }
 0x2d6   : > { %720 = vmatpush.msra.mxu3 %v674_v17 }
 0x2d7   : > { %922 = vmatmul.msk.f32.vlgmr.msra.gmra.mxu3 %vm317_vm3, %v655_v16 }
 0x2dc   : > { %701 = vmatmul.f32.gmra.mxu2 %v656_v19 }
 0x2df   : > { %923 = vmatmul.msk.f32.gmra.mxu3 %vm317_vm3, %v657_v20 }
 0x357   : > { %v699_v21 = vpop.f32.mrf.mxu2 }
 0x35a   : > { %v722_v22 = vpop.f32.mrf.mxu3 }
 0x35b   : > { %v723_v23 = vadd.f32 %v722_v22, %v699_v21 }
 0x35d   : > { %v740_v25 = vmul.f32 %v733_v24, %v723_v23 }
 0x35f   : > { %v754_v27 = vadd.f32 %v747_v26, %v740_v25  ;;  %v702_v28 = vpop.f32.mrf.mxu2 }
 0x361   : > { %v756_v29 = vadd.f32 %v754_v27, %v1029_v2 }
 0x362   : > { %v725_v30 = vpop.f32.mrf.mxu3 }
 0x363   : > { %v726_v31 = vadd.f32 %v725_v30, %v702_v28  ;;  %v758_v32 = vmax.f32 %v756_v29, 0.0 }
 0x365   : > { %v741_v34 = vmul.f32 %v738_v33, %v726_v31  ;;  %762 = vrot.lane.b32.xlu0 %v758_v32, %s959_s30 }
 0x367   : > { %v755_v36 = vadd.f32 %v752_v35, %v741_v34 }
 0x369   : > { %v757_v37 = vadd.f32 %v755_v36, %v1025_v1 }
 0x36b   : > { %v759_v38 = vmax.f32 %v757_v37, 0.0 }
 0x36d   : > { %764 = vrot.lane.b32.xlu1 %v759_v38, %s959_s30 }
 0x3d7   : > { %v763_v39 = vpop.permute.xlu0 %762 }
 0x3d8   : > { %768 = vst.msk [vmem:[#allocation2] sm:$0xff] %vm292_vm1, %v763_v39 }
 0x3df   : > { %v765_v40 = vpop.permute.xlu1 %764  ;;  %v770_v41 = vld [vmem:[#allocation2] sm:$0xff] }
 0x3e0   : > { %769 = vst.msk [vmem:[#allocation2 + $0x8] sm:$0xff] %vm292_vm1, %v765_v40  ;;  %796 = vrot.lane.b32.xlu0 %v770_v41, %s965_s13  ;;  %778 = vrot.lane.b32.xlu2 %v770_v41, %s966_s14  ;;  %v772_v49 = vsel %vm1034_vm2, %v770_v41, 0.0 }
 0x3e1   : > { %786 = vrot.lane.b32.xlu1 %v770_v41, %s964_s12 }
 0x3e7   : > { %v771_v1 = vld [vmem:[#allocation2 + $0x8] sm:$0xff] }
 0x3e8   : > { %824 = vrot.lane.b32.xlu0 %v770_v41, %s961_s9  ;;  %806 = vrot.lane.b32.xlu2 %v770_v41, %s963_s11  ;;  %v773_v54 = vsel %vm1034_vm2, %v771_v1, 0.0 }
 0x3e9   : > { %814 = vrot.lane.b32.xlu1 %v770_v41, %s962_s10 }
 0x3f0   : > { %834 = vrot.lane.b32.xlu2 %v770_v41, %s960_s8  ;;  %780 = vrot.lane.b32.xlu0 %v771_v1, %s966_s14 }
 0x3f1   : > { %798 = vrot.lane.b32.xlu1 %v771_v1, %s965_s13 }
 0x3f8   : > { %788 = vrot.lane.b32.xlu2 %v771_v1, %s964_s12  ;;  %808 = vrot.lane.b32.xlu0 %v771_v1, %s963_s11 }
 0x3f9   : > { %826 = vrot.lane.b32.xlu1 %v771_v1, %s961_s9  ;;  %s278_s9 = scalar_lea.vmem %s1278_s7, %s926_s26 }
 0x400   : > { %816 = vrot.lane.b32.xlu2 %v771_v1, %s962_s10  ;;  %836 = vrot.lane.b32.xlu0 %v771_v1, %s960_s8 }
 0x401   : > { %842 = vrot.lane.b32.xlu1 %v770_v41, %s967_s15 }
 0x408   : > { %844 = vrot.lane.b32.xlu2 %v771_v1, %s967_s15 }
 0x43a   : > { %v779_v2 = vpop.permute.xlu2 %778 }
 0x43b   : > { %v784_v51 = vadd.f32 %v779_v2, %v772_v49 }
 0x442   : > { %v807_v42 = vpop.permute.xlu2 %806 }
 0x44a   : > { %v835_v44 = vpop.permute.xlu2 %834 }
 0x452   : > { %v797_v43 = vpop.permute.xlu0 %796  ;;  %v789_v48 = vpop.permute.xlu2 %788 }
 0x453   : > { %v787_v45 = vpop.permute.xlu1 %786  ;;  %v802_v57 = vsel %vm1034_vm2, %v797_v43, 0.0  ;;  %v793_v58 = vsel %vm1068_vm4, %v789_v48, 0.0 }
 0x454   : > { %v792_v50 = vsel %vm1068_vm4, %v787_v45, 0.0 }
 0x455   : > { %v794_v52 = vadd.f32 %v792_v50, %v784_v51 }
 0x457   : > { %v804_v59 = vadd.f32 %v802_v57, %v794_v52 }
 0x459   : > { %v812_v0 = vadd.f32 %v807_v42, %v804_v59 }
 0x45a   : > { %v825_v46 = vpop.permute.xlu0 %824  ;;  %v817_v61 = vpop.permute.xlu2 %816 }
 0x45b   : > { %v815_v47 = vpop.permute.xlu1 %814  ;;  %v821_v9 = vsel %vm1068_vm4, %v817_v61, 0.0  ;;  %v830_v11 = vsel %vm1034_vm2, %v825_v46, 0.0 }
 0x45c   : > { %v820_v62 = vsel %vm1068_vm4, %v815_v47, 0.0 }
 0x45d   : > { %v822_v5 = vadd.f32 %v820_v62, %v812_v0 }
 0x45f   : > { %v832_v12 = vadd.f32 %v830_v11, %v822_v5 }
 0x461   : > { %v840_v19 = vadd.f32 %v835_v44, %v832_v12 }
 0x462   : > { %v781_v53 = vpop.permute.xlu0 %780  ;;  %v845_v14 = vpop.permute.xlu2 %844 }
 0x463   : > { %v785_v55 = vadd.f32 %v781_v53, %v773_v54  ;;  %v799_v56 = vpop.permute.xlu1 %798  ;;  %v849_v21 = vsel %vm1068_vm4, %v845_v14, 0.0 }
 0x464   : > { %v803_v63 = vsel %vm1034_vm2, %v799_v56, 0.0 }
 0x465   : > { %v795_v60 = vadd.f32 %v793_v58, %v785_v55 }
 0x467   : > { %v805_v3 = vadd.f32 %v803_v63, %v795_v60 }
 0x46a   : > { %v809_v4 = vpop.permute.xlu0 %808 }
 0x46b   : > { %v813_v6 = vadd.f32 %v809_v4, %v805_v3  ;;  %v827_v8 = vpop.permute.xlu1 %826 }
 0x46c   : > { %v831_v13 = vsel %vm1034_vm2, %v827_v8, 0.0 }
 0x46d   : > { %v823_v10 = vadd.f32 %v821_v9, %v813_v6 }
 0x46f   : > { %v833_v15 = vadd.f32 %v831_v13, %v823_v10 }
 0x472   : > { %v837_v16 = vpop.permute.xlu0 %836 }
 0x473   : > { %v841_v17 = vadd.f32 %v837_v16, %v833_v15  ;;  %v843_v20 = vpop.permute.xlu1 %842 }
 0x474   : > { %v848_v22 = vsel %vm1068_vm4, %v843_v20, 0.0 }
 0x475   : > { %v851_v23 = vadd.f32 %v849_v21, %v841_v17  ;;  %v850_v24 = vadd.f32 %v848_v22, %v840_v19 }
 0x477   : > { %v853_v7 = vmul.f32 0.11111111, %v851_v23  ;;  %v852_v25 = vmul.f32 0.11111111, %v850_v24 }
 0x479   : > { %855 = vst.msk [vmem:[%s278_s9 + $0x8] sm:$0xff] %vm317_vm3, %v853_v7 }
 0x47a   : > { %854 = vst.msk [vmem:[%s278_s9] sm:$0xff] %vm317_vm3, %v852_v25 }
 0x47b PF: > { %s17_s24 = sadd.s32 1, %s956_s24  }
 0x47c   : > { %p14_p4 = scmp.ge.s32.totalorder %s17_s24, 4  }
 0x47e   :  { %16 = sbr.rel (!%p14_p4) target bundleno = 1 (0x1), region = 78 }

// kernel: representation_forward.15
= control target key start
LH: loop header
LB: loop body
LE: loop exit
PB: predicated region body
PF: predicated region fallthrough
CT: control target
= control target key end

     0   :  { %s912_s24 = smov 0   ;;  %s1130_s0 = inlined_call_operand.vmem [shape: f32[2,16,4], index: 0, kind: input, shape index: {}]   ;;  %s1131_s1 = inlined_call_operand.vmem [shape: f32[16,144], index: 1, kind: input, shape index: {}]   ;;  %s1132_s2 = inlined_call_operand.vmem [shape: f32[16,1], index: 2, kind: input, shape index: {}]   ;;  %s1133_s3 = inlined_call_operand.vmem [shape: f32[16,1], index: 3, kind: input, shape index: {}]   ;;  %s1134_s4 = inlined_call_operand.vmem [shape: f32[16,144], index: 4, kind: input, shape index: {}]   ;;  %s1135_s5 = inlined_call_operand.vmem [shape: f32[16,1], index: 5, kind: input, shape index: {}]   ;;  %s1136_s6 = inlined_call_operand.vmem [shape: f32[16,1], index: 6, kind: input, shape index: {}]   ;;  %s1137_s7 = inlined_call_operand.vmem [shape: f32[2,16,4], index: 7, kind: output, shape index: {}]  }
   0x1 LB: > { %s818_s25 = sadd.s32 4294967295, %s861_s24   ;;  %p822_p0 = scmp.ge.s32.totalorder %s861_s24, 1  ;;  %s861_s24 = sphi %s912_s24, %s17_s24  }
   0x2   : > { %p237_p1 = scmp.lt.s32.totalorder %s861_s24, 3 }
   0x4   : > { %p238_p2 = pnand %p822_p0, %p237_p1 }
   0x5   : > { %p269_p3 = scmp.lt.s32.totalorder (!%p238_p2), %s818_s25, 1  ;;  %s864_s30 = smov (!%p238_p2), 3  }
   0x6   : > { %241 = sbr.rel (%p238_p2) target bundleno = 878 (0x36e), region = 48  ;;  %s865_s8 = smov (!%p238_p2), 123  }
   0x7   : > { %s866_s9 = smov (!%p238_p2), 124   ;;  %s867_s10 = smov (!%p238_p2), 125  }
   0x8   : > { %s868_s11 = smov (!%p238_p2), 126   ;;  %s869_s12 = smov (!%p238_p2), 127  }
   0x9   : > { %s870_s13 = smov (!%p238_p2), 122  }
   0xb   : > { %vm279_vm0 = vcmask 80896   ;;  %v863_v0 = vmov 0.0   ;;  %s1143_s25 = smov (!%p269_p3, %s818_s25), 1  ;;  %v295_v3 = vlaneseq  ;;  %vm292_vm1 = vcmask 56344   ;;  %v503_v36 = vld [vmem:[%s1132_s2] sm:$0xff]  ;;  %v504_v47 = vld [vmem:[%s1132_s2 + $0x8] sm:$0xff] }
   0xc   : > { %281 = vst.msk [vmem:[#allocation2 + $0x8] sm:$0xff] %vm279_vm0, %v863_v0  ;;  %s833_s26 = sshll.u32 %s1143_s25, 4  ;;  %vm317_vm3 = vcmask 31744   ;;  %v871_v37 = vmov 0   ;;  %v517_v44 = vld [vmem:[%s1133_s3] sm:$0xff]  ;;  %v518_v48 = vld [vmem:[%s1133_s3 + $0x8] sm:$0xff] }
   0xd   : > { %280 = vst.msk [vmem:[#allocation2] sm:$0xff] %vm279_vm0, %v863_v0  ;;  %s273_s29 = scalar_lea.vmem %s1130_s0, %s833_s26  ;;  %v296_v4 = vand.u32 127, %v295_v3  ;;  %853 = vset.pattern.permute.xlu1 %v871_v37  ;;  %852 = vset.pattern.permute.xlu0 %v871_v37  ;;  %v428_v60 = vld [vmem:[%s1131_s1] sm:$0xff]  ;;  %v429_v63 = vld [vmem:[%s1131_s1 + $0x8] sm:$0xff]  ;;  %vm450_vm5 = vcmask 130048   ;;  %v430_v3 = vld [vmem:[%s1131_s1 + $0x10] sm:$0xff]  ;;  %s278_s15 = scalar_lea.vmem %s1137_s7, %s833_s26 }
   0xe   : > { %v928_v1 = vld [vmem:[%s273_s29 + $0x8] sm:$0xff]  ;;  %v932_v2 = vld [vmem:[%s273_s29] sm:$0xff]  ;;  %854 = vset.pattern.permute.xlu2 %v871_v37 }
   0xf   : > { %288 = vrot.lane.b32.xlu0 %v928_v1, %s864_s30  ;;  %v301_v6 = vand.u32 1, %v296_v4  ;;  %v431_v4 = vld [vmem:[%s1131_s1 + $0x18] sm:$0xff]  ;;  %v656_v18 = vld [vmem:[%s1134_s4 + $0x8] sm:$0xff] }
  0x11   : > { %vm937_vm2 = vcmp.ne.s32.totalorder %v301_v6, 0  ;;  %vm971_vm4 = vcmp.ne.s32.totalorder %v301_v6, 1 }
  0x17   : > { %286 = vrot.lane.b32.xlu0 %v932_v2, %s864_s30 }
  0x81   : > { %v289_v5 = vpop.permute.xlu0 %288 }
  0x82   : > { %294 = vst.msk [vmem:[#allocation2 + $0x8] sm:$0xff] %vm292_vm1, %v289_v5 }
  0x89   : > { %v312_v8 = vld [vmem:[#allocation2 + $0x8] sm:$0xff]  ;;  %v287_v9 = vpop.permute.xlu0 %286 }
  0x8a   : > { %293 = vst.msk [vmem:[#allocation2] sm:$0xff] %vm292_vm1, %v287_v9  ;;  %408 = vrot.lane.b32.xlu1 %v312_v8, %s865_s8  ;;  %394 = vrot.lane.b32.xlu2 %v312_v8, %s866_s9  ;;  %v316_v10 = vsel %vm937_vm2, %v312_v8, 0.0 }
  0x8b   : > { %380 = vrot.lane.b32.xlu0 %v312_v8, %s866_s9  ;;  %319 = vst.msk [vmem:[#allocation3 + $0x8] sm:$0xff] %vm317_vm3, %v316_v10 }
  0x91   : > { %v311_v11 = vld [vmem:[#allocation2] sm:$0xff] }
  0x92   : > { %406 = vrot.lane.b32.xlu1 %v311_v11, %s865_s8  ;;  %392 = vrot.lane.b32.xlu2 %v311_v11, %s866_s9  ;;  %v315_v12 = vsel %vm937_vm2, %v311_v11, 0.0  ;;  %v433_v59 = vld [vmem:[#allocation3 + $0x8] sm:$0xff] }
  0x93   : > { %366 = vrot.lane.b32.xlu0 %v311_v11, %s867_s10  ;;  %318 = vst.msk [vmem:[#allocation3] sm:$0xff] %vm317_vm3, %v315_v12 }
  0x9a   : > { %368 = vrot.lane.b32.xlu2 %v312_v8, %s867_s10  ;;  %378 = vrot.lane.b32.xlu1 %v311_v11, %s866_s9  ;;  %v432_v61 = vld [vmem:[#allocation3] sm:$0xff] }
  0x9b   : > { %340 = vrot.lane.b32.xlu0 %v312_v8, %s868_s11 }
  0xa2   : > { %354 = vrot.lane.b32.xlu1 %v312_v8, %s868_s11  ;;  %352 = vrot.lane.b32.xlu2 %v311_v11, %s868_s11 }
  0xa3   : > { %324 = vrot.lane.b32.xlu0 %v311_v11, %s869_s12 }
  0xaa   : > { %326 = vrot.lane.b32.xlu2 %v312_v8, %s869_s12  ;;  %338 = vrot.lane.b32.xlu1 %v311_v11, %s868_s11 }
  0xab   : > { %512 = vperm.xlu0 %852, %v504_v47  }
  0xb2   : > { %418 = vrot.lane.b32.xlu2 %v311_v11, %s870_s13  ;;  %420 = vrot.lane.b32.xlu1 %v312_v8, %s870_s13 }
  0xba   : > { %507 = vperm.xlu1 %853, %v503_v36   ;;  %526 = vperm.xlu2 %854, %v518_v48  }
  0xc2   : > { %521 = vperm.xlu1 %853, %v517_v44  }
  0xe4   : > { %v395_v13 = vpop.permute.xlu2 %394 }
  0xe5   : > { %v399_v14 = vsel %vm937_vm2, %v395_v13, 0.0 }
  0xe6   : > { %401 = vst.msk [vmem:[#allocation3 + $0x68] sm:$0xff] %vm317_vm3, %v399_v14 }
  0xec   : > { %v393_v15 = vpop.permute.xlu2 %392 }
  0xed   : > { %v398_v16 = vsel %vm937_vm2, %v393_v15, 0.0  ;;  %v445_v35 = vld [vmem:[#allocation3 + $0x68] sm:$0xff] }
  0xee   : > { %400 = vst.msk [vmem:[#allocation3 + $0x60] sm:$0xff] %vm317_vm3, %v398_v16 }
  0xf4   : > { %v369_v17 = vpop.permute.xlu2 %368 }
  0xf5   : > { %373 = vst.msk [vmem:[#allocation3 + $0x48] sm:$0xff] %vm317_vm3, %v369_v17  ;;  %v444_v38 = vld [vmem:[#allocation3 + $0x60] sm:$0xff] }
  0xfc   : > { %v409_v19 = vpop.permute.xlu1 %408  ;;  %v353_v20 = vpop.permute.xlu2 %352  ;;  %v441_v45 = vld [vmem:[#allocation3 + $0x48] sm:$0xff] }
  0xfd   : > { %413 = vst.msk [vmem:[#allocation3 + $0x78] sm:$0xff] %vm317_vm3, %v409_v19  ;;  %v358_v21 = vsel %vm937_vm2, %v353_v20, 0.0  ;;  %v381_v22 = vpop.permute.xlu0 %380 }
  0xfe   : > { %360 = vst.msk [vmem:[#allocation3 + $0x30] sm:$0xff] %vm317_vm3, %v358_v21  ;;  %v385_v23 = vsel %vm971_vm4, %v381_v22, 0.0 }
  0xff   : > { %387 = vst.msk [vmem:[#allocation3 + $0x58] sm:$0xff] %vm317_vm3, %v385_v23 }
 0x104   : > { %v407_v24 = vpop.permute.xlu1 %406  ;;  %v327_v25 = vpop.permute.xlu2 %326  ;;  %v447_v26 = vld [vmem:[#allocation3 + $0x78] sm:$0xff] }
 0x105   : > { %412 = vst.msk [vmem:[#allocation3 + $0x70] sm:$0xff] %vm317_vm3, %v407_v24  ;;  %v367_v27 = vpop.permute.xlu0 %366  ;;  %457 = vmatpush.msra.mxu0 %v447_v26  ;;  %v438_v52 = vld [vmem:[#allocation3 + $0x30] sm:$0xff] }
 0x106   : > { %331 = vst.msk [vmem:[#allocation3 + $0x18] sm:$0xff] %vm317_vm3, %v327_v25  ;;  %v443_v39 = vld [vmem:[#allocation3 + $0x58] sm:$0xff] }
 0x107   : > { %372 = vst.msk [vmem:[#allocation3 + $0x40] sm:$0xff] %vm317_vm3, %v367_v27 }
 0x10c   : > { %v379_v28 = vpop.permute.xlu1 %378  ;;  %v419_v29 = vpop.permute.xlu2 %418  ;;  %v446_v30 = vld [vmem:[#allocation3 + $0x70] sm:$0xff] }
 0x10d   : > { %v384_v31 = vsel %vm971_vm4, %v379_v28, 0.0  ;;  %v424_v32 = vsel %vm971_vm4, %v419_v29, 0.0  ;;  %v341_v33 = vpop.permute.xlu0 %340  ;;  %458 = vmatpush.msra.mxu0 %v446_v30  ;;  %v435_v57 = vld [vmem:[#allocation3 + $0x18] sm:$0xff]  ;;  %v729_v29 = vld [vmem:[%s1135_s5] sm:$0xff] }
 0x10e   : > { %386 = vst.msk [vmem:[#allocation3 + $0x50] sm:$0xff] %vm317_vm3, %v384_v31  ;;  %v345_v34 = vsel %vm971_vm4, %v341_v33, 0.0  ;;  %v440_v46 = vld [vmem:[#allocation3 + $0x40] sm:$0xff]  ;;  %v730_v30 = vld [vmem:[%s1135_s5 + $0x8] sm:$0xff]  ;;  %v743_v31 = vld [vmem:[%s1136_s6] sm:$0xff] }
 0x10f   : > { %426 = vst.msk [vmem:[#allocation3 + $0x80] sm:$0xff] %vm317_vm3, %v424_v32  ;;  %459 = vmatpush.msra.mxu0 %v445_v35  ;;  %v744_v32 = vld [vmem:[%s1136_s6 + $0x8] sm:$0xff] }
 0x110   : > { %347 = vst.msk [vmem:[#allocation3 + $0x28] sm:$0xff] %vm317_vm3, %v345_v34 }
 0x111   : > { %460 = vmatpush.msra.mxu0 %v444_v38 }
 0x113   : > { %461 = vmatpush.msra.mxu0 %v443_v39 }
 0x114   : > { %v355_v40 = vpop.permute.xlu1 %354  ;;  %v527_v19 = vpop.permute.xlu2 %526 }
 0x115   : > { %v359_v41 = vsel %vm937_vm2, %v355_v40, 0.0  ;;  %v325_v42 = vpop.permute.xlu0 %324  ;;  %v442_v43 = vld [vmem:[#allocation3 + $0x50] sm:$0xff] }
 0x116   : > { %361 = vst.msk [vmem:[#allocation3 + $0x38] sm:$0xff] %vm317_vm3, %v359_v41  ;;  %462 = vmatpush.msra.mxu0 %v442_v43  ;;  %v448_v0 = vld [vmem:[#allocation3 + $0x80] sm:$0xff] }
 0x117   : > { %330 = vst.msk [vmem:[#allocation3 + $0x10] sm:$0xff] %vm317_vm3, %v325_v42  ;;  %v437_v53 = vld [vmem:[#allocation3 + $0x28] sm:$0xff] }
 0x118   : > { %463 = vmatpush.msra.mxu0 %v441_v45 }
 0x11a   : > { %464 = vmatpush.msra.mxu0 %v440_v46 }
 0x11c   : > { %v339_v49 = vpop.permute.xlu1 %338 }
 0x11d   : > { %v344_v50 = vsel %vm971_vm4, %v339_v49, 0.0  ;;  %v439_v51 = vld [vmem:[#allocation3 + $0x38] sm:$0xff]  ;;  %v513_v16 = vpop.permute.xlu0 %512 }
 0x11e   : > { %346 = vst.msk [vmem:[#allocation3 + $0x20] sm:$0xff] %vm317_vm3, %v344_v50  ;;  %465 = vmatpush.msra.mxu0 %v439_v51  ;;  %v434_v58 = vld [vmem:[#allocation3 + $0x10] sm:$0xff] }
 0x120   : > { %466 = vmatpush.msra.mxu0 %v438_v52 }
 0x122   : > { %467 = vmatpush.msra.mxu0 %v437_v53 }
 0x124   : > { %v421_v54 = vpop.permute.xlu1 %420 }
 0x125   : > { %v425_v55 = vsel %vm971_vm4, %v421_v54, 0.0  ;;  %v436_v56 = vld [vmem:[#allocation3 + $0x20] sm:$0xff] }
 0x126   : > { %427 = vst.msk [vmem:[#allocation3 + $0x88] sm:$0xff] %vm317_vm3, %v425_v55  ;;  %468 = vmatpush.msra.mxu0 %v436_v56 }
 0x128   : > { %469 = vmatpush.msra.mxu0 %v435_v57 }
 0x12a   : > { %470 = vmatpush.msra.mxu0 %v434_v58 }
 0x12c   : > { %471 = vmatpush.msra.mxu0 %v433_v59  ;;  %v508_v5 = vpop.permute.xlu1 %507 }
 0x12d   : > { %v449_v62 = vld [vmem:[#allocation3 + $0x88] sm:$0xff] }
 0x12e   : > { %472 = vmatpush.msra.mxu0 %v432_v61  ;;  %494 = vmatpush.msra.mxu1 %v449_v62 }
 0x12f   : > { %473 = vmatmul.f32.vlgmr.msra.gmra.mxu0 %v428_v60 }
 0x130   : > { %495 = vmatpush.msra.mxu1 %v448_v0 }
 0x131   : > { %827 = vmatmul.msk.f32.vlgmr.msra.gmra.mxu1 %vm450_vm5, %v429_v63 }
 0x134   : > { %v522_v11 = vpop.permute.xlu1 %521 }
 0x137   : > { %476 = vmatmul.f32.gmra.mxu0 %v430_v3 }
 0x139   : > { %828 = vmatmul.msk.f32.gmra.mxu1 %vm450_vm5, %v431_v4 }
 0x1ac   : > { %v474_v6 = vpop.f32.mrf.mxu0 }
 0x1ae   : > { %v497_v8 = vpop.f32.mrf.mxu1 }
 0x1af   : > { %v498_v9 = vadd.f32 %v497_v8, %v474_v6 }
 0x1b1   : > { %v515_v10 = vmul.f32 %v508_v5, %v498_v9 }
 0x1b3   : > { %v529_v12 = vadd.f32 %v522_v11, %v515_v10 }
 0x1b4   : > { %v477_v13 = vpop.f32.mrf.mxu0 }
 0x1b5   : > { %v531_v14 = vmax.f32 %v529_v12, 0.0 }
 0x1b6   : > { %v500_v15 = vpop.f32.mrf.mxu1 }
 0x1b7   : > { %535 = vrot.lane.b32.xlu0 %v531_v14, %s864_s30  ;;  %v501_v17 = vadd.f32 %v500_v15, %v477_v13  ;;  %v655_v13 = vld [vmem:[%s1134_s4] sm:$0xff] }
 0x1b9   : > { %v516_v20 = vmul.f32 %v513_v16, %v501_v17  ;;  %v657_v16 = vld [vmem:[%s1134_s4 + $0x10] sm:$0xff]  ;;  %v658_v17 = vld [vmem:[%s1134_s4 + $0x18] sm:$0xff] }
 0x1bb   : > { %v530_v21 = vadd.f32 %v527_v19, %v516_v20 }
 0x1bd   : > { %v532_v22 = vmax.f32 %v530_v21, 0.0 }
 0x1bf   : > { %537 = vrot.lane.b32.xlu2 %v532_v22, %s864_s30 }
 0x219   : > { %v538_v23 = vpop.permute.xlu2 %537 }
 0x21a   : > { %542 = vst.msk [vmem:[#allocation2 + $0x8] sm:$0xff] %vm292_vm1, %v538_v23 }
 0x221   : > { %v602_v24 = vld [vmem:[#allocation2 + $0x8] sm:$0xff] }
 0x222   : > { %v546_v25 = vsel %vm937_vm2, %v602_v24, 0.0 }
 0x223   : > { %548 = vst.msk [vmem:[#allocation3 + $0x8] sm:$0xff] %vm317_vm3, %v546_v25 }
 0x229   : > { %v536_v26 = vpop.permute.xlu0 %535 }
 0x22a   : > { %541 = vst.msk [vmem:[#allocation2] sm:$0xff] %vm292_vm1, %v536_v26  ;;  %v660_v12 = vld [vmem:[#allocation3 + $0x8] sm:$0xff] }
 0x231   : > { %v629_v27 = vld [vmem:[#allocation2] sm:$0xff] }
 0x232   : > { %633 = vrot.lane.b32.xlu2 %v629_v27, %s865_s8  ;;  %619 = vrot.lane.b32.xlu1 %v629_v27, %s866_s9  ;;  %v545_v28 = vsel %vm937_vm2, %v629_v27, 0.0 }
 0x233   : > { %605 = vrot.lane.b32.xlu0 %v629_v27, %s866_s9  ;;  %547 = vst.msk [vmem:[#allocation3] sm:$0xff] %vm317_vm3, %v545_v28 }
 0x23a   : > { %607 = vrot.lane.b32.xlu2 %v602_v24, %s866_s9  ;;  %635 = vrot.lane.b32.xlu1 %v602_v24, %s865_s8  ;;  %v659_v14 = vld [vmem:[#allocation3] sm:$0xff] }
 0x23b   : > { %621 = vrot.lane.b32.xlu0 %v602_v24, %s866_s9 }
 0x242   : > { %595 = vrot.lane.b32.xlu1 %v602_v24, %s867_s10  ;;  %593 = vrot.lane.b32.xlu2 %v629_v27, %s867_s10 }
 0x243   : > { %581 = vrot.lane.b32.xlu0 %v602_v24, %s868_s11 }
 0x24a   : > { %567 = vrot.lane.b32.xlu2 %v602_v24, %s868_s11  ;;  %579 = vrot.lane.b32.xlu1 %v629_v27, %s868_s11 }
 0x24b   : > { %565 = vrot.lane.b32.xlu0 %v629_v27, %s868_s11 }
 0x252   : > { %555 = vrot.lane.b32.xlu1 %v602_v24, %s869_s12  ;;  %553 = vrot.lane.b32.xlu2 %v629_v27, %s869_s12 }
 0x253   : > { %647 = vrot.lane.b32.xlu0 %v602_v24, %s870_s13 }
 0x25a   : > { %645 = vrot.lane.b32.xlu1 %v629_v27, %s870_s13  ;;  %733 = vperm.xlu2 %854, %v729_v29  }
 0x25b   : > { %738 = vperm.xlu0 %852, %v730_v30  }
 0x262   : > { %747 = vperm.xlu1 %853, %v743_v31   ;;  %752 = vperm.xlu2 %854, %v744_v32  }
 0x28c   : > { %v634_v33 = vpop.permute.xlu2 %633 }
 0x28d   : > { %639 = vst.msk [vmem:[#allocation3 + $0x70] sm:$0xff] %vm317_vm3, %v634_v33 }
 0x294   : > { %v608_v34 = vpop.permute.xlu2 %607  ;;  %v673_v51 = vld [vmem:[#allocation3 + $0x70] sm:$0xff] }
 0x295   : > { %v612_v35 = vsel %vm971_vm4, %v608_v34, 0.0 }
 0x296   : > { %614 = vst.msk [vmem:[#allocation3 + $0x58] sm:$0xff] %vm317_vm3, %v612_v35 }
 0x29c   : > { %v594_v36 = vpop.permute.xlu2 %593 }
 0x29d   : > { %599 = vst.msk [vmem:[#allocation3 + $0x40] sm:$0xff] %vm317_vm3, %v594_v36  ;;  %v670_v55 = vld [vmem:[#allocation3 + $0x58] sm:$0xff] }
 0x2a4   : > { %v620_v37 = vpop.permute.xlu1 %619  ;;  %v568_v38 = vpop.permute.xlu2 %567  ;;  %v667_v61 = vld [vmem:[#allocation3 + $0x40] sm:$0xff] }
 0x2a5   : > { %v625_v39 = vsel %vm937_vm2, %v620_v37, 0.0  ;;  %v606_v40 = vpop.permute.xlu0 %605  ;;  %v572_v41 = vsel %vm971_vm4, %v568_v38, 0.0 }
 0x2a6   : > { %627 = vst.msk [vmem:[#allocation3 + $0x60] sm:$0xff] %vm317_vm3, %v625_v39  ;;  %v611_v42 = vsel %vm971_vm4, %v606_v40, 0.0 }
 0x2a7   : > { %613 = vst.msk [vmem:[#allocation3 + $0x50] sm:$0xff] %vm317_vm3, %v611_v42 }
 0x2a8   : > { %574 = vst.msk [vmem:[#allocation3 + $0x28] sm:$0xff] %vm317_vm3, %v572_v41 }
 0x2ac   : > { %v636_v43 = vpop.permute.xlu1 %635  ;;  %v554_v44 = vpop.permute.xlu2 %553 }
 0x2ad   : > { %640 = vst.msk [vmem:[#allocation3 + $0x78] sm:$0xff] %vm317_vm3, %v636_v43  ;;  %v622_v45 = vpop.permute.xlu0 %621  ;;  %v671_v53 = vld [vmem:[#allocation3 + $0x60] sm:$0xff] }
 0x2ae   : > { %v626_v46 = vsel %vm937_vm2, %v622_v45, 0.0  ;;  %559 = vst.msk [vmem:[#allocation3 + $0x10] sm:$0xff] %vm317_vm3, %v554_v44  ;;  %v669_v59 = vld [vmem:[#allocation3 + $0x50] sm:$0xff] }
 0x2af   : > { %628 = vst.msk [vmem:[#allocation3 + $0x68] sm:$0xff] %vm317_vm3, %v626_v46  ;;  %v664_v4 = vld [vmem:[#allocation3 + $0x28] sm:$0xff] }
 0x2b4   : > { %v596_v47 = vpop.permute.xlu1 %595  ;;  %v674_v48 = vld [vmem:[#allocation3 + $0x78] sm:$0xff]  ;;  %v734_v22 = vpop.permute.xlu2 %733 }
 0x2b5   : > { %600 = vst.msk [vmem:[#allocation3 + $0x48] sm:$0xff] %vm317_vm3, %v596_v47  ;;  %v582_v49 = vpop.permute.xlu0 %581  ;;  %683 = vmatpush.msra.mxu2 %v674_v48  ;;  %v661_v11 = vld [vmem:[#allocation3 + $0x10] sm:$0xff] }
 0x2b6   : > { %v586_v50 = vsel %vm937_vm2, %v582_v49, 0.0  ;;  %v672_v52 = vld [vmem:[#allocation3 + $0x68] sm:$0xff] }
 0x2b7   : > { %588 = vst.msk [vmem:[#allocation3 + $0x38] sm:$0xff] %vm317_vm3, %v586_v50  ;;  %684 = vmatpush.msra.mxu2 %v673_v51 }
 0x2b9   : > { %685 = vmatpush.msra.mxu2 %v672_v52 }
 0x2bb   : > { %686 = vmatpush.msra.mxu2 %v671_v53 }
 0x2bc   : > { %v580_v54 = vpop.permute.xlu1 %579  ;;  %v668_v60 = vld [vmem:[#allocation3 + $0x48] sm:$0xff]  ;;  %v753_v33 = vpop.permute.xlu2 %752 }
 0x2bd   : > { %v585_v56 = vsel %vm937_vm2, %v580_v54, 0.0  ;;  %v566_v57 = vpop.permute.xlu0 %565  ;;  %687 = vmatpush.msra.mxu2 %v670_v55 }
 0x2be   : > { %587 = vst.msk [vmem:[#allocation3 + $0x30] sm:$0xff] %vm317_vm3, %v585_v56  ;;  %v571_v58 = vsel %vm971_vm4, %v566_v57, 0.0  ;;  %v666_v63 = vld [vmem:[#allocation3 + $0x38] sm:$0xff] }
 0x2bf   : > { %573 = vst.msk [vmem:[#allocation3 + $0x20] sm:$0xff] %vm317_vm3, %v571_v58  ;;  %688 = vmatpush.msra.mxu2 %v669_v59 }
 0x2c1   : > { %689 = vmatpush.msra.mxu2 %v668_v60 }
 0x2c3   : > { %690 = vmatpush.msra.mxu2 %v667_v61 }
 0x2c4   : > { %v556_v62 = vpop.permute.xlu1 %555 }
 0x2c5   : > { %560 = vst.msk [vmem:[#allocation3 + $0x18] sm:$0xff] %vm317_vm3, %v556_v62  ;;  %v648_v7 = vpop.permute.xlu0 %647  ;;  %691 = vmatpush.msra.mxu2 %v666_v63  ;;  %v665_v0 = vld [vmem:[#allocation3 + $0x30] sm:$0xff] }
 0x2c6   : > { %v652_v3 = vsel %vm971_vm4, %v648_v7, 0.0  ;;  %v663_v5 = vld [vmem:[#allocation3 + $0x20] sm:$0xff] }
 0x2c7   : > { %654 = vst.msk [vmem:[#allocation3 + $0x88] sm:$0xff] %vm317_vm3, %v652_v3  ;;  %692 = vmatpush.msra.mxu2 %v665_v0 }
 0x2c9   : > { %693 = vmatpush.msra.mxu2 %v664_v4 }
 0x2cb   : > { %694 = vmatpush.msra.mxu2 %v663_v5 }
 0x2cc   : > { %v646_v6 = vpop.permute.xlu1 %645  ;;  %v662_v8 = vld [vmem:[#allocation3 + $0x18] sm:$0xff] }
 0x2cd   : > { %v651_v9 = vsel %vm971_vm4, %v646_v6, 0.0  ;;  %695 = vmatpush.msra.mxu2 %v662_v8  ;;  %v739_v31 = vpop.permute.xlu0 %738 }
 0x2ce   : > { %653 = vst.msk [vmem:[#allocation3 + $0x80] sm:$0xff] %vm317_vm3, %v651_v9  ;;  %v676_v10 = vld [vmem:[#allocation3 + $0x88] sm:$0xff] }
 0x2cf   : > { %720 = vmatpush.msra.mxu3 %v676_v10  ;;  %696 = vmatpush.msra.mxu2 %v661_v11 }
 0x2d1   : > { %697 = vmatpush.msra.mxu2 %v660_v12 }
 0x2d3   : > { %698 = vmatpush.msra.mxu2 %v659_v14 }
 0x2d4   : > { %699 = vmatmul.f32.vlgmr.msra.gmra.mxu2 %v655_v13  ;;  %v748_v24 = vpop.permute.xlu1 %747 }
 0x2d5   : > { %v675_v15 = vld [vmem:[#allocation3 + $0x80] sm:$0xff] }
 0x2d6   : > { %721 = vmatpush.msra.mxu3 %v675_v15 }
 0x2d7   : > { %829 = vmatmul.msk.f32.vlgmr.msra.gmra.mxu3 %vm450_vm5, %v656_v18 }
 0x2dc   : > { %702 = vmatmul.f32.gmra.mxu2 %v657_v16 }
 0x2df   : > { %830 = vmatmul.msk.f32.gmra.mxu3 %vm450_vm5, %v658_v17 }
 0x357   : > { %v700_v19 = vpop.f32.mrf.mxu2 }
 0x35a   : > { %v723_v20 = vpop.f32.mrf.mxu3 }
 0x35b   : > { %v724_v21 = vadd.f32 %v723_v20, %v700_v19 }
 0x35d   : > { %v741_v23 = vmul.f32 %v734_v22, %v724_v21 }
 0x35f   : > { %v755_v25 = vadd.f32 %v748_v24, %v741_v23  ;;  %v703_v26 = vpop.f32.mrf.mxu2 }
 0x361   : > { %v757_v27 = vadd.f32 %v755_v25, %v932_v2 }
 0x362   : > { %v726_v28 = vpop.f32.mrf.mxu3 }
 0x363   : > { %v759_v29 = vmax.f32 %v757_v27, 0.0  ;;  %v727_v30 = vadd.f32 %v726_v28, %v703_v26 }
 0x365   : > { %761 = vst.msk [vmem:[%s278_s15] sm:$0xff] %vm317_vm3, %v759_v29  ;;  %v742_v32 = vmul.f32 %v739_v31, %v727_v30 }
 0x367   : > { %v756_v34 = vadd.f32 %v753_v33, %v742_v32 }
 0x369   : > { %v758_v35 = vadd.f32 %v756_v34, %v928_v1 }
 0x36b   : > { %v760_v36 = vmax.f32 %v758_v35, 0.0 }
 0x36d   : > { %762 = vst.msk [vmem:[%s278_s15 + $0x8] sm:$0xff] %vm317_vm3, %v760_v36 }
 0x36e PF: > { %s17_s24 = sadd.s32 1, %s861_s24  }
 0x36f   : > { %p14_p4 = scmp.ge.s32.totalorder %s17_s24, 4  }
 0x371   :  { %16 = sbr.rel (!%p14_p4) target bundleno = 1 (0x1), region = 78 }

</bundles_post_ra>
